<compile_context>
chip_gen: v6e
topology: v6e:2x2x1
jax: 0.10.0
libtpu: 0.0.40
codegen_flags: <defaults>
</compile_context>

<pallas_src>
import functools

import jax
import jax.numpy as jnp
import numpy as np
from jax import lax
from jax.experimental import pallas as pl
from jax.experimental.pallas import tpu as pltpu

EPS = float(jnp.finfo(jnp.float32).eps)           # torch.finfo(torch.float).eps
LOG_2PI_HALF = 0.5 * float(np.log(2.0 * np.pi))   # log(2*pi)/2

N_FIXED = 28            # number of non-GRU raw parameter arrays
N_PACKED_FIXED = 17     # packed fixed kernel weight inputs (incl. GRU-l0 phi_z part)


# ----------------------------------------------------------------------------- kernel
def _make_vrnn_kernel(x_dim, h_dim, z_dim, n_layers, T, B):
    n_w = N_PACKED_FIXED + 2 * (n_layers - 1)
    h2, h3 = 2 * h_dim, 3 * h_dim

    def kernel(*refs):
        x_ref, eps_ref, encpre_ref, gi0pre_ref = refs[:4]
        w = refs[4:4 + n_w]
        loss_ref, z_out_ref = refs[4 + n_w], refs[4 + n_w + 1]

        (w_phi_z, b_phi_z,
         enc_w2, enc_b2, enc_hw, enc_hb,
         prior_b, prior_hw, prior_hb,
         dec_w1a, dec_b1, dec_w2, dec_b2, dec_hw, dec_hb,
         w_hfused, w_ih0b) = w[:N_PACKED_FIXED]
        w_ih_rest = list(w[N_PACKED_FIXED:N_PACKED_FIXED + n_layers - 1])
        w_hh_rest = list(w[N_PACKED_FIXED + n_layers - 1:])

        relu = lambda a: jnp.maximum(a, 0.0)
        softplus = jax.nn.softplus
        sigmoid = jax.nn.sigmoid

        # Weights stay as refs; load at use sites so live ranges are short
        # across the fully-unrolled T loop (avoids >64-vreg spill pressure).
        def dot(a, b_ref):
            return jnp.dot(a, b_ref[...], preferred_element_type=jnp.float32)

        def step(t, carry):
            h, kld_acc, nll_acc, _ = carry
            x_t = x_ref[t]               # (B, x_dim)
            eps_t = eps_ref[t]           # (B, z_dim)
            enc_pre_t = encpre_ref[t]    # phi_x @ enc_w1[:h] + enc_b1  (precomputed)
            gi0_pre_t = gi0pre_ref[t]    # phi_x @ w_ih0[:h]            (precomputed)
            h_last = h[n_layers - 1]     # (B, h_dim)

            # All h_last-only matmuls as one MXU push:
            #   [enc_w1[h:] | prior_w | dec_w1[h:] | w_hh[last]]  -> (B, 6h)
            hfused = dot(h_last, w_hfused)

            # encoder
            enc_h = relu(enc_pre_t + hfused[:, :h_dim])
            enc_h = relu(dot(enc_h, enc_w2) + enc_b2[...])
            enc_head = dot(enc_h, enc_hw) + enc_hb[...]          # (B, 2*z_dim)
            enc_mean = enc_head[:, :z_dim]
            enc_std = softplus(enc_head[:, z_dim:])

            # prior
            prior_h = relu(hfused[:, h_dim:h2] + prior_b[...])
            prior_head = dot(prior_h, prior_hw) + prior_hb[...]  # (B, 2*z_dim)
            prior_mean = prior_head[:, :z_dim]
            prior_std = softplus(prior_head[:, z_dim:])

            # reparameterized sample (eps precomputed host-side) + phi_z
            z_t = eps_t * enc_std + enc_mean
            phi_z_t = relu(dot(z_t, w_phi_z) + b_phi_z[...])

            # decoder (h_last part already in hfused)
            dec_h = relu(dot(phi_z_t, dec_w1a) + hfused[:, h2:h3] + dec_b1[...])
            dec_h = relu(dot(dec_h, dec_w2) + dec_b2[...])
            dec_head = dot(dec_h, dec_hw) + dec_hb[...]          # (B, 2*x_dim)
            dec_mean = dec_head[:, :x_dim]
            dec_std = softplus(dec_head[:, x_dim:])

            # GRU (bias=False), fused r/z/n gate weights
            gh_last = hfused[:, h3:]     # last layer's hidden contribution (B, 3h)
            new_h = []
            layer_in = None
            for l in range(n_layers):
                h_l = h[l]
                if l == 0:
                    gi = gi0_pre_t + dot(phi_z_t, w_ih0b)
                else:
                    gi = dot(layer_in, w_ih_rest[l - 1])
                gh = gh_last if l == n_layers - 1 else dot(h_l, w_hh_rest[l])
                # r and z gates share a single sigmoid push (single EUP slot)
                rz = sigmoid(gi[:, :h2] + gh[:, :h2])
                r = rz[:, :h_dim]
                zg = rz[:, h_dim:]
                n = jnp.tanh(gi[:, h2:] + r * gh[:, h2:])
                h_new = (1.0 - zg) * n + zg * h_l
                new_h.append(h_new)
                layer_in = h_new

            # element-wise loss accumulation; cross-lane reduce only after loop
            kld_acc = kld_acc + (
                2.0 * jnp.log(prior_std + EPS) - 2.0 * jnp.log(enc_std + EPS)
                + (enc_std * enc_std + (enc_mean - prior_mean) ** 2)
                / (prior_std * prior_std) - 1.0)
            nll_acc = nll_acc + (jnp.log(dec_std + EPS) + LOG_2PI_HALF
                                 + (x_t - dec_mean) ** 2 / (2.0 * dec_std * dec_std))
            return tuple(new_h), kld_acc, nll_acc, z_t

        carry0 = (tuple(jnp.zeros((B, h_dim), jnp.float32) for _ in range(n_layers)),
                  jnp.zeros((B, z_dim), jnp.float32),
                  jnp.zeros((B, x_dim), jnp.float32),
                  jnp.zeros((B, z_dim), jnp.float32))
        _, kld_acc, nll_acc, z_last = lax.fori_loop(0, T, step, carry0, unroll=True)

        # kld and nll packed into one (1, 2) output block (single output DMA).
        kld_s = 0.5 * jnp.sum(kld_acc, keepdims=True)   # (1, 1)
        nll_s = jnp.sum(nll_acc, keepdims=True)         # (1, 1)
        lane = lax.broadcasted_iota(jnp.int32, (1, 2), 1)
        loss_ref[...] = jnp.where(lane == 0, kld_s, nll_s)
        z_out_ref[...] = z_last

    return kernel


# ----------------------------------------------------------------------------- packing (once per parameter set)
def prepare_params(params, *, h_dim, n_layers):
    """Fuse/pack raw parameters ONCE; the result is reused by every forward call."""
    w = params
    h = h_dim

    # GRU layer 0 fused input weight (2h, 3h) = [w_ir | w_iz | w_in]
    w_ih0 = jnp.concatenate([w[N_FIXED + 0], w[N_FIXED + 1], w[N_FIXED + 2]], axis=1)
    base_last = N_FIXED + 6 * (n_layers - 1)
    w_hh_last = jnp.concatenate(
        [w[base_last + 3], w[base_last + 4], w[base_last + 5]], axis=1)     # (h, 3h)

    enc_w1, prior_w, dec_w1 = w[6], w[14], w[20]

    # phi_x-dependent contributions hoisted off the recurrence (lane-dense N = 4h)
    pre_w = jnp.concatenate([enc_w1[:h, :], w_ih0[:h, :]], axis=1)          # (h, 4h)
    # all h_last-only matmuls fused into one (h, 6h) weight
    w_hfused = jnp.concatenate(
        [enc_w1[h:, :], prior_w, dec_w1[h:, :], w_hh_last], axis=1)         # (h, 6h)

    kernel_weights = [
        w[4], w[5],                                   # phi_z
        w[8], w[9],                                   # enc layer 2
        jnp.concatenate([w[10], w[12]], axis=1),      # enc  mean|std weight (h, 2z)
        jnp.concatenate([w[11], w[13]], axis=1),      # enc  mean|std bias   (1, 2z)
        w[15],                                        # prior bias
        jnp.concatenate([w[16], w[18]], axis=1),      # prior mean|std weight
        jnp.concatenate([w[17], w[19]], axis=1),      # prior mean|std bias
        dec_w1[:h, :], w[21],                         # dec layer 1 (phi_z part) + bias
        w[22], w[23],                                 # dec layer 2
        jnp.concatenate([w[24], w[26]], axis=1),      # dec  mean|std weight (h, 2x)
        jnp.concatenate([w[25], w[27]], axis=1),      # dec  mean|std bias   (1, 2x)
        w_hfused,                                     # (h, 6h)
        w_ih0[h:, :],                                 # GRU l0 input weight, phi_z rows (h, 3h)
    ]
    for l in range(1, n_layers):
        b = N_FIXED + 6 * l
        kernel_weights.append(jnp.concatenate([w[b + 0], w[b + 1], w[b + 2]], axis=1))
    for l in range(n_layers - 1):
        b = N_FIXED + 6 * l
        kernel_weights.append(jnp.concatenate([w[b + 3], w[b + 4], w[b + 5]], axis=1))

    return {
        "phi_x": (w[0], w[1], w[2], w[3]),
        "pre_w": pre_w,
        "enc_b1": w[7],
        "kernel_weights": tuple(kernel_weights),
    }


# ----------------------------------------------------------------------------- jitted wrapper
@functools.partial(jax.jit, static_argnames=("h_dim", "z_dim", "n_layers"))
def vrnn_forward(x, eps, packed, *, h_dim, z_dim, n_layers):
    T, B, x_dim = x.shape

    # phi_x has no recurrence dependence -> one big (T*B, .) matmul chain here,
    # plus the phi_x-dependent enc / GRU-layer-0 contributions (lane-dense N=4h).
    pw1, pb1, pw2, pb2 = packed["phi_x"]
    xf = x.reshape(T * B, x_dim)
    phi = jax.nn.relu(xf @ pw1 + pb1)
    phi_x = jax.nn.relu(phi @ pw2 + pb2)                     # (T*B, h)
    pre = phi_x @ packed["pre_w"]                            # (T*B, 4h)
    enc_pre = (pre[:, :h_dim] + packed["enc_b1"]).reshape(T, B, h_dim)
    gi0_pre = pre[:, h_dim:].reshape(T, B, 3 * h_dim)

    kernel = _make_vrnn_kernel(x_dim, h_dim, z_dim, n_layers, T, B)

    def full_spec(a):
        nd = a.ndim
        return pl.BlockSpec(a.shape, lambda i, _nd=nd: (0,) * _nd)

    inputs = [x, eps, enc_pre, gi0_pre] + list(packed["kernel_weights"])
    in_specs = [full_spec(a) for a in inputs]

    out_specs = (
        pl.BlockSpec((1, 2), lambda i: (0, 0)),
        pl.BlockSpec((B, z_dim), lambda i: (0, 0)),
    )
    out_shape = (
        jax.ShapeDtypeStruct((1, 2), jnp.float32),
        jax.ShapeDtypeStruct((B, z_dim), jnp.float32),
    )

    grid_spec = pltpu.PrefetchScalarGridSpec(
        num_scalar_prefetch=0,
        grid=(1,),                    # whole sequence in one grid step
        in_specs=in_specs,
        out_specs=out_specs,
    )

    loss, z_last = pl.pallas_call(
        kernel,
        grid_spec=grid_spec,
        out_shape=out_shape,
        compiler_params=pltpu.CompilerParams(
            dimension_semantics=("arbitrary",)),
    )(*inputs)
    return loss[0, 0], loss[0, 1], z_last


# ----------------------------------------------------------------------------- params
def init_params(key, x_dim, h_dim, z_dim, n_layers, stdv=0.1):
    shapes = [
        (x_dim, h_dim), (1, h_dim), (h_dim, h_dim), (1, h_dim),      # phi_x
        (z_dim, h_dim), (1, h_dim),                                  # phi_z
        (2 * h_dim, h_dim), (1, h_dim), (h_dim, h_dim), (1, h_dim),  # enc
        (h_dim, z_dim), (1, z_dim),                                  # enc_mean
        (h_dim, z_dim), (1, z_dim),                                  # enc_std
        (h_dim, h_dim), (1, h_dim),                                  # prior
        (h_dim, z_dim), (1, z_dim),                                  # prior_mean
        (h_dim, z_dim), (1, z_dim),                                  # prior_std
        (2 * h_dim, h_dim), (1, h_dim), (h_dim, h_dim), (1, h_dim),  # dec
        (h_dim, x_dim), (1, x_dim),                                  # dec_mean
        (h_dim, x_dim), (1, x_dim),                                  # dec_std
    ]
    for l in range(n_layers):
        in_l = 2 * h_dim if l == 0 else h_dim
        shapes += [(in_l, h_dim)] * 3 + [(h_dim, h_dim)] * 3          # GRU r/z/n gates
    keys = jax.random.split(key, len(shapes))
    return [stdv * jax.random.normal(k, s, dtype=jnp.float32) for k, s in zip(keys, shapes)]


# ----------------------------------------------------------------------------- pure-JAX reference
def vrnn_reference(x, eps, params, *, h_dim, z_dim, n_layers):
    T, B, x_dim = x.shape
    w = params
    relu = lambda a: jnp.maximum(a, 0.0)
    sp = jax.nn.softplus
    h = jnp.zeros((n_layers, B, h_dim), jnp.float32)
    kld = 0.0
    nll = 0.0
    z_t = None
    for t in range(T):
        x_t, eps_t, h_last = x[t], eps[t], h[-1]
        phi_x = relu(x_t @ w[0] + w[1]); phi_x = relu(phi_x @ w[2] + w[3])
        enc_in = jnp.concatenate([phi_x, h_last], axis=1)
        enc_h = relu(enc_in @ w[6] + w[7]); enc_h = relu(enc_h @ w[8] + w[9])
        enc_mean = enc_h @ w[10] + w[11]; enc_std = sp(enc_h @ w[12] + w[13])
        prior_h = relu(h_last @ w[14] + w[15])
        prior_mean = prior_h @ w[16] + w[17]; prior_std = sp(prior_h @ w[18] + w[19])
        z_t = eps_t * enc_std + enc_mean
        phi_z = relu(z_t @ w[4] + w[5])
        dec_in = jnp.concatenate([phi_z, h_last], axis=1)
        dec_h = relu(dec_in @ w[20] + w[21]); dec_h = relu(dec_h @ w[22] + w[23])
        dec_mean = dec_h @ w[24] + w[25]; dec_std = sp(dec_h @ w[26] + w[27])
        layer_in = jnp.concatenate([phi_x, phi_z], axis=1)
        new_h = []
        for l in range(n_layers):
            base = N_FIXED + 6 * l
            h_l = h[l]
            r = jax.nn.sigmoid(layer_in @ w[base + 0] + h_l @ w[base + 3])
            zg = jax.nn.sigmoid(layer_in @ w[base + 1] + h_l @ w[base + 4])
            n = jnp.tanh(layer_in @ w[base + 2] + r * (h_l @ w[base + 5]))
            h_new = (1.0 - zg) * n + zg * h_l
            new_h.append(h_new)
            layer_in = h_new
        h = jnp.stack(new_h)
        kld += 0.5 * jnp.sum(2 * jnp.log(prior_std + EPS) - 2 * jnp.log(enc_std + EPS)
                             + (enc_std ** 2 + (enc_mean - prior_mean) ** 2) / prior_std ** 2 - 1)
        nll += jnp.sum(jnp.log(dec_std + EPS) + LOG_2PI_HALF
                       + (x_t - dec_mean) ** 2 / (2 * dec_std ** 2))
    return kld, nll, z_t


# ----------------------------------------------------------------------------- main
if __name__ == "__main__":
    T, B = 8, 8
    x_dim, h_dim, z_dim, n_layers = 16, 32, 16, 2

    key = jax.random.PRNGKey(0)
    kx, ke, kp = jax.random.split(key, 3)
    x = jax.random.normal(kx, (T, B, x_dim), dtype=jnp.float32)
    # TODO(synk): torch's in-forward .normal_() RNG has no kernel equivalent; the
    # reparameterization noise is drawn deterministically host-side and passed in.
    eps = jax.random.normal(ke, (T, B, z_dim), dtype=jnp.float32)
    params = init_params(kp, x_dim, h_dim, z_dim, n_layers)

    # Pack/fuse weights once per parameter set (not per forward call).
    packed = prepare_params(params, h_dim=h_dim, n_layers=n_layers)
    packed = jax.block_until_ready(packed)

    kld, nll, z_last = vrnn_forward(x, eps, packed,
                                    h_dim=h_dim, z_dim=z_dim, n_layers=n_layers)
    jax.block_until_ready((kld, nll, z_last))

    kld_r, nll_r, z_r = vrnn_reference(x, eps, params,
                                       h_dim=h_dim, z_dim=z_dim, n_layers=n_layers)
    np.testing.assert_allclose(float(kld), float(kld_r), rtol=5e-3, atol=5e-3)
    np.testing.assert_allclose(float(nll), float(nll_r), rtol=5e-3, atol=5e-3)
    np.testing.assert_allclose(np.asarray(z_last), np.asarray(z_r), rtol=5e-3, atol=5e-3)

    print("KERNEL_OK")
</pallas_src>

<mosaic_0001>
module attributes {stable_mosaic.version = 11 : i64} {
  func.func @kernel(%arg0: i32, %arg1: memref<8x8x16xf32, #tpu.memory_space<vmem>>, %arg2: memref<8x8x16xf32, #tpu.memory_space<vmem>>, %arg3: memref<8x8x32xf32, #tpu.memory_space<vmem>>, %arg4: memref<8x8x96xf32, #tpu.memory_space<vmem>>, %arg5: memref<16x32xf32, #tpu.memory_space<vmem>>, %arg6: memref<1x32xf32, #tpu.memory_space<vmem>>, %arg7: memref<32x32xf32, #tpu.memory_space<vmem>>, %arg8: memref<1x32xf32, #tpu.memory_space<vmem>>, %arg9: memref<32x32xf32, #tpu.memory_space<vmem>>, %arg10: memref<1x32xf32, #tpu.memory_space<vmem>>, %arg11: memref<1x32xf32, #tpu.memory_space<vmem>>, %arg12: memref<32x32xf32, #tpu.memory_space<vmem>>, %arg13: memref<1x32xf32, #tpu.memory_space<vmem>>, %arg14: memref<32x32xf32, #tpu.memory_space<vmem>>, %arg15: memref<1x32xf32, #tpu.memory_space<vmem>>, %arg16: memref<32x32xf32, #tpu.memory_space<vmem>>, %arg17: memref<1x32xf32, #tpu.memory_space<vmem>>, %arg18: memref<32x32xf32, #tpu.memory_space<vmem>>, %arg19: memref<1x32xf32, #tpu.memory_space<vmem>>, %arg20: memref<32x192xf32, #tpu.memory_space<vmem>>, %arg21: memref<32x96xf32, #tpu.memory_space<vmem>>, %arg22: memref<32x96xf32, #tpu.memory_space<vmem>>, %arg23: memref<32x96xf32, #tpu.memory_space<vmem>>, %arg24: memref<1x2xf32, #tpu.memory_space<vmem>>, %arg25: memref<8x16xf32, #tpu.memory_space<vmem>>) attributes {dimension_semantics = [#tpu.dimension_semantics<arbitrary>], iteration_bounds = array<i64: 1>, scalar_prefetch = 0 : i64, scratch_operands = 0 : i64, tpu.core_type = #tpu.core_type<tc>, window_params = [{pipeline_mode = #tpu.pipeline_mode<synchronous>, transform_indices = @transform_0, window_bounds = array<i64: 8, 8, 16>}, {pipeline_mode = #tpu.pipeline_mode<synchronous>, transform_indices = @transform_1, window_bounds = array<i64: 8, 8, 16>}, {pipeline_mode = #tpu.pipeline_mode<synchronous>, transform_indices = @transform_2, window_bounds = array<i64: 8, 8, 32>}, {pipeline_mode = #tpu.pipeline_mode<synchronous>, transform_indices = @transform_3, window_bounds = array<i64: 8, 8, 96>}, {pipeline_mode = #tpu.pipeline_mode<synchronous>, transform_indices = @transform_4, window_bounds = array<i64: 16, 32>}, {pipeline_mode = #tpu.pipeline_mode<synchronous>, transform_indices = @transform_5, window_bounds = array<i64: 1, 32>}, {pipeline_mode = #tpu.pipeline_mode<synchronous>, transform_indices = @transform_6, window_bounds = array<i64: 32, 32>}, {pipeline_mode = #tpu.pipeline_mode<synchronous>, transform_indices = @transform_7, window_bounds = array<i64: 1, 32>}, {pipeline_mode = #tpu.pipeline_mode<synchronous>, transform_indices = @transform_8, window_bounds = array<i64: 32, 32>}, {pipeline_mode = #tpu.pipeline_mode<synchronous>, transform_indices = @transform_9, window_bounds = array<i64: 1, 32>}, {pipeline_mode = #tpu.pipeline_mode<synchronous>, transform_indices = @transform_10, window_bounds = array<i64: 1, 32>}, {pipeline_mode = #tpu.pipeline_mode<synchronous>, transform_indices = @transform_11, window_bounds = array<i64: 32, 32>}, {pipeline_mode = #tpu.pipeline_mode<synchronous>, transform_indices = @transform_12, window_bounds = array<i64: 1, 32>}, {pipeline_mode = #tpu.pipeline_mode<synchronous>, transform_indices = @transform_13, window_bounds = array<i64: 32, 32>}, {pipeline_mode = #tpu.pipeline_mode<synchronous>, transform_indices = @transform_14, window_bounds = array<i64: 1, 32>}, {pipeline_mode = #tpu.pipeline_mode<synchronous>, transform_indices = @transform_15, window_bounds = array<i64: 32, 32>}, {pipeline_mode = #tpu.pipeline_mode<synchronous>, transform_indices = @transform_16, window_bounds = array<i64: 1, 32>}, {pipeline_mode = #tpu.pipeline_mode<synchronous>, transform_indices = @transform_17, window_bounds = array<i64: 32, 32>}, {pipeline_mode = #tpu.pipeline_mode<synchronous>, transform_indices = @transform_18, window_bounds = array<i64: 1, 32>}, {pipeline_mode = #tpu.pipeline_mode<synchronous>, transform_indices = @transform_19, window_bounds = array<i64: 32, 192>}, {pipeline_mode = #tpu.pipeline_mode<synchronous>, transform_indices = @transform_20, window_bounds = array<i64: 32, 96>}, {pipeline_mode = #tpu.pipeline_mode<synchronous>, transform_indices = @transform_21, window_bounds = array<i64: 32, 96>}, {pipeline_mode = #tpu.pipeline_mode<synchronous>, transform_indices = @transform_22, window_bounds = array<i64: 32, 96>}, {pipeline_mode = #tpu.pipeline_mode<synchronous>, transform_indices = @transform_23, window_bounds = array<i64: 1, 2>}, {pipeline_mode = #tpu.pipeline_mode<synchronous>, transform_indices = @transform_24, window_bounds = array<i64: 8, 16>}]} {
    %cst = arith.constant 0.000000e+00 : f32
    %0 = vector.broadcast %cst : f32 to vector<8x32xf32>
    %cst_0 = arith.constant 0.000000e+00 : f32
    %1 = vector.broadcast %cst_0 : f32 to vector<8x32xf32>
    %cst_1 = arith.constant 0.000000e+00 : f32
    %2 = vector.broadcast %cst_1 : f32 to vector<8x16xf32>
    %cst_2 = arith.constant 0.000000e+00 : f32
    %3 = vector.broadcast %cst_2 : f32 to vector<8x16xf32>
    %cst_3 = arith.constant 0.000000e+00 : f32
    %4 = vector.broadcast %cst_3 : f32 to vector<8x16xf32>
    %c0_i32 = arith.constant 0 : i32
    %5 = arith.index_cast %c0_i32 : i32 to index
    %c0 = arith.constant 0 : index
    %c0_4 = arith.constant 0 : index
    %6 = vector.load %arg1[%5, %c0, %c0_4] : memref<8x8x16xf32, #tpu.memory_space<vmem>>, vector<1x8x16xf32>
    %7 = vector.shape_cast %6 : vector<1x8x16xf32> to vector<8x16xf32>
    %8 = arith.index_cast %c0_i32 : i32 to index
    %c0_5 = arith.constant 0 : index
    %c0_6 = arith.constant 0 : index
    %9 = vector.load %arg2[%8, %c0_5, %c0_6] : memref<8x8x16xf32, #tpu.memory_space<vmem>>, vector<1x8x16xf32>
    %10 = vector.shape_cast %9 : vector<1x8x16xf32> to vector<8x16xf32>
    %11 = arith.index_cast %c0_i32 : i32 to index
    %c0_7 = arith.constant 0 : index
    %c0_8 = arith.constant 0 : index
    %12 = vector.load %arg3[%11, %c0_7, %c0_8] : memref<8x8x32xf32, #tpu.memory_space<vmem>>, vector<1x8x32xf32>
    %13 = vector.shape_cast %12 : vector<1x8x32xf32> to vector<8x32xf32>
    %14 = arith.index_cast %c0_i32 : i32 to index
    %c0_9 = arith.constant 0 : index
    %c0_10 = arith.constant 0 : index
    %15 = vector.load %arg4[%14, %c0_9, %c0_10] : memref<8x8x96xf32, #tpu.memory_space<vmem>>, vector<1x8x96xf32>
    %16 = vector.shape_cast %15 : vector<1x8x96xf32> to vector<8x96xf32>
    %c0_11 = arith.constant 0 : index
    %c0_12 = arith.constant 0 : index
    %17 = vector.load %arg20[%c0_11, %c0_12] : memref<32x192xf32, #tpu.memory_space<vmem>>, vector<32x192xf32>
    %cst_13 = arith.constant dense<0.000000e+00> : vector<8x192xf32>
    %18 = tpu.matmul %1, %17, %cst_13 {dimension_numbers = #tpu.dot_dimension_numbers<[1], [0], [0], [1], [0, 0, 1, 1], [], []>} : vector<8x32xf32>, vector<32x192xf32>, vector<8x192xf32> -> vector<8x192xf32>
    %19 = vector.extract_strided_slice %18 {offsets = [0, 0], sizes = [8, 32], strides = [1, 1]} : vector<8x192xf32> to vector<8x32xf32>
    %20 = arith.addf %13, %19 : vector<8x32xf32>
    %cst_14 = arith.constant 0.000000e+00 : f32
    %21 = vector.broadcast %cst_14 : f32 to vector<8x32xf32>
    %22 = arith.maximumf %20, %21 : vector<8x32xf32>
    %c0_15 = arith.constant 0 : index
    %c0_16 = arith.constant 0 : index
    %23 = vector.load %arg7[%c0_15, %c0_16] : memref<32x32xf32, #tpu.memory_space<vmem>>, vector<32x32xf32>
    %cst_17 = arith.constant dense<0.000000e+00> : vector<8x32xf32>
    %24 = tpu.matmul %22, %23, %cst_17 {dimension_numbers = #tpu.dot_dimension_numbers<[1], [0], [0], [1], [0, 0, 1, 1], [], []>} : vector<8x32xf32>, vector<32x32xf32>, vector<8x32xf32> -> vector<8x32xf32>
    %c0_18 = arith.constant 0 : index
    %c0_19 = arith.constant 0 : index
    %25 = vector.load %arg8[%c0_18, %c0_19] : memref<1x32xf32, #tpu.memory_space<vmem>>, vector<1x32xf32>
    %26 = vector.broadcast %25 : vector<1x32xf32> to vector<8x32xf32>
    %27 = arith.addf %24, %26 : vector<8x32xf32>
    %cst_20 = arith.constant 0.000000e+00 : f32
    %28 = vector.broadcast %cst_20 : f32 to vector<8x32xf32>
    %29 = arith.maximumf %27, %28 : vector<8x32xf32>
    %c0_21 = arith.constant 0 : index
    %c0_22 = arith.constant 0 : index
    %30 = vector.load %arg9[%c0_21, %c0_22] : memref<32x32xf32, #tpu.memory_space<vmem>>, vector<32x32xf32>
    %cst_23 = arith.constant dense<0.000000e+00> : vector<8x32xf32>
    %31 = tpu.matmul %29, %30, %cst_23 {dimension_numbers = #tpu.dot_dimension_numbers<[1], [0], [0], [1], [0, 0, 1, 1], [], []>} : vector<8x32xf32>, vector<32x32xf32>, vector<8x32xf32> -> vector<8x32xf32>
    %c0_24 = arith.constant 0 : index
    %c0_25 = arith.constant 0 : index
    %32 = vector.load %arg10[%c0_24, %c0_25] : memref<1x32xf32, #tpu.memory_space<vmem>>, vector<1x32xf32>
    %33 = vector.broadcast %32 : vector<1x32xf32> to vector<8x32xf32>
    %34 = arith.addf %31, %33 : vector<8x32xf32>
    %35 = vector.extract_strided_slice %34 {offsets = [0, 0], sizes = [8, 16], strides = [1, 1]} : vector<8x32xf32> to vector<8x16xf32>
    %36 = vector.extract_strided_slice %34 {offsets = [0, 16], sizes = [8, 16], strides = [1, 1]} : vector<8x32xf32> to vector<8x16xf32>
    %cst_26 = arith.constant 0.000000e+00 : f32
    %37 = vector.broadcast %cst_26 : f32 to vector<8x16xf32>
    %38 = arith.maximumf %36, %37 : vector<8x16xf32>
    %39 = vector.broadcast %cst_26 : f32 to vector<8x16xf32>
    %40 = arith.subf %36, %39 : vector<8x16xf32>
    %41 = arith.cmpf one, %40, %40 : vector<8x16xf32>
    %42 = vector.broadcast %cst_26 : f32 to vector<8x16xf32>
    %43 = arith.addf %36, %42 : vector<8x16xf32>
    %44 = math.absf %40 : vector<8x16xf32>
    %cst_27 = arith.constant 0.000000e+00 : f32
    %45 = vector.broadcast %cst_27 : f32 to vector<8x16xf32>
    %46 = arith.subf %45, %44 : vector<8x16xf32>
    %47 = math.exp %46 : vector<8x16xf32>
    %48 = math.log1p %47 : vector<8x16xf32>
    %49 = arith.addf %38, %48 : vector<8x16xf32>
    %50 = arith.select %41, %43, %49 : vector<8x16xi1>, vector<8x16xf32>
    %51 = vector.extract_strided_slice %18 {offsets = [0, 32], sizes = [8, 32], strides = [1, 1]} : vector<8x192xf32> to vector<8x32xf32>
    %c0_28 = arith.constant 0 : index
    %c0_29 = arith.constant 0 : index
    %52 = vector.load %arg11[%c0_28, %c0_29] : memref<1x32xf32, #tpu.memory_space<vmem>>, vector<1x32xf32>
    %53 = vector.broadcast %52 : vector<1x32xf32> to vector<8x32xf32>
    %54 = arith.addf %51, %53 : vector<8x32xf32>
    %cst_30 = arith.constant 0.000000e+00 : f32
    %55 = vector.broadcast %cst_30 : f32 to vector<8x32xf32>
    %56 = arith.maximumf %54, %55 : vector<8x32xf32>
    %c0_31 = arith.constant 0 : index
    %c0_32 = arith.constant 0 : index
    %57 = vector.load %arg12[%c0_31, %c0_32] : memref<32x32xf32, #tpu.memory_space<vmem>>, vector<32x32xf32>
    %cst_33 = arith.constant dense<0.000000e+00> : vector<8x32xf32>
    %58 = tpu.matmul %56, %57, %cst_33 {dimension_numbers = #tpu.dot_dimension_numbers<[1], [0], [0], [1], [0, 0, 1, 1], [], []>} : vector<8x32xf32>, vector<32x32xf32>, vector<8x32xf32> -> vector<8x32xf32>
    %c0_34 = arith.constant 0 : index
    %c0_35 = arith.constant 0 : index
    %59 = vector.load %arg13[%c0_34, %c0_35] : memref<1x32xf32, #tpu.memory_space<vmem>>, vector<1x32xf32>
    %60 = vector.broadcast %59 : vector<1x32xf32> to vector<8x32xf32>
    %61 = arith.addf %58, %60 : vector<8x32xf32>
    %62 = vector.extract_strided_slice %61 {offsets = [0, 0], sizes = [8, 16], strides = [1, 1]} : vector<8x32xf32> to vector<8x16xf32>
    %63 = vector.extract_strided_slice %61 {offsets = [0, 16], sizes = [8, 16], strides = [1, 1]} : vector<8x32xf32> to vector<8x16xf32>
    %cst_36 = arith.constant 0.000000e+00 : f32
    %64 = vector.broadcast %cst_36 : f32 to vector<8x16xf32>
    %65 = arith.maximumf %63, %64 : vector<8x16xf32>
    %66 = vector.broadcast %cst_36 : f32 to vector<8x16xf32>
    %67 = arith.subf %63, %66 : vector<8x16xf32>
    %68 = arith.cmpf one, %67, %67 : vector<8x16xf32>
    %69 = vector.broadcast %cst_36 : f32 to vector<8x16xf32>
    %70 = arith.addf %63, %69 : vector<8x16xf32>
    %71 = math.absf %67 : vector<8x16xf32>
    %cst_37 = arith.constant 0.000000e+00 : f32
    %72 = vector.broadcast %cst_37 : f32 to vector<8x16xf32>
    %73 = arith.subf %72, %71 : vector<8x16xf32>
    %74 = math.exp %73 : vector<8x16xf32>
    %75 = math.log1p %74 : vector<8x16xf32>
    %76 = arith.addf %65, %75 : vector<8x16xf32>
    %77 = arith.select %68, %70, %76 : vector<8x16xi1>, vector<8x16xf32>
    %78 = arith.mulf %10, %50 : vector<8x16xf32>
    %79 = arith.addf %78, %35 : vector<8x16xf32>
    %c0_38 = arith.constant 0 : index
    %c0_39 = arith.constant 0 : index
    %80 = vector.load %arg5[%c0_38, %c0_39] : memref<16x32xf32, #tpu.memory_space<vmem>>, vector<16x32xf32>
    %cst_40 = arith.constant dense<0.000000e+00> : vector<8x32xf32>
    %81 = tpu.matmul %79, %80, %cst_40 {dimension_numbers = #tpu.dot_dimension_numbers<[1], [0], [0], [1], [0, 0, 1, 1], [], []>} : vector<8x16xf32>, vector<16x32xf32>, vector<8x32xf32> -> vector<8x32xf32>
    %c0_41 = arith.constant 0 : index
    %c0_42 = arith.constant 0 : index
    %82 = vector.load %arg6[%c0_41, %c0_42] : memref<1x32xf32, #tpu.memory_space<vmem>>, vector<1x32xf32>
    %83 = vector.broadcast %82 : vector<1x32xf32> to vector<8x32xf32>
    %84 = arith.addf %81, %83 : vector<8x32xf32>
    %cst_43 = arith.constant 0.000000e+00 : f32
    %85 = vector.broadcast %cst_43 : f32 to vector<8x32xf32>
    %86 = arith.maximumf %84, %85 : vector<8x32xf32>
    %c0_44 = arith.constant 0 : index
    %c0_45 = arith.constant 0 : index
    %87 = vector.load %arg14[%c0_44, %c0_45] : memref<32x32xf32, #tpu.memory_space<vmem>>, vector<32x32xf32>
    %cst_46 = arith.constant dense<0.000000e+00> : vector<8x32xf32>
    %88 = tpu.matmul %86, %87, %cst_46 {dimension_numbers = #tpu.dot_dimension_numbers<[1], [0], [0], [1], [0, 0, 1, 1], [], []>} : vector<8x32xf32>, vector<32x32xf32>, vector<8x32xf32> -> vector<8x32xf32>
    %89 = vector.extract_strided_slice %18 {offsets = [0, 64], sizes = [8, 32], strides = [1, 1]} : vector<8x192xf32> to vector<8x32xf32>
    %90 = arith.addf %88, %89 : vector<8x32xf32>
    %c0_47 = arith.constant 0 : index
    %c0_48 = arith.constant 0 : index
    %91 = vector.load %arg15[%c0_47, %c0_48] : memref<1x32xf32, #tpu.memory_space<vmem>>, vector<1x32xf32>
    %92 = vector.broadcast %91 : vector<1x32xf32> to vector<8x32xf32>
    %93 = arith.addf %90, %92 : vector<8x32xf32>
    %cst_49 = arith.constant 0.000000e+00 : f32
    %94 = vector.broadcast %cst_49 : f32 to vector<8x32xf32>
    %95 = arith.maximumf %93, %94 : vector<8x32xf32>
    %c0_50 = arith.constant 0 : index
    %c0_51 = arith.constant 0 : index
    %96 = vector.load %arg16[%c0_50, %c0_51] : memref<32x32xf32, #tpu.memory_space<vmem>>, vector<32x32xf32>
    %cst_52 = arith.constant dense<0.000000e+00> : vector<8x32xf32>
    %97 = tpu.matmul %95, %96, %cst_52 {dimension_numbers = #tpu.dot_dimension_numbers<[1], [0], [0], [1], [0, 0, 1, 1], [], []>} : vector<8x32xf32>, vector<32x32xf32>, vector<8x32xf32> -> vector<8x32xf32>
    %c0_53 = arith.constant 0 : index
    %c0_54 = arith.constant 0 : index
    %98 = vector.load %arg17[%c0_53, %c0_54] : memref<1x32xf32, #tpu.memory_space<vmem>>, vector<1x32xf32>
    %99 = vector.broadcast %98 : vector<1x32xf32> to vector<8x32xf32>
    %100 = arith.addf %97, %99 : vector<8x32xf32>
    %cst_55 = arith.constant 0.000000e+00 : f32
    %101 = vector.broadcast %cst_55 : f32 to vector<8x32xf32>
    %102 = arith.maximumf %100, %101 : vector<8x32xf32>
    %c0_56 = arith.constant 0 : index
    %c0_57 = arith.constant 0 : index
    %103 = vector.load %arg18[%c0_56, %c0_57] : memref<32x32xf32, #tpu.memory_space<vmem>>, vector<32x32xf32>
    %cst_58 = arith.constant dense<0.000000e+00> : vector<8x32xf32>
    %104 = tpu.matmul %102, %103, %cst_58 {dimension_numbers = #tpu.dot_dimension_numbers<[1], [0], [0], [1], [0, 0, 1, 1], [], []>} : vector<8x32xf32>, vector<32x32xf32>, vector<8x32xf32> -> vector<8x32xf32>
    %c0_59 = arith.constant 0 : index
    %c0_60 = arith.constant 0 : index
    %105 = vector.load %arg19[%c0_59, %c0_60] : memref<1x32xf32, #tpu.memory_space<vmem>>, vector<1x32xf32>
    %106 = vector.broadcast %105 : vector<1x32xf32> to vector<8x32xf32>
    %107 = arith.addf %104, %106 : vector<8x32xf32>
    %108 = vector.extract_strided_slice %107 {offsets = [0, 0], sizes = [8, 16], strides = [1, 1]} : vector<8x32xf32> to vector<8x16xf32>
    %109 = vector.extract_strided_slice %107 {offsets = [0, 16], sizes = [8, 16], strides = [1, 1]} : vector<8x32xf32> to vector<8x16xf32>
    %cst_61 = arith.constant 0.000000e+00 : f32
    %110 = vector.broadcast %cst_61 : f32 to vector<8x16xf32>
    %111 = arith.maximumf %109, %110 : vector<8x16xf32>
    %112 = vector.broadcast %cst_61 : f32 to vector<8x16xf32>
    %113 = arith.subf %109, %112 : vector<8x16xf32>
    %114 = arith.cmpf one, %113, %113 : vector<8x16xf32>
    %115 = vector.broadcast %cst_61 : f32 to vector<8x16xf32>
    %116 = arith.addf %109, %115 : vector<8x16xf32>
    %117 = math.absf %113 : vector<8x16xf32>
    %cst_62 = arith.constant 0.000000e+00 : f32
    %118 = vector.broadcast %cst_62 : f32 to vector<8x16xf32>
    %119 = arith.subf %118, %117 : vector<8x16xf32>
    %120 = math.exp %119 : vector<8x16xf32>
    %121 = math.log1p %120 : vector<8x16xf32>
    %122 = arith.addf %111, %121 : vector<8x16xf32>
    %123 = arith.select %114, %116, %122 : vector<8x16xi1>, vector<8x16xf32>
    %124 = vector.extract_strided_slice %18 {offsets = [0, 96], sizes = [8, 96], strides = [1, 1]} : vector<8x192xf32> to vector<8x96xf32>
    %c0_63 = arith.constant 0 : index
    %c0_64 = arith.constant 0 : index
    %125 = vector.load %arg21[%c0_63, %c0_64] : memref<32x96xf32, #tpu.memory_space<vmem>>, vector<32x96xf32>
    %cst_65 = arith.constant dense<0.000000e+00> : vector<8x96xf32>
    %126 = tpu.matmul %86, %125, %cst_65 {dimension_numbers = #tpu.dot_dimension_numbers<[1], [0], [0], [1], [0, 0, 1, 1], [], []>} : vector<8x32xf32>, vector<32x96xf32>, vector<8x96xf32> -> vector<8x96xf32>
    %127 = arith.addf %16, %126 : vector<8x96xf32>
    %c0_66 = arith.constant 0 : index
    %c0_67 = arith.constant 0 : index
    %128 = vector.load %arg23[%c0_66, %c0_67] : memref<32x96xf32, #tpu.memory_space<vmem>>, vector<32x96xf32>
    %cst_68 = arith.constant dense<0.000000e+00> : vector<8x96xf32>
    %129 = tpu.matmul %0, %128, %cst_68 {dimension_numbers = #tpu.dot_dimension_numbers<[1], [0], [0], [1], [0, 0, 1, 1], [], []>} : vector<8x32xf32>, vector<32x96xf32>, vector<8x96xf32> -> vector<8x96xf32>
    %130 = vector.extract_strided_slice %127 {offsets = [0, 0], sizes = [8, 64], strides = [1, 1]} : vector<8x96xf32> to vector<8x64xf32>
    %131 = vector.extract_strided_slice %129 {offsets = [0, 0], sizes = [8, 64], strides = [1, 1]} : vector<8x96xf32> to vector<8x64xf32>
    %132 = arith.addf %130, %131 : vector<8x64xf32>
    %133 = arith.negf %132 : vector<8x64xf32>
    %134 = math.exp %133 : vector<8x64xf32>
    %cst_69 = arith.constant 1.000000e+00 : f32
    %135 = vector.broadcast %cst_69 : f32 to vector<8x64xf32>
    %136 = arith.addf %135, %134 : vector<8x64xf32>
    %137 = arith.divf %135, %136 : vector<8x64xf32>
    %138 = vector.extract_strided_slice %137 {offsets = [0, 0], sizes = [8, 32], strides = [1, 1]} : vector<8x64xf32> to vector<8x32xf32>
    %139 = vector.extract_strided_slice %137 {offsets = [0, 32], sizes = [8, 32], strides = [1, 1]} : vector<8x64xf32> to vector<8x32xf32>
    %140 = vector.extract_strided_slice %127 {offsets = [0, 64], sizes = [8, 32], strides = [1, 1]} : vector<8x96xf32> to vector<8x32xf32>
    %141 = vector.extract_strided_slice %129 {offsets = [0, 64], sizes = [8, 32], strides = [1, 1]} : vector<8x96xf32> to vector<8x32xf32>
    %142 = arith.mulf %138, %141 : vector<8x32xf32>
    %143 = arith.addf %140, %142 : vector<8x32xf32>
    %144 = math.tanh %143 : vector<8x32xf32>
    %cst_70 = arith.constant 1.000000e+00 : f32
    %145 = vector.broadcast %cst_70 : f32 to vector<8x32xf32>
    %146 = arith.subf %145, %139 : vector<8x32xf32>
    %147 = arith.mulf %146, %144 : vector<8x32xf32>
    %148 = arith.mulf %139, %0 : vector<8x32xf32>
    %149 = arith.addf %147, %148 : vector<8x32xf32>
    %c0_71 = arith.constant 0 : index
    %c0_72 = arith.constant 0 : index
    %150 = vector.load %arg22[%c0_71, %c0_72] : memref<32x96xf32, #tpu.memory_space<vmem>>, vector<32x96xf32>
    %cst_73 = arith.constant dense<0.000000e+00> : vector<8x96xf32>
    %151 = tpu.matmul %149, %150, %cst_73 {dimension_numbers = #tpu.dot_dimension_numbers<[1], [0], [0], [1], [0, 0, 1, 1], [], []>} : vector<8x32xf32>, vector<32x96xf32>, vector<8x96xf32> -> vector<8x96xf32>
    %152 = vector.extract_strided_slice %151 {offsets = [0, 0], sizes = [8, 64], strides = [1, 1]} : vector<8x96xf32> to vector<8x64xf32>
    %153 = vector.extract_strided_slice %124 {offsets = [0, 0], sizes = [8, 64], strides = [1, 1]} : vector<8x96xf32> to vector<8x64xf32>
    %154 = arith.addf %152, %153 : vector<8x64xf32>
    %155 = arith.negf %154 : vector<8x64xf32>
    %156 = math.exp %155 : vector<8x64xf32>
    %cst_74 = arith.constant 1.000000e+00 : f32
    %157 = vector.broadcast %cst_74 : f32 to vector<8x64xf32>
    %158 = arith.addf %157, %156 : vector<8x64xf32>
    %159 = arith.divf %157, %158 : vector<8x64xf32>
    %160 = vector.extract_strided_slice %159 {offsets = [0, 0], sizes = [8, 32], strides = [1, 1]} : vector<8x64xf32> to vector<8x32xf32>
    %161 = vector.extract_strided_slice %159 {offsets = [0, 32], sizes = [8, 32], strides = [1, 1]} : vector<8x64xf32> to vector<8x32xf32>
    %162 = vector.extract_strided_slice %151 {offsets = [0, 64], sizes = [8, 32], strides = [1, 1]} : vector<8x96xf32> to vector<8x32xf32>
    %163 = vector.extract_strided_slice %124 {offsets = [0, 64], sizes = [8, 32], strides = [1, 1]} : vector<8x96xf32> to vector<8x32xf32>
    %164 = arith.mulf %160, %163 : vector<8x32xf32>
    %165 = arith.addf %162, %164 : vector<8x32xf32>
    %166 = math.tanh %165 : vector<8x32xf32>
    %cst_75 = arith.constant 1.000000e+00 : f32
    %167 = vector.broadcast %cst_75 : f32 to vector<8x32xf32>
    %168 = arith.subf %167, %161 : vector<8x32xf32>
    %169 = arith.mulf %168, %166 : vector<8x32xf32>
    %170 = arith.mulf %161, %1 : vector<8x32xf32>
    %171 = arith.addf %169, %170 : vector<8x32xf32>
    %cst_76 = arith.constant 1.1920929E-7 : f32
    %172 = vector.broadcast %cst_76 : f32 to vector<8x16xf32>
    %173 = arith.addf %77, %172 : vector<8x16xf32>
    %174 = math.log %173 : vector<8x16xf32>
    %cst_77 = arith.constant 2.000000e+00 : f32
    %175 = vector.broadcast %cst_77 : f32 to vector<8x16xf32>
    %176 = arith.mulf %175, %174 : vector<8x16xf32>
    %cst_78 = arith.constant 1.1920929E-7 : f32
    %177 = vector.broadcast %cst_78 : f32 to vector<8x16xf32>
    %178 = arith.addf %50, %177 : vector<8x16xf32>
    %179 = math.log %178 : vector<8x16xf32>
    %cst_79 = arith.constant 2.000000e+00 : f32
    %180 = vector.broadcast %cst_79 : f32 to vector<8x16xf32>
    %181 = arith.mulf %180, %179 : vector<8x16xf32>
    %182 = arith.subf %176, %181 : vector<8x16xf32>
    %183 = arith.mulf %50, %50 : vector<8x16xf32>
    %184 = arith.subf %35, %62 : vector<8x16xf32>
    %185 = arith.mulf %184, %184 : vector<8x16xf32>
    %186 = arith.addf %183, %185 : vector<8x16xf32>
    %187 = arith.mulf %77, %77 : vector<8x16xf32>
    %188 = arith.divf %186, %187 : vector<8x16xf32>
    %189 = arith.addf %182, %188 : vector<8x16xf32>
    %cst_80 = arith.constant 1.000000e+00 : f32
    %190 = vector.broadcast %cst_80 : f32 to vector<8x16xf32>
    %191 = arith.subf %189, %190 : vector<8x16xf32>
    %192 = arith.addf %2, %191 : vector<8x16xf32>
    %cst_81 = arith.constant 1.1920929E-7 : f32
    %193 = vector.broadcast %cst_81 : f32 to vector<8x16xf32>
    %194 = arith.addf %123, %193 : vector<8x16xf32>
    %195 = math.log %194 : vector<8x16xf32>
    %cst_82 = arith.constant 0.918938517 : f32
    %196 = vector.broadcast %cst_82 : f32 to vector<8x16xf32>
    %197 = arith.addf %195, %196 : vector<8x16xf32>
    %198 = arith.subf %7, %108 : vector<8x16xf32>
    %199 = arith.mulf %198, %198 : vector<8x16xf32>
    %cst_83 = arith.constant 2.000000e+00 : f32
    %200 = vector.broadcast %cst_83 : f32 to vector<8x16xf32>
    %201 = arith.mulf %200, %123 : vector<8x16xf32>
    %202 = arith.mulf %201, %123 : vector<8x16xf32>
    %203 = arith.divf %199, %202 : vector<8x16xf32>
    %204 = arith.addf %197, %203 : vector<8x16xf32>
    %205 = arith.addf %3, %204 : vector<8x16xf32>
    %c1_i32 = arith.constant 1 : i32
    %206 = arith.index_cast %c1_i32 : i32 to index
    %c0_84 = arith.constant 0 : index
    %c0_85 = arith.constant 0 : index
    %207 = vector.load %arg1[%206, %c0_84, %c0_85] : memref<8x8x16xf32, #tpu.memory_space<vmem>>, vector<1x8x16xf32>
    %208 = vector.shape_cast %207 : vector<1x8x16xf32> to vector<8x16xf32>
    %209 = arith.index_cast %c1_i32 : i32 to index
    %c0_86 = arith.constant 0 : index
    %c0_87 = arith.constant 0 : index
    %210 = vector.load %arg2[%209, %c0_86, %c0_87] : memref<8x8x16xf32, #tpu.memory_space<vmem>>, vector<1x8x16xf32>
    %211 = vector.shape_cast %210 : vector<1x8x16xf32> to vector<8x16xf32>
    %212 = arith.index_cast %c1_i32 : i32 to index
    %c0_88 = arith.constant 0 : index
    %c0_89 = arith.constant 0 : index
    %213 = vector.load %arg3[%212, %c0_88, %c0_89] : memref<8x8x32xf32, #tpu.memory_space<vmem>>, vector<1x8x32xf32>
    %214 = vector.shape_cast %213 : vector<1x8x32xf32> to vector<8x32xf32>
    %215 = arith.index_cast %c1_i32 : i32 to index
    %c0_90 = arith.constant 0 : index
    %c0_91 = arith.constant 0 : index
    %216 = vector.load %arg4[%215, %c0_90, %c0_91] : memref<8x8x96xf32, #tpu.memory_space<vmem>>, vector<1x8x96xf32>
    %217 = vector.shape_cast %216 : vector<1x8x96xf32> to vector<8x96xf32>
    %c0_92 = arith.constant 0 : index
    %c0_93 = arith.constant 0 : index
    %218 = vector.load %arg20[%c0_92, %c0_93] : memref<32x192xf32, #tpu.memory_space<vmem>>, vector<32x192xf32>
    %cst_94 = arith.constant dense<0.000000e+00> : vector<8x192xf32>
    %219 = tpu.matmul %171, %218, %cst_94 {dimension_numbers = #tpu.dot_dimension_numbers<[1], [0], [0], [1], [0, 0, 1, 1], [], []>} : vector<8x32xf32>, vector<32x192xf32>, vector<8x192xf32> -> vector<8x192xf32>
    %220 = vector.extract_strided_slice %219 {offsets = [0, 0], sizes = [8, 32], strides = [1, 1]} : vector<8x192xf32> to vector<8x32xf32>
    %221 = arith.addf %214, %220 : vector<8x32xf32>
    %cst_95 = arith.constant 0.000000e+00 : f32
    %222 = vector.broadcast %cst_95 : f32 to vector<8x32xf32>
    %223 = arith.maximumf %221, %222 : vector<8x32xf32>
    %c0_96 = arith.constant 0 : index
    %c0_97 = arith.constant 0 : index
    %224 = vector.load %arg7[%c0_96, %c0_97] : memref<32x32xf32, #tpu.memory_space<vmem>>, vector<32x32xf32>
    %cst_98 = arith.constant dense<0.000000e+00> : vector<8x32xf32>
    %225 = tpu.matmul %223, %224, %cst_98 {dimension_numbers = #tpu.dot_dimension_numbers<[1], [0], [0], [1], [0, 0, 1, 1], [], []>} : vector<8x32xf32>, vector<32x32xf32>, vector<8x32xf32> -> vector<8x32xf32>
    %c0_99 = arith.constant 0 : index
    %c0_100 = arith.constant 0 : index
    %226 = vector.load %arg8[%c0_99, %c0_100] : memref<1x32xf32, #tpu.memory_space<vmem>>, vector<1x32xf32>
    %227 = vector.broadcast %226 : vector<1x32xf32> to vector<8x32xf32>
    %228 = arith.addf %225, %227 : vector<8x32xf32>
    %cst_101 = arith.constant 0.000000e+00 : f32
    %229 = vector.broadcast %cst_101 : f32 to vector<8x32xf32>
    %230 = arith.maximumf %228, %229 : vector<8x32xf32>
    %c0_102 = arith.constant 0 : index
    %c0_103 = arith.constant 0 : index
    %231 = vector.load %arg9[%c0_102, %c0_103] : memref<32x32xf32, #tpu.memory_space<vmem>>, vector<32x32xf32>
    %cst_104 = arith.constant dense<0.000000e+00> : vector<8x32xf32>
    %232 = tpu.matmul %230, %231, %cst_104 {dimension_numbers = #tpu.dot_dimension_numbers<[1], [0], [0], [1], [0, 0, 1, 1], [], []>} : vector<8x32xf32>, vector<32x32xf32>, vector<8x32xf32> -> vector<8x32xf32>
    %c0_105 = arith.constant 0 : index
    %c0_106 = arith.constant 0 : index
    %233 = vector.load %arg10[%c0_105, %c0_106] : memref<1x32xf32, #tpu.memory_space<vmem>>, vector<1x32xf32>
    %234 = vector.broadcast %233 : vector<1x32xf32> to vector<8x32xf32>
    %235 = arith.addf %232, %234 : vector<8x32xf32>
    %236 = vector.extract_strided_slice %235 {offsets = [0, 0], sizes = [8, 16], strides = [1, 1]} : vector<8x32xf32> to vector<8x16xf32>
    %237 = vector.extract_strided_slice %235 {offsets = [0, 16], sizes = [8, 16], strides = [1, 1]} : vector<8x32xf32> to vector<8x16xf32>
    %cst_107 = arith.constant 0.000000e+00 : f32
    %238 = vector.broadcast %cst_107 : f32 to vector<8x16xf32>
    %239 = arith.maximumf %237, %238 : vector<8x16xf32>
    %240 = vector.broadcast %cst_107 : f32 to vector<8x16xf32>
    %241 = arith.subf %237, %240 : vector<8x16xf32>
    %242 = arith.cmpf one, %241, %241 : vector<8x16xf32>
    %243 = vector.broadcast %cst_107 : f32 to vector<8x16xf32>
    %244 = arith.addf %237, %243 : vector<8x16xf32>
    %245 = math.absf %241 : vector<8x16xf32>
    %cst_108 = arith.constant 0.000000e+00 : f32
    %246 = vector.broadcast %cst_108 : f32 to vector<8x16xf32>
    %247 = arith.subf %246, %245 : vector<8x16xf32>
    %248 = math.exp %247 : vector<8x16xf32>
    %249 = math.log1p %248 : vector<8x16xf32>
    %250 = arith.addf %239, %249 : vector<8x16xf32>
    %251 = arith.select %242, %244, %250 : vector<8x16xi1>, vector<8x16xf32>
    %252 = vector.extract_strided_slice %219 {offsets = [0, 32], sizes = [8, 32], strides = [1, 1]} : vector<8x192xf32> to vector<8x32xf32>
    %c0_109 = arith.constant 0 : index
    %c0_110 = arith.constant 0 : index
    %253 = vector.load %arg11[%c0_109, %c0_110] : memref<1x32xf32, #tpu.memory_space<vmem>>, vector<1x32xf32>
    %254 = vector.broadcast %253 : vector<1x32xf32> to vector<8x32xf32>
    %255 = arith.addf %252, %254 : vector<8x32xf32>
    %cst_111 = arith.constant 0.000000e+00 : f32
    %256 = vector.broadcast %cst_111 : f32 to vector<8x32xf32>
    %257 = arith.maximumf %255, %256 : vector<8x32xf32>
    %c0_112 = arith.constant 0 : index
    %c0_113 = arith.constant 0 : index
    %258 = vector.load %arg12[%c0_112, %c0_113] : memref<32x32xf32, #tpu.memory_space<vmem>>, vector<32x32xf32>
    %cst_114 = arith.constant dense<0.000000e+00> : vector<8x32xf32>
    %259 = tpu.matmul %257, %258, %cst_114 {dimension_numbers = #tpu.dot_dimension_numbers<[1], [0], [0], [1], [0, 0, 1, 1], [], []>} : vector<8x32xf32>, vector<32x32xf32>, vector<8x32xf32> -> vector<8x32xf32>
    %c0_115 = arith.constant 0 : index
    %c0_116 = arith.constant 0 : index
    %260 = vector.load %arg13[%c0_115, %c0_116] : memref<1x32xf32, #tpu.memory_space<vmem>>, vector<1x32xf32>
    %261 = vector.broadcast %260 : vector<1x32xf32> to vector<8x32xf32>
    %262 = arith.addf %259, %261 : vector<8x32xf32>
    %263 = vector.extract_strided_slice %262 {offsets = [0, 0], sizes = [8, 16], strides = [1, 1]} : vector<8x32xf32> to vector<8x16xf32>
    %264 = vector.extract_strided_slice %262 {offsets = [0, 16], sizes = [8, 16], strides = [1, 1]} : vector<8x32xf32> to vector<8x16xf32>
    %cst_117 = arith.constant 0.000000e+00 : f32
    %265 = vector.broadcast %cst_117 : f32 to vector<8x16xf32>
    %266 = arith.maximumf %264, %265 : vector<8x16xf32>
    %267 = vector.broadcast %cst_117 : f32 to vector<8x16xf32>
    %268 = arith.subf %264, %267 : vector<8x16xf32>
    %269 = arith.cmpf one, %268, %268 : vector<8x16xf32>
    %270 = vector.broadcast %cst_117 : f32 to vector<8x16xf32>
    %271 = arith.addf %264, %270 : vector<8x16xf32>
    %272 = math.absf %268 : vector<8x16xf32>
    %cst_118 = arith.constant 0.000000e+00 : f32
    %273 = vector.broadcast %cst_118 : f32 to vector<8x16xf32>
    %274 = arith.subf %273, %272 : vector<8x16xf32>
    %275 = math.exp %274 : vector<8x16xf32>
    %276 = math.log1p %275 : vector<8x16xf32>
    %277 = arith.addf %266, %276 : vector<8x16xf32>
    %278 = arith.select %269, %271, %277 : vector<8x16xi1>, vector<8x16xf32>
    %279 = arith.mulf %211, %251 : vector<8x16xf32>
    %280 = arith.addf %279, %236 : vector<8x16xf32>
    %c0_119 = arith.constant 0 : index
    %c0_120 = arith.constant 0 : index
    %281 = vector.load %arg5[%c0_119, %c0_120] : memref<16x32xf32, #tpu.memory_space<vmem>>, vector<16x32xf32>
    %cst_121 = arith.constant dense<0.000000e+00> : vector<8x32xf32>
    %282 = tpu.matmul %280, %281, %cst_121 {dimension_numbers = #tpu.dot_dimension_numbers<[1], [0], [0], [1], [0, 0, 1, 1], [], []>} : vector<8x16xf32>, vector<16x32xf32>, vector<8x32xf32> -> vector<8x32xf32>
    %c0_122 = arith.constant 0 : index
    %c0_123 = arith.constant 0 : index
    %283 = vector.load %arg6[%c0_122, %c0_123] : memref<1x32xf32, #tpu.memory_space<vmem>>, vector<1x32xf32>
    %284 = vector.broadcast %283 : vector<1x32xf32> to vector<8x32xf32>
    %285 = arith.addf %282, %284 : vector<8x32xf32>
    %cst_124 = arith.constant 0.000000e+00 : f32
    %286 = vector.broadcast %cst_124 : f32 to vector<8x32xf32>
    %287 = arith.maximumf %285, %286 : vector<8x32xf32>
    %c0_125 = arith.constant 0 : index
    %c0_126 = arith.constant 0 : index
    %288 = vector.load %arg14[%c0_125, %c0_126] : memref<32x32xf32, #tpu.memory_space<vmem>>, vector<32x32xf32>
    %cst_127 = arith.constant dense<0.000000e+00> : vector<8x32xf32>
    %289 = tpu.matmul %287, %288, %cst_127 {dimension_numbers = #tpu.dot_dimension_numbers<[1], [0], [0], [1], [0, 0, 1, 1], [], []>} : vector<8x32xf32>, vector<32x32xf32>, vector<8x32xf32> -> vector<8x32xf32>
    %290 = vector.extract_strided_slice %219 {offsets = [0, 64], sizes = [8, 32], strides = [1, 1]} : vector<8x192xf32> to vector<8x32xf32>
    %291 = arith.addf %289, %290 : vector<8x32xf32>
    %c0_128 = arith.constant 0 : index
    %c0_129 = arith.constant 0 : index
    %292 = vector.load %arg15[%c0_128, %c0_129] : memref<1x32xf32, #tpu.memory_space<vmem>>, vector<1x32xf32>
    %293 = vector.broadcast %292 : vector<1x32xf32> to vector<8x32xf32>
    %294 = arith.addf %291, %293 : vector<8x32xf32>
    %cst_130 = arith.constant 0.000000e+00 : f32
    %295 = vector.broadcast %cst_130 : f32 to vector<8x32xf32>
    %296 = arith.maximumf %294, %295 : vector<8x32xf32>
    %c0_131 = arith.constant 0 : index
    %c0_132 = arith.constant 0 : index
    %297 = vector.load %arg16[%c0_131, %c0_132] : memref<32x32xf32, #tpu.memory_space<vmem>>, vector<32x32xf32>
    %cst_133 = arith.constant dense<0.000000e+00> : vector<8x32xf32>
    %298 = tpu.matmul %296, %297, %cst_133 {dimension_numbers = #tpu.dot_dimension_numbers<[1], [0], [0], [1], [0, 0, 1, 1], [], []>} : vector<8x32xf32>, vector<32x32xf32>, vector<8x32xf32> -> vector<8x32xf32>
    %c0_134 = arith.constant 0 : index
    %c0_135 = arith.constant 0 : index
    %299 = vector.load %arg17[%c0_134, %c0_135] : memref<1x32xf32, #tpu.memory_space<vmem>>, vector<1x32xf32>
    %300 = vector.broadcast %299 : vector<1x32xf32> to vector<8x32xf32>
    %301 = arith.addf %298, %300 : vector<8x32xf32>
    %cst_136 = arith.constant 0.000000e+00 : f32
    %302 = vector.broadcast %cst_136 : f32 to vector<8x32xf32>
    %303 = arith.maximumf %301, %302 : vector<8x32xf32>
    %c0_137 = arith.constant 0 : index
    %c0_138 = arith.constant 0 : index
    %304 = vector.load %arg18[%c0_137, %c0_138] : memref<32x32xf32, #tpu.memory_space<vmem>>, vector<32x32xf32>
    %cst_139 = arith.constant dense<0.000000e+00> : vector<8x32xf32>
    %305 = tpu.matmul %303, %304, %cst_139 {dimension_numbers = #tpu.dot_dimension_numbers<[1], [0], [0], [1], [0, 0, 1, 1], [], []>} : vector<8x32xf32>, vector<32x32xf32>, vector<8x32xf32> -> vector<8x32xf32>
    %c0_140 = arith.constant 0 : index
    %c0_141 = arith.constant 0 : index
    %306 = vector.load %arg19[%c0_140, %c0_141] : memref<1x32xf32, #tpu.memory_space<vmem>>, vector<1x32xf32>
    %307 = vector.broadcast %306 : vector<1x32xf32> to vector<8x32xf32>
    %308 = arith.addf %305, %307 : vector<8x32xf32>
    %309 = vector.extract_strided_slice %308 {offsets = [0, 0], sizes = [8, 16], strides = [1, 1]} : vector<8x32xf32> to vector<8x16xf32>
    %310 = vector.extract_strided_slice %308 {offsets = [0, 16], sizes = [8, 16], strides = [1, 1]} : vector<8x32xf32> to vector<8x16xf32>
    %cst_142 = arith.constant 0.000000e+00 : f32
    %311 = vector.broadcast %cst_142 : f32 to vector<8x16xf32>
    %312 = arith.maximumf %310, %311 : vector<8x16xf32>
    %313 = vector.broadcast %cst_142 : f32 to vector<8x16xf32>
    %314 = arith.subf %310, %313 : vector<8x16xf32>
    %315 = arith.cmpf one, %314, %314 : vector<8x16xf32>
    %316 = vector.broadcast %cst_142 : f32 to vector<8x16xf32>
    %317 = arith.addf %310, %316 : vector<8x16xf32>
    %318 = math.absf %314 : vector<8x16xf32>
    %cst_143 = arith.constant 0.000000e+00 : f32
    %319 = vector.broadcast %cst_143 : f32 to vector<8x16xf32>
    %320 = arith.subf %319, %318 : vector<8x16xf32>
    %321 = math.exp %320 : vector<8x16xf32>
    %322 = math.log1p %321 : vector<8x16xf32>
    %323 = arith.addf %312, %322 : vector<8x16xf32>
    %324 = arith.select %315, %317, %323 : vector<8x16xi1>, vector<8x16xf32>
    %325 = vector.extract_strided_slice %219 {offsets = [0, 96], sizes = [8, 96], strides = [1, 1]} : vector<8x192xf32> to vector<8x96xf32>
    %c0_144 = arith.constant 0 : index
    %c0_145 = arith.constant 0 : index
    %326 = vector.load %arg21[%c0_144, %c0_145] : memref<32x96xf32, #tpu.memory_space<vmem>>, vector<32x96xf32>
    %cst_146 = arith.constant dense<0.000000e+00> : vector<8x96xf32>
    %327 = tpu.matmul %287, %326, %cst_146 {dimension_numbers = #tpu.dot_dimension_numbers<[1], [0], [0], [1], [0, 0, 1, 1], [], []>} : vector<8x32xf32>, vector<32x96xf32>, vector<8x96xf32> -> vector<8x96xf32>
    %328 = arith.addf %217, %327 : vector<8x96xf32>
    %c0_147 = arith.constant 0 : index
    %c0_148 = arith.constant 0 : index
    %329 = vector.load %arg23[%c0_147, %c0_148] : memref<32x96xf32, #tpu.memory_space<vmem>>, vector<32x96xf32>
    %cst_149 = arith.constant dense<0.000000e+00> : vector<8x96xf32>
    %330 = tpu.matmul %149, %329, %cst_149 {dimension_numbers = #tpu.dot_dimension_numbers<[1], [0], [0], [1], [0, 0, 1, 1], [], []>} : vector<8x32xf32>, vector<32x96xf32>, vector<8x96xf32> -> vector<8x96xf32>
    %331 = vector.extract_strided_slice %328 {offsets = [0, 0], sizes = [8, 64], strides = [1, 1]} : vector<8x96xf32> to vector<8x64xf32>
    %332 = vector.extract_strided_slice %330 {offsets = [0, 0], sizes = [8, 64], strides = [1, 1]} : vector<8x96xf32> to vector<8x64xf32>
    %333 = arith.addf %331, %332 : vector<8x64xf32>
    %334 = arith.negf %333 : vector<8x64xf32>
    %335 = math.exp %334 : vector<8x64xf32>
    %cst_150 = arith.constant 1.000000e+00 : f32
    %336 = vector.broadcast %cst_150 : f32 to vector<8x64xf32>
    %337 = arith.addf %336, %335 : vector<8x64xf32>
    %338 = arith.divf %336, %337 : vector<8x64xf32>
    %339 = vector.extract_strided_slice %338 {offsets = [0, 0], sizes = [8, 32], strides = [1, 1]} : vector<8x64xf32> to vector<8x32xf32>
    %340 = vector.extract_strided_slice %338 {offsets = [0, 32], sizes = [8, 32], strides = [1, 1]} : vector<8x64xf32> to vector<8x32xf32>
    %341 = vector.extract_strided_slice %328 {offsets = [0, 64], sizes = [8, 32], strides = [1, 1]} : vector<8x96xf32> to vector<8x32xf32>
    %342 = vector.extract_strided_slice %330 {offsets = [0, 64], sizes = [8, 32], strides = [1, 1]} : vector<8x96xf32> to vector<8x32xf32>
    %343 = arith.mulf %339, %342 : vector<8x32xf32>
    %344 = arith.addf %341, %343 : vector<8x32xf32>
    %345 = math.tanh %344 : vector<8x32xf32>
    %cst_151 = arith.constant 1.000000e+00 : f32
    %346 = vector.broadcast %cst_151 : f32 to vector<8x32xf32>
    %347 = arith.subf %346, %340 : vector<8x32xf32>
    %348 = arith.mulf %347, %345 : vector<8x32xf32>
    %349 = arith.mulf %340, %149 : vector<8x32xf32>
    %350 = arith.addf %348, %349 : vector<8x32xf32>
    %c0_152 = arith.constant 0 : index
    %c0_153 = arith.constant 0 : index
    %351 = vector.load %arg22[%c0_152, %c0_153] : memref<32x96xf32, #tpu.memory_space<vmem>>, vector<32x96xf32>
    %cst_154 = arith.constant dense<0.000000e+00> : vector<8x96xf32>
    %352 = tpu.matmul %350, %351, %cst_154 {dimension_numbers = #tpu.dot_dimension_numbers<[1], [0], [0], [1], [0, 0, 1, 1], [], []>} : vector<8x32xf32>, vector<32x96xf32>, vector<8x96xf32> -> vector<8x96xf32>
    %353 = vector.extract_strided_slice %352 {offsets = [0, 0], sizes = [8, 64], strides = [1, 1]} : vector<8x96xf32> to vector<8x64xf32>
    %354 = vector.extract_strided_slice %325 {offsets = [0, 0], sizes = [8, 64], strides = [1, 1]} : vector<8x96xf32> to vector<8x64xf32>
    %355 = arith.addf %353, %354 : vector<8x64xf32>
    %356 = arith.negf %355 : vector<8x64xf32>
    %357 = math.exp %356 : vector<8x64xf32>
    %cst_155 = arith.constant 1.000000e+00 : f32
    %358 = vector.broadcast %cst_155 : f32 to vector<8x64xf32>
    %359 = arith.addf %358, %357 : vector<8x64xf32>
    %360 = arith.divf %358, %359 : vector<8x64xf32>
    %361 = vector.extract_strided_slice %360 {offsets = [0, 0], sizes = [8, 32], strides = [1, 1]} : vector<8x64xf32> to vector<8x32xf32>
    %362 = vector.extract_strided_slice %360 {offsets = [0, 32], sizes = [8, 32], strides = [1, 1]} : vector<8x64xf32> to vector<8x32xf32>
    %363 = vector.extract_strided_slice %352 {offsets = [0, 64], sizes = [8, 32], strides = [1, 1]} : vector<8x96xf32> to vector<8x32xf32>
    %364 = vector.extract_strided_slice %325 {offsets = [0, 64], sizes = [8, 32], strides = [1, 1]} : vector<8x96xf32> to vector<8x32xf32>
    %365 = arith.mulf %361, %364 : vector<8x32xf32>
    %366 = arith.addf %363, %365 : vector<8x32xf32>
    %367 = math.tanh %366 : vector<8x32xf32>
    %cst_156 = arith.constant 1.000000e+00 : f32
    %368 = vector.broadcast %cst_156 : f32 to vector<8x32xf32>
    %369 = arith.subf %368, %362 : vector<8x32xf32>
    %370 = arith.mulf %369, %367 : vector<8x32xf32>
    %371 = arith.mulf %362, %171 : vector<8x32xf32>
    %372 = arith.addf %370, %371 : vector<8x32xf32>
    %cst_157 = arith.constant 1.1920929E-7 : f32
    %373 = vector.broadcast %cst_157 : f32 to vector<8x16xf32>
    %374 = arith.addf %278, %373 : vector<8x16xf32>
    %375 = math.log %374 : vector<8x16xf32>
    %cst_158 = arith.constant 2.000000e+00 : f32
    %376 = vector.broadcast %cst_158 : f32 to vector<8x16xf32>
    %377 = arith.mulf %376, %375 : vector<8x16xf32>
    %cst_159 = arith.constant 1.1920929E-7 : f32
    %378 = vector.broadcast %cst_159 : f32 to vector<8x16xf32>
    %379 = arith.addf %251, %378 : vector<8x16xf32>
    %380 = math.log %379 : vector<8x16xf32>
    %cst_160 = arith.constant 2.000000e+00 : f32
    %381 = vector.broadcast %cst_160 : f32 to vector<8x16xf32>
    %382 = arith.mulf %381, %380 : vector<8x16xf32>
    %383 = arith.subf %377, %382 : vector<8x16xf32>
    %384 = arith.mulf %251, %251 : vector<8x16xf32>
    %385 = arith.subf %236, %263 : vector<8x16xf32>
    %386 = arith.mulf %385, %385 : vector<8x16xf32>
    %387 = arith.addf %384, %386 : vector<8x16xf32>
    %388 = arith.mulf %278, %278 : vector<8x16xf32>
    %389 = arith.divf %387, %388 : vector<8x16xf32>
    %390 = arith.addf %383, %389 : vector<8x16xf32>
    %cst_161 = arith.constant 1.000000e+00 : f32
    %391 = vector.broadcast %cst_161 : f32 to vector<8x16xf32>
    %392 = arith.subf %390, %391 : vector<8x16xf32>
    %393 = arith.addf %192, %392 : vector<8x16xf32>
    %cst_162 = arith.constant 1.1920929E-7 : f32
    %394 = vector.broadcast %cst_162 : f32 to vector<8x16xf32>
    %395 = arith.addf %324, %394 : vector<8x16xf32>
    %396 = math.log %395 : vector<8x16xf32>
    %cst_163 = arith.constant 0.918938517 : f32
    %397 = vector.broadcast %cst_163 : f32 to vector<8x16xf32>
    %398 = arith.addf %396, %397 : vector<8x16xf32>
    %399 = arith.subf %208, %309 : vector<8x16xf32>
    %400 = arith.mulf %399, %399 : vector<8x16xf32>
    %cst_164 = arith.constant 2.000000e+00 : f32
    %401 = vector.broadcast %cst_164 : f32 to vector<8x16xf32>
    %402 = arith.mulf %401, %324 : vector<8x16xf32>
    %403 = arith.mulf %402, %324 : vector<8x16xf32>
    %404 = arith.divf %400, %403 : vector<8x16xf32>
    %405 = arith.addf %398, %404 : vector<8x16xf32>
    %406 = arith.addf %205, %405 : vector<8x16xf32>
    %c2_i32 = arith.constant 2 : i32
    %407 = arith.index_cast %c2_i32 : i32 to index
    %c0_165 = arith.constant 0 : index
    %c0_166 = arith.constant 0 : index
    %408 = vector.load %arg1[%407, %c0_165, %c0_166] : memref<8x8x16xf32, #tpu.memory_space<vmem>>, vector<1x8x16xf32>
    %409 = vector.shape_cast %408 : vector<1x8x16xf32> to vector<8x16xf32>
    %410 = arith.index_cast %c2_i32 : i32 to index
    %c0_167 = arith.constant 0 : index
    %c0_168 = arith.constant 0 : index
    %411 = vector.load %arg2[%410, %c0_167, %c0_168] : memref<8x8x16xf32, #tpu.memory_space<vmem>>, vector<1x8x16xf32>
    %412 = vector.shape_cast %411 : vector<1x8x16xf32> to vector<8x16xf32>
    %413 = arith.index_cast %c2_i32 : i32 to index
    %c0_169 = arith.constant 0 : index
    %c0_170 = arith.constant 0 : index
    %414 = vector.load %arg3[%413, %c0_169, %c0_170] : memref<8x8x32xf32, #tpu.memory_space<vmem>>, vector<1x8x32xf32>
    %415 = vector.shape_cast %414 : vector<1x8x32xf32> to vector<8x32xf32>
    %416 = arith.index_cast %c2_i32 : i32 to index
    %c0_171 = arith.constant 0 : index
    %c0_172 = arith.constant 0 : index
    %417 = vector.load %arg4[%416, %c0_171, %c0_172] : memref<8x8x96xf32, #tpu.memory_space<vmem>>, vector<1x8x96xf32>
    %418 = vector.shape_cast %417 : vector<1x8x96xf32> to vector<8x96xf32>
    %c0_173 = arith.constant 0 : index
    %c0_174 = arith.constant 0 : index
    %419 = vector.load %arg20[%c0_173, %c0_174] : memref<32x192xf32, #tpu.memory_space<vmem>>, vector<32x192xf32>
    %cst_175 = arith.constant dense<0.000000e+00> : vector<8x192xf32>
    %420 = tpu.matmul %372, %419, %cst_175 {dimension_numbers = #tpu.dot_dimension_numbers<[1], [0], [0], [1], [0, 0, 1, 1], [], []>} : vector<8x32xf32>, vector<32x192xf32>, vector<8x192xf32> -> vector<8x192xf32>
    %421 = vector.extract_strided_slice %420 {offsets = [0, 0], sizes = [8, 32], strides = [1, 1]} : vector<8x192xf32> to vector<8x32xf32>
    %422 = arith.addf %415, %421 : vector<8x32xf32>
    %cst_176 = arith.constant 0.000000e+00 : f32
    %423 = vector.broadcast %cst_176 : f32 to vector<8x32xf32>
    %424 = arith.maximumf %422, %423 : vector<8x32xf32>
    %c0_177 = arith.constant 0 : index
    %c0_178 = arith.constant 0 : index
    %425 = vector.load %arg7[%c0_177, %c0_178] : memref<32x32xf32, #tpu.memory_space<vmem>>, vector<32x32xf32>
    %cst_179 = arith.constant dense<0.000000e+00> : vector<8x32xf32>
    %426 = tpu.matmul %424, %425, %cst_179 {dimension_numbers = #tpu.dot_dimension_numbers<[1], [0], [0], [1], [0, 0, 1, 1], [], []>} : vector<8x32xf32>, vector<32x32xf32>, vector<8x32xf32> -> vector<8x32xf32>
    %c0_180 = arith.constant 0 : index
    %c0_181 = arith.constant 0 : index
    %427 = vector.load %arg8[%c0_180, %c0_181] : memref<1x32xf32, #tpu.memory_space<vmem>>, vector<1x32xf32>
    %428 = vector.broadcast %427 : vector<1x32xf32> to vector<8x32xf32>
    %429 = arith.addf %426, %428 : vector<8x32xf32>
    %cst_182 = arith.constant 0.000000e+00 : f32
    %430 = vector.broadcast %cst_182 : f32 to vector<8x32xf32>
    %431 = arith.maximumf %429, %430 : vector<8x32xf32>
    %c0_183 = arith.constant 0 : index
    %c0_184 = arith.constant 0 : index
    %432 = vector.load %arg9[%c0_183, %c0_184] : memref<32x32xf32, #tpu.memory_space<vmem>>, vector<32x32xf32>
    %cst_185 = arith.constant dense<0.000000e+00> : vector<8x32xf32>
    %433 = tpu.matmul %431, %432, %cst_185 {dimension_numbers = #tpu.dot_dimension_numbers<[1], [0], [0], [1], [0, 0, 1, 1], [], []>} : vector<8x32xf32>, vector<32x32xf32>, vector<8x32xf32> -> vector<8x32xf32>
    %c0_186 = arith.constant 0 : index
    %c0_187 = arith.constant 0 : index
    %434 = vector.load %arg10[%c0_186, %c0_187] : memref<1x32xf32, #tpu.memory_space<vmem>>, vector<1x32xf32>
    %435 = vector.broadcast %434 : vector<1x32xf32> to vector<8x32xf32>
    %436 = arith.addf %433, %435 : vector<8x32xf32>
    %437 = vector.extract_strided_slice %436 {offsets = [0, 0], sizes = [8, 16], strides = [1, 1]} : vector<8x32xf32> to vector<8x16xf32>
    %438 = vector.extract_strided_slice %436 {offsets = [0, 16], sizes = [8, 16], strides = [1, 1]} : vector<8x32xf32> to vector<8x16xf32>
    %cst_188 = arith.constant 0.000000e+00 : f32
    %439 = vector.broadcast %cst_188 : f32 to vector<8x16xf32>
    %440 = arith.maximumf %438, %439 : vector<8x16xf32>
    %441 = vector.broadcast %cst_188 : f32 to vector<8x16xf32>
    %442 = arith.subf %438, %441 : vector<8x16xf32>
    %443 = arith.cmpf one, %442, %442 : vector<8x16xf32>
    %444 = vector.broadcast %cst_188 : f32 to vector<8x16xf32>
    %445 = arith.addf %438, %444 : vector<8x16xf32>
    %446 = math.absf %442 : vector<8x16xf32>
    %cst_189 = arith.constant 0.000000e+00 : f32
    %447 = vector.broadcast %cst_189 : f32 to vector<8x16xf32>
    %448 = arith.subf %447, %446 : vector<8x16xf32>
    %449 = math.exp %448 : vector<8x16xf32>
    %450 = math.log1p %449 : vector<8x16xf32>
    %451 = arith.addf %440, %450 : vector<8x16xf32>
    %452 = arith.select %443, %445, %451 : vector<8x16xi1>, vector<8x16xf32>
    %453 = vector.extract_strided_slice %420 {offsets = [0, 32], sizes = [8, 32], strides = [1, 1]} : vector<8x192xf32> to vector<8x32xf32>
    %c0_190 = arith.constant 0 : index
    %c0_191 = arith.constant 0 : index
    %454 = vector.load %arg11[%c0_190, %c0_191] : memref<1x32xf32, #tpu.memory_space<vmem>>, vector<1x32xf32>
    %455 = vector.broadcast %454 : vector<1x32xf32> to vector<8x32xf32>
    %456 = arith.addf %453, %455 : vector<8x32xf32>
    %cst_192 = arith.constant 0.000000e+00 : f32
    %457 = vector.broadcast %cst_192 : f32 to vector<8x32xf32>
    %458 = arith.maximumf %456, %457 : vector<8x32xf32>
    %c0_193 = arith.constant 0 : index
    %c0_194 = arith.constant 0 : index
    %459 = vector.load %arg12[%c0_193, %c0_194] : memref<32x32xf32, #tpu.memory_space<vmem>>, vector<32x32xf32>
    %cst_195 = arith.constant dense<0.000000e+00> : vector<8x32xf32>
    %460 = tpu.matmul %458, %459, %cst_195 {dimension_numbers = #tpu.dot_dimension_numbers<[1], [0], [0], [1], [0, 0, 1, 1], [], []>} : vector<8x32xf32>, vector<32x32xf32>, vector<8x32xf32> -> vector<8x32xf32>
    %c0_196 = arith.constant 0 : index
    %c0_197 = arith.constant 0 : index
    %461 = vector.load %arg13[%c0_196, %c0_197] : memref<1x32xf32, #tpu.memory_space<vmem>>, vector<1x32xf32>
    %462 = vector.broadcast %461 : vector<1x32xf32> to vector<8x32xf32>
    %463 = arith.addf %460, %462 : vector<8x32xf32>
    %464 = vector.extract_strided_slice %463 {offsets = [0, 0], sizes = [8, 16], strides = [1, 1]} : vector<8x32xf32> to vector<8x16xf32>
    %465 = vector.extract_strided_slice %463 {offsets = [0, 16], sizes = [8, 16], strides = [1, 1]} : vector<8x32xf32> to vector<8x16xf32>
    %cst_198 = arith.constant 0.000000e+00 : f32
    %466 = vector.broadcast %cst_198 : f32 to vector<8x16xf32>
    %467 = arith.maximumf %465, %466 : vector<8x16xf32>
    %468 = vector.broadcast %cst_198 : f32 to vector<8x16xf32>
    %469 = arith.subf %465, %468 : vector<8x16xf32>
    %470 = arith.cmpf one, %469, %469 : vector<8x16xf32>
    %471 = vector.broadcast %cst_198 : f32 to vector<8x16xf32>
    %472 = arith.addf %465, %471 : vector<8x16xf32>
    %473 = math.absf %469 : vector<8x16xf32>
    %cst_199 = arith.constant 0.000000e+00 : f32
    %474 = vector.broadcast %cst_199 : f32 to vector<8x16xf32>
    %475 = arith.subf %474, %473 : vector<8x16xf32>
    %476 = math.exp %475 : vector<8x16xf32>
    %477 = math.log1p %476 : vector<8x16xf32>
    %478 = arith.addf %467, %477 : vector<8x16xf32>
    %479 = arith.select %470, %472, %478 : vector<8x16xi1>, vector<8x16xf32>
    %480 = arith.mulf %412, %452 : vector<8x16xf32>
    %481 = arith.addf %480, %437 : vector<8x16xf32>
    %c0_200 = arith.constant 0 : index
    %c0_201 = arith.constant 0 : index
    %482 = vector.load %arg5[%c0_200, %c0_201] : memref<16x32xf32, #tpu.memory_space<vmem>>, vector<16x32xf32>
    %cst_202 = arith.constant dense<0.000000e+00> : vector<8x32xf32>
    %483 = tpu.matmul %481, %482, %cst_202 {dimension_numbers = #tpu.dot_dimension_numbers<[1], [0], [0], [1], [0, 0, 1, 1], [], []>} : vector<8x16xf32>, vector<16x32xf32>, vector<8x32xf32> -> vector<8x32xf32>
    %c0_203 = arith.constant 0 : index
    %c0_204 = arith.constant 0 : index
    %484 = vector.load %arg6[%c0_203, %c0_204] : memref<1x32xf32, #tpu.memory_space<vmem>>, vector<1x32xf32>
    %485 = vector.broadcast %484 : vector<1x32xf32> to vector<8x32xf32>
    %486 = arith.addf %483, %485 : vector<8x32xf32>
    %cst_205 = arith.constant 0.000000e+00 : f32
    %487 = vector.broadcast %cst_205 : f32 to vector<8x32xf32>
    %488 = arith.maximumf %486, %487 : vector<8x32xf32>
    %c0_206 = arith.constant 0 : index
    %c0_207 = arith.constant 0 : index
    %489 = vector.load %arg14[%c0_206, %c0_207] : memref<32x32xf32, #tpu.memory_space<vmem>>, vector<32x32xf32>
    %cst_208 = arith.constant dense<0.000000e+00> : vector<8x32xf32>
    %490 = tpu.matmul %488, %489, %cst_208 {dimension_numbers = #tpu.dot_dimension_numbers<[1], [0], [0], [1], [0, 0, 1, 1], [], []>} : vector<8x32xf32>, vector<32x32xf32>, vector<8x32xf32> -> vector<8x32xf32>
    %491 = vector.extract_strided_slice %420 {offsets = [0, 64], sizes = [8, 32], strides = [1, 1]} : vector<8x192xf32> to vector<8x32xf32>
    %492 = arith.addf %490, %491 : vector<8x32xf32>
    %c0_209 = arith.constant 0 : index
    %c0_210 = arith.constant 0 : index
    %493 = vector.load %arg15[%c0_209, %c0_210] : memref<1x32xf32, #tpu.memory_space<vmem>>, vector<1x32xf32>
    %494 = vector.broadcast %493 : vector<1x32xf32> to vector<8x32xf32>
    %495 = arith.addf %492, %494 : vector<8x32xf32>
    %cst_211 = arith.constant 0.000000e+00 : f32
    %496 = vector.broadcast %cst_211 : f32 to vector<8x32xf32>
    %497 = arith.maximumf %495, %496 : vector<8x32xf32>
    %c0_212 = arith.constant 0 : index
    %c0_213 = arith.constant 0 : index
    %498 = vector.load %arg16[%c0_212, %c0_213] : memref<32x32xf32, #tpu.memory_space<vmem>>, vector<32x32xf32>
    %cst_214 = arith.constant dense<0.000000e+00> : vector<8x32xf32>
    %499 = tpu.matmul %497, %498, %cst_214 {dimension_numbers = #tpu.dot_dimension_numbers<[1], [0], [0], [1], [0, 0, 1, 1], [], []>} : vector<8x32xf32>, vector<32x32xf32>, vector<8x32xf32> -> vector<8x32xf32>
    %c0_215 = arith.constant 0 : index
    %c0_216 = arith.constant 0 : index
    %500 = vector.load %arg17[%c0_215, %c0_216] : memref<1x32xf32, #tpu.memory_space<vmem>>, vector<1x32xf32>
    %501 = vector.broadcast %500 : vector<1x32xf32> to vector<8x32xf32>
    %502 = arith.addf %499, %501 : vector<8x32xf32>
    %cst_217 = arith.constant 0.000000e+00 : f32
    %503 = vector.broadcast %cst_217 : f32 to vector<8x32xf32>
    %504 = arith.maximumf %502, %503 : vector<8x32xf32>
    %c0_218 = arith.constant 0 : index
    %c0_219 = arith.constant 0 : index
    %505 = vector.load %arg18[%c0_218, %c0_219] : memref<32x32xf32, #tpu.memory_space<vmem>>, vector<32x32xf32>
    %cst_220 = arith.constant dense<0.000000e+00> : vector<8x32xf32>
    %506 = tpu.matmul %504, %505, %cst_220 {dimension_numbers = #tpu.dot_dimension_numbers<[1], [0], [0], [1], [0, 0, 1, 1], [], []>} : vector<8x32xf32>, vector<32x32xf32>, vector<8x32xf32> -> vector<8x32xf32>
    %c0_221 = arith.constant 0 : index
    %c0_222 = arith.constant 0 : index
    %507 = vector.load %arg19[%c0_221, %c0_222] : memref<1x32xf32, #tpu.memory_space<vmem>>, vector<1x32xf32>
    %508 = vector.broadcast %507 : vector<1x32xf32> to vector<8x32xf32>
    %509 = arith.addf %506, %508 : vector<8x32xf32>
    %510 = vector.extract_strided_slice %509 {offsets = [0, 0], sizes = [8, 16], strides = [1, 1]} : vector<8x32xf32> to vector<8x16xf32>
    %511 = vector.extract_strided_slice %509 {offsets = [0, 16], sizes = [8, 16], strides = [1, 1]} : vector<8x32xf32> to vector<8x16xf32>
    %cst_223 = arith.constant 0.000000e+00 : f32
    %512 = vector.broadcast %cst_223 : f32 to vector<8x16xf32>
    %513 = arith.maximumf %511, %512 : vector<8x16xf32>
    %514 = vector.broadcast %cst_223 : f32 to vector<8x16xf32>
    %515 = arith.subf %511, %514 : vector<8x16xf32>
    %516 = arith.cmpf one, %515, %515 : vector<8x16xf32>
    %517 = vector.broadcast %cst_223 : f32 to vector<8x16xf32>
    %518 = arith.addf %511, %517 : vector<8x16xf32>
    %519 = math.absf %515 : vector<8x16xf32>
    %cst_224 = arith.constant 0.000000e+00 : f32
    %520 = vector.broadcast %cst_224 : f32 to vector<8x16xf32>
    %521 = arith.subf %520, %519 : vector<8x16xf32>
    %522 = math.exp %521 : vector<8x16xf32>
    %523 = math.log1p %522 : vector<8x16xf32>
    %524 = arith.addf %513, %523 : vector<8x16xf32>
    %525 = arith.select %516, %518, %524 : vector<8x16xi1>, vector<8x16xf32>
    %526 = vector.extract_strided_slice %420 {offsets = [0, 96], sizes = [8, 96], strides = [1, 1]} : vector<8x192xf32> to vector<8x96xf32>
    %c0_225 = arith.constant 0 : index
    %c0_226 = arith.constant 0 : index
    %527 = vector.load %arg21[%c0_225, %c0_226] : memref<32x96xf32, #tpu.memory_space<vmem>>, vector<32x96xf32>
    %cst_227 = arith.constant dense<0.000000e+00> : vector<8x96xf32>
    %528 = tpu.matmul %488, %527, %cst_227 {dimension_numbers = #tpu.dot_dimension_numbers<[1], [0], [0], [1], [0, 0, 1, 1], [], []>} : vector<8x32xf32>, vector<32x96xf32>, vector<8x96xf32> -> vector<8x96xf32>
    %529 = arith.addf %418, %528 : vector<8x96xf32>
    %c0_228 = arith.constant 0 : index
    %c0_229 = arith.constant 0 : index
    %530 = vector.load %arg23[%c0_228, %c0_229] : memref<32x96xf32, #tpu.memory_space<vmem>>, vector<32x96xf32>
    %cst_230 = arith.constant dense<0.000000e+00> : vector<8x96xf32>
    %531 = tpu.matmul %350, %530, %cst_230 {dimension_numbers = #tpu.dot_dimension_numbers<[1], [0], [0], [1], [0, 0, 1, 1], [], []>} : vector<8x32xf32>, vector<32x96xf32>, vector<8x96xf32> -> vector<8x96xf32>
    %532 = vector.extract_strided_slice %529 {offsets = [0, 0], sizes = [8, 64], strides = [1, 1]} : vector<8x96xf32> to vector<8x64xf32>
    %533 = vector.extract_strided_slice %531 {offsets = [0, 0], sizes = [8, 64], strides = [1, 1]} : vector<8x96xf32> to vector<8x64xf32>
    %534 = arith.addf %532, %533 : vector<8x64xf32>
    %535 = arith.negf %534 : vector<8x64xf32>
    %536 = math.exp %535 : vector<8x64xf32>
    %cst_231 = arith.constant 1.000000e+00 : f32
    %537 = vector.broadcast %cst_231 : f32 to vector<8x64xf32>
    %538 = arith.addf %537, %536 : vector<8x64xf32>
    %539 = arith.divf %537, %538 : vector<8x64xf32>
    %540 = vector.extract_strided_slice %539 {offsets = [0, 0], sizes = [8, 32], strides = [1, 1]} : vector<8x64xf32> to vector<8x32xf32>
    %541 = vector.extract_strided_slice %539 {offsets = [0, 32], sizes = [8, 32], strides = [1, 1]} : vector<8x64xf32> to vector<8x32xf32>
    %542 = vector.extract_strided_slice %529 {offsets = [0, 64], sizes = [8, 32], strides = [1, 1]} : vector<8x96xf32> to vector<8x32xf32>
    %543 = vector.extract_strided_slice %531 {offsets = [0, 64], sizes = [8, 32], strides = [1, 1]} : vector<8x96xf32> to vector<8x32xf32>
    %544 = arith.mulf %540, %543 : vector<8x32xf32>
    %545 = arith.addf %542, %544 : vector<8x32xf32>
    %546 = math.tanh %545 : vector<8x32xf32>
    %cst_232 = arith.constant 1.000000e+00 : f32
    %547 = vector.broadcast %cst_232 : f32 to vector<8x32xf32>
    %548 = arith.subf %547, %541 : vector<8x32xf32>
    %549 = arith.mulf %548, %546 : vector<8x32xf32>
    %550 = arith.mulf %541, %350 : vector<8x32xf32>
    %551 = arith.addf %549, %550 : vector<8x32xf32>
    %c0_233 = arith.constant 0 : index
    %c0_234 = arith.constant 0 : index
    %552 = vector.load %arg22[%c0_233, %c0_234] : memref<32x96xf32, #tpu.memory_space<vmem>>, vector<32x96xf32>
    %cst_235 = arith.constant dense<0.000000e+00> : vector<8x96xf32>
    %553 = tpu.matmul %551, %552, %cst_235 {dimension_numbers = #tpu.dot_dimension_numbers<[1], [0], [0], [1], [0, 0, 1, 1], [], []>} : vector<8x32xf32>, vector<32x96xf32>, vector<8x96xf32> -> vector<8x96xf32>
    %554 = vector.extract_strided_slice %553 {offsets = [0, 0], sizes = [8, 64], strides = [1, 1]} : vector<8x96xf32> to vector<8x64xf32>
    %555 = vector.extract_strided_slice %526 {offsets = [0, 0], sizes = [8, 64], strides = [1, 1]} : vector<8x96xf32> to vector<8x64xf32>
    %556 = arith.addf %554, %555 : vector<8x64xf32>
    %557 = arith.negf %556 : vector<8x64xf32>
    %558 = math.exp %557 : vector<8x64xf32>
    %cst_236 = arith.constant 1.000000e+00 : f32
    %559 = vector.broadcast %cst_236 : f32 to vector<8x64xf32>
    %560 = arith.addf %559, %558 : vector<8x64xf32>
    %561 = arith.divf %559, %560 : vector<8x64xf32>
    %562 = vector.extract_strided_slice %561 {offsets = [0, 0], sizes = [8, 32], strides = [1, 1]} : vector<8x64xf32> to vector<8x32xf32>
    %563 = vector.extract_strided_slice %561 {offsets = [0, 32], sizes = [8, 32], strides = [1, 1]} : vector<8x64xf32> to vector<8x32xf32>
    %564 = vector.extract_strided_slice %553 {offsets = [0, 64], sizes = [8, 32], strides = [1, 1]} : vector<8x96xf32> to vector<8x32xf32>
    %565 = vector.extract_strided_slice %526 {offsets = [0, 64], sizes = [8, 32], strides = [1, 1]} : vector<8x96xf32> to vector<8x32xf32>
    %566 = arith.mulf %562, %565 : vector<8x32xf32>
    %567 = arith.addf %564, %566 : vector<8x32xf32>
    %568 = math.tanh %567 : vector<8x32xf32>
    %cst_237 = arith.constant 1.000000e+00 : f32
    %569 = vector.broadcast %cst_237 : f32 to vector<8x32xf32>
    %570 = arith.subf %569, %563 : vector<8x32xf32>
    %571 = arith.mulf %570, %568 : vector<8x32xf32>
    %572 = arith.mulf %563, %372 : vector<8x32xf32>
    %573 = arith.addf %571, %572 : vector<8x32xf32>
    %cst_238 = arith.constant 1.1920929E-7 : f32
    %574 = vector.broadcast %cst_238 : f32 to vector<8x16xf32>
    %575 = arith.addf %479, %574 : vector<8x16xf32>
    %576 = math.log %575 : vector<8x16xf32>
    %cst_239 = arith.constant 2.000000e+00 : f32
    %577 = vector.broadcast %cst_239 : f32 to vector<8x16xf32>
    %578 = arith.mulf %577, %576 : vector<8x16xf32>
    %cst_240 = arith.constant 1.1920929E-7 : f32
    %579 = vector.broadcast %cst_240 : f32 to vector<8x16xf32>
    %580 = arith.addf %452, %579 : vector<8x16xf32>
    %581 = math.log %580 : vector<8x16xf32>
    %cst_241 = arith.constant 2.000000e+00 : f32
    %582 = vector.broadcast %cst_241 : f32 to vector<8x16xf32>
    %583 = arith.mulf %582, %581 : vector<8x16xf32>
    %584 = arith.subf %578, %583 : vector<8x16xf32>
    %585 = arith.mulf %452, %452 : vector<8x16xf32>
    %586 = arith.subf %437, %464 : vector<8x16xf32>
    %587 = arith.mulf %586, %586 : vector<8x16xf32>
    %588 = arith.addf %585, %587 : vector<8x16xf32>
    %589 = arith.mulf %479, %479 : vector<8x16xf32>
    %590 = arith.divf %588, %589 : vector<8x16xf32>
    %591 = arith.addf %584, %590 : vector<8x16xf32>
    %cst_242 = arith.constant 1.000000e+00 : f32
    %592 = vector.broadcast %cst_242 : f32 to vector<8x16xf32>
    %593 = arith.subf %591, %592 : vector<8x16xf32>
    %594 = arith.addf %393, %593 : vector<8x16xf32>
    %cst_243 = arith.constant 1.1920929E-7 : f32
    %595 = vector.broadcast %cst_243 : f32 to vector<8x16xf32>
    %596 = arith.addf %525, %595 : vector<8x16xf32>
    %597 = math.log %596 : vector<8x16xf32>
    %cst_244 = arith.constant 0.918938517 : f32
    %598 = vector.broadcast %cst_244 : f32 to vector<8x16xf32>
    %599 = arith.addf %597, %598 : vector<8x16xf32>
    %600 = arith.subf %409, %510 : vector<8x16xf32>
    %601 = arith.mulf %600, %600 : vector<8x16xf32>
    %cst_245 = arith.constant 2.000000e+00 : f32
    %602 = vector.broadcast %cst_245 : f32 to vector<8x16xf32>
    %603 = arith.mulf %602, %525 : vector<8x16xf32>
    %604 = arith.mulf %603, %525 : vector<8x16xf32>
    %605 = arith.divf %601, %604 : vector<8x16xf32>
    %606 = arith.addf %599, %605 : vector<8x16xf32>
    %607 = arith.addf %406, %606 : vector<8x16xf32>
    %c3_i32 = arith.constant 3 : i32
    %608 = arith.index_cast %c3_i32 : i32 to index
    %c0_246 = arith.constant 0 : index
    %c0_247 = arith.constant 0 : index
    %609 = vector.load %arg1[%608, %c0_246, %c0_247] : memref<8x8x16xf32, #tpu.memory_space<vmem>>, vector<1x8x16xf32>
    %610 = vector.shape_cast %609 : vector<1x8x16xf32> to vector<8x16xf32>
    %611 = arith.index_cast %c3_i32 : i32 to index
    %c0_248 = arith.constant 0 : index
    %c0_249 = arith.constant 0 : index
    %612 = vector.load %arg2[%611, %c0_248, %c0_249] : memref<8x8x16xf32, #tpu.memory_space<vmem>>, vector<1x8x16xf32>
    %613 = vector.shape_cast %612 : vector<1x8x16xf32> to vector<8x16xf32>
    %614 = arith.index_cast %c3_i32 : i32 to index
    %c0_250 = arith.constant 0 : index
    %c0_251 = arith.constant 0 : index
    %615 = vector.load %arg3[%614, %c0_250, %c0_251] : memref<8x8x32xf32, #tpu.memory_space<vmem>>, vector<1x8x32xf32>
    %616 = vector.shape_cast %615 : vector<1x8x32xf32> to vector<8x32xf32>
    %617 = arith.index_cast %c3_i32 : i32 to index
    %c0_252 = arith.constant 0 : index
    %c0_253 = arith.constant 0 : index
    %618 = vector.load %arg4[%617, %c0_252, %c0_253] : memref<8x8x96xf32, #tpu.memory_space<vmem>>, vector<1x8x96xf32>
    %619 = vector.shape_cast %618 : vector<1x8x96xf32> to vector<8x96xf32>
    %c0_254 = arith.constant 0 : index
    %c0_255 = arith.constant 0 : index
    %620 = vector.load %arg20[%c0_254, %c0_255] : memref<32x192xf32, #tpu.memory_space<vmem>>, vector<32x192xf32>
    %cst_256 = arith.constant dense<0.000000e+00> : vector<8x192xf32>
    %621 = tpu.matmul %573, %620, %cst_256 {dimension_numbers = #tpu.dot_dimension_numbers<[1], [0], [0], [1], [0, 0, 1, 1], [], []>} : vector<8x32xf32>, vector<32x192xf32>, vector<8x192xf32> -> vector<8x192xf32>
    %622 = vector.extract_strided_slice %621 {offsets = [0, 0], sizes = [8, 32], strides = [1, 1]} : vector<8x192xf32> to vector<8x32xf32>
    %623 = arith.addf %616, %622 : vector<8x32xf32>
    %cst_257 = arith.constant 0.000000e+00 : f32
    %624 = vector.broadcast %cst_257 : f32 to vector<8x32xf32>
    %625 = arith.maximumf %623, %624 : vector<8x32xf32>
    %c0_258 = arith.constant 0 : index
    %c0_259 = arith.constant 0 : index
    %626 = vector.load %arg7[%c0_258, %c0_259] : memref<32x32xf32, #tpu.memory_space<vmem>>, vector<32x32xf32>
    %cst_260 = arith.constant dense<0.000000e+00> : vector<8x32xf32>
    %627 = tpu.matmul %625, %626, %cst_260 {dimension_numbers = #tpu.dot_dimension_numbers<[1], [0], [0], [1], [0, 0, 1, 1], [], []>} : vector<8x32xf32>, vector<32x32xf32>, vector<8x32xf32> -> vector<8x32xf32>
    %c0_261 = arith.constant 0 : index
    %c0_262 = arith.constant 0 : index
    %628 = vector.load %arg8[%c0_261, %c0_262] : memref<1x32xf32, #tpu.memory_space<vmem>>, vector<1x32xf32>
    %629 = vector.broadcast %628 : vector<1x32xf32> to vector<8x32xf32>
    %630 = arith.addf %627, %629 : vector<8x32xf32>
    %cst_263 = arith.constant 0.000000e+00 : f32
    %631 = vector.broadcast %cst_263 : f32 to vector<8x32xf32>
    %632 = arith.maximumf %630, %631 : vector<8x32xf32>
    %c0_264 = arith.constant 0 : index
    %c0_265 = arith.constant 0 : index
    %633 = vector.load %arg9[%c0_264, %c0_265] : memref<32x32xf32, #tpu.memory_space<vmem>>, vector<32x32xf32>
    %cst_266 = arith.constant dense<0.000000e+00> : vector<8x32xf32>
    %634 = tpu.matmul %632, %633, %cst_266 {dimension_numbers = #tpu.dot_dimension_numbers<[1], [0], [0], [1], [0, 0, 1, 1], [], []>} : vector<8x32xf32>, vector<32x32xf32>, vector<8x32xf32> -> vector<8x32xf32>
    %c0_267 = arith.constant 0 : index
    %c0_268 = arith.constant 0 : index
    %635 = vector.load %arg10[%c0_267, %c0_268] : memref<1x32xf32, #tpu.memory_space<vmem>>, vector<1x32xf32>
    %636 = vector.broadcast %635 : vector<1x32xf32> to vector<8x32xf32>
    %637 = arith.addf %634, %636 : vector<8x32xf32>
    %638 = vector.extract_strided_slice %637 {offsets = [0, 0], sizes = [8, 16], strides = [1, 1]} : vector<8x32xf32> to vector<8x16xf32>
    %639 = vector.extract_strided_slice %637 {offsets = [0, 16], sizes = [8, 16], strides = [1, 1]} : vector<8x32xf32> to vector<8x16xf32>
    %cst_269 = arith.constant 0.000000e+00 : f32
    %640 = vector.broadcast %cst_269 : f32 to vector<8x16xf32>
    %641 = arith.maximumf %639, %640 : vector<8x16xf32>
    %642 = vector.broadcast %cst_269 : f32 to vector<8x16xf32>
    %643 = arith.subf %639, %642 : vector<8x16xf32>
    %644 = arith.cmpf one, %643, %643 : vector<8x16xf32>
    %645 = vector.broadcast %cst_269 : f32 to vector<8x16xf32>
    %646 = arith.addf %639, %645 : vector<8x16xf32>
    %647 = math.absf %643 : vector<8x16xf32>
    %cst_270 = arith.constant 0.000000e+00 : f32
    %648 = vector.broadcast %cst_270 : f32 to vector<8x16xf32>
    %649 = arith.subf %648, %647 : vector<8x16xf32>
    %650 = math.exp %649 : vector<8x16xf32>
    %651 = math.log1p %650 : vector<8x16xf32>
    %652 = arith.addf %641, %651 : vector<8x16xf32>
    %653 = arith.select %644, %646, %652 : vector<8x16xi1>, vector<8x16xf32>
    %654 = vector.extract_strided_slice %621 {offsets = [0, 32], sizes = [8, 32], strides = [1, 1]} : vector<8x192xf32> to vector<8x32xf32>
    %c0_271 = arith.constant 0 : index
    %c0_272 = arith.constant 0 : index
    %655 = vector.load %arg11[%c0_271, %c0_272] : memref<1x32xf32, #tpu.memory_space<vmem>>, vector<1x32xf32>
    %656 = vector.broadcast %655 : vector<1x32xf32> to vector<8x32xf32>
    %657 = arith.addf %654, %656 : vector<8x32xf32>
    %cst_273 = arith.constant 0.000000e+00 : f32
    %658 = vector.broadcast %cst_273 : f32 to vector<8x32xf32>
    %659 = arith.maximumf %657, %658 : vector<8x32xf32>
    %c0_274 = arith.constant 0 : index
    %c0_275 = arith.constant 0 : index
    %660 = vector.load %arg12[%c0_274, %c0_275] : memref<32x32xf32, #tpu.memory_space<vmem>>, vector<32x32xf32>
    %cst_276 = arith.constant dense<0.000000e+00> : vector<8x32xf32>
    %661 = tpu.matmul %659, %660, %cst_276 {dimension_numbers = #tpu.dot_dimension_numbers<[1], [0], [0], [1], [0, 0, 1, 1], [], []>} : vector<8x32xf32>, vector<32x32xf32>, vector<8x32xf32> -> vector<8x32xf32>
    %c0_277 = arith.constant 0 : index
    %c0_278 = arith.constant 0 : index
    %662 = vector.load %arg13[%c0_277, %c0_278] : memref<1x32xf32, #tpu.memory_space<vmem>>, vector<1x32xf32>
    %663 = vector.broadcast %662 : vector<1x32xf32> to vector<8x32xf32>
    %664 = arith.addf %661, %663 : vector<8x32xf32>
    %665 = vector.extract_strided_slice %664 {offsets = [0, 0], sizes = [8, 16], strides = [1, 1]} : vector<8x32xf32> to vector<8x16xf32>
    %666 = vector.extract_strided_slice %664 {offsets = [0, 16], sizes = [8, 16], strides = [1, 1]} : vector<8x32xf32> to vector<8x16xf32>
    %cst_279 = arith.constant 0.000000e+00 : f32
    %667 = vector.broadcast %cst_279 : f32 to vector<8x16xf32>
    %668 = arith.maximumf %666, %667 : vector<8x16xf32>
    %669 = vector.broadcast %cst_279 : f32 to vector<8x16xf32>
    %670 = arith.subf %666, %669 : vector<8x16xf32>
    %671 = arith.cmpf one, %670, %670 : vector<8x16xf32>
    %672 = vector.broadcast %cst_279 : f32 to vector<8x16xf32>
    %673 = arith.addf %666, %672 : vector<8x16xf32>
    %674 = math.absf %670 : vector<8x16xf32>
    %cst_280 = arith.constant 0.000000e+00 : f32
    %675 = vector.broadcast %cst_280 : f32 to vector<8x16xf32>
    %676 = arith.subf %675, %674 : vector<8x16xf32>
    %677 = math.exp %676 : vector<8x16xf32>
    %678 = math.log1p %677 : vector<8x16xf32>
    %679 = arith.addf %668, %678 : vector<8x16xf32>
    %680 = arith.select %671, %673, %679 : vector<8x16xi1>, vector<8x16xf32>
    %681 = arith.mulf %613, %653 : vector<8x16xf32>
    %682 = arith.addf %681, %638 : vector<8x16xf32>
    %c0_281 = arith.constant 0 : index
    %c0_282 = arith.constant 0 : index
    %683 = vector.load %arg5[%c0_281, %c0_282] : memref<16x32xf32, #tpu.memory_space<vmem>>, vector<16x32xf32>
    %cst_283 = arith.constant dense<0.000000e+00> : vector<8x32xf32>
    %684 = tpu.matmul %682, %683, %cst_283 {dimension_numbers = #tpu.dot_dimension_numbers<[1], [0], [0], [1], [0, 0, 1, 1], [], []>} : vector<8x16xf32>, vector<16x32xf32>, vector<8x32xf32> -> vector<8x32xf32>
    %c0_284 = arith.constant 0 : index
    %c0_285 = arith.constant 0 : index
    %685 = vector.load %arg6[%c0_284, %c0_285] : memref<1x32xf32, #tpu.memory_space<vmem>>, vector<1x32xf32>
    %686 = vector.broadcast %685 : vector<1x32xf32> to vector<8x32xf32>
    %687 = arith.addf %684, %686 : vector<8x32xf32>
    %cst_286 = arith.constant 0.000000e+00 : f32
    %688 = vector.broadcast %cst_286 : f32 to vector<8x32xf32>
    %689 = arith.maximumf %687, %688 : vector<8x32xf32>
    %c0_287 = arith.constant 0 : index
    %c0_288 = arith.constant 0 : index
    %690 = vector.load %arg14[%c0_287, %c0_288] : memref<32x32xf32, #tpu.memory_space<vmem>>, vector<32x32xf32>
    %cst_289 = arith.constant dense<0.000000e+00> : vector<8x32xf32>
    %691 = tpu.matmul %689, %690, %cst_289 {dimension_numbers = #tpu.dot_dimension_numbers<[1], [0], [0], [1], [0, 0, 1, 1], [], []>} : vector<8x32xf32>, vector<32x32xf32>, vector<8x32xf32> -> vector<8x32xf32>
    %692 = vector.extract_strided_slice %621 {offsets = [0, 64], sizes = [8, 32], strides = [1, 1]} : vector<8x192xf32> to vector<8x32xf32>
    %693 = arith.addf %691, %692 : vector<8x32xf32>
    %c0_290 = arith.constant 0 : index
    %c0_291 = arith.constant 0 : index
    %694 = vector.load %arg15[%c0_290, %c0_291] : memref<1x32xf32, #tpu.memory_space<vmem>>, vector<1x32xf32>
    %695 = vector.broadcast %694 : vector<1x32xf32> to vector<8x32xf32>
    %696 = arith.addf %693, %695 : vector<8x32xf32>
    %cst_292 = arith.constant 0.000000e+00 : f32
    %697 = vector.broadcast %cst_292 : f32 to vector<8x32xf32>
    %698 = arith.maximumf %696, %697 : vector<8x32xf32>
    %c0_293 = arith.constant 0 : index
    %c0_294 = arith.constant 0 : index
    %699 = vector.load %arg16[%c0_293, %c0_294] : memref<32x32xf32, #tpu.memory_space<vmem>>, vector<32x32xf32>
    %cst_295 = arith.constant dense<0.000000e+00> : vector<8x32xf32>
    %700 = tpu.matmul %698, %699, %cst_295 {dimension_numbers = #tpu.dot_dimension_numbers<[1], [0], [0], [1], [0, 0, 1, 1], [], []>} : vector<8x32xf32>, vector<32x32xf32>, vector<8x32xf32> -> vector<8x32xf32>
    %c0_296 = arith.constant 0 : index
    %c0_297 = arith.constant 0 : index
    %701 = vector.load %arg17[%c0_296, %c0_297] : memref<1x32xf32, #tpu.memory_space<vmem>>, vector<1x32xf32>
    %702 = vector.broadcast %701 : vector<1x32xf32> to vector<8x32xf32>
    %703 = arith.addf %700, %702 : vector<8x32xf32>
    %cst_298 = arith.constant 0.000000e+00 : f32
    %704 = vector.broadcast %cst_298 : f32 to vector<8x32xf32>
    %705 = arith.maximumf %703, %704 : vector<8x32xf32>
    %c0_299 = arith.constant 0 : index
    %c0_300 = arith.constant 0 : index
    %706 = vector.load %arg18[%c0_299, %c0_300] : memref<32x32xf32, #tpu.memory_space<vmem>>, vector<32x32xf32>
    %cst_301 = arith.constant dense<0.000000e+00> : vector<8x32xf32>
    %707 = tpu.matmul %705, %706, %cst_301 {dimension_numbers = #tpu.dot_dimension_numbers<[1], [0], [0], [1], [0, 0, 1, 1], [], []>} : vector<8x32xf32>, vector<32x32xf32>, vector<8x32xf32> -> vector<8x32xf32>
    %c0_302 = arith.constant 0 : index
    %c0_303 = arith.constant 0 : index
    %708 = vector.load %arg19[%c0_302, %c0_303] : memref<1x32xf32, #tpu.memory_space<vmem>>, vector<1x32xf32>
    %709 = vector.broadcast %708 : vector<1x32xf32> to vector<8x32xf32>
    %710 = arith.addf %707, %709 : vector<8x32xf32>
    %711 = vector.extract_strided_slice %710 {offsets = [0, 0], sizes = [8, 16], strides = [1, 1]} : vector<8x32xf32> to vector<8x16xf32>
    %712 = vector.extract_strided_slice %710 {offsets = [0, 16], sizes = [8, 16], strides = [1, 1]} : vector<8x32xf32> to vector<8x16xf32>
    %cst_304 = arith.constant 0.000000e+00 : f32
    %713 = vector.broadcast %cst_304 : f32 to vector<8x16xf32>
    %714 = arith.maximumf %712, %713 : vector<8x16xf32>
    %715 = vector.broadcast %cst_304 : f32 to vector<8x16xf32>
    %716 = arith.subf %712, %715 : vector<8x16xf32>
    %717 = arith.cmpf one, %716, %716 : vector<8x16xf32>
    %718 = vector.broadcast %cst_304 : f32 to vector<8x16xf32>
    %719 = arith.addf %712, %718 : vector<8x16xf32>
    %720 = math.absf %716 : vector<8x16xf32>
    %cst_305 = arith.constant 0.000000e+00 : f32
    %721 = vector.broadcast %cst_305 : f32 to vector<8x16xf32>
    %722 = arith.subf %721, %720 : vector<8x16xf32>
    %723 = math.exp %722 : vector<8x16xf32>
    %724 = math.log1p %723 : vector<8x16xf32>
    %725 = arith.addf %714, %724 : vector<8x16xf32>
    %726 = arith.select %717, %719, %725 : vector<8x16xi1>, vector<8x16xf32>
    %727 = vector.extract_strided_slice %621 {offsets = [0, 96], sizes = [8, 96], strides = [1, 1]} : vector<8x192xf32> to vector<8x96xf32>
    %c0_306 = arith.constant 0 : index
    %c0_307 = arith.constant 0 : index
    %728 = vector.load %arg21[%c0_306, %c0_307] : memref<32x96xf32, #tpu.memory_space<vmem>>, vector<32x96xf32>
    %cst_308 = arith.constant dense<0.000000e+00> : vector<8x96xf32>
    %729 = tpu.matmul %689, %728, %cst_308 {dimension_numbers = #tpu.dot_dimension_numbers<[1], [0], [0], [1], [0, 0, 1, 1], [], []>} : vector<8x32xf32>, vector<32x96xf32>, vector<8x96xf32> -> vector<8x96xf32>
    %730 = arith.addf %619, %729 : vector<8x96xf32>
    %c0_309 = arith.constant 0 : index
    %c0_310 = arith.constant 0 : index
    %731 = vector.load %arg23[%c0_309, %c0_310] : memref<32x96xf32, #tpu.memory_space<vmem>>, vector<32x96xf32>
    %cst_311 = arith.constant dense<0.000000e+00> : vector<8x96xf32>
    %732 = tpu.matmul %551, %731, %cst_311 {dimension_numbers = #tpu.dot_dimension_numbers<[1], [0], [0], [1], [0, 0, 1, 1], [], []>} : vector<8x32xf32>, vector<32x96xf32>, vector<8x96xf32> -> vector<8x96xf32>
    %733 = vector.extract_strided_slice %730 {offsets = [0, 0], sizes = [8, 64], strides = [1, 1]} : vector<8x96xf32> to vector<8x64xf32>
    %734 = vector.extract_strided_slice %732 {offsets = [0, 0], sizes = [8, 64], strides = [1, 1]} : vector<8x96xf32> to vector<8x64xf32>
    %735 = arith.addf %733, %734 : vector<8x64xf32>
    %736 = arith.negf %735 : vector<8x64xf32>
    %737 = math.exp %736 : vector<8x64xf32>
    %cst_312 = arith.constant 1.000000e+00 : f32
    %738 = vector.broadcast %cst_312 : f32 to vector<8x64xf32>
    %739 = arith.addf %738, %737 : vector<8x64xf32>
    %740 = arith.divf %738, %739 : vector<8x64xf32>
    %741 = vector.extract_strided_slice %740 {offsets = [0, 0], sizes = [8, 32], strides = [1, 1]} : vector<8x64xf32> to vector<8x32xf32>
    %742 = vector.extract_strided_slice %740 {offsets = [0, 32], sizes = [8, 32], strides = [1, 1]} : vector<8x64xf32> to vector<8x32xf32>
    %743 = vector.extract_strided_slice %730 {offsets = [0, 64], sizes = [8, 32], strides = [1, 1]} : vector<8x96xf32> to vector<8x32xf32>
    %744 = vector.extract_strided_slice %732 {offsets = [0, 64], sizes = [8, 32], strides = [1, 1]} : vector<8x96xf32> to vector<8x32xf32>
    %745 = arith.mulf %741, %744 : vector<8x32xf32>
    %746 = arith.addf %743, %745 : vector<8x32xf32>
    %747 = math.tanh %746 : vector<8x32xf32>
    %cst_313 = arith.constant 1.000000e+00 : f32
    %748 = vector.broadcast %cst_313 : f32 to vector<8x32xf32>
    %749 = arith.subf %748, %742 : vector<8x32xf32>
    %750 = arith.mulf %749, %747 : vector<8x32xf32>
    %751 = arith.mulf %742, %551 : vector<8x32xf32>
    %752 = arith.addf %750, %751 : vector<8x32xf32>
    %c0_314 = arith.constant 0 : index
    %c0_315 = arith.constant 0 : index
    %753 = vector.load %arg22[%c0_314, %c0_315] : memref<32x96xf32, #tpu.memory_space<vmem>>, vector<32x96xf32>
    %cst_316 = arith.constant dense<0.000000e+00> : vector<8x96xf32>
    %754 = tpu.matmul %752, %753, %cst_316 {dimension_numbers = #tpu.dot_dimension_numbers<[1], [0], [0], [1], [0, 0, 1, 1], [], []>} : vector<8x32xf32>, vector<32x96xf32>, vector<8x96xf32> -> vector<8x96xf32>
    %755 = vector.extract_strided_slice %754 {offsets = [0, 0], sizes = [8, 64], strides = [1, 1]} : vector<8x96xf32> to vector<8x64xf32>
    %756 = vector.extract_strided_slice %727 {offsets = [0, 0], sizes = [8, 64], strides = [1, 1]} : vector<8x96xf32> to vector<8x64xf32>
    %757 = arith.addf %755, %756 : vector<8x64xf32>
    %758 = arith.negf %757 : vector<8x64xf32>
    %759 = math.exp %758 : vector<8x64xf32>
    %cst_317 = arith.constant 1.000000e+00 : f32
    %760 = vector.broadcast %cst_317 : f32 to vector<8x64xf32>
    %761 = arith.addf %760, %759 : vector<8x64xf32>
    %762 = arith.divf %760, %761 : vector<8x64xf32>
    %763 = vector.extract_strided_slice %762 {offsets = [0, 0], sizes = [8, 32], strides = [1, 1]} : vector<8x64xf32> to vector<8x32xf32>
    %764 = vector.extract_strided_slice %762 {offsets = [0, 32], sizes = [8, 32], strides = [1, 1]} : vector<8x64xf32> to vector<8x32xf32>
    %765 = vector.extract_strided_slice %754 {offsets = [0, 64], sizes = [8, 32], strides = [1, 1]} : vector<8x96xf32> to vector<8x32xf32>
    %766 = vector.extract_strided_slice %727 {offsets = [0, 64], sizes = [8, 32], strides = [1, 1]} : vector<8x96xf32> to vector<8x32xf32>
    %767 = arith.mulf %763, %766 : vector<8x32xf32>
    %768 = arith.addf %765, %767 : vector<8x32xf32>
    %769 = math.tanh %768 : vector<8x32xf32>
    %cst_318 = arith.constant 1.000000e+00 : f32
    %770 = vector.broadcast %cst_318 : f32 to vector<8x32xf32>
    %771 = arith.subf %770, %764 : vector<8x32xf32>
    %772 = arith.mulf %771, %769 : vector<8x32xf32>
    %773 = arith.mulf %764, %573 : vector<8x32xf32>
    %774 = arith.addf %772, %773 : vector<8x32xf32>
    %cst_319 = arith.constant 1.1920929E-7 : f32
    %775 = vector.broadcast %cst_319 : f32 to vector<8x16xf32>
    %776 = arith.addf %680, %775 : vector<8x16xf32>
    %777 = math.log %776 : vector<8x16xf32>
    %cst_320 = arith.constant 2.000000e+00 : f32
    %778 = vector.broadcast %cst_320 : f32 to vector<8x16xf32>
    %779 = arith.mulf %778, %777 : vector<8x16xf32>
    %cst_321 = arith.constant 1.1920929E-7 : f32
    %780 = vector.broadcast %cst_321 : f32 to vector<8x16xf32>
    %781 = arith.addf %653, %780 : vector<8x16xf32>
    %782 = math.log %781 : vector<8x16xf32>
    %cst_322 = arith.constant 2.000000e+00 : f32
    %783 = vector.broadcast %cst_322 : f32 to vector<8x16xf32>
    %784 = arith.mulf %783, %782 : vector<8x16xf32>
    %785 = arith.subf %779, %784 : vector<8x16xf32>
    %786 = arith.mulf %653, %653 : vector<8x16xf32>
    %787 = arith.subf %638, %665 : vector<8x16xf32>
    %788 = arith.mulf %787, %787 : vector<8x16xf32>
    %789 = arith.addf %786, %788 : vector<8x16xf32>
    %790 = arith.mulf %680, %680 : vector<8x16xf32>
    %791 = arith.divf %789, %790 : vector<8x16xf32>
    %792 = arith.addf %785, %791 : vector<8x16xf32>
    %cst_323 = arith.constant 1.000000e+00 : f32
    %793 = vector.broadcast %cst_323 : f32 to vector<8x16xf32>
    %794 = arith.subf %792, %793 : vector<8x16xf32>
    %795 = arith.addf %594, %794 : vector<8x16xf32>
    %cst_324 = arith.constant 1.1920929E-7 : f32
    %796 = vector.broadcast %cst_324 : f32 to vector<8x16xf32>
    %797 = arith.addf %726, %796 : vector<8x16xf32>
    %798 = math.log %797 : vector<8x16xf32>
    %cst_325 = arith.constant 0.918938517 : f32
    %799 = vector.broadcast %cst_325 : f32 to vector<8x16xf32>
    %800 = arith.addf %798, %799 : vector<8x16xf32>
    %801 = arith.subf %610, %711 : vector<8x16xf32>
    %802 = arith.mulf %801, %801 : vector<8x16xf32>
    %cst_326 = arith.constant 2.000000e+00 : f32
    %803 = vector.broadcast %cst_326 : f32 to vector<8x16xf32>
    %804 = arith.mulf %803, %726 : vector<8x16xf32>
    %805 = arith.mulf %804, %726 : vector<8x16xf32>
    %806 = arith.divf %802, %805 : vector<8x16xf32>
    %807 = arith.addf %800, %806 : vector<8x16xf32>
    %808 = arith.addf %607, %807 : vector<8x16xf32>
    %c4_i32 = arith.constant 4 : i32
    %809 = arith.index_cast %c4_i32 : i32 to index
    %c0_327 = arith.constant 0 : index
    %c0_328 = arith.constant 0 : index
    %810 = vector.load %arg1[%809, %c0_327, %c0_328] : memref<8x8x16xf32, #tpu.memory_space<vmem>>, vector<1x8x16xf32>
    %811 = vector.shape_cast %810 : vector<1x8x16xf32> to vector<8x16xf32>
    %812 = arith.index_cast %c4_i32 : i32 to index
    %c0_329 = arith.constant 0 : index
    %c0_330 = arith.constant 0 : index
    %813 = vector.load %arg2[%812, %c0_329, %c0_330] : memref<8x8x16xf32, #tpu.memory_space<vmem>>, vector<1x8x16xf32>
    %814 = vector.shape_cast %813 : vector<1x8x16xf32> to vector<8x16xf32>
    %815 = arith.index_cast %c4_i32 : i32 to index
    %c0_331 = arith.constant 0 : index
    %c0_332 = arith.constant 0 : index
    %816 = vector.load %arg3[%815, %c0_331, %c0_332] : memref<8x8x32xf32, #tpu.memory_space<vmem>>, vector<1x8x32xf32>
    %817 = vector.shape_cast %816 : vector<1x8x32xf32> to vector<8x32xf32>
    %818 = arith.index_cast %c4_i32 : i32 to index
    %c0_333 = arith.constant 0 : index
    %c0_334 = arith.constant 0 : index
    %819 = vector.load %arg4[%818, %c0_333, %c0_334] : memref<8x8x96xf32, #tpu.memory_space<vmem>>, vector<1x8x96xf32>
    %820 = vector.shape_cast %819 : vector<1x8x96xf32> to vector<8x96xf32>
    %c0_335 = arith.constant 0 : index
    %c0_336 = arith.constant 0 : index
    %821 = vector.load %arg20[%c0_335, %c0_336] : memref<32x192xf32, #tpu.memory_space<vmem>>, vector<32x192xf32>
    %cst_337 = arith.constant dense<0.000000e+00> : vector<8x192xf32>
    %822 = tpu.matmul %774, %821, %cst_337 {dimension_numbers = #tpu.dot_dimension_numbers<[1], [0], [0], [1], [0, 0, 1, 1], [], []>} : vector<8x32xf32>, vector<32x192xf32>, vector<8x192xf32> -> vector<8x192xf32>
    %823 = vector.extract_strided_slice %822 {offsets = [0, 0], sizes = [8, 32], strides = [1, 1]} : vector<8x192xf32> to vector<8x32xf32>
    %824 = arith.addf %817, %823 : vector<8x32xf32>
    %cst_338 = arith.constant 0.000000e+00 : f32
    %825 = vector.broadcast %cst_338 : f32 to vector<8x32xf32>
    %826 = arith.maximumf %824, %825 : vector<8x32xf32>
    %c0_339 = arith.constant 0 : index
    %c0_340 = arith.constant 0 : index
    %827 = vector.load %arg7[%c0_339, %c0_340] : memref<32x32xf32, #tpu.memory_space<vmem>>, vector<32x32xf32>
    %cst_341 = arith.constant dense<0.000000e+00> : vector<8x32xf32>
    %828 = tpu.matmul %826, %827, %cst_341 {dimension_numbers = #tpu.dot_dimension_numbers<[1], [0], [0], [1], [0, 0, 1, 1], [], []>} : vector<8x32xf32>, vector<32x32xf32>, vector<8x32xf32> -> vector<8x32xf32>
    %c0_342 = arith.constant 0 : index
    %c0_343 = arith.constant 0 : index
    %829 = vector.load %arg8[%c0_342, %c0_343] : memref<1x32xf32, #tpu.memory_space<vmem>>, vector<1x32xf32>
    %830 = vector.broadcast %829 : vector<1x32xf32> to vector<8x32xf32>
    %831 = arith.addf %828, %830 : vector<8x32xf32>
    %cst_344 = arith.constant 0.000000e+00 : f32
    %832 = vector.broadcast %cst_344 : f32 to vector<8x32xf32>
    %833 = arith.maximumf %831, %832 : vector<8x32xf32>
    %c0_345 = arith.constant 0 : index
    %c0_346 = arith.constant 0 : index
    %834 = vector.load %arg9[%c0_345, %c0_346] : memref<32x32xf32, #tpu.memory_space<vmem>>, vector<32x32xf32>
    %cst_347 = arith.constant dense<0.000000e+00> : vector<8x32xf32>
    %835 = tpu.matmul %833, %834, %cst_347 {dimension_numbers = #tpu.dot_dimension_numbers<[1], [0], [0], [1], [0, 0, 1, 1], [], []>} : vector<8x32xf32>, vector<32x32xf32>, vector<8x32xf32> -> vector<8x32xf32>
    %c0_348 = arith.constant 0 : index
    %c0_349 = arith.constant 0 : index
    %836 = vector.load %arg10[%c0_348, %c0_349] : memref<1x32xf32, #tpu.memory_space<vmem>>, vector<1x32xf32>
    %837 = vector.broadcast %836 : vector<1x32xf32> to vector<8x32xf32>
    %838 = arith.addf %835, %837 : vector<8x32xf32>
    %839 = vector.extract_strided_slice %838 {offsets = [0, 0], sizes = [8, 16], strides = [1, 1]} : vector<8x32xf32> to vector<8x16xf32>
    %840 = vector.extract_strided_slice %838 {offsets = [0, 16], sizes = [8, 16], strides = [1, 1]} : vector<8x32xf32> to vector<8x16xf32>
    %cst_350 = arith.constant 0.000000e+00 : f32
    %841 = vector.broadcast %cst_350 : f32 to vector<8x16xf32>
    %842 = arith.maximumf %840, %841 : vector<8x16xf32>
    %843 = vector.broadcast %cst_350 : f32 to vector<8x16xf32>
    %844 = arith.subf %840, %843 : vector<8x16xf32>
    %845 = arith.cmpf one, %844, %844 : vector<8x16xf32>
    %846 = vector.broadcast %cst_350 : f32 to vector<8x16xf32>
    %847 = arith.addf %840, %846 : vector<8x16xf32>
    %848 = math.absf %844 : vector<8x16xf32>
    %cst_351 = arith.constant 0.000000e+00 : f32
    %849 = vector.broadcast %cst_351 : f32 to vector<8x16xf32>
    %850 = arith.subf %849, %848 : vector<8x16xf32>
    %851 = math.exp %850 : vector<8x16xf32>
    %852 = math.log1p %851 : vector<8x16xf32>
    %853 = arith.addf %842, %852 : vector<8x16xf32>
    %854 = arith.select %845, %847, %853 : vector<8x16xi1>, vector<8x16xf32>
    %855 = vector.extract_strided_slice %822 {offsets = [0, 32], sizes = [8, 32], strides = [1, 1]} : vector<8x192xf32> to vector<8x32xf32>
    %c0_352 = arith.constant 0 : index
    %c0_353 = arith.constant 0 : index
    %856 = vector.load %arg11[%c0_352, %c0_353] : memref<1x32xf32, #tpu.memory_space<vmem>>, vector<1x32xf32>
    %857 = vector.broadcast %856 : vector<1x32xf32> to vector<8x32xf32>
    %858 = arith.addf %855, %857 : vector<8x32xf32>
    %cst_354 = arith.constant 0.000000e+00 : f32
    %859 = vector.broadcast %cst_354 : f32 to vector<8x32xf32>
    %860 = arith.maximumf %858, %859 : vector<8x32xf32>
    %c0_355 = arith.constant 0 : index
    %c0_356 = arith.constant 0 : index
    %861 = vector.load %arg12[%c0_355, %c0_356] : memref<32x32xf32, #tpu.memory_space<vmem>>, vector<32x32xf32>
    %cst_357 = arith.constant dense<0.000000e+00> : vector<8x32xf32>
    %862 = tpu.matmul %860, %861, %cst_357 {dimension_numbers = #tpu.dot_dimension_numbers<[1], [0], [0], [1], [0, 0, 1, 1], [], []>} : vector<8x32xf32>, vector<32x32xf32>, vector<8x32xf32> -> vector<8x32xf32>
    %c0_358 = arith.constant 0 : index
    %c0_359 = arith.constant 0 : index
    %863 = vector.load %arg13[%c0_358, %c0_359] : memref<1x32xf32, #tpu.memory_space<vmem>>, vector<1x32xf32>
    %864 = vector.broadcast %863 : vector<1x32xf32> to vector<8x32xf32>
    %865 = arith.addf %862, %864 : vector<8x32xf32>
    %866 = vector.extract_strided_slice %865 {offsets = [0, 0], sizes = [8, 16], strides = [1, 1]} : vector<8x32xf32> to vector<8x16xf32>
    %867 = vector.extract_strided_slice %865 {offsets = [0, 16], sizes = [8, 16], strides = [1, 1]} : vector<8x32xf32> to vector<8x16xf32>
    %cst_360 = arith.constant 0.000000e+00 : f32
    %868 = vector.broadcast %cst_360 : f32 to vector<8x16xf32>
    %869 = arith.maximumf %867, %868 : vector<8x16xf32>
    %870 = vector.broadcast %cst_360 : f32 to vector<8x16xf32>
    %871 = arith.subf %867, %870 : vector<8x16xf32>
    %872 = arith.cmpf one, %871, %871 : vector<8x16xf32>
    %873 = vector.broadcast %cst_360 : f32 to vector<8x16xf32>
    %874 = arith.addf %867, %873 : vector<8x16xf32>
    %875 = math.absf %871 : vector<8x16xf32>
    %cst_361 = arith.constant 0.000000e+00 : f32
    %876 = vector.broadcast %cst_361 : f32 to vector<8x16xf32>
    %877 = arith.subf %876, %875 : vector<8x16xf32>
    %878 = math.exp %877 : vector<8x16xf32>
    %879 = math.log1p %878 : vector<8x16xf32>
    %880 = arith.addf %869, %879 : vector<8x16xf32>
    %881 = arith.select %872, %874, %880 : vector<8x16xi1>, vector<8x16xf32>
    %882 = arith.mulf %814, %854 : vector<8x16xf32>
    %883 = arith.addf %882, %839 : vector<8x16xf32>
    %c0_362 = arith.constant 0 : index
    %c0_363 = arith.constant 0 : index
    %884 = vector.load %arg5[%c0_362, %c0_363] : memref<16x32xf32, #tpu.memory_space<vmem>>, vector<16x32xf32>
    %cst_364 = arith.constant dense<0.000000e+00> : vector<8x32xf32>
    %885 = tpu.matmul %883, %884, %cst_364 {dimension_numbers = #tpu.dot_dimension_numbers<[1], [0], [0], [1], [0, 0, 1, 1], [], []>} : vector<8x16xf32>, vector<16x32xf32>, vector<8x32xf32> -> vector<8x32xf32>
    %c0_365 = arith.constant 0 : index
    %c0_366 = arith.constant 0 : index
    %886 = vector.load %arg6[%c0_365, %c0_366] : memref<1x32xf32, #tpu.memory_space<vmem>>, vector<1x32xf32>
    %887 = vector.broadcast %886 : vector<1x32xf32> to vector<8x32xf32>
    %888 = arith.addf %885, %887 : vector<8x32xf32>
    %cst_367 = arith.constant 0.000000e+00 : f32
    %889 = vector.broadcast %cst_367 : f32 to vector<8x32xf32>
    %890 = arith.maximumf %888, %889 : vector<8x32xf32>
    %c0_368 = arith.constant 0 : index
    %c0_369 = arith.constant 0 : index
    %891 = vector.load %arg14[%c0_368, %c0_369] : memref<32x32xf32, #tpu.memory_space<vmem>>, vector<32x32xf32>
    %cst_370 = arith.constant dense<0.000000e+00> : vector<8x32xf32>
    %892 = tpu.matmul %890, %891, %cst_370 {dimension_numbers = #tpu.dot_dimension_numbers<[1], [0], [0], [1], [0, 0, 1, 1], [], []>} : vector<8x32xf32>, vector<32x32xf32>, vector<8x32xf32> -> vector<8x32xf32>
    %893 = vector.extract_strided_slice %822 {offsets = [0, 64], sizes = [8, 32], strides = [1, 1]} : vector<8x192xf32> to vector<8x32xf32>
    %894 = arith.addf %892, %893 : vector<8x32xf32>
    %c0_371 = arith.constant 0 : index
    %c0_372 = arith.constant 0 : index
    %895 = vector.load %arg15[%c0_371, %c0_372] : memref<1x32xf32, #tpu.memory_space<vmem>>, vector<1x32xf32>
    %896 = vector.broadcast %895 : vector<1x32xf32> to vector<8x32xf32>
    %897 = arith.addf %894, %896 : vector<8x32xf32>
    %cst_373 = arith.constant 0.000000e+00 : f32
    %898 = vector.broadcast %cst_373 : f32 to vector<8x32xf32>
    %899 = arith.maximumf %897, %898 : vector<8x32xf32>
    %c0_374 = arith.constant 0 : index
    %c0_375 = arith.constant 0 : index
    %900 = vector.load %arg16[%c0_374, %c0_375] : memref<32x32xf32, #tpu.memory_space<vmem>>, vector<32x32xf32>
    %cst_376 = arith.constant dense<0.000000e+00> : vector<8x32xf32>
    %901 = tpu.matmul %899, %900, %cst_376 {dimension_numbers = #tpu.dot_dimension_numbers<[1], [0], [0], [1], [0, 0, 1, 1], [], []>} : vector<8x32xf32>, vector<32x32xf32>, vector<8x32xf32> -> vector<8x32xf32>
    %c0_377 = arith.constant 0 : index
    %c0_378 = arith.constant 0 : index
    %902 = vector.load %arg17[%c0_377, %c0_378] : memref<1x32xf32, #tpu.memory_space<vmem>>, vector<1x32xf32>
    %903 = vector.broadcast %902 : vector<1x32xf32> to vector<8x32xf32>
    %904 = arith.addf %901, %903 : vector<8x32xf32>
    %cst_379 = arith.constant 0.000000e+00 : f32
    %905 = vector.broadcast %cst_379 : f32 to vector<8x32xf32>
    %906 = arith.maximumf %904, %905 : vector<8x32xf32>
    %c0_380 = arith.constant 0 : index
    %c0_381 = arith.constant 0 : index
    %907 = vector.load %arg18[%c0_380, %c0_381] : memref<32x32xf32, #tpu.memory_space<vmem>>, vector<32x32xf32>
    %cst_382 = arith.constant dense<0.000000e+00> : vector<8x32xf32>
    %908 = tpu.matmul %906, %907, %cst_382 {dimension_numbers = #tpu.dot_dimension_numbers<[1], [0], [0], [1], [0, 0, 1, 1], [], []>} : vector<8x32xf32>, vector<32x32xf32>, vector<8x32xf32> -> vector<8x32xf32>
    %c0_383 = arith.constant 0 : index
    %c0_384 = arith.constant 0 : index
    %909 = vector.load %arg19[%c0_383, %c0_384] : memref<1x32xf32, #tpu.memory_space<vmem>>, vector<1x32xf32>
    %910 = vector.broadcast %909 : vector<1x32xf32> to vector<8x32xf32>
    %911 = arith.addf %908, %910 : vector<8x32xf32>
    %912 = vector.extract_strided_slice %911 {offsets = [0, 0], sizes = [8, 16], strides = [1, 1]} : vector<8x32xf32> to vector<8x16xf32>
    %913 = vector.extract_strided_slice %911 {offsets = [0, 16], sizes = [8, 16], strides = [1, 1]} : vector<8x32xf32> to vector<8x16xf32>
    %cst_385 = arith.constant 0.000000e+00 : f32
    %914 = vector.broadcast %cst_385 : f32 to vector<8x16xf32>
    %915 = arith.maximumf %913, %914 : vector<8x16xf32>
    %916 = vector.broadcast %cst_385 : f32 to vector<8x16xf32>
    %917 = arith.subf %913, %916 : vector<8x16xf32>
    %918 = arith.cmpf one, %917, %917 : vector<8x16xf32>
    %919 = vector.broadcast %cst_385 : f32 to vector<8x16xf32>
    %920 = arith.addf %913, %919 : vector<8x16xf32>
    %921 = math.absf %917 : vector<8x16xf32>
    %cst_386 = arith.constant 0.000000e+00 : f32
    %922 = vector.broadcast %cst_386 : f32 to vector<8x16xf32>
    %923 = arith.subf %922, %921 : vector<8x16xf32>
    %924 = math.exp %923 : vector<8x16xf32>
    %925 = math.log1p %924 : vector<8x16xf32>
    %926 = arith.addf %915, %925 : vector<8x16xf32>
    %927 = arith.select %918, %920, %926 : vector<8x16xi1>, vector<8x16xf32>
    %928 = vector.extract_strided_slice %822 {offsets = [0, 96], sizes = [8, 96], strides = [1, 1]} : vector<8x192xf32> to vector<8x96xf32>
    %c0_387 = arith.constant 0 : index
    %c0_388 = arith.constant 0 : index
    %929 = vector.load %arg21[%c0_387, %c0_388] : memref<32x96xf32, #tpu.memory_space<vmem>>, vector<32x96xf32>
    %cst_389 = arith.constant dense<0.000000e+00> : vector<8x96xf32>
    %930 = tpu.matmul %890, %929, %cst_389 {dimension_numbers = #tpu.dot_dimension_numbers<[1], [0], [0], [1], [0, 0, 1, 1], [], []>} : vector<8x32xf32>, vector<32x96xf32>, vector<8x96xf32> -> vector<8x96xf32>
    %931 = arith.addf %820, %930 : vector<8x96xf32>
    %c0_390 = arith.constant 0 : index
    %c0_391 = arith.constant 0 : index
    %932 = vector.load %arg23[%c0_390, %c0_391] : memref<32x96xf32, #tpu.memory_space<vmem>>, vector<32x96xf32>
    %cst_392 = arith.constant dense<0.000000e+00> : vector<8x96xf32>
    %933 = tpu.matmul %752, %932, %cst_392 {dimension_numbers = #tpu.dot_dimension_numbers<[1], [0], [0], [1], [0, 0, 1, 1], [], []>} : vector<8x32xf32>, vector<32x96xf32>, vector<8x96xf32> -> vector<8x96xf32>
    %934 = vector.extract_strided_slice %931 {offsets = [0, 0], sizes = [8, 64], strides = [1, 1]} : vector<8x96xf32> to vector<8x64xf32>
    %935 = vector.extract_strided_slice %933 {offsets = [0, 0], sizes = [8, 64], strides = [1, 1]} : vector<8x96xf32> to vector<8x64xf32>
    %936 = arith.addf %934, %935 : vector<8x64xf32>
    %937 = arith.negf %936 : vector<8x64xf32>
    %938 = math.exp %937 : vector<8x64xf32>
    %cst_393 = arith.constant 1.000000e+00 : f32
    %939 = vector.broadcast %cst_393 : f32 to vector<8x64xf32>
    %940 = arith.addf %939, %938 : vector<8x64xf32>
    %941 = arith.divf %939, %940 : vector<8x64xf32>
    %942 = vector.extract_strided_slice %941 {offsets = [0, 0], sizes = [8, 32], strides = [1, 1]} : vector<8x64xf32> to vector<8x32xf32>
    %943 = vector.extract_strided_slice %941 {offsets = [0, 32], sizes = [8, 32], strides = [1, 1]} : vector<8x64xf32> to vector<8x32xf32>
    %944 = vector.extract_strided_slice %931 {offsets = [0, 64], sizes = [8, 32], strides = [1, 1]} : vector<8x96xf32> to vector<8x32xf32>
    %945 = vector.extract_strided_slice %933 {offsets = [0, 64], sizes = [8, 32], strides = [1, 1]} : vector<8x96xf32> to vector<8x32xf32>
    %946 = arith.mulf %942, %945 : vector<8x32xf32>
    %947 = arith.addf %944, %946 : vector<8x32xf32>
    %948 = math.tanh %947 : vector<8x32xf32>
    %cst_394 = arith.constant 1.000000e+00 : f32
    %949 = vector.broadcast %cst_394 : f32 to vector<8x32xf32>
    %950 = arith.subf %949, %943 : vector<8x32xf32>
    %951 = arith.mulf %950, %948 : vector<8x32xf32>
    %952 = arith.mulf %943, %752 : vector<8x32xf32>
    %953 = arith.addf %951, %952 : vector<8x32xf32>
    %c0_395 = arith.constant 0 : index
    %c0_396 = arith.constant 0 : index
    %954 = vector.load %arg22[%c0_395, %c0_396] : memref<32x96xf32, #tpu.memory_space<vmem>>, vector<32x96xf32>
    %cst_397 = arith.constant dense<0.000000e+00> : vector<8x96xf32>
    %955 = tpu.matmul %953, %954, %cst_397 {dimension_numbers = #tpu.dot_dimension_numbers<[1], [0], [0], [1], [0, 0, 1, 1], [], []>} : vector<8x32xf32>, vector<32x96xf32>, vector<8x96xf32> -> vector<8x96xf32>
    %956 = vector.extract_strided_slice %955 {offsets = [0, 0], sizes = [8, 64], strides = [1, 1]} : vector<8x96xf32> to vector<8x64xf32>
    %957 = vector.extract_strided_slice %928 {offsets = [0, 0], sizes = [8, 64], strides = [1, 1]} : vector<8x96xf32> to vector<8x64xf32>
    %958 = arith.addf %956, %957 : vector<8x64xf32>
    %959 = arith.negf %958 : vector<8x64xf32>
    %960 = math.exp %959 : vector<8x64xf32>
    %cst_398 = arith.constant 1.000000e+00 : f32
    %961 = vector.broadcast %cst_398 : f32 to vector<8x64xf32>
    %962 = arith.addf %961, %960 : vector<8x64xf32>
    %963 = arith.divf %961, %962 : vector<8x64xf32>
    %964 = vector.extract_strided_slice %963 {offsets = [0, 0], sizes = [8, 32], strides = [1, 1]} : vector<8x64xf32> to vector<8x32xf32>
    %965 = vector.extract_strided_slice %963 {offsets = [0, 32], sizes = [8, 32], strides = [1, 1]} : vector<8x64xf32> to vector<8x32xf32>
    %966 = vector.extract_strided_slice %955 {offsets = [0, 64], sizes = [8, 32], strides = [1, 1]} : vector<8x96xf32> to vector<8x32xf32>
    %967 = vector.extract_strided_slice %928 {offsets = [0, 64], sizes = [8, 32], strides = [1, 1]} : vector<8x96xf32> to vector<8x32xf32>
    %968 = arith.mulf %964, %967 : vector<8x32xf32>
    %969 = arith.addf %966, %968 : vector<8x32xf32>
    %970 = math.tanh %969 : vector<8x32xf32>
    %cst_399 = arith.constant 1.000000e+00 : f32
    %971 = vector.broadcast %cst_399 : f32 to vector<8x32xf32>
    %972 = arith.subf %971, %965 : vector<8x32xf32>
    %973 = arith.mulf %972, %970 : vector<8x32xf32>
    %974 = arith.mulf %965, %774 : vector<8x32xf32>
    %975 = arith.addf %973, %974 : vector<8x32xf32>
    %cst_400 = arith.constant 1.1920929E-7 : f32
    %976 = vector.broadcast %cst_400 : f32 to vector<8x16xf32>
    %977 = arith.addf %881, %976 : vector<8x16xf32>
    %978 = math.log %977 : vector<8x16xf32>
    %cst_401 = arith.constant 2.000000e+00 : f32
    %979 = vector.broadcast %cst_401 : f32 to vector<8x16xf32>
    %980 = arith.mulf %979, %978 : vector<8x16xf32>
    %cst_402 = arith.constant 1.1920929E-7 : f32
    %981 = vector.broadcast %cst_402 : f32 to vector<8x16xf32>
    %982 = arith.addf %854, %981 : vector<8x16xf32>
    %983 = math.log %982 : vector<8x16xf32>
    %cst_403 = arith.constant 2.000000e+00 : f32
    %984 = vector.broadcast %cst_403 : f32 to vector<8x16xf32>
    %985 = arith.mulf %984, %983 : vector<8x16xf32>
    %986 = arith.subf %980, %985 : vector<8x16xf32>
    %987 = arith.mulf %854, %854 : vector<8x16xf32>
    %988 = arith.subf %839, %866 : vector<8x16xf32>
    %989 = arith.mulf %988, %988 : vector<8x16xf32>
    %990 = arith.addf %987, %989 : vector<8x16xf32>
    %991 = arith.mulf %881, %881 : vector<8x16xf32>
    %992 = arith.divf %990, %991 : vector<8x16xf32>
    %993 = arith.addf %986, %992 : vector<8x16xf32>
    %cst_404 = arith.constant 1.000000e+00 : f32
    %994 = vector.broadcast %cst_404 : f32 to vector<8x16xf32>
    %995 = arith.subf %993, %994 : vector<8x16xf32>
    %996 = arith.addf %795, %995 : vector<8x16xf32>
    %cst_405 = arith.constant 1.1920929E-7 : f32
    %997 = vector.broadcast %cst_405 : f32 to vector<8x16xf32>
    %998 = arith.addf %927, %997 : vector<8x16xf32>
    %999 = math.log %998 : vector<8x16xf32>
    %cst_406 = arith.constant 0.918938517 : f32
    %1000 = vector.broadcast %cst_406 : f32 to vector<8x16xf32>
    %1001 = arith.addf %999, %1000 : vector<8x16xf32>
    %1002 = arith.subf %811, %912 : vector<8x16xf32>
    %1003 = arith.mulf %1002, %1002 : vector<8x16xf32>
    %cst_407 = arith.constant 2.000000e+00 : f32
    %1004 = vector.broadcast %cst_407 : f32 to vector<8x16xf32>
    %1005 = arith.mulf %1004, %927 : vector<8x16xf32>
    %1006 = arith.mulf %1005, %927 : vector<8x16xf32>
    %1007 = arith.divf %1003, %1006 : vector<8x16xf32>
    %1008 = arith.addf %1001, %1007 : vector<8x16xf32>
    %1009 = arith.addf %808, %1008 : vector<8x16xf32>
    %c5_i32 = arith.constant 5 : i32
    %1010 = arith.index_cast %c5_i32 : i32 to index
    %c0_408 = arith.constant 0 : index
    %c0_409 = arith.constant 0 : index
    %1011 = vector.load %arg1[%1010, %c0_408, %c0_409] : memref<8x8x16xf32, #tpu.memory_space<vmem>>, vector<1x8x16xf32>
    %1012 = vector.shape_cast %1011 : vector<1x8x16xf32> to vector<8x16xf32>
    %1013 = arith.index_cast %c5_i32 : i32 to index
    %c0_410 = arith.constant 0 : index
    %c0_411 = arith.constant 0 : index
    %1014 = vector.load %arg2[%1013, %c0_410, %c0_411] : memref<8x8x16xf32, #tpu.memory_space<vmem>>, vector<1x8x16xf32>
    %1015 = vector.shape_cast %1014 : vector<1x8x16xf32> to vector<8x16xf32>
    %1016 = arith.index_cast %c5_i32 : i32 to index
    %c0_412 = arith.constant 0 : index
    %c0_413 = arith.constant 0 : index
    %1017 = vector.load %arg3[%1016, %c0_412, %c0_413] : memref<8x8x32xf32, #tpu.memory_space<vmem>>, vector<1x8x32xf32>
    %1018 = vector.shape_cast %1017 : vector<1x8x32xf32> to vector<8x32xf32>
    %1019 = arith.index_cast %c5_i32 : i32 to index
    %c0_414 = arith.constant 0 : index
    %c0_415 = arith.constant 0 : index
    %1020 = vector.load %arg4[%1019, %c0_414, %c0_415] : memref<8x8x96xf32, #tpu.memory_space<vmem>>, vector<1x8x96xf32>
    %1021 = vector.shape_cast %1020 : vector<1x8x96xf32> to vector<8x96xf32>
    %c0_416 = arith.constant 0 : index
    %c0_417 = arith.constant 0 : index
    %1022 = vector.load %arg20[%c0_416, %c0_417] : memref<32x192xf32, #tpu.memory_space<vmem>>, vector<32x192xf32>
    %cst_418 = arith.constant dense<0.000000e+00> : vector<8x192xf32>
    %1023 = tpu.matmul %975, %1022, %cst_418 {dimension_numbers = #tpu.dot_dimension_numbers<[1], [0], [0], [1], [0, 0, 1, 1], [], []>} : vector<8x32xf32>, vector<32x192xf32>, vector<8x192xf32> -> vector<8x192xf32>
    %1024 = vector.extract_strided_slice %1023 {offsets = [0, 0], sizes = [8, 32], strides = [1, 1]} : vector<8x192xf32> to vector<8x32xf32>
    %1025 = arith.addf %1018, %1024 : vector<8x32xf32>
    %cst_419 = arith.constant 0.000000e+00 : f32
    %1026 = vector.broadcast %cst_419 : f32 to vector<8x32xf32>
    %1027 = arith.maximumf %1025, %1026 : vector<8x32xf32>
    %c0_420 = arith.constant 0 : index
    %c0_421 = arith.constant 0 : index
    %1028 = vector.load %arg7[%c0_420, %c0_421] : memref<32x32xf32, #tpu.memory_space<vmem>>, vector<32x32xf32>
    %cst_422 = arith.constant dense<0.000000e+00> : vector<8x32xf32>
    %1029 = tpu.matmul %1027, %1028, %cst_422 {dimension_numbers = #tpu.dot_dimension_numbers<[1], [0], [0], [1], [0, 0, 1, 1], [], []>} : vector<8x32xf32>, vector<32x32xf32>, vector<8x32xf32> -> vector<8x32xf32>
    %c0_423 = arith.constant 0 : index
    %c0_424 = arith.constant 0 : index
    %1030 = vector.load %arg8[%c0_423, %c0_424] : memref<1x32xf32, #tpu.memory_space<vmem>>, vector<1x32xf32>
    %1031 = vector.broadcast %1030 : vector<1x32xf32> to vector<8x32xf32>
    %1032 = arith.addf %1029, %1031 : vector<8x32xf32>
    %cst_425 = arith.constant 0.000000e+00 : f32
    %1033 = vector.broadcast %cst_425 : f32 to vector<8x32xf32>
    %1034 = arith.maximumf %1032, %1033 : vector<8x32xf32>
    %c0_426 = arith.constant 0 : index
    %c0_427 = arith.constant 0 : index
    %1035 = vector.load %arg9[%c0_426, %c0_427] : memref<32x32xf32, #tpu.memory_space<vmem>>, vector<32x32xf32>
    %cst_428 = arith.constant dense<0.000000e+00> : vector<8x32xf32>
    %1036 = tpu.matmul %1034, %1035, %cst_428 {dimension_numbers = #tpu.dot_dimension_numbers<[1], [0], [0], [1], [0, 0, 1, 1], [], []>} : vector<8x32xf32>, vector<32x32xf32>, vector<8x32xf32> -> vector<8x32xf32>
    %c0_429 = arith.constant 0 : index
    %c0_430 = arith.constant 0 : index
    %1037 = vector.load %arg10[%c0_429, %c0_430] : memref<1x32xf32, #tpu.memory_space<vmem>>, vector<1x32xf32>
    %1038 = vector.broadcast %1037 : vector<1x32xf32> to vector<8x32xf32>
    %1039 = arith.addf %1036, %1038 : vector<8x32xf32>
    %1040 = vector.extract_strided_slice %1039 {offsets = [0, 0], sizes = [8, 16], strides = [1, 1]} : vector<8x32xf32> to vector<8x16xf32>
    %1041 = vector.extract_strided_slice %1039 {offsets = [0, 16], sizes = [8, 16], strides = [1, 1]} : vector<8x32xf32> to vector<8x16xf32>
    %cst_431 = arith.constant 0.000000e+00 : f32
    %1042 = vector.broadcast %cst_431 : f32 to vector<8x16xf32>
    %1043 = arith.maximumf %1041, %1042 : vector<8x16xf32>
    %1044 = vector.broadcast %cst_431 : f32 to vector<8x16xf32>
    %1045 = arith.subf %1041, %1044 : vector<8x16xf32>
    %1046 = arith.cmpf one, %1045, %1045 : vector<8x16xf32>
    %1047 = vector.broadcast %cst_431 : f32 to vector<8x16xf32>
    %1048 = arith.addf %1041, %1047 : vector<8x16xf32>
    %1049 = math.absf %1045 : vector<8x16xf32>
    %cst_432 = arith.constant 0.000000e+00 : f32
    %1050 = vector.broadcast %cst_432 : f32 to vector<8x16xf32>
    %1051 = arith.subf %1050, %1049 : vector<8x16xf32>
    %1052 = math.exp %1051 : vector<8x16xf32>
    %1053 = math.log1p %1052 : vector<8x16xf32>
    %1054 = arith.addf %1043, %1053 : vector<8x16xf32>
    %1055 = arith.select %1046, %1048, %1054 : vector<8x16xi1>, vector<8x16xf32>
    %1056 = vector.extract_strided_slice %1023 {offsets = [0, 32], sizes = [8, 32], strides = [1, 1]} : vector<8x192xf32> to vector<8x32xf32>
    %c0_433 = arith.constant 0 : index
    %c0_434 = arith.constant 0 : index
    %1057 = vector.load %arg11[%c0_433, %c0_434] : memref<1x32xf32, #tpu.memory_space<vmem>>, vector<1x32xf32>
    %1058 = vector.broadcast %1057 : vector<1x32xf32> to vector<8x32xf32>
    %1059 = arith.addf %1056, %1058 : vector<8x32xf32>
    %cst_435 = arith.constant 0.000000e+00 : f32
    %1060 = vector.broadcast %cst_435 : f32 to vector<8x32xf32>
    %1061 = arith.maximumf %1059, %1060 : vector<8x32xf32>
    %c0_436 = arith.constant 0 : index
    %c0_437 = arith.constant 0 : index
    %1062 = vector.load %arg12[%c0_436, %c0_437] : memref<32x32xf32, #tpu.memory_space<vmem>>, vector<32x32xf32>
    %cst_438 = arith.constant dense<0.000000e+00> : vector<8x32xf32>
    %1063 = tpu.matmul %1061, %1062, %cst_438 {dimension_numbers = #tpu.dot_dimension_numbers<[1], [0], [0], [1], [0, 0, 1, 1], [], []>} : vector<8x32xf32>, vector<32x32xf32>, vector<8x32xf32> -> vector<8x32xf32>
    %c0_439 = arith.constant 0 : index
    %c0_440 = arith.constant 0 : index
    %1064 = vector.load %arg13[%c0_439, %c0_440] : memref<1x32xf32, #tpu.memory_space<vmem>>, vector<1x32xf32>
    %1065 = vector.broadcast %1064 : vector<1x32xf32> to vector<8x32xf32>
    %1066 = arith.addf %1063, %1065 : vector<8x32xf32>
    %1067 = vector.extract_strided_slice %1066 {offsets = [0, 0], sizes = [8, 16], strides = [1, 1]} : vector<8x32xf32> to vector<8x16xf32>
    %1068 = vector.extract_strided_slice %1066 {offsets = [0, 16], sizes = [8, 16], strides = [1, 1]} : vector<8x32xf32> to vector<8x16xf32>
    %cst_441 = arith.constant 0.000000e+00 : f32
    %1069 = vector.broadcast %cst_441 : f32 to vector<8x16xf32>
    %1070 = arith.maximumf %1068, %1069 : vector<8x16xf32>
    %1071 = vector.broadcast %cst_441 : f32 to vector<8x16xf32>
    %1072 = arith.subf %1068, %1071 : vector<8x16xf32>
    %1073 = arith.cmpf one, %1072, %1072 : vector<8x16xf32>
    %1074 = vector.broadcast %cst_441 : f32 to vector<8x16xf32>
    %1075 = arith.addf %1068, %1074 : vector<8x16xf32>
    %1076 = math.absf %1072 : vector<8x16xf32>
    %cst_442 = arith.constant 0.000000e+00 : f32
    %1077 = vector.broadcast %cst_442 : f32 to vector<8x16xf32>
    %1078 = arith.subf %1077, %1076 : vector<8x16xf32>
    %1079 = math.exp %1078 : vector<8x16xf32>
    %1080 = math.log1p %1079 : vector<8x16xf32>
    %1081 = arith.addf %1070, %1080 : vector<8x16xf32>
    %1082 = arith.select %1073, %1075, %1081 : vector<8x16xi1>, vector<8x16xf32>
    %1083 = arith.mulf %1015, %1055 : vector<8x16xf32>
    %1084 = arith.addf %1083, %1040 : vector<8x16xf32>
    %c0_443 = arith.constant 0 : index
    %c0_444 = arith.constant 0 : index
    %1085 = vector.load %arg5[%c0_443, %c0_444] : memref<16x32xf32, #tpu.memory_space<vmem>>, vector<16x32xf32>
    %cst_445 = arith.constant dense<0.000000e+00> : vector<8x32xf32>
    %1086 = tpu.matmul %1084, %1085, %cst_445 {dimension_numbers = #tpu.dot_dimension_numbers<[1], [0], [0], [1], [0, 0, 1, 1], [], []>} : vector<8x16xf32>, vector<16x32xf32>, vector<8x32xf32> -> vector<8x32xf32>
    %c0_446 = arith.constant 0 : index
    %c0_447 = arith.constant 0 : index
    %1087 = vector.load %arg6[%c0_446, %c0_447] : memref<1x32xf32, #tpu.memory_space<vmem>>, vector<1x32xf32>
    %1088 = vector.broadcast %1087 : vector<1x32xf32> to vector<8x32xf32>
    %1089 = arith.addf %1086, %1088 : vector<8x32xf32>
    %cst_448 = arith.constant 0.000000e+00 : f32
    %1090 = vector.broadcast %cst_448 : f32 to vector<8x32xf32>
    %1091 = arith.maximumf %1089, %1090 : vector<8x32xf32>
    %c0_449 = arith.constant 0 : index
    %c0_450 = arith.constant 0 : index
    %1092 = vector.load %arg14[%c0_449, %c0_450] : memref<32x32xf32, #tpu.memory_space<vmem>>, vector<32x32xf32>
    %cst_451 = arith.constant dense<0.000000e+00> : vector<8x32xf32>
    %1093 = tpu.matmul %1091, %1092, %cst_451 {dimension_numbers = #tpu.dot_dimension_numbers<[1], [0], [0], [1], [0, 0, 1, 1], [], []>} : vector<8x32xf32>, vector<32x32xf32>, vector<8x32xf32> -> vector<8x32xf32>
    %1094 = vector.extract_strided_slice %1023 {offsets = [0, 64], sizes = [8, 32], strides = [1, 1]} : vector<8x192xf32> to vector<8x32xf32>
    %1095 = arith.addf %1093, %1094 : vector<8x32xf32>
    %c0_452 = arith.constant 0 : index
    %c0_453 = arith.constant 0 : index
    %1096 = vector.load %arg15[%c0_452, %c0_453] : memref<1x32xf32, #tpu.memory_space<vmem>>, vector<1x32xf32>
    %1097 = vector.broadcast %1096 : vector<1x32xf32> to vector<8x32xf32>
    %1098 = arith.addf %1095, %1097 : vector<8x32xf32>
    %cst_454 = arith.constant 0.000000e+00 : f32
    %1099 = vector.broadcast %cst_454 : f32 to vector<8x32xf32>
    %1100 = arith.maximumf %1098, %1099 : vector<8x32xf32>
    %c0_455 = arith.constant 0 : index
    %c0_456 = arith.constant 0 : index
    %1101 = vector.load %arg16[%c0_455, %c0_456] : memref<32x32xf32, #tpu.memory_space<vmem>>, vector<32x32xf32>
    %cst_457 = arith.constant dense<0.000000e+00> : vector<8x32xf32>
    %1102 = tpu.matmul %1100, %1101, %cst_457 {dimension_numbers = #tpu.dot_dimension_numbers<[1], [0], [0], [1], [0, 0, 1, 1], [], []>} : vector<8x32xf32>, vector<32x32xf32>, vector<8x32xf32> -> vector<8x32xf32>
    %c0_458 = arith.constant 0 : index
    %c0_459 = arith.constant 0 : index
    %1103 = vector.load %arg17[%c0_458, %c0_459] : memref<1x32xf32, #tpu.memory_space<vmem>>, vector<1x32xf32>
    %1104 = vector.broadcast %1103 : vector<1x32xf32> to vector<8x32xf32>
    %1105 = arith.addf %1102, %1104 : vector<8x32xf32>
    %cst_460 = arith.constant 0.000000e+00 : f32
    %1106 = vector.broadcast %cst_460 : f32 to vector<8x32xf32>
    %1107 = arith.maximumf %1105, %1106 : vector<8x32xf32>
    %c0_461 = arith.constant 0 : index
    %c0_462 = arith.constant 0 : index
    %1108 = vector.load %arg18[%c0_461, %c0_462] : memref<32x32xf32, #tpu.memory_space<vmem>>, vector<32x32xf32>
    %cst_463 = arith.constant dense<0.000000e+00> : vector<8x32xf32>
    %1109 = tpu.matmul %1107, %1108, %cst_463 {dimension_numbers = #tpu.dot_dimension_numbers<[1], [0], [0], [1], [0, 0, 1, 1], [], []>} : vector<8x32xf32>, vector<32x32xf32>, vector<8x32xf32> -> vector<8x32xf32>
    %c0_464 = arith.constant 0 : index
    %c0_465 = arith.constant 0 : index
    %1110 = vector.load %arg19[%c0_464, %c0_465] : memref<1x32xf32, #tpu.memory_space<vmem>>, vector<1x32xf32>
    %1111 = vector.broadcast %1110 : vector<1x32xf32> to vector<8x32xf32>
    %1112 = arith.addf %1109, %1111 : vector<8x32xf32>
    %1113 = vector.extract_strided_slice %1112 {offsets = [0, 0], sizes = [8, 16], strides = [1, 1]} : vector<8x32xf32> to vector<8x16xf32>
    %1114 = vector.extract_strided_slice %1112 {offsets = [0, 16], sizes = [8, 16], strides = [1, 1]} : vector<8x32xf32> to vector<8x16xf32>
    %cst_466 = arith.constant 0.000000e+00 : f32
    %1115 = vector.broadcast %cst_466 : f32 to vector<8x16xf32>
    %1116 = arith.maximumf %1114, %1115 : vector<8x16xf32>
    %1117 = vector.broadcast %cst_466 : f32 to vector<8x16xf32>
    %1118 = arith.subf %1114, %1117 : vector<8x16xf32>
    %1119 = arith.cmpf one, %1118, %1118 : vector<8x16xf32>
    %1120 = vector.broadcast %cst_466 : f32 to vector<8x16xf32>
    %1121 = arith.addf %1114, %1120 : vector<8x16xf32>
    %1122 = math.absf %1118 : vector<8x16xf32>
    %cst_467 = arith.constant 0.000000e+00 : f32
    %1123 = vector.broadcast %cst_467 : f32 to vector<8x16xf32>
    %1124 = arith.subf %1123, %1122 : vector<8x16xf32>
    %1125 = math.exp %1124 : vector<8x16xf32>
    %1126 = math.log1p %1125 : vector<8x16xf32>
    %1127 = arith.addf %1116, %1126 : vector<8x16xf32>
    %1128 = arith.select %1119, %1121, %1127 : vector<8x16xi1>, vector<8x16xf32>
    %1129 = vector.extract_strided_slice %1023 {offsets = [0, 96], sizes = [8, 96], strides = [1, 1]} : vector<8x192xf32> to vector<8x96xf32>
    %c0_468 = arith.constant 0 : index
    %c0_469 = arith.constant 0 : index
    %1130 = vector.load %arg21[%c0_468, %c0_469] : memref<32x96xf32, #tpu.memory_space<vmem>>, vector<32x96xf32>
    %cst_470 = arith.constant dense<0.000000e+00> : vector<8x96xf32>
    %1131 = tpu.matmul %1091, %1130, %cst_470 {dimension_numbers = #tpu.dot_dimension_numbers<[1], [0], [0], [1], [0, 0, 1, 1], [], []>} : vector<8x32xf32>, vector<32x96xf32>, vector<8x96xf32> -> vector<8x96xf32>
    %1132 = arith.addf %1021, %1131 : vector<8x96xf32>
    %c0_471 = arith.constant 0 : index
    %c0_472 = arith.constant 0 : index
    %1133 = vector.load %arg23[%c0_471, %c0_472] : memref<32x96xf32, #tpu.memory_space<vmem>>, vector<32x96xf32>
    %cst_473 = arith.constant dense<0.000000e+00> : vector<8x96xf32>
    %1134 = tpu.matmul %953, %1133, %cst_473 {dimension_numbers = #tpu.dot_dimension_numbers<[1], [0], [0], [1], [0, 0, 1, 1], [], []>} : vector<8x32xf32>, vector<32x96xf32>, vector<8x96xf32> -> vector<8x96xf32>
    %1135 = vector.extract_strided_slice %1132 {offsets = [0, 0], sizes = [8, 64], strides = [1, 1]} : vector<8x96xf32> to vector<8x64xf32>
    %1136 = vector.extract_strided_slice %1134 {offsets = [0, 0], sizes = [8, 64], strides = [1, 1]} : vector<8x96xf32> to vector<8x64xf32>
    %1137 = arith.addf %1135, %1136 : vector<8x64xf32>
    %1138 = arith.negf %1137 : vector<8x64xf32>
    %1139 = math.exp %1138 : vector<8x64xf32>
    %cst_474 = arith.constant 1.000000e+00 : f32
    %1140 = vector.broadcast %cst_474 : f32 to vector<8x64xf32>
    %1141 = arith.addf %1140, %1139 : vector<8x64xf32>
    %1142 = arith.divf %1140, %1141 : vector<8x64xf32>
    %1143 = vector.extract_strided_slice %1142 {offsets = [0, 0], sizes = [8, 32], strides = [1, 1]} : vector<8x64xf32> to vector<8x32xf32>
    %1144 = vector.extract_strided_slice %1142 {offsets = [0, 32], sizes = [8, 32], strides = [1, 1]} : vector<8x64xf32> to vector<8x32xf32>
    %1145 = vector.extract_strided_slice %1132 {offsets = [0, 64], sizes = [8, 32], strides = [1, 1]} : vector<8x96xf32> to vector<8x32xf32>
    %1146 = vector.extract_strided_slice %1134 {offsets = [0, 64], sizes = [8, 32], strides = [1, 1]} : vector<8x96xf32> to vector<8x32xf32>
    %1147 = arith.mulf %1143, %1146 : vector<8x32xf32>
    %1148 = arith.addf %1145, %1147 : vector<8x32xf32>
    %1149 = math.tanh %1148 : vector<8x32xf32>
    %cst_475 = arith.constant 1.000000e+00 : f32
    %1150 = vector.broadcast %cst_475 : f32 to vector<8x32xf32>
    %1151 = arith.subf %1150, %1144 : vector<8x32xf32>
    %1152 = arith.mulf %1151, %1149 : vector<8x32xf32>
    %1153 = arith.mulf %1144, %953 : vector<8x32xf32>
    %1154 = arith.addf %1152, %1153 : vector<8x32xf32>
    %c0_476 = arith.constant 0 : index
    %c0_477 = arith.constant 0 : index
    %1155 = vector.load %arg22[%c0_476, %c0_477] : memref<32x96xf32, #tpu.memory_space<vmem>>, vector<32x96xf32>
    %cst_478 = arith.constant dense<0.000000e+00> : vector<8x96xf32>
    %1156 = tpu.matmul %1154, %1155, %cst_478 {dimension_numbers = #tpu.dot_dimension_numbers<[1], [0], [0], [1], [0, 0, 1, 1], [], []>} : vector<8x32xf32>, vector<32x96xf32>, vector<8x96xf32> -> vector<8x96xf32>
    %1157 = vector.extract_strided_slice %1156 {offsets = [0, 0], sizes = [8, 64], strides = [1, 1]} : vector<8x96xf32> to vector<8x64xf32>
    %1158 = vector.extract_strided_slice %1129 {offsets = [0, 0], sizes = [8, 64], strides = [1, 1]} : vector<8x96xf32> to vector<8x64xf32>
    %1159 = arith.addf %1157, %1158 : vector<8x64xf32>
    %1160 = arith.negf %1159 : vector<8x64xf32>
    %1161 = math.exp %1160 : vector<8x64xf32>
    %cst_479 = arith.constant 1.000000e+00 : f32
    %1162 = vector.broadcast %cst_479 : f32 to vector<8x64xf32>
    %1163 = arith.addf %1162, %1161 : vector<8x64xf32>
    %1164 = arith.divf %1162, %1163 : vector<8x64xf32>
    %1165 = vector.extract_strided_slice %1164 {offsets = [0, 0], sizes = [8, 32], strides = [1, 1]} : vector<8x64xf32> to vector<8x32xf32>
    %1166 = vector.extract_strided_slice %1164 {offsets = [0, 32], sizes = [8, 32], strides = [1, 1]} : vector<8x64xf32> to vector<8x32xf32>
    %1167 = vector.extract_strided_slice %1156 {offsets = [0, 64], sizes = [8, 32], strides = [1, 1]} : vector<8x96xf32> to vector<8x32xf32>
    %1168 = vector.extract_strided_slice %1129 {offsets = [0, 64], sizes = [8, 32], strides = [1, 1]} : vector<8x96xf32> to vector<8x32xf32>
    %1169 = arith.mulf %1165, %1168 : vector<8x32xf32>
    %1170 = arith.addf %1167, %1169 : vector<8x32xf32>
    %1171 = math.tanh %1170 : vector<8x32xf32>
    %cst_480 = arith.constant 1.000000e+00 : f32
    %1172 = vector.broadcast %cst_480 : f32 to vector<8x32xf32>
    %1173 = arith.subf %1172, %1166 : vector<8x32xf32>
    %1174 = arith.mulf %1173, %1171 : vector<8x32xf32>
    %1175 = arith.mulf %1166, %975 : vector<8x32xf32>
    %1176 = arith.addf %1174, %1175 : vector<8x32xf32>
    %cst_481 = arith.constant 1.1920929E-7 : f32
    %1177 = vector.broadcast %cst_481 : f32 to vector<8x16xf32>
    %1178 = arith.addf %1082, %1177 : vector<8x16xf32>
    %1179 = math.log %1178 : vector<8x16xf32>
    %cst_482 = arith.constant 2.000000e+00 : f32
    %1180 = vector.broadcast %cst_482 : f32 to vector<8x16xf32>
    %1181 = arith.mulf %1180, %1179 : vector<8x16xf32>
    %cst_483 = arith.constant 1.1920929E-7 : f32
    %1182 = vector.broadcast %cst_483 : f32 to vector<8x16xf32>
    %1183 = arith.addf %1055, %1182 : vector<8x16xf32>
    %1184 = math.log %1183 : vector<8x16xf32>
    %cst_484 = arith.constant 2.000000e+00 : f32
    %1185 = vector.broadcast %cst_484 : f32 to vector<8x16xf32>
    %1186 = arith.mulf %1185, %1184 : vector<8x16xf32>
    %1187 = arith.subf %1181, %1186 : vector<8x16xf32>
    %1188 = arith.mulf %1055, %1055 : vector<8x16xf32>
    %1189 = arith.subf %1040, %1067 : vector<8x16xf32>
    %1190 = arith.mulf %1189, %1189 : vector<8x16xf32>
    %1191 = arith.addf %1188, %1190 : vector<8x16xf32>
    %1192 = arith.mulf %1082, %1082 : vector<8x16xf32>
    %1193 = arith.divf %1191, %1192 : vector<8x16xf32>
    %1194 = arith.addf %1187, %1193 : vector<8x16xf32>
    %cst_485 = arith.constant 1.000000e+00 : f32
    %1195 = vector.broadcast %cst_485 : f32 to vector<8x16xf32>
    %1196 = arith.subf %1194, %1195 : vector<8x16xf32>
    %1197 = arith.addf %996, %1196 : vector<8x16xf32>
    %cst_486 = arith.constant 1.1920929E-7 : f32
    %1198 = vector.broadcast %cst_486 : f32 to vector<8x16xf32>
    %1199 = arith.addf %1128, %1198 : vector<8x16xf32>
    %1200 = math.log %1199 : vector<8x16xf32>
    %cst_487 = arith.constant 0.918938517 : f32
    %1201 = vector.broadcast %cst_487 : f32 to vector<8x16xf32>
    %1202 = arith.addf %1200, %1201 : vector<8x16xf32>
    %1203 = arith.subf %1012, %1113 : vector<8x16xf32>
    %1204 = arith.mulf %1203, %1203 : vector<8x16xf32>
    %cst_488 = arith.constant 2.000000e+00 : f32
    %1205 = vector.broadcast %cst_488 : f32 to vector<8x16xf32>
    %1206 = arith.mulf %1205, %1128 : vector<8x16xf32>
    %1207 = arith.mulf %1206, %1128 : vector<8x16xf32>
    %1208 = arith.divf %1204, %1207 : vector<8x16xf32>
    %1209 = arith.addf %1202, %1208 : vector<8x16xf32>
    %1210 = arith.addf %1009, %1209 : vector<8x16xf32>
    %c6_i32 = arith.constant 6 : i32
    %1211 = arith.index_cast %c6_i32 : i32 to index
    %c0_489 = arith.constant 0 : index
    %c0_490 = arith.constant 0 : index
    %1212 = vector.load %arg1[%1211, %c0_489, %c0_490] : memref<8x8x16xf32, #tpu.memory_space<vmem>>, vector<1x8x16xf32>
    %1213 = vector.shape_cast %1212 : vector<1x8x16xf32> to vector<8x16xf32>
    %1214 = arith.index_cast %c6_i32 : i32 to index
    %c0_491 = arith.constant 0 : index
    %c0_492 = arith.constant 0 : index
    %1215 = vector.load %arg2[%1214, %c0_491, %c0_492] : memref<8x8x16xf32, #tpu.memory_space<vmem>>, vector<1x8x16xf32>
    %1216 = vector.shape_cast %1215 : vector<1x8x16xf32> to vector<8x16xf32>
    %1217 = arith.index_cast %c6_i32 : i32 to index
    %c0_493 = arith.constant 0 : index
    %c0_494 = arith.constant 0 : index
    %1218 = vector.load %arg3[%1217, %c0_493, %c0_494] : memref<8x8x32xf32, #tpu.memory_space<vmem>>, vector<1x8x32xf32>
    %1219 = vector.shape_cast %1218 : vector<1x8x32xf32> to vector<8x32xf32>
    %1220 = arith.index_cast %c6_i32 : i32 to index
    %c0_495 = arith.constant 0 : index
    %c0_496 = arith.constant 0 : index
    %1221 = vector.load %arg4[%1220, %c0_495, %c0_496] : memref<8x8x96xf32, #tpu.memory_space<vmem>>, vector<1x8x96xf32>
    %1222 = vector.shape_cast %1221 : vector<1x8x96xf32> to vector<8x96xf32>
    %c0_497 = arith.constant 0 : index
    %c0_498 = arith.constant 0 : index
    %1223 = vector.load %arg20[%c0_497, %c0_498] : memref<32x192xf32, #tpu.memory_space<vmem>>, vector<32x192xf32>
    %cst_499 = arith.constant dense<0.000000e+00> : vector<8x192xf32>
    %1224 = tpu.matmul %1176, %1223, %cst_499 {dimension_numbers = #tpu.dot_dimension_numbers<[1], [0], [0], [1], [0, 0, 1, 1], [], []>} : vector<8x32xf32>, vector<32x192xf32>, vector<8x192xf32> -> vector<8x192xf32>
    %1225 = vector.extract_strided_slice %1224 {offsets = [0, 0], sizes = [8, 32], strides = [1, 1]} : vector<8x192xf32> to vector<8x32xf32>
    %1226 = arith.addf %1219, %1225 : vector<8x32xf32>
    %cst_500 = arith.constant 0.000000e+00 : f32
    %1227 = vector.broadcast %cst_500 : f32 to vector<8x32xf32>
    %1228 = arith.maximumf %1226, %1227 : vector<8x32xf32>
    %c0_501 = arith.constant 0 : index
    %c0_502 = arith.constant 0 : index
    %1229 = vector.load %arg7[%c0_501, %c0_502] : memref<32x32xf32, #tpu.memory_space<vmem>>, vector<32x32xf32>
    %cst_503 = arith.constant dense<0.000000e+00> : vector<8x32xf32>
    %1230 = tpu.matmul %1228, %1229, %cst_503 {dimension_numbers = #tpu.dot_dimension_numbers<[1], [0], [0], [1], [0, 0, 1, 1], [], []>} : vector<8x32xf32>, vector<32x32xf32>, vector<8x32xf32> -> vector<8x32xf32>
    %c0_504 = arith.constant 0 : index
    %c0_505 = arith.constant 0 : index
    %1231 = vector.load %arg8[%c0_504, %c0_505] : memref<1x32xf32, #tpu.memory_space<vmem>>, vector<1x32xf32>
    %1232 = vector.broadcast %1231 : vector<1x32xf32> to vector<8x32xf32>
    %1233 = arith.addf %1230, %1232 : vector<8x32xf32>
    %cst_506 = arith.constant 0.000000e+00 : f32
    %1234 = vector.broadcast %cst_506 : f32 to vector<8x32xf32>
    %1235 = arith.maximumf %1233, %1234 : vector<8x32xf32>
    %c0_507 = arith.constant 0 : index
    %c0_508 = arith.constant 0 : index
    %1236 = vector.load %arg9[%c0_507, %c0_508] : memref<32x32xf32, #tpu.memory_space<vmem>>, vector<32x32xf32>
    %cst_509 = arith.constant dense<0.000000e+00> : vector<8x32xf32>
    %1237 = tpu.matmul %1235, %1236, %cst_509 {dimension_numbers = #tpu.dot_dimension_numbers<[1], [0], [0], [1], [0, 0, 1, 1], [], []>} : vector<8x32xf32>, vector<32x32xf32>, vector<8x32xf32> -> vector<8x32xf32>
    %c0_510 = arith.constant 0 : index
    %c0_511 = arith.constant 0 : index
    %1238 = vector.load %arg10[%c0_510, %c0_511] : memref<1x32xf32, #tpu.memory_space<vmem>>, vector<1x32xf32>
    %1239 = vector.broadcast %1238 : vector<1x32xf32> to vector<8x32xf32>
    %1240 = arith.addf %1237, %1239 : vector<8x32xf32>
    %1241 = vector.extract_strided_slice %1240 {offsets = [0, 0], sizes = [8, 16], strides = [1, 1]} : vector<8x32xf32> to vector<8x16xf32>
    %1242 = vector.extract_strided_slice %1240 {offsets = [0, 16], sizes = [8, 16], strides = [1, 1]} : vector<8x32xf32> to vector<8x16xf32>
    %cst_512 = arith.constant 0.000000e+00 : f32
    %1243 = vector.broadcast %cst_512 : f32 to vector<8x16xf32>
    %1244 = arith.maximumf %1242, %1243 : vector<8x16xf32>
    %1245 = vector.broadcast %cst_512 : f32 to vector<8x16xf32>
    %1246 = arith.subf %1242, %1245 : vector<8x16xf32>
    %1247 = arith.cmpf one, %1246, %1246 : vector<8x16xf32>
    %1248 = vector.broadcast %cst_512 : f32 to vector<8x16xf32>
    %1249 = arith.addf %1242, %1248 : vector<8x16xf32>
    %1250 = math.absf %1246 : vector<8x16xf32>
    %cst_513 = arith.constant 0.000000e+00 : f32
    %1251 = vector.broadcast %cst_513 : f32 to vector<8x16xf32>
    %1252 = arith.subf %1251, %1250 : vector<8x16xf32>
    %1253 = math.exp %1252 : vector<8x16xf32>
    %1254 = math.log1p %1253 : vector<8x16xf32>
    %1255 = arith.addf %1244, %1254 : vector<8x16xf32>
    %1256 = arith.select %1247, %1249, %1255 : vector<8x16xi1>, vector<8x16xf32>
    %1257 = vector.extract_strided_slice %1224 {offsets = [0, 32], sizes = [8, 32], strides = [1, 1]} : vector<8x192xf32> to vector<8x32xf32>
    %c0_514 = arith.constant 0 : index
    %c0_515 = arith.constant 0 : index
    %1258 = vector.load %arg11[%c0_514, %c0_515] : memref<1x32xf32, #tpu.memory_space<vmem>>, vector<1x32xf32>
    %1259 = vector.broadcast %1258 : vector<1x32xf32> to vector<8x32xf32>
    %1260 = arith.addf %1257, %1259 : vector<8x32xf32>
    %cst_516 = arith.constant 0.000000e+00 : f32
    %1261 = vector.broadcast %cst_516 : f32 to vector<8x32xf32>
    %1262 = arith.maximumf %1260, %1261 : vector<8x32xf32>
    %c0_517 = arith.constant 0 : index
    %c0_518 = arith.constant 0 : index
    %1263 = vector.load %arg12[%c0_517, %c0_518] : memref<32x32xf32, #tpu.memory_space<vmem>>, vector<32x32xf32>
    %cst_519 = arith.constant dense<0.000000e+00> : vector<8x32xf32>
    %1264 = tpu.matmul %1262, %1263, %cst_519 {dimension_numbers = #tpu.dot_dimension_numbers<[1], [0], [0], [1], [0, 0, 1, 1], [], []>} : vector<8x32xf32>, vector<32x32xf32>, vector<8x32xf32> -> vector<8x32xf32>
    %c0_520 = arith.constant 0 : index
    %c0_521 = arith.constant 0 : index
    %1265 = vector.load %arg13[%c0_520, %c0_521] : memref<1x32xf32, #tpu.memory_space<vmem>>, vector<1x32xf32>
    %1266 = vector.broadcast %1265 : vector<1x32xf32> to vector<8x32xf32>
    %1267 = arith.addf %1264, %1266 : vector<8x32xf32>
    %1268 = vector.extract_strided_slice %1267 {offsets = [0, 0], sizes = [8, 16], strides = [1, 1]} : vector<8x32xf32> to vector<8x16xf32>
    %1269 = vector.extract_strided_slice %1267 {offsets = [0, 16], sizes = [8, 16], strides = [1, 1]} : vector<8x32xf32> to vector<8x16xf32>
    %cst_522 = arith.constant 0.000000e+00 : f32
    %1270 = vector.broadcast %cst_522 : f32 to vector<8x16xf32>
    %1271 = arith.maximumf %1269, %1270 : vector<8x16xf32>
    %1272 = vector.broadcast %cst_522 : f32 to vector<8x16xf32>
    %1273 = arith.subf %1269, %1272 : vector<8x16xf32>
    %1274 = arith.cmpf one, %1273, %1273 : vector<8x16xf32>
    %1275 = vector.broadcast %cst_522 : f32 to vector<8x16xf32>
    %1276 = arith.addf %1269, %1275 : vector<8x16xf32>
    %1277 = math.absf %1273 : vector<8x16xf32>
    %cst_523 = arith.constant 0.000000e+00 : f32
    %1278 = vector.broadcast %cst_523 : f32 to vector<8x16xf32>
    %1279 = arith.subf %1278, %1277 : vector<8x16xf32>
    %1280 = math.exp %1279 : vector<8x16xf32>
    %1281 = math.log1p %1280 : vector<8x16xf32>
    %1282 = arith.addf %1271, %1281 : vector<8x16xf32>
    %1283 = arith.select %1274, %1276, %1282 : vector<8x16xi1>, vector<8x16xf32>
    %1284 = arith.mulf %1216, %1256 : vector<8x16xf32>
    %1285 = arith.addf %1284, %1241 : vector<8x16xf32>
    %c0_524 = arith.constant 0 : index
    %c0_525 = arith.constant 0 : index
    %1286 = vector.load %arg5[%c0_524, %c0_525] : memref<16x32xf32, #tpu.memory_space<vmem>>, vector<16x32xf32>
    %cst_526 = arith.constant dense<0.000000e+00> : vector<8x32xf32>
    %1287 = tpu.matmul %1285, %1286, %cst_526 {dimension_numbers = #tpu.dot_dimension_numbers<[1], [0], [0], [1], [0, 0, 1, 1], [], []>} : vector<8x16xf32>, vector<16x32xf32>, vector<8x32xf32> -> vector<8x32xf32>
    %c0_527 = arith.constant 0 : index
    %c0_528 = arith.constant 0 : index
    %1288 = vector.load %arg6[%c0_527, %c0_528] : memref<1x32xf32, #tpu.memory_space<vmem>>, vector<1x32xf32>
    %1289 = vector.broadcast %1288 : vector<1x32xf32> to vector<8x32xf32>
    %1290 = arith.addf %1287, %1289 : vector<8x32xf32>
    %cst_529 = arith.constant 0.000000e+00 : f32
    %1291 = vector.broadcast %cst_529 : f32 to vector<8x32xf32>
    %1292 = arith.maximumf %1290, %1291 : vector<8x32xf32>
    %c0_530 = arith.constant 0 : index
    %c0_531 = arith.constant 0 : index
    %1293 = vector.load %arg14[%c0_530, %c0_531] : memref<32x32xf32, #tpu.memory_space<vmem>>, vector<32x32xf32>
    %cst_532 = arith.constant dense<0.000000e+00> : vector<8x32xf32>
    %1294 = tpu.matmul %1292, %1293, %cst_532 {dimension_numbers = #tpu.dot_dimension_numbers<[1], [0], [0], [1], [0, 0, 1, 1], [], []>} : vector<8x32xf32>, vector<32x32xf32>, vector<8x32xf32> -> vector<8x32xf32>
    %1295 = vector.extract_strided_slice %1224 {offsets = [0, 64], sizes = [8, 32], strides = [1, 1]} : vector<8x192xf32> to vector<8x32xf32>
    %1296 = arith.addf %1294, %1295 : vector<8x32xf32>
    %c0_533 = arith.constant 0 : index
    %c0_534 = arith.constant 0 : index
    %1297 = vector.load %arg15[%c0_533, %c0_534] : memref<1x32xf32, #tpu.memory_space<vmem>>, vector<1x32xf32>
    %1298 = vector.broadcast %1297 : vector<1x32xf32> to vector<8x32xf32>
    %1299 = arith.addf %1296, %1298 : vector<8x32xf32>
    %cst_535 = arith.constant 0.000000e+00 : f32
    %1300 = vector.broadcast %cst_535 : f32 to vector<8x32xf32>
    %1301 = arith.maximumf %1299, %1300 : vector<8x32xf32>
    %c0_536 = arith.constant 0 : index
    %c0_537 = arith.constant 0 : index
    %1302 = vector.load %arg16[%c0_536, %c0_537] : memref<32x32xf32, #tpu.memory_space<vmem>>, vector<32x32xf32>
    %cst_538 = arith.constant dense<0.000000e+00> : vector<8x32xf32>
    %1303 = tpu.matmul %1301, %1302, %cst_538 {dimension_numbers = #tpu.dot_dimension_numbers<[1], [0], [0], [1], [0, 0, 1, 1], [], []>} : vector<8x32xf32>, vector<32x32xf32>, vector<8x32xf32> -> vector<8x32xf32>
    %c0_539 = arith.constant 0 : index
    %c0_540 = arith.constant 0 : index
    %1304 = vector.load %arg17[%c0_539, %c0_540] : memref<1x32xf32, #tpu.memory_space<vmem>>, vector<1x32xf32>
    %1305 = vector.broadcast %1304 : vector<1x32xf32> to vector<8x32xf32>
    %1306 = arith.addf %1303, %1305 : vector<8x32xf32>
    %cst_541 = arith.constant 0.000000e+00 : f32
    %1307 = vector.broadcast %cst_541 : f32 to vector<8x32xf32>
    %1308 = arith.maximumf %1306, %1307 : vector<8x32xf32>
    %c0_542 = arith.constant 0 : index
    %c0_543 = arith.constant 0 : index
    %1309 = vector.load %arg18[%c0_542, %c0_543] : memref<32x32xf32, #tpu.memory_space<vmem>>, vector<32x32xf32>
    %cst_544 = arith.constant dense<0.000000e+00> : vector<8x32xf32>
    %1310 = tpu.matmul %1308, %1309, %cst_544 {dimension_numbers = #tpu.dot_dimension_numbers<[1], [0], [0], [1], [0, 0, 1, 1], [], []>} : vector<8x32xf32>, vector<32x32xf32>, vector<8x32xf32> -> vector<8x32xf32>
    %c0_545 = arith.constant 0 : index
    %c0_546 = arith.constant 0 : index
    %1311 = vector.load %arg19[%c0_545, %c0_546] : memref<1x32xf32, #tpu.memory_space<vmem>>, vector<1x32xf32>
    %1312 = vector.broadcast %1311 : vector<1x32xf32> to vector<8x32xf32>
    %1313 = arith.addf %1310, %1312 : vector<8x32xf32>
    %1314 = vector.extract_strided_slice %1313 {offsets = [0, 0], sizes = [8, 16], strides = [1, 1]} : vector<8x32xf32> to vector<8x16xf32>
    %1315 = vector.extract_strided_slice %1313 {offsets = [0, 16], sizes = [8, 16], strides = [1, 1]} : vector<8x32xf32> to vector<8x16xf32>
    %cst_547 = arith.constant 0.000000e+00 : f32
    %1316 = vector.broadcast %cst_547 : f32 to vector<8x16xf32>
    %1317 = arith.maximumf %1315, %1316 : vector<8x16xf32>
    %1318 = vector.broadcast %cst_547 : f32 to vector<8x16xf32>
    %1319 = arith.subf %1315, %1318 : vector<8x16xf32>
    %1320 = arith.cmpf one, %1319, %1319 : vector<8x16xf32>
    %1321 = vector.broadcast %cst_547 : f32 to vector<8x16xf32>
    %1322 = arith.addf %1315, %1321 : vector<8x16xf32>
    %1323 = math.absf %1319 : vector<8x16xf32>
    %cst_548 = arith.constant 0.000000e+00 : f32
    %1324 = vector.broadcast %cst_548 : f32 to vector<8x16xf32>
    %1325 = arith.subf %1324, %1323 : vector<8x16xf32>
    %1326 = math.exp %1325 : vector<8x16xf32>
    %1327 = math.log1p %1326 : vector<8x16xf32>
    %1328 = arith.addf %1317, %1327 : vector<8x16xf32>
    %1329 = arith.select %1320, %1322, %1328 : vector<8x16xi1>, vector<8x16xf32>
    %1330 = vector.extract_strided_slice %1224 {offsets = [0, 96], sizes = [8, 96], strides = [1, 1]} : vector<8x192xf32> to vector<8x96xf32>
    %c0_549 = arith.constant 0 : index
    %c0_550 = arith.constant 0 : index
    %1331 = vector.load %arg21[%c0_549, %c0_550] : memref<32x96xf32, #tpu.memory_space<vmem>>, vector<32x96xf32>
    %cst_551 = arith.constant dense<0.000000e+00> : vector<8x96xf32>
    %1332 = tpu.matmul %1292, %1331, %cst_551 {dimension_numbers = #tpu.dot_dimension_numbers<[1], [0], [0], [1], [0, 0, 1, 1], [], []>} : vector<8x32xf32>, vector<32x96xf32>, vector<8x96xf32> -> vector<8x96xf32>
    %1333 = arith.addf %1222, %1332 : vector<8x96xf32>
    %c0_552 = arith.constant 0 : index
    %c0_553 = arith.constant 0 : index
    %1334 = vector.load %arg23[%c0_552, %c0_553] : memref<32x96xf32, #tpu.memory_space<vmem>>, vector<32x96xf32>
    %cst_554 = arith.constant dense<0.000000e+00> : vector<8x96xf32>
    %1335 = tpu.matmul %1154, %1334, %cst_554 {dimension_numbers = #tpu.dot_dimension_numbers<[1], [0], [0], [1], [0, 0, 1, 1], [], []>} : vector<8x32xf32>, vector<32x96xf32>, vector<8x96xf32> -> vector<8x96xf32>
    %1336 = vector.extract_strided_slice %1333 {offsets = [0, 0], sizes = [8, 64], strides = [1, 1]} : vector<8x96xf32> to vector<8x64xf32>
    %1337 = vector.extract_strided_slice %1335 {offsets = [0, 0], sizes = [8, 64], strides = [1, 1]} : vector<8x96xf32> to vector<8x64xf32>
    %1338 = arith.addf %1336, %1337 : vector<8x64xf32>
    %1339 = arith.negf %1338 : vector<8x64xf32>
    %1340 = math.exp %1339 : vector<8x64xf32>
    %cst_555 = arith.constant 1.000000e+00 : f32
    %1341 = vector.broadcast %cst_555 : f32 to vector<8x64xf32>
    %1342 = arith.addf %1341, %1340 : vector<8x64xf32>
    %1343 = arith.divf %1341, %1342 : vector<8x64xf32>
    %1344 = vector.extract_strided_slice %1343 {offsets = [0, 0], sizes = [8, 32], strides = [1, 1]} : vector<8x64xf32> to vector<8x32xf32>
    %1345 = vector.extract_strided_slice %1343 {offsets = [0, 32], sizes = [8, 32], strides = [1, 1]} : vector<8x64xf32> to vector<8x32xf32>
    %1346 = vector.extract_strided_slice %1333 {offsets = [0, 64], sizes = [8, 32], strides = [1, 1]} : vector<8x96xf32> to vector<8x32xf32>
    %1347 = vector.extract_strided_slice %1335 {offsets = [0, 64], sizes = [8, 32], strides = [1, 1]} : vector<8x96xf32> to vector<8x32xf32>
    %1348 = arith.mulf %1344, %1347 : vector<8x32xf32>
    %1349 = arith.addf %1346, %1348 : vector<8x32xf32>
    %1350 = math.tanh %1349 : vector<8x32xf32>
    %cst_556 = arith.constant 1.000000e+00 : f32
    %1351 = vector.broadcast %cst_556 : f32 to vector<8x32xf32>
    %1352 = arith.subf %1351, %1345 : vector<8x32xf32>
    %1353 = arith.mulf %1352, %1350 : vector<8x32xf32>
    %1354 = arith.mulf %1345, %1154 : vector<8x32xf32>
    %1355 = arith.addf %1353, %1354 : vector<8x32xf32>
    %c0_557 = arith.constant 0 : index
    %c0_558 = arith.constant 0 : index
    %1356 = vector.load %arg22[%c0_557, %c0_558] : memref<32x96xf32, #tpu.memory_space<vmem>>, vector<32x96xf32>
    %cst_559 = arith.constant dense<0.000000e+00> : vector<8x96xf32>
    %1357 = tpu.matmul %1355, %1356, %cst_559 {dimension_numbers = #tpu.dot_dimension_numbers<[1], [0], [0], [1], [0, 0, 1, 1], [], []>} : vector<8x32xf32>, vector<32x96xf32>, vector<8x96xf32> -> vector<8x96xf32>
    %1358 = vector.extract_strided_slice %1357 {offsets = [0, 0], sizes = [8, 64], strides = [1, 1]} : vector<8x96xf32> to vector<8x64xf32>
    %1359 = vector.extract_strided_slice %1330 {offsets = [0, 0], sizes = [8, 64], strides = [1, 1]} : vector<8x96xf32> to vector<8x64xf32>
    %1360 = arith.addf %1358, %1359 : vector<8x64xf32>
    %1361 = arith.negf %1360 : vector<8x64xf32>
    %1362 = math.exp %1361 : vector<8x64xf32>
    %cst_560 = arith.constant 1.000000e+00 : f32
    %1363 = vector.broadcast %cst_560 : f32 to vector<8x64xf32>
    %1364 = arith.addf %1363, %1362 : vector<8x64xf32>
    %1365 = arith.divf %1363, %1364 : vector<8x64xf32>
    %1366 = vector.extract_strided_slice %1365 {offsets = [0, 0], sizes = [8, 32], strides = [1, 1]} : vector<8x64xf32> to vector<8x32xf32>
    %1367 = vector.extract_strided_slice %1365 {offsets = [0, 32], sizes = [8, 32], strides = [1, 1]} : vector<8x64xf32> to vector<8x32xf32>
    %1368 = vector.extract_strided_slice %1357 {offsets = [0, 64], sizes = [8, 32], strides = [1, 1]} : vector<8x96xf32> to vector<8x32xf32>
    %1369 = vector.extract_strided_slice %1330 {offsets = [0, 64], sizes = [8, 32], strides = [1, 1]} : vector<8x96xf32> to vector<8x32xf32>
    %1370 = arith.mulf %1366, %1369 : vector<8x32xf32>
    %1371 = arith.addf %1368, %1370 : vector<8x32xf32>
    %1372 = math.tanh %1371 : vector<8x32xf32>
    %cst_561 = arith.constant 1.000000e+00 : f32
    %1373 = vector.broadcast %cst_561 : f32 to vector<8x32xf32>
    %1374 = arith.subf %1373, %1367 : vector<8x32xf32>
    %1375 = arith.mulf %1374, %1372 : vector<8x32xf32>
    %1376 = arith.mulf %1367, %1176 : vector<8x32xf32>
    %1377 = arith.addf %1375, %1376 : vector<8x32xf32>
    %cst_562 = arith.constant 1.1920929E-7 : f32
    %1378 = vector.broadcast %cst_562 : f32 to vector<8x16xf32>
    %1379 = arith.addf %1283, %1378 : vector<8x16xf32>
    %1380 = math.log %1379 : vector<8x16xf32>
    %cst_563 = arith.constant 2.000000e+00 : f32
    %1381 = vector.broadcast %cst_563 : f32 to vector<8x16xf32>
    %1382 = arith.mulf %1381, %1380 : vector<8x16xf32>
    %cst_564 = arith.constant 1.1920929E-7 : f32
    %1383 = vector.broadcast %cst_564 : f32 to vector<8x16xf32>
    %1384 = arith.addf %1256, %1383 : vector<8x16xf32>
    %1385 = math.log %1384 : vector<8x16xf32>
    %cst_565 = arith.constant 2.000000e+00 : f32
    %1386 = vector.broadcast %cst_565 : f32 to vector<8x16xf32>
    %1387 = arith.mulf %1386, %1385 : vector<8x16xf32>
    %1388 = arith.subf %1382, %1387 : vector<8x16xf32>
    %1389 = arith.mulf %1256, %1256 : vector<8x16xf32>
    %1390 = arith.subf %1241, %1268 : vector<8x16xf32>
    %1391 = arith.mulf %1390, %1390 : vector<8x16xf32>
    %1392 = arith.addf %1389, %1391 : vector<8x16xf32>
    %1393 = arith.mulf %1283, %1283 : vector<8x16xf32>
    %1394 = arith.divf %1392, %1393 : vector<8x16xf32>
    %1395 = arith.addf %1388, %1394 : vector<8x16xf32>
    %cst_566 = arith.constant 1.000000e+00 : f32
    %1396 = vector.broadcast %cst_566 : f32 to vector<8x16xf32>
    %1397 = arith.subf %1395, %1396 : vector<8x16xf32>
    %1398 = arith.addf %1197, %1397 : vector<8x16xf32>
    %cst_567 = arith.constant 1.1920929E-7 : f32
    %1399 = vector.broadcast %cst_567 : f32 to vector<8x16xf32>
    %1400 = arith.addf %1329, %1399 : vector<8x16xf32>
    %1401 = math.log %1400 : vector<8x16xf32>
    %cst_568 = arith.constant 0.918938517 : f32
    %1402 = vector.broadcast %cst_568 : f32 to vector<8x16xf32>
    %1403 = arith.addf %1401, %1402 : vector<8x16xf32>
    %1404 = arith.subf %1213, %1314 : vector<8x16xf32>
    %1405 = arith.mulf %1404, %1404 : vector<8x16xf32>
    %cst_569 = arith.constant 2.000000e+00 : f32
    %1406 = vector.broadcast %cst_569 : f32 to vector<8x16xf32>
    %1407 = arith.mulf %1406, %1329 : vector<8x16xf32>
    %1408 = arith.mulf %1407, %1329 : vector<8x16xf32>
    %1409 = arith.divf %1405, %1408 : vector<8x16xf32>
    %1410 = arith.addf %1403, %1409 : vector<8x16xf32>
    %1411 = arith.addf %1210, %1410 : vector<8x16xf32>
    %c7_i32 = arith.constant 7 : i32
    %1412 = arith.index_cast %c7_i32 : i32 to index
    %c0_570 = arith.constant 0 : index
    %c0_571 = arith.constant 0 : index
    %1413 = vector.load %arg1[%1412, %c0_570, %c0_571] : memref<8x8x16xf32, #tpu.memory_space<vmem>>, vector<1x8x16xf32>
    %1414 = vector.shape_cast %1413 : vector<1x8x16xf32> to vector<8x16xf32>
    %1415 = arith.index_cast %c7_i32 : i32 to index
    %c0_572 = arith.constant 0 : index
    %c0_573 = arith.constant 0 : index
    %1416 = vector.load %arg2[%1415, %c0_572, %c0_573] : memref<8x8x16xf32, #tpu.memory_space<vmem>>, vector<1x8x16xf32>
    %1417 = vector.shape_cast %1416 : vector<1x8x16xf32> to vector<8x16xf32>
    %1418 = arith.index_cast %c7_i32 : i32 to index
    %c0_574 = arith.constant 0 : index
    %c0_575 = arith.constant 0 : index
    %1419 = vector.load %arg3[%1418, %c0_574, %c0_575] : memref<8x8x32xf32, #tpu.memory_space<vmem>>, vector<1x8x32xf32>
    %1420 = vector.shape_cast %1419 : vector<1x8x32xf32> to vector<8x32xf32>
    %1421 = arith.index_cast %c7_i32 : i32 to index
    %c0_576 = arith.constant 0 : index
    %c0_577 = arith.constant 0 : index
    %1422 = vector.load %arg4[%1421, %c0_576, %c0_577] : memref<8x8x96xf32, #tpu.memory_space<vmem>>, vector<1x8x96xf32>
    %1423 = vector.shape_cast %1422 : vector<1x8x96xf32> to vector<8x96xf32>
    %c0_578 = arith.constant 0 : index
    %c0_579 = arith.constant 0 : index
    %1424 = vector.load %arg20[%c0_578, %c0_579] : memref<32x192xf32, #tpu.memory_space<vmem>>, vector<32x192xf32>
    %cst_580 = arith.constant dense<0.000000e+00> : vector<8x192xf32>
    %1425 = tpu.matmul %1377, %1424, %cst_580 {dimension_numbers = #tpu.dot_dimension_numbers<[1], [0], [0], [1], [0, 0, 1, 1], [], []>} : vector<8x32xf32>, vector<32x192xf32>, vector<8x192xf32> -> vector<8x192xf32>
    %1426 = vector.extract_strided_slice %1425 {offsets = [0, 0], sizes = [8, 32], strides = [1, 1]} : vector<8x192xf32> to vector<8x32xf32>
    %1427 = arith.addf %1420, %1426 : vector<8x32xf32>
    %cst_581 = arith.constant 0.000000e+00 : f32
    %1428 = vector.broadcast %cst_581 : f32 to vector<8x32xf32>
    %1429 = arith.maximumf %1427, %1428 : vector<8x32xf32>
    %c0_582 = arith.constant 0 : index
    %c0_583 = arith.constant 0 : index
    %1430 = vector.load %arg7[%c0_582, %c0_583] : memref<32x32xf32, #tpu.memory_space<vmem>>, vector<32x32xf32>
    %cst_584 = arith.constant dense<0.000000e+00> : vector<8x32xf32>
    %1431 = tpu.matmul %1429, %1430, %cst_584 {dimension_numbers = #tpu.dot_dimension_numbers<[1], [0], [0], [1], [0, 0, 1, 1], [], []>} : vector<8x32xf32>, vector<32x32xf32>, vector<8x32xf32> -> vector<8x32xf32>
    %c0_585 = arith.constant 0 : index
    %c0_586 = arith.constant 0 : index
    %1432 = vector.load %arg8[%c0_585, %c0_586] : memref<1x32xf32, #tpu.memory_space<vmem>>, vector<1x32xf32>
    %1433 = vector.broadcast %1432 : vector<1x32xf32> to vector<8x32xf32>
    %1434 = arith.addf %1431, %1433 : vector<8x32xf32>
    %cst_587 = arith.constant 0.000000e+00 : f32
    %1435 = vector.broadcast %cst_587 : f32 to vector<8x32xf32>
    %1436 = arith.maximumf %1434, %1435 : vector<8x32xf32>
    %c0_588 = arith.constant 0 : index
    %c0_589 = arith.constant 0 : index
    %1437 = vector.load %arg9[%c0_588, %c0_589] : memref<32x32xf32, #tpu.memory_space<vmem>>, vector<32x32xf32>
    %cst_590 = arith.constant dense<0.000000e+00> : vector<8x32xf32>
    %1438 = tpu.matmul %1436, %1437, %cst_590 {dimension_numbers = #tpu.dot_dimension_numbers<[1], [0], [0], [1], [0, 0, 1, 1], [], []>} : vector<8x32xf32>, vector<32x32xf32>, vector<8x32xf32> -> vector<8x32xf32>
    %c0_591 = arith.constant 0 : index
    %c0_592 = arith.constant 0 : index
    %1439 = vector.load %arg10[%c0_591, %c0_592] : memref<1x32xf32, #tpu.memory_space<vmem>>, vector<1x32xf32>
    %1440 = vector.broadcast %1439 : vector<1x32xf32> to vector<8x32xf32>
    %1441 = arith.addf %1438, %1440 : vector<8x32xf32>
    %1442 = vector.extract_strided_slice %1441 {offsets = [0, 0], sizes = [8, 16], strides = [1, 1]} : vector<8x32xf32> to vector<8x16xf32>
    %1443 = vector.extract_strided_slice %1441 {offsets = [0, 16], sizes = [8, 16], strides = [1, 1]} : vector<8x32xf32> to vector<8x16xf32>
    %cst_593 = arith.constant 0.000000e+00 : f32
    %1444 = vector.broadcast %cst_593 : f32 to vector<8x16xf32>
    %1445 = arith.maximumf %1443, %1444 : vector<8x16xf32>
    %1446 = vector.broadcast %cst_593 : f32 to vector<8x16xf32>
    %1447 = arith.subf %1443, %1446 : vector<8x16xf32>
    %1448 = arith.cmpf one, %1447, %1447 : vector<8x16xf32>
    %1449 = vector.broadcast %cst_593 : f32 to vector<8x16xf32>
    %1450 = arith.addf %1443, %1449 : vector<8x16xf32>
    %1451 = math.absf %1447 : vector<8x16xf32>
    %cst_594 = arith.constant 0.000000e+00 : f32
    %1452 = vector.broadcast %cst_594 : f32 to vector<8x16xf32>
    %1453 = arith.subf %1452, %1451 : vector<8x16xf32>
    %1454 = math.exp %1453 : vector<8x16xf32>
    %1455 = math.log1p %1454 : vector<8x16xf32>
    %1456 = arith.addf %1445, %1455 : vector<8x16xf32>
    %1457 = arith.select %1448, %1450, %1456 : vector<8x16xi1>, vector<8x16xf32>
    %1458 = vector.extract_strided_slice %1425 {offsets = [0, 32], sizes = [8, 32], strides = [1, 1]} : vector<8x192xf32> to vector<8x32xf32>
    %c0_595 = arith.constant 0 : index
    %c0_596 = arith.constant 0 : index
    %1459 = vector.load %arg11[%c0_595, %c0_596] : memref<1x32xf32, #tpu.memory_space<vmem>>, vector<1x32xf32>
    %1460 = vector.broadcast %1459 : vector<1x32xf32> to vector<8x32xf32>
    %1461 = arith.addf %1458, %1460 : vector<8x32xf32>
    %cst_597 = arith.constant 0.000000e+00 : f32
    %1462 = vector.broadcast %cst_597 : f32 to vector<8x32xf32>
    %1463 = arith.maximumf %1461, %1462 : vector<8x32xf32>
    %c0_598 = arith.constant 0 : index
    %c0_599 = arith.constant 0 : index
    %1464 = vector.load %arg12[%c0_598, %c0_599] : memref<32x32xf32, #tpu.memory_space<vmem>>, vector<32x32xf32>
    %cst_600 = arith.constant dense<0.000000e+00> : vector<8x32xf32>
    %1465 = tpu.matmul %1463, %1464, %cst_600 {dimension_numbers = #tpu.dot_dimension_numbers<[1], [0], [0], [1], [0, 0, 1, 1], [], []>} : vector<8x32xf32>, vector<32x32xf32>, vector<8x32xf32> -> vector<8x32xf32>
    %c0_601 = arith.constant 0 : index
    %c0_602 = arith.constant 0 : index
    %1466 = vector.load %arg13[%c0_601, %c0_602] : memref<1x32xf32, #tpu.memory_space<vmem>>, vector<1x32xf32>
    %1467 = vector.broadcast %1466 : vector<1x32xf32> to vector<8x32xf32>
    %1468 = arith.addf %1465, %1467 : vector<8x32xf32>
    %1469 = vector.extract_strided_slice %1468 {offsets = [0, 0], sizes = [8, 16], strides = [1, 1]} : vector<8x32xf32> to vector<8x16xf32>
    %1470 = vector.extract_strided_slice %1468 {offsets = [0, 16], sizes = [8, 16], strides = [1, 1]} : vector<8x32xf32> to vector<8x16xf32>
    %cst_603 = arith.constant 0.000000e+00 : f32
    %1471 = vector.broadcast %cst_603 : f32 to vector<8x16xf32>
    %1472 = arith.maximumf %1470, %1471 : vector<8x16xf32>
    %1473 = vector.broadcast %cst_603 : f32 to vector<8x16xf32>
    %1474 = arith.subf %1470, %1473 : vector<8x16xf32>
    %1475 = arith.cmpf one, %1474, %1474 : vector<8x16xf32>
    %1476 = vector.broadcast %cst_603 : f32 to vector<8x16xf32>
    %1477 = arith.addf %1470, %1476 : vector<8x16xf32>
    %1478 = math.absf %1474 : vector<8x16xf32>
    %cst_604 = arith.constant 0.000000e+00 : f32
    %1479 = vector.broadcast %cst_604 : f32 to vector<8x16xf32>
    %1480 = arith.subf %1479, %1478 : vector<8x16xf32>
    %1481 = math.exp %1480 : vector<8x16xf32>
    %1482 = math.log1p %1481 : vector<8x16xf32>
    %1483 = arith.addf %1472, %1482 : vector<8x16xf32>
    %1484 = arith.select %1475, %1477, %1483 : vector<8x16xi1>, vector<8x16xf32>
    %1485 = arith.mulf %1417, %1457 : vector<8x16xf32>
    %1486 = arith.addf %1485, %1442 : vector<8x16xf32>
    %c0_605 = arith.constant 0 : index
    %c0_606 = arith.constant 0 : index
    %1487 = vector.load %arg5[%c0_605, %c0_606] : memref<16x32xf32, #tpu.memory_space<vmem>>, vector<16x32xf32>
    %cst_607 = arith.constant dense<0.000000e+00> : vector<8x32xf32>
    %1488 = tpu.matmul %1486, %1487, %cst_607 {dimension_numbers = #tpu.dot_dimension_numbers<[1], [0], [0], [1], [0, 0, 1, 1], [], []>} : vector<8x16xf32>, vector<16x32xf32>, vector<8x32xf32> -> vector<8x32xf32>
    %c0_608 = arith.constant 0 : index
    %c0_609 = arith.constant 0 : index
    %1489 = vector.load %arg6[%c0_608, %c0_609] : memref<1x32xf32, #tpu.memory_space<vmem>>, vector<1x32xf32>
    %1490 = vector.broadcast %1489 : vector<1x32xf32> to vector<8x32xf32>
    %1491 = arith.addf %1488, %1490 : vector<8x32xf32>
    %cst_610 = arith.constant 0.000000e+00 : f32
    %1492 = vector.broadcast %cst_610 : f32 to vector<8x32xf32>
    %1493 = arith.maximumf %1491, %1492 : vector<8x32xf32>
    %c0_611 = arith.constant 0 : index
    %c0_612 = arith.constant 0 : index
    %1494 = vector.load %arg14[%c0_611, %c0_612] : memref<32x32xf32, #tpu.memory_space<vmem>>, vector<32x32xf32>
    %cst_613 = arith.constant dense<0.000000e+00> : vector<8x32xf32>
    %1495 = tpu.matmul %1493, %1494, %cst_613 {dimension_numbers = #tpu.dot_dimension_numbers<[1], [0], [0], [1], [0, 0, 1, 1], [], []>} : vector<8x32xf32>, vector<32x32xf32>, vector<8x32xf32> -> vector<8x32xf32>
    %1496 = vector.extract_strided_slice %1425 {offsets = [0, 64], sizes = [8, 32], strides = [1, 1]} : vector<8x192xf32> to vector<8x32xf32>
    %1497 = arith.addf %1495, %1496 : vector<8x32xf32>
    %c0_614 = arith.constant 0 : index
    %c0_615 = arith.constant 0 : index
    %1498 = vector.load %arg15[%c0_614, %c0_615] : memref<1x32xf32, #tpu.memory_space<vmem>>, vector<1x32xf32>
    %1499 = vector.broadcast %1498 : vector<1x32xf32> to vector<8x32xf32>
    %1500 = arith.addf %1497, %1499 : vector<8x32xf32>
    %cst_616 = arith.constant 0.000000e+00 : f32
    %1501 = vector.broadcast %cst_616 : f32 to vector<8x32xf32>
    %1502 = arith.maximumf %1500, %1501 : vector<8x32xf32>
    %c0_617 = arith.constant 0 : index
    %c0_618 = arith.constant 0 : index
    %1503 = vector.load %arg16[%c0_617, %c0_618] : memref<32x32xf32, #tpu.memory_space<vmem>>, vector<32x32xf32>
    %cst_619 = arith.constant dense<0.000000e+00> : vector<8x32xf32>
    %1504 = tpu.matmul %1502, %1503, %cst_619 {dimension_numbers = #tpu.dot_dimension_numbers<[1], [0], [0], [1], [0, 0, 1, 1], [], []>} : vector<8x32xf32>, vector<32x32xf32>, vector<8x32xf32> -> vector<8x32xf32>
    %c0_620 = arith.constant 0 : index
    %c0_621 = arith.constant 0 : index
    %1505 = vector.load %arg17[%c0_620, %c0_621] : memref<1x32xf32, #tpu.memory_space<vmem>>, vector<1x32xf32>
    %1506 = vector.broadcast %1505 : vector<1x32xf32> to vector<8x32xf32>
    %1507 = arith.addf %1504, %1506 : vector<8x32xf32>
    %cst_622 = arith.constant 0.000000e+00 : f32
    %1508 = vector.broadcast %cst_622 : f32 to vector<8x32xf32>
    %1509 = arith.maximumf %1507, %1508 : vector<8x32xf32>
    %c0_623 = arith.constant 0 : index
    %c0_624 = arith.constant 0 : index
    %1510 = vector.load %arg18[%c0_623, %c0_624] : memref<32x32xf32, #tpu.memory_space<vmem>>, vector<32x32xf32>
    %cst_625 = arith.constant dense<0.000000e+00> : vector<8x32xf32>
    %1511 = tpu.matmul %1509, %1510, %cst_625 {dimension_numbers = #tpu.dot_dimension_numbers<[1], [0], [0], [1], [0, 0, 1, 1], [], []>} : vector<8x32xf32>, vector<32x32xf32>, vector<8x32xf32> -> vector<8x32xf32>
    %c0_626 = arith.constant 0 : index
    %c0_627 = arith.constant 0 : index
    %1512 = vector.load %arg19[%c0_626, %c0_627] : memref<1x32xf32, #tpu.memory_space<vmem>>, vector<1x32xf32>
    %1513 = vector.broadcast %1512 : vector<1x32xf32> to vector<8x32xf32>
    %1514 = arith.addf %1511, %1513 : vector<8x32xf32>
    %1515 = vector.extract_strided_slice %1514 {offsets = [0, 0], sizes = [8, 16], strides = [1, 1]} : vector<8x32xf32> to vector<8x16xf32>
    %1516 = vector.extract_strided_slice %1514 {offsets = [0, 16], sizes = [8, 16], strides = [1, 1]} : vector<8x32xf32> to vector<8x16xf32>
    %cst_628 = arith.constant 0.000000e+00 : f32
    %1517 = vector.broadcast %cst_628 : f32 to vector<8x16xf32>
    %1518 = arith.maximumf %1516, %1517 : vector<8x16xf32>
    %1519 = vector.broadcast %cst_628 : f32 to vector<8x16xf32>
    %1520 = arith.subf %1516, %1519 : vector<8x16xf32>
    %1521 = arith.cmpf one, %1520, %1520 : vector<8x16xf32>
    %1522 = vector.broadcast %cst_628 : f32 to vector<8x16xf32>
    %1523 = arith.addf %1516, %1522 : vector<8x16xf32>
    %1524 = math.absf %1520 : vector<8x16xf32>
    %cst_629 = arith.constant 0.000000e+00 : f32
    %1525 = vector.broadcast %cst_629 : f32 to vector<8x16xf32>
    %1526 = arith.subf %1525, %1524 : vector<8x16xf32>
    %1527 = math.exp %1526 : vector<8x16xf32>
    %1528 = math.log1p %1527 : vector<8x16xf32>
    %1529 = arith.addf %1518, %1528 : vector<8x16xf32>
    %1530 = arith.select %1521, %1523, %1529 : vector<8x16xi1>, vector<8x16xf32>
    %1531 = vector.extract_strided_slice %1425 {offsets = [0, 96], sizes = [8, 96], strides = [1, 1]} : vector<8x192xf32> to vector<8x96xf32>
    %c0_630 = arith.constant 0 : index
    %c0_631 = arith.constant 0 : index
    %1532 = vector.load %arg21[%c0_630, %c0_631] : memref<32x96xf32, #tpu.memory_space<vmem>>, vector<32x96xf32>
    %cst_632 = arith.constant dense<0.000000e+00> : vector<8x96xf32>
    %1533 = tpu.matmul %1493, %1532, %cst_632 {dimension_numbers = #tpu.dot_dimension_numbers<[1], [0], [0], [1], [0, 0, 1, 1], [], []>} : vector<8x32xf32>, vector<32x96xf32>, vector<8x96xf32> -> vector<8x96xf32>
    %1534 = arith.addf %1423, %1533 : vector<8x96xf32>
    %c0_633 = arith.constant 0 : index
    %c0_634 = arith.constant 0 : index
    %1535 = vector.load %arg23[%c0_633, %c0_634] : memref<32x96xf32, #tpu.memory_space<vmem>>, vector<32x96xf32>
    %cst_635 = arith.constant dense<0.000000e+00> : vector<8x96xf32>
    %1536 = tpu.matmul %1355, %1535, %cst_635 {dimension_numbers = #tpu.dot_dimension_numbers<[1], [0], [0], [1], [0, 0, 1, 1], [], []>} : vector<8x32xf32>, vector<32x96xf32>, vector<8x96xf32> -> vector<8x96xf32>
    %1537 = vector.extract_strided_slice %1534 {offsets = [0, 0], sizes = [8, 64], strides = [1, 1]} : vector<8x96xf32> to vector<8x64xf32>
    %1538 = vector.extract_strided_slice %1536 {offsets = [0, 0], sizes = [8, 64], strides = [1, 1]} : vector<8x96xf32> to vector<8x64xf32>
    %1539 = arith.addf %1537, %1538 : vector<8x64xf32>
    %1540 = arith.negf %1539 : vector<8x64xf32>
    %1541 = math.exp %1540 : vector<8x64xf32>
    %cst_636 = arith.constant 1.000000e+00 : f32
    %1542 = vector.broadcast %cst_636 : f32 to vector<8x64xf32>
    %1543 = arith.addf %1542, %1541 : vector<8x64xf32>
    %1544 = arith.divf %1542, %1543 : vector<8x64xf32>
    %1545 = vector.extract_strided_slice %1544 {offsets = [0, 0], sizes = [8, 32], strides = [1, 1]} : vector<8x64xf32> to vector<8x32xf32>
    %1546 = vector.extract_strided_slice %1544 {offsets = [0, 32], sizes = [8, 32], strides = [1, 1]} : vector<8x64xf32> to vector<8x32xf32>
    %1547 = vector.extract_strided_slice %1534 {offsets = [0, 64], sizes = [8, 32], strides = [1, 1]} : vector<8x96xf32> to vector<8x32xf32>
    %1548 = vector.extract_strided_slice %1536 {offsets = [0, 64], sizes = [8, 32], strides = [1, 1]} : vector<8x96xf32> to vector<8x32xf32>
    %1549 = arith.mulf %1545, %1548 : vector<8x32xf32>
    %1550 = arith.addf %1547, %1549 : vector<8x32xf32>
    %1551 = math.tanh %1550 : vector<8x32xf32>
    %cst_637 = arith.constant 1.000000e+00 : f32
    %1552 = vector.broadcast %cst_637 : f32 to vector<8x32xf32>
    %1553 = arith.subf %1552, %1546 : vector<8x32xf32>
    %1554 = arith.mulf %1553, %1551 : vector<8x32xf32>
    %1555 = arith.mulf %1546, %1355 : vector<8x32xf32>
    %1556 = arith.addf %1554, %1555 : vector<8x32xf32>
    %c0_638 = arith.constant 0 : index
    %c0_639 = arith.constant 0 : index
    %1557 = vector.load %arg22[%c0_638, %c0_639] : memref<32x96xf32, #tpu.memory_space<vmem>>, vector<32x96xf32>
    %cst_640 = arith.constant dense<0.000000e+00> : vector<8x96xf32>
    %1558 = tpu.matmul %1556, %1557, %cst_640 {dimension_numbers = #tpu.dot_dimension_numbers<[1], [0], [0], [1], [0, 0, 1, 1], [], []>} : vector<8x32xf32>, vector<32x96xf32>, vector<8x96xf32> -> vector<8x96xf32>
    %1559 = vector.extract_strided_slice %1558 {offsets = [0, 0], sizes = [8, 64], strides = [1, 1]} : vector<8x96xf32> to vector<8x64xf32>
    %1560 = vector.extract_strided_slice %1531 {offsets = [0, 0], sizes = [8, 64], strides = [1, 1]} : vector<8x96xf32> to vector<8x64xf32>
    %1561 = arith.addf %1559, %1560 : vector<8x64xf32>
    %1562 = arith.negf %1561 : vector<8x64xf32>
    %1563 = math.exp %1562 : vector<8x64xf32>
    %cst_641 = arith.constant 1.000000e+00 : f32
    %1564 = vector.broadcast %cst_641 : f32 to vector<8x64xf32>
    %1565 = arith.addf %1564, %1563 : vector<8x64xf32>
    %1566 = arith.divf %1564, %1565 : vector<8x64xf32>
    %1567 = vector.extract_strided_slice %1566 {offsets = [0, 0], sizes = [8, 32], strides = [1, 1]} : vector<8x64xf32> to vector<8x32xf32>
    %1568 = vector.extract_strided_slice %1566 {offsets = [0, 32], sizes = [8, 32], strides = [1, 1]} : vector<8x64xf32> to vector<8x32xf32>
    %1569 = vector.extract_strided_slice %1558 {offsets = [0, 64], sizes = [8, 32], strides = [1, 1]} : vector<8x96xf32> to vector<8x32xf32>
    %1570 = vector.extract_strided_slice %1531 {offsets = [0, 64], sizes = [8, 32], strides = [1, 1]} : vector<8x96xf32> to vector<8x32xf32>
    %1571 = arith.mulf %1567, %1570 : vector<8x32xf32>
    %1572 = arith.addf %1569, %1571 : vector<8x32xf32>
    %1573 = math.tanh %1572 : vector<8x32xf32>
    %cst_642 = arith.constant 1.000000e+00 : f32
    %1574 = vector.broadcast %cst_642 : f32 to vector<8x32xf32>
    %1575 = arith.subf %1574, %1568 : vector<8x32xf32>
    %1576 = arith.mulf %1575, %1573 : vector<8x32xf32>
    %1577 = arith.mulf %1568, %1377 : vector<8x32xf32>
    %1578 = arith.addf %1576, %1577 : vector<8x32xf32>
    %cst_643 = arith.constant 1.1920929E-7 : f32
    %1579 = vector.broadcast %cst_643 : f32 to vector<8x16xf32>
    %1580 = arith.addf %1484, %1579 : vector<8x16xf32>
    %1581 = math.log %1580 : vector<8x16xf32>
    %cst_644 = arith.constant 2.000000e+00 : f32
    %1582 = vector.broadcast %cst_644 : f32 to vector<8x16xf32>
    %1583 = arith.mulf %1582, %1581 : vector<8x16xf32>
    %cst_645 = arith.constant 1.1920929E-7 : f32
    %1584 = vector.broadcast %cst_645 : f32 to vector<8x16xf32>
    %1585 = arith.addf %1457, %1584 : vector<8x16xf32>
    %1586 = math.log %1585 : vector<8x16xf32>
    %cst_646 = arith.constant 2.000000e+00 : f32
    %1587 = vector.broadcast %cst_646 : f32 to vector<8x16xf32>
    %1588 = arith.mulf %1587, %1586 : vector<8x16xf32>
    %1589 = arith.subf %1583, %1588 : vector<8x16xf32>
    %1590 = arith.mulf %1457, %1457 : vector<8x16xf32>
    %1591 = arith.subf %1442, %1469 : vector<8x16xf32>
    %1592 = arith.mulf %1591, %1591 : vector<8x16xf32>
    %1593 = arith.addf %1590, %1592 : vector<8x16xf32>
    %1594 = arith.mulf %1484, %1484 : vector<8x16xf32>
    %1595 = arith.divf %1593, %1594 : vector<8x16xf32>
    %1596 = arith.addf %1589, %1595 : vector<8x16xf32>
    %cst_647 = arith.constant 1.000000e+00 : f32
    %1597 = vector.broadcast %cst_647 : f32 to vector<8x16xf32>
    %1598 = arith.subf %1596, %1597 : vector<8x16xf32>
    %1599 = arith.addf %1398, %1598 : vector<8x16xf32>
    %cst_648 = arith.constant 1.1920929E-7 : f32
    %1600 = vector.broadcast %cst_648 : f32 to vector<8x16xf32>
    %1601 = arith.addf %1530, %1600 : vector<8x16xf32>
    %1602 = math.log %1601 : vector<8x16xf32>
    %cst_649 = arith.constant 0.918938517 : f32
    %1603 = vector.broadcast %cst_649 : f32 to vector<8x16xf32>
    %1604 = arith.addf %1602, %1603 : vector<8x16xf32>
    %1605 = arith.subf %1414, %1515 : vector<8x16xf32>
    %1606 = arith.mulf %1605, %1605 : vector<8x16xf32>
    %cst_650 = arith.constant 2.000000e+00 : f32
    %1607 = vector.broadcast %cst_650 : f32 to vector<8x16xf32>
    %1608 = arith.mulf %1607, %1530 : vector<8x16xf32>
    %1609 = arith.mulf %1608, %1530 : vector<8x16xf32>
    %1610 = arith.divf %1606, %1609 : vector<8x16xf32>
    %1611 = arith.addf %1604, %1610 : vector<8x16xf32>
    %1612 = arith.addf %1411, %1611 : vector<8x16xf32>
    %c8_i32 = arith.constant 8 : i32
    %1613 = vector.shape_cast %1599 : vector<8x16xf32> to vector<1x8x16xf32>
    %cst_651 = arith.constant dense<0.000000e+00> : vector<1xf32>
    %1614 = vector.multi_reduction <add>, %1613, %cst_651 [1, 2] : vector<1x8x16xf32> to vector<1xf32>
    %1615 = vector.shape_cast %1614 : vector<1xf32> to vector<1x1x1xf32>
    %1616 = vector.extract %1615[0, 0, 0] : f32 from vector<1x1x1xf32>
    %1617 = vector.broadcast %1616 : f32 to vector<1x1xf32>
    %cst_652 = arith.constant 5.000000e-01 : f32
    %1618 = vector.broadcast %cst_652 : f32 to vector<1x1xf32>
    %1619 = arith.mulf %1618, %1617 : vector<1x1xf32>
    %1620 = vector.shape_cast %1612 : vector<8x16xf32> to vector<1x8x16xf32>
    %cst_653 = arith.constant dense<0.000000e+00> : vector<1xf32>
    %1621 = vector.multi_reduction <add>, %1620, %cst_653 [1, 2] : vector<1x8x16xf32> to vector<1xf32>
    %1622 = vector.shape_cast %1621 : vector<1xf32> to vector<1x1x1xf32>
    %1623 = vector.extract %1622[0, 0, 0] : f32 from vector<1x1x1xf32>
    %1624 = vector.broadcast %1623 : f32 to vector<1x1xf32>
    %1625 = tpu.iota {dimensions = array<i32: 1>} : vector<1x2xi32>
    %c0_i32_654 = arith.constant 0 : i32
    %1626 = vector.broadcast %c0_i32_654 : i32 to vector<1x2xi32>
    %1627 = arith.cmpi eq, %1625, %1626 : vector<1x2xi32>
    %1628 = vector.shape_cast %1619 : vector<1x1xf32> to vector<1x1xf32>
    %1629 = vector.broadcast %1628 : vector<1x1xf32> to vector<1x2xf32>
    %1630 = vector.shape_cast %1624 : vector<1x1xf32> to vector<1x1xf32>
    %1631 = vector.broadcast %1630 : vector<1x1xf32> to vector<1x2xf32>
    %1632 = arith.select %1627, %1629, %1631 : vector<1x2xi1>, vector<1x2xf32>
    %c0_655 = arith.constant 0 : index
    %c0_656 = arith.constant 0 : index
    %1633 = vector.load %arg24[%c0_655, %c0_656] : memref<1x2xf32, #tpu.memory_space<vmem>>, vector<1x2xf32>
    tpu.vector_store %arg24[%c0_655, %c0_656], %1632 {strides = array<i32>} : memref<1x2xf32, #tpu.memory_space<vmem>>, vector<1x2xf32>,
    %c0_657 = arith.constant 0 : index
    %c0_658 = arith.constant 0 : index
    %1634 = vector.load %arg25[%c0_657, %c0_658] : memref<8x16xf32, #tpu.memory_space<vmem>>, vector<8x16xf32>
    tpu.vector_store %arg25[%c0_657, %c0_658], %1486 {strides = array<i32>} : memref<8x16xf32, #tpu.memory_space<vmem>>, vector<8x16xf32>,
    return
  }
  func.func @transform_0(%arg0: i32) -> (i32, i32, i32) {
    %c0_i32 = arith.constant 0 : i32
    %c0_i32_0 = arith.constant 0 : i32
    %c0_i32_1 = arith.constant 0 : i32
    %c0_i32_2 = arith.constant 0 : i32
    return %c0_i32, %c0_i32_0, %c0_i32_1 : i32, i32, i32
  }
  func.func @transform_1(%arg0: i32) -> (i32, i32, i32) {
    %c0_i32 = arith.constant 0 : i32
    %c0_i32_0 = arith.constant 0 : i32
    %c0_i32_1 = arith.constant 0 : i32
    %c0_i32_2 = arith.constant 0 : i32
    return %c0_i32, %c0_i32_0, %c0_i32_1 : i32, i32, i32
  }
  func.func @transform_2(%arg0: i32) -> (i32, i32, i32) {
    %c0_i32 = arith.constant 0 : i32
    %c0_i32_0 = arith.constant 0 : i32
    %c0_i32_1 = arith.constant 0 : i32
    %c0_i32_2 = arith.constant 0 : i32
    return %c0_i32, %c0_i32_0, %c0_i32_1 : i32, i32, i32
  }
  func.func @transform_3(%arg0: i32) -> (i32, i32, i32) {
    %c0_i32 = arith.constant 0 : i32
    %c0_i32_0 = arith.constant 0 : i32
    %c0_i32_1 = arith.constant 0 : i32
    %c0_i32_2 = arith.constant 0 : i32
    return %c0_i32, %c0_i32_0, %c0_i32_1 : i32, i32, i32
  }
  func.func @transform_4(%arg0: i32) -> (i32, i32) {
    %c0_i32 = arith.constant 0 : i32
    %c0_i32_0 = arith.constant 0 : i32
    %c0_i32_1 = arith.constant 0 : i32
    return %c0_i32, %c0_i32_0 : i32, i32
  }
  func.func @transform_5(%arg0: i32) -> (i32, i32) {
    %c0_i32 = arith.constant 0 : i32
    %c0_i32_0 = arith.constant 0 : i32
    %c0_i32_1 = arith.constant 0 : i32
    return %c0_i32, %c0_i32_0 : i32, i32
  }
  func.func @transform_6(%arg0: i32) -> (i32, i32) {
    %c0_i32 = arith.constant 0 : i32
    %c0_i32_0 = arith.constant 0 : i32
    %c0_i32_1 = arith.constant 0 : i32
    return %c0_i32, %c0_i32_0 : i32, i32
  }
  func.func @transform_7(%arg0: i32) -> (i32, i32) {
    %c0_i32 = arith.constant 0 : i32
    %c0_i32_0 = arith.constant 0 : i32
    %c0_i32_1 = arith.constant 0 : i32
    return %c0_i32, %c0_i32_0 : i32, i32
  }
  func.func @transform_8(%arg0: i32) -> (i32, i32) {
    %c0_i32 = arith.constant 0 : i32
    %c0_i32_0 = arith.constant 0 : i32
    %c0_i32_1 = arith.constant 0 : i32
    return %c0_i32, %c0_i32_0 : i32, i32
  }
  func.func @transform_9(%arg0: i32) -> (i32, i32) {
    %c0_i32 = arith.constant 0 : i32
    %c0_i32_0 = arith.constant 0 : i32
    %c0_i32_1 = arith.constant 0 : i32
    return %c0_i32, %c0_i32_0 : i32, i32
  }
  func.func @transform_10(%arg0: i32) -> (i32, i32) {
    %c0_i32 = arith.constant 0 : i32
    %c0_i32_0 = arith.constant 0 : i32
    %c0_i32_1 = arith.constant 0 : i32
    return %c0_i32, %c0_i32_0 : i32, i32
  }
  func.func @transform_11(%arg0: i32) -> (i32, i32) {
    %c0_i32 = arith.constant 0 : i32
    %c0_i32_0 = arith.constant 0 : i32
    %c0_i32_1 = arith.constant 0 : i32
    return %c0_i32, %c0_i32_0 : i32, i32
  }
  func.func @transform_12(%arg0: i32) -> (i32, i32) {
    %c0_i32 = arith.constant 0 : i32
    %c0_i32_0 = arith.constant 0 : i32
    %c0_i32_1 = arith.constant 0 : i32
    return %c0_i32, %c0_i32_0 : i32, i32
  }
  func.func @transform_13(%arg0: i32) -> (i32, i32) {
    %c0_i32 = arith.constant 0 : i32
    %c0_i32_0 = arith.constant 0 : i32
    %c0_i32_1 = arith.constant 0 : i32
    return %c0_i32, %c0_i32_0 : i32, i32
  }
  func.func @transform_14(%arg0: i32) -> (i32, i32) {
    %c0_i32 = arith.constant 0 : i32
    %c0_i32_0 = arith.constant 0 : i32
    %c0_i32_1 = arith.constant 0 : i32
    return %c0_i32, %c0_i32_0 : i32, i32
  }
  func.func @transform_15(%arg0: i32) -> (i32, i32) {
    %c0_i32 = arith.constant 0 : i32
    %c0_i32_0 = arith.constant 0 : i32
    %c0_i32_1 = arith.constant 0 : i32
    return %c0_i32, %c0_i32_0 : i32, i32
  }
  func.func @transform_16(%arg0: i32) -> (i32, i32) {
    %c0_i32 = arith.constant 0 : i32
    %c0_i32_0 = arith.constant 0 : i32
    %c0_i32_1 = arith.constant 0 : i32
    return %c0_i32, %c0_i32_0 : i32, i32
  }
  func.func @transform_17(%arg0: i32) -> (i32, i32) {
    %c0_i32 = arith.constant 0 : i32
    %c0_i32_0 = arith.constant 0 : i32
    %c0_i32_1 = arith.constant 0 : i32
    return %c0_i32, %c0_i32_0 : i32, i32
  }
  func.func @transform_18(%arg0: i32) -> (i32, i32) {
    %c0_i32 = arith.constant 0 : i32
    %c0_i32_0 = arith.constant 0 : i32
    %c0_i32_1 = arith.constant 0 : i32
    return %c0_i32, %c0_i32_0 : i32, i32
  }
  func.func @transform_19(%arg0: i32) -> (i32, i32) {
    %c0_i32 = arith.constant 0 : i32
    %c0_i32_0 = arith.constant 0 : i32
    %c0_i32_1 = arith.constant 0 : i32
    return %c0_i32, %c0_i32_0 : i32, i32
  }
  func.func @transform_20(%arg0: i32) -> (i32, i32) {
    %c0_i32 = arith.constant 0 : i32
    %c0_i32_0 = arith.constant 0 : i32
    %c0_i32_1 = arith.constant 0 : i32
    return %c0_i32, %c0_i32_0 : i32, i32
  }
  func.func @transform_21(%arg0: i32) -> (i32, i32) {
    %c0_i32 = arith.constant 0 : i32
    %c0_i32_0 = arith.constant 0 : i32
    %c0_i32_1 = arith.constant 0 : i32
    return %c0_i32, %c0_i32_0 : i32, i32
  }
  func.func @transform_22(%arg0: i32) -> (i32, i32) {
    %c0_i32 = arith.constant 0 : i32
    %c0_i32_0 = arith.constant 0 : i32
    %c0_i32_1 = arith.constant 0 : i32
    return %c0_i32, %c0_i32_0 : i32, i32
  }
  func.func @transform_23(%arg0: i32) -> (i32, i32) {
    %c0_i32 = arith.constant 0 : i32
    %c0_i32_0 = arith.constant 0 : i32
    %c0_i32_1 = arith.constant 0 : i32
    return %c0_i32, %c0_i32_0 : i32, i32
  }
  func.func @transform_24(%arg0: i32) -> (i32, i32) {
    %c0_i32 = arith.constant 0 : i32
    %c0_i32_0 = arith.constant 0 : i32
    %c0_i32_1 = arith.constant 0 : i32
    return %c0_i32, %c0_i32_0 : i32, i32
  }
}

</mosaic_0001>

<bundles_post_ra>
// kernel: vrnn_forward.1
= control target key start
LH: loop header
LB: loop body
LE: loop exit
PB: predicated region body
PF: predicated region fallthrough
CT: control target
= control target key end

     0   :  { %s12215_s0 = inlined_call_operand.vmem [shape: f32[8,8,16], index: 0, kind: input, shape index: {}]   ;;  %s12216_s1 = inlined_call_operand.vmem [shape: f32[8,8,16], index: 1, kind: input, shape index: {}]   ;;  %s12217_s2 = inlined_call_operand.vmem [shape: f32[8,8,32], index: 2, kind: input, shape index: {}]   ;;  %s12218_s3 = inlined_call_operand.vmem [shape: f32[8,8,96], index: 3, kind: input, shape index: {}]   ;;  %s12219_s4 = inlined_call_operand.vmem [shape: f32[16,32], index: 4, kind: input, shape index: {}]   ;;  %s12220_s5 = inlined_call_operand.vmem [shape: f32[1,32], index: 5, kind: input, shape index: {}]   ;;  %s12221_s6 = inlined_call_operand.vmem [shape: f32[32,32], index: 6, kind: input, shape index: {}]   ;;  %s12222_s7 = inlined_call_operand.vmem [shape: f32[1,32], index: 7, kind: input, shape index: {}]   ;;  %s12223_s8 = inlined_call_operand.vmem [shape: f32[32,32], index: 8, kind: input, shape index: {}]   ;;  %s12224_s9 = inlined_call_operand.vmem [shape: f32[1,32], index: 9, kind: input, shape index: {}]   ;;  %s12225_s10 = inlined_call_operand.vmem [shape: f32[1,32], index: 10, kind: input, shape index: {}]   ;;  %s12226_s11 = inlined_call_operand.vmem [shape: f32[32,32], index: 11, kind: input, shape index: {}]   ;;  %s12227_s12 = inlined_call_operand.vmem [shape: f32[1,32], index: 12, kind: input, shape index: {}]   ;;  %s12228_s13 = inlined_call_operand.vmem [shape: f32[32,32], index: 13, kind: input, shape index: {}]   ;;  %s12229_s14 = inlined_call_operand.vmem [shape: f32[1,32], index: 14, kind: input, shape index: {}]   ;;  %s12230_s15 = inlined_call_operand.vmem [shape: f32[32,32], index: 15, kind: input, shape index: {}]   ;;  %s12231_s16 = inlined_call_operand.vmem [shape: f32[1,32], index: 16, kind: input, shape index: {}]   ;;  %s12232_s17 = inlined_call_operand.vmem [shape: f32[32,32], index: 17, kind: input, shape index: {}]   ;;  %s12233_s18 = inlined_call_operand.vmem [shape: f32[1,32], index: 18, kind: input, shape index: {}]   ;;  %s12234_s19 = inlined_call_operand.vmem [shape: f32[32,192], index: 19, kind: input, shape index: {}]   ;;  %s12235_s20 = inlined_call_operand.vmem [shape: f32[32,96], index: 20, kind: input, shape index: {}]   ;;  %s12236_s21 = inlined_call_operand.vmem [shape: f32[32,96], index: 21, kind: input, shape index: {}]   ;;  %s12237_s22 = inlined_call_operand.vmem [shape: f32[32,96], index: 22, kind: input, shape index: {}]   ;;  %s12238_s23 = inlined_call_operand.vmem [shape: f32[1,2], index: 23, kind: output, shape index: {0}]   ;;  %s12239_s24 = inlined_call_operand.hbm [shape: f32[8,16], index: 24, kind: output, shape index: {1}]  }
   0x1   :  { %12291 = sst [smem:[#allocation32_spill]] %s12215_s0 }
   0x2   :  { %12292 = sst [smem:[#allocation33_spill]] %s12216_s1 }
   0x3   :  { %12293 = sst [smem:[#allocation34_spill]] %s12217_s2 }
   0x4   :  { %12294 = sst [smem:[#allocation35_spill]] %s12218_s3 }
   0x5   :  { %12295 = sst [smem:[#allocation36_spill]] %s12219_s4 }
   0x6   :  { %12296 = sst [smem:[#allocation37_spill]] %s12220_s5 }
   0x7   :  { %12297 = sst [smem:[#allocation38_spill]] %s12221_s6 }
   0x8   :  { %12298 = sst [smem:[#allocation39_spill]] %s12222_s7 }
   0x9   :  { %12299 = sst [smem:[#allocation40_spill]] %s12223_s8 }
   0xa   :  { %12300 = sst [smem:[#allocation41_spill]] %s12227_s12 }
   0xb   :  { %12301 = sst [smem:[#allocation42_spill]] %s12238_s23 }
   0xc   :  { %12302 = sst [smem:[#allocation43_spill]] %s12239_s24 }
   0xd   :  { %v9708_v0 = vld [vmem:[%s12234_s19 + $0x38] sm:$0xff]  ;;  %v9713_v1 = vld [vmem:[%s12234_s19 + $0x30] sm:$0xff]  ;;  %v9718_v2 = vld [vmem:[%s12234_s19 + $0x28] sm:$0xff]  ;;  %v12254_v4 = vmov 0.0   ;;  %s12256_s1 = smov 32   ;;  %s12303_s27 = sld [smem:[#allocation38_spill]] }
   0xe   :  { %117 = vmatprep.subr.mxu0 %v9708_v0  ;;  %v9724_v3 = vld [vmem:[%s12234_s19 + $0x20] sm:$0xff]  ;;  %157 = vmatprep.mubr.f32.mxu0 %v12254_v4  ;;  %v9731_v5 = vld [vmem:[%s12234_s19 + $0x18] sm:$0xff]  ;;  %v9741_v7 = vld [vmem:[%s12234_s19 + $0x10] sm:$0xff] }
   0xf   :  { %118 = vmatpush1.msra.mxu0 %v9713_v1  ;;  %v7856_v6 = vld [vmem:[%s12225_s10] ss:$0 sm:$0xff]  ;;  %8361 = vmatprep.subr.mxu1 %v12254_v4 }
  0x10   :  { %119 = vmatprep.subr.mxu0 %v9718_v2  ;;  %359 = vrot.lane.b32.xlu0 %v7856_v6, %s12256_s1 }
  0x13   :  { %v9747_v8 = vld [vmem:[%s12303_s27 + $0x18] sm:$0xff] }
  0x14   :  { %12304 = vst [vmem:[#allocation5_spill] sm:$0xff] %v9747_v8 }
  0x15   :  { %30 = vsyncpa [#allocation3], 0  ;;  %120 = vmatpush1.msra.mxu0 %v9724_v3  ;;  %v9753_v9 = vld [vmem:[%s12234_s19 + $0x8] sm:$0xff]  ;;  %8362 = vmatpush3.msra.mxu1 %v9747_v8  ;;  %v9760_v10 = vld [vmem:[%s12234_s19] sm:$0xff]  ;;  %vm9574_vm0 = vmmov 0   ;;  %s12309_s5 = sld [smem:[#allocation40_spill]] }
  0x16   :  { %121 = vmatprep.subr.mxu0 %v9731_v5  ;;  %12305 = vst [vmem:[#allocation6_spill] sm:$0xff] %v9760_v10  ;;  %8363 = vmatprep.subr.mxu1 %v12254_v4  ;;  %v9771_v11 = vld [vmem:[%s12303_s27 + $0x10] sm:$0xff]  ;;  %v9778_v12 = vld [vmem:[%s12303_s27 + $0x8] sm:$0xff]  ;;  %v9785_v13 = vld [vmem:[%s12303_s27] sm:$0xff]  ;;  %s12310_s28 = sld [smem:[#allocation34_spill]]  ;;  %vm89_vm1 = vcmask 261120  }
  0x17   :  { %122 = vmatpush1.msra.mxu0 %v9741_v7  ;;  %12306 = vst [vmem:[#allocation7_spill] sm:$0xff] %v9771_v11  ;;  %8364 = vmatpush3.msra.mxu1 %v9771_v11  ;;  %12307 = vst [vmem:[#allocation8_spill] sm:$0xff] %v9778_v12  ;;  %v9813_v22 = vld [vmem:[%s12226_s11 + $0x18] sm:$0xff]  ;;  %s12268_s29 = smov 96   ;;  %v9820_v23 = vld [vmem:[%s12226_s11 + $0x10] sm:$0xff]  ;;  %s12311_s3 = sld [smem:[#allocation39_spill]] }
  0x18   :  { %123 = vmatprep.subr.mxu0 %v9753_v9  ;;  %8365 = vmatprep.subr.mxu1 %v12254_v4  ;;  %12308 = vst [vmem:[#allocation9_spill] sm:$0xff] %v9785_v13  ;;  %v9829_v24 = vld [vmem:[%s12226_s11 + $0x8] sm:$0xff]  ;;  %v9836_v25 = vld [vmem:[%s12226_s11] sm:$0xff]  ;;  %s12316_s10 = sld [smem:[#allocation36_spill]]  ;;  %s12249_s0 = smov 112   ;;  %vm483_vm4 = vcmask 130048  }
  0x19   :  { %124 = vmatpush1.msra.mxu0 %v9760_v10  ;;  %8366 = vmatpush3.msra.mxu1 %v9778_v12  ;;  %v9882_v38 = vld [vmem:[%s12224_s9] ss:$0 sm:$0xff]  ;;  %s12270_s7 = smov 64   ;;  %s12320_s8 = sld [smem:[#allocation33_spill]]  ;;  %v9919_v63 = vld [vmem:[%s12228_s13 + $0x18] sm:$0xff]  ;;  %v9929_v6 = vld [vmem:[%s12228_s13 + $0x10] sm:$0xff] }
  0x1a   :  { %158 = vmatmul.mubr.f32.vlgmr.msra.gmra.mxu0 %v12254_v4  ;;  %8372 = vmatprep.subr.mxu0 %v12254_v4  ;;  %12314 = vst [vmem:[#allocation12_spill] sm:$0xff] %v9882_v38  ;;  %s12323_s4 = sld [smem:[#allocation35_spill]]  ;;  %s12325_s1 = smov 32  }
  0x1b   :  { %8367 = vmatprep.subr.mxu1 %v12254_v4  ;;  %8369 = vmatprep.mubr.msk.f32.mxu1 %vm9574_vm0, %v12254_v4  ;;  %v9796_v14 = vld [vmem:[%s12309_s5 + $0x18] sm:$0xff]  ;;  %v9845_v26 = vld [vmem:[%s12309_s5 + $0x10] sm:$0xff]  ;;  %v9852_v27 = vld [vmem:[%s12309_s5 + $0x8] sm:$0xff]  ;;  %s12330_s25 = smov 112   ;;  %s12353_s23 = smov 64  }
  0x1c   :  { %8368 = vmatpush3.msra.mxu1 %v9785_v13  ;;  %8380 = vmatprep.mubr.msk.f32.mxu0 %vm9574_vm0, %v12254_v4  ;;  %v79_v16 = vld [vmem:[%s12310_s28] sm:$0xff]  ;;  %s12375_s12 = sld [smem:[#allocation41_spill]]  ;;  %s9578_s2 = smov 16  }
  0x1d   :  { %8383 = vmatprep.subr.mxu1 %v12254_v4  ;;  %8373 = vmatpush3.msra.mxu0 %v9796_v14  ;;  %v9859_v28 = vld [vmem:[%s12309_s5] sm:$0xff]  ;;  %s9579_s6 = smov [#allocation2]  }
  0x1e   :  { %8374 = vmatprep.subr.mxu0 %v12254_v4  ;;  %v9869_v30 = vld [vmem:[%s12311_s3] ss:$0 sm:$0xff]  ;;  %v9891_v48 = vld [vmem:[%s12316_s10 + $0x8] sm:$0xff] }
  0x1f   :  { %8375 = vmatpush3.msra.mxu0 %v9845_v26  ;;  %12312 = vst [vmem:[#allocation10_spill] sm:$0xff] %v9869_v30  ;;  %12317 = vst [vmem:[#allocation14_spill] sm:$0xff] %v9891_v48  ;;  %v9898_v49 = vld [vmem:[%s12316_s10] sm:$0xff] }
  0x20   :  { %8376 = vmatprep.subr.mxu0 %v12254_v4  ;;  %12318 = vst [vmem:[#allocation15_spill] sm:$0xff] %v9898_v49  ;;  %v78_v59 = vld [vmem:[%s12320_s8] sm:$0xff] }
  0x21   :  { %8377 = vmatpush3.msra.mxu0 %v9852_v27 }
  0x22   :  { %8378 = vmatprep.subr.mxu0 %v12254_v4 }
  0x23   :  { %8379 = vmatpush3.msra.mxu0 %v9859_v28 }
  0x24   :  { %8412 = vmatprep.subr.mxu0 %v12254_v4 }
  0x82   :  { %v9800_v15 = vpop.permute.xlu0 %359 }
  0xda   :  { %v9805_v17 = vpop.f32.mrf.mxu0 }
  0xdb   :  { %v164_v18 = vadd.f32 %v9805_v17, %v79_v16  ;;  %v362_v19 = vadd.f32 %v9800_v15, %v9805_v17  ;;  %v9936_v16 = vld [vmem:[%s12228_s13 + $0x8] sm:$0xff] }
  0xdc   :  { %v9877_v37 = vpop.f32.mrf.mxu0 }
  0xdd   :  { %v165_v20 = vmax.f32 %v164_v18, 0.0  ;;  %v363_v21 = vmax.f32 %v362_v19, 0.0  ;;  %v9943_v18 = vld [vmem:[%s12228_s13] sm:$0xff]  ;;  %v9949_v19 = vld [vmem:[%s12230_s15 + $0x18] sm:$0xff] }
  0xdf   :  { %376 = vrot.lane.b32.xlu0 %v363_v21, %s12268_s29  ;;  %8370 = vmatmul.mubr.msk.f32.vlgmr.msra.gmra.mxu1 %vm89_vm1, %v165_v20 }
  0xe0   :  { %8384 = vmatpush3.msra.mxu1 %v9813_v22  ;;  %8391 = vmatprep.mubr.msk.f32.mxu1 %vm9574_vm0, %v12254_v4 }
  0xe1   :  { %8385 = vmatprep.subr.mxu1 %v12254_v4 }
  0xe2   :  { %8386 = vmatpush3.msra.mxu1 %v9820_v23 }
  0xe3   :  { %8387 = vmatprep.subr.mxu1 %v12254_v4 }
  0xe4   :  { %8388 = vmatpush3.msra.mxu1 %v9829_v24 }
  0xe5   :  { %8389 = vmatprep.subr.mxu1 %v12254_v4 }
  0xe6   :  { %8390 = vmatpush3.msra.mxu1 %v9836_v25 }
  0xe7   :  { %8394 = vmatprep.subr.mxu1 %v12254_v4 }
 0x151   :  { %v377_v29 = vpop.permute.xlu0 %376 }
 0x152   :  { %8392 = vmatmul.mubr.msk.f32.vlgmr.msra.gmra.mxu1 %vm89_vm1, %v377_v29 }
 0x153   :  { %8398 = vmatprep.mubr.msk.f32.mxu1 %vm9574_vm0, %v12254_v4  ;;  %8395 = vmatpush3.msra.mxu1 %v9891_v48 }
 0x154   :  { %8396 = vmatprep.subr.mxu1 %v12254_v4 }
 0x155   :  { %8397 = vmatpush3.msra.mxu1 %v9898_v49 }
 0x156   :  { %8401 = vmatprep.subr.mxu1 %v12254_v4 }
 0x19f   :  { %v246_v31 = vpop.f32.mrf.mxu1 }
 0x1a0   :  { %v247_v32 = vadd.f32 %v9869_v30, %v246_v31 }
 0x1a1   :  { %v8371_v33 = vpop.f32.mrf.mxu1 }
 0x1a2   :  { %v250_v34 = vmax.f32 %v247_v32, 0.0  ;;  %v9966_v33 = vld [vmem:[%s12230_s15 + $0x10] sm:$0xff] }
 0x1a4   :  { %8381 = vmatmul.mubr.msk.f32.vlgmr.msra.gmra.mxu0 %vm89_vm1, %v250_v34  ;;  %v9973_v34 = vld [vmem:[%s12230_s15 + $0x8] sm:$0xff] }
 0x1a5   :  { %8420 = vmatprep.mubr.msk.f32.mxu0 %vm9574_vm0, %v12254_v4  ;;  %8413 = vmatpush3.msra.mxu0 %v9949_v19 }
 0x1a6   :  { %8414 = vmatprep.subr.mxu0 %v12254_v4 }
 0x1a7   :  { %8415 = vmatpush3.msra.mxu0 %v9966_v33 }
 0x1a8   :  { %8416 = vmatprep.subr.mxu0 %v12254_v4 }
 0x1a9   :  { %8417 = vmatpush3.msra.mxu0 %v9973_v34 }
 0x1aa   :  { %8418 = vmatprep.subr.mxu0 %v12254_v4 }
 0x212   :  { %v9875_v35 = vpop.f32.mrf.mxu1 }
 0x213   :  { %12313 = vst [vmem:[#allocation11_spill] sm:$0xff] %v9875_v35 }
 0x214   :  { %v8393_v36 = vpop.f32.mrf.mxu1 }
 0x215   :  { %v9980_v36 = vld [vmem:[%s12230_s15] sm:$0xff] }
 0x216   :  { %8419 = vmatpush3.msra.mxu0 %v9980_v36 }
 0x217   :  { %8434 = vmatprep.subr.mxu0 %v12254_v4 }
 0x264   :  { %v331_v39 = vpop.f32.mrf.mxu0 }
 0x265   :  { %v9885_v40 = vadd.f32 %v9882_v38, %v331_v39  ;;  %v9987_v39 = vld [vmem:[%s12232_s17 + $0x18] sm:$0xff] }
 0x266   :  { %v8382_v41 = vpop.f32.mrf.mxu0 }
 0x267   :  { %12315 = vst [vmem:[#allocation13_spill] sm:$0xff] %v9885_v40  ;;  %v338_v42 = vand.u32 2147483647, %v9885_v40  ;;  %v335_v55 = vmax.f32 %v9885_v40, 0.0  ;;  %vm336_vm3 = vcmp.ne.f32.partialorder %v9885_v40, %v9885_v40  ;;  %v9992_v41 = vld [vmem:[%s12232_s17 + $0x10] sm:$0xff] }
 0x269   :  { %v339_v43 = vsub.f32 0.0, %v338_v42 }
 0x26b   :  { %v340_v44 = vmul.f32 1.442695, %v339_v43 }
 0x26d   :  { %9188 = vpow2.f32 %v340_v44  ;;  %v10001_v44 = vld [vmem:[%s12229_s14] ss:$0 sm:$0xff] }
 0x27a   :  { %v9189_v45 = vpop.eup %9188 }
 0x27b   :  { %v342_v46 = vadd.f32 1.0, %v9189_v45  ;;  %v345_v47 = vmul.f32 -0.5, %v9189_v45  ;;  %v348_v51 = vand.u32 2147483647, %v9189_v45 }
 0x27d   :  { %9190 = vlog2.f32 %v342_v46  ;;  %v346_v50 = vadd.f32 1.0, %v345_v47  ;;  %vm349_vm2 = vcmp.lt.f32.partialorder %v348_v51, 0.0004427343  ;;  %v10007_v51 = vld [vmem:[%s12235_s20 + $0x18] sm:$0xff] }
 0x27f   :  { %v347_v54 = vmul.f32 %v9189_v45, %v346_v50 }
 0x28a   :  { %v9191_v52 = vpop.eup %9190 }
 0x28b   :  { %v344_v53 = vmul.f32 0.6931472, %v9191_v52  ;;  %v10013_v52 = vld [vmem:[%s12235_s20 + $0x10] sm:$0xff] }
 0x28d   :  { %v350_v56 = vsel %vm349_vm2, %v347_v54, %v344_v53  ;;  %v10022_v53 = vld [vmem:[%s12235_s20 + $0x8] sm:$0xff]  ;;  %v10029_v54 = vld [vmem:[%s12235_s20] sm:$0xff] }
 0x28e   :  { %v351_v57 = vadd.f32 %v350_v56, %v335_v55  ;;  %v10041_v55 = vld [vmem:[%s12232_s17 + $0x8] sm:$0xff]  ;;  %v10048_v56 = vld [vmem:[%s12232_s17] sm:$0xff] }
 0x290   :  { %v9906_v58 = vsel %vm336_vm3, %v9885_v40, %v351_v57  ;;  %v10055_v57 = vld [vmem:[%s12231_s16] ss:$0 sm:$0xff] }
 0x291   :  { %12319 = vst [vmem:[#allocation16_spill] sm:$0xff] %v9906_v58  ;;  %469 = vrot.lane.b32.xlu1 %v9906_v58, %s12249_s0  ;;  %s12321_s0 = sld [smem:[#allocation37_spill]] }
 0x295   :  { %563 = vrot.lane.b32.xlu1 %v9805_v17, %s12270_s7 }
 0x297   :  { %v9957_v20 = vld [vmem:[%s12321_s0] ss:$0 sm:$0xff] }
 0x303   :  { %v470_v60 = vpop.permute.xlu1 %469 }
 0x304   :  { %v472_v61 = vmul.f32 %v470_v60, %v78_v59 }
 0x306   :  { %v473_v62 = vadd.f32 %v472_v61, %v9885_v40 }
 0x307   :  { %v564_v42 = vpop.permute.xlu1 %563 }
 0x308   :  { %8399 = vmatmul.mubr.msk.f32.vlgmr.msra.gmra.mxu1 %vm483_vm4, %v473_v62 }
 0x309   :  { %8402 = vmatpush3.msra.mxu1 %v9919_v63  ;;  %8409 = vmatprep.mubr.msk.f32.mxu1 %vm9574_vm0, %v12254_v4 }
 0x30a   :  { %8403 = vmatprep.subr.mxu1 %v12254_v4 }
 0x30b   :  { %8404 = vmatpush3.msra.mxu1 %v9929_v6 }
 0x30c   :  { %8405 = vmatprep.subr.mxu1 %v12254_v4 }
 0x30d   :  { %8406 = vmatpush3.msra.mxu1 %v9936_v16 }
 0x30e   :  { %8407 = vmatprep.subr.mxu1 %v12254_v4 }
 0x30f   :  { %8408 = vmatpush3.msra.mxu1 %v9943_v18 }
 0x310   :  { %8423 = vmatprep.subr.mxu1 %v12254_v4 }
 0x3c8   :  { %v553_v21 = vpop.f32.mrf.mxu1 }
 0x3c9   :  { %v554_v29 = vadd.f32 %v9957_v20, %v553_v21  ;;  %v10061_v21 = vld [vmem:[%s12237_s22 + $0x18] sm:$0xff] }
 0x3ca   :  { %v8400_v31 = vpop.f32.mrf.mxu1 }
 0x3cb   :  { %v557_v32 = vmax.f32 %v554_v29, 0.0  ;;  %v10067_v29 = vld [vmem:[%s12237_s22 + $0x10] sm:$0xff]  ;;  %v10076_v31 = vld [vmem:[%s12237_s22 + $0x8] sm:$0xff] }
 0x3cd   :  { %8410 = vmatmul.mubr.msk.f32.vlgmr.msra.gmra.mxu1 %vm89_vm1, %v557_v32 }
 0x3ce   :  { %8431 = vmatprep.mubr.msk.f32.mxu1 %vm9574_vm0, %v12254_v4  ;;  %8424 = vmatpush3.msra.mxu1 %v9987_v39 }
 0x3cf   :  { %8425 = vmatprep.subr.mxu1 %v12254_v4 }
 0x3d0   :  { %8426 = vmatpush3.msra.mxu1 %v9992_v41 }
 0x3d1   :  { %8427 = vmatprep.subr.mxu1 %v12254_v4 }
 0x3d2   :  { %8428 = vmatpush3.msra.mxu1 %v10041_v55 }
 0x3d3   :  { %8429 = vmatprep.subr.mxu1 %v12254_v4 }
 0x3d4   :  { %8430 = vmatpush3.msra.mxu1 %v10048_v56 }
 0x3d5   :  { %8445 = vmatprep.subr.mxu1 %v12254_v4 }
 0x48d   :  { %v635_v43 = vpop.f32.mrf.mxu1 }
 0x48e   :  { %v636_v45 = vadd.f32 %v635_v43, %v564_v42  ;;  %v10083_v42 = vld [vmem:[%s12237_s22] sm:$0xff] }
 0x48f   :  { %v8411_v46 = vpop.f32.mrf.mxu1 }
 0x490   :  { %v646_v47 = vadd.f32 %v10001_v44, %v636_v45 }
 0x492   :  { %v647_v50 = vmax.f32 %v646_v47, 0.0 }
 0x494   :  { %8421 = vmatmul.mubr.msk.f32.vlgmr.msra.gmra.mxu0 %vm89_vm1, %v647_v50 }
 0x495   :  { %8435 = vmatpush3.msra.mxu0 %v10007_v51  ;;  %8442 = vmatprep.mubr.msk.f32.mxu0 %vm9574_vm0, %v12254_v4 }
 0x496   :  { %8436 = vmatprep.subr.mxu0 %v12254_v4 }
 0x497   :  { %8437 = vmatpush3.msra.mxu0 %v10013_v52 }
 0x498   :  { %8438 = vmatprep.subr.mxu0 %v12254_v4 }
 0x499   :  { %8439 = vmatpush3.msra.mxu0 %v10022_v53 }
 0x49a   :  { %8440 = vmatprep.subr.mxu0 %v12254_v4 }
 0x49b   :  { %8441 = vmatpush3.msra.mxu0 %v10029_v54 }
 0x49c   :  { %8443 = vmatmul.mubr.msk.f32.vlgmr.msra.gmra.mxu0 %vm89_vm1, %v557_v32  ;;  %8456 = vmatprep.subr.mxu0 %v12254_v4 }
 0x49d   :  { %8464 = vmatprep.mubr.msk.f32.mxu0 %vm9574_vm0, %v12254_v4 }
 0x554   :  { %v728_v59 = vpop.f32.mrf.mxu0 }
 0x555   :  { %v729_v60 = vadd.f32 %v10055_v57, %v728_v59  ;;  %v80_v59 = vld [vmem:[%s12323_s4] sm:$0xff] }
 0x556   :  { %v8422_v61 = vpop.f32.mrf.mxu0 }
 0x557   :  { %v732_v62 = vmax.f32 %v729_v60, 0.0 }
 0x559   :  { %8432 = vmatmul.mubr.msk.f32.vlgmr.msra.gmra.mxu1 %vm89_vm1, %v732_v62 }
 0x55a   :  { %8446 = vmatpush3.msra.mxu1 %v10061_v21  ;;  %8453 = vmatprep.mubr.msk.f32.mxu1 %vm9574_vm0, %v12254_v4 }
 0x55b   :  { %8447 = vmatprep.subr.mxu1 %v12254_v4 }
 0x55c   :  { %v905_v32 = vpop.f32.mrf.mxu0  ;;  %8448 = vmatpush3.msra.mxu1 %v10067_v29 }
 0x55d   :  { %8449 = vmatprep.subr.mxu1 %v12254_v4  ;;  %v909_v60 = vadd.f32 %v905_v32, %v80_v59  ;;  %v10114_v32 = vld [vmem:[%s12236_s21 + $0x10] sm:$0xff] }
 0x55e   :  { %v8444_v43 = vpop.f32.mrf.mxu0  ;;  %8450 = vmatpush3.msra.mxu1 %v10076_v31 }
 0x55f   :  { %8451 = vmatprep.subr.mxu1 %v12254_v4 }
 0x560   :  { %8452 = vmatpush3.msra.mxu1 %v10083_v42 }
 0x561   :  { %8454 = vmatmul.mubr.f32.vlgmr.msra.gmra.mxu1 %v12254_v4  ;;  %1201 = vmatprep.subr.mxu1 %v9708_v0 }
 0x562   :  { %1202 = vmatpush1.msra.mxu1 %v9713_v1  ;;  %1241 = vmatprep.mubr.f32.mxu1 %v12254_v4 }
 0x563   :  { %1203 = vmatprep.subr.mxu1 %v9718_v2 }
 0x564   :  { %1204 = vmatpush1.msra.mxu1 %v9724_v3 }
 0x565   :  { %1205 = vmatprep.subr.mxu1 %v9731_v5 }
 0x566   :  { %1206 = vmatpush1.msra.mxu1 %v9741_v7 }
 0x567   :  { %1207 = vmatprep.subr.mxu1 %v9753_v9 }
 0x568   :  { %1208 = vmatpush1.msra.mxu1 %v9760_v10 }
 0x569   :  { %8478 = vmatprep.subr.mxu1 %v12254_v4 }
 0x619   :  { %v10099_v45 = vpop.f32.mrf.mxu1 }
 0x61a   :  { %12322 = vst [vmem:[#allocation17_spill] sm:$0xff] %v10099_v45 }
 0x61b   :  { %v8433_v46 = vpop.f32.mrf.mxu1 }
 0x621   :  { %v980_v47 = vpop.f32.mrf.mxu1 }
 0x622   :  { %992 = vrot.lane.b32.xlu0 %v980_v47, %s12270_s7  ;;  %v984_v61 = vadd.f32 %v980_v47, %v909_v60 }
 0x623   :  { %v8455_v50 = vpop.f32.mrf.mxu1 }
 0x624   :  { %v7868_v62 = vmul.f32 -1.442695, %v984_v61  ;;  %v10109_v50 = vld [vmem:[%s12236_s21 + $0x18] sm:$0xff] }
 0x625   :  { %8457 = vmatpush3.msra.mxu0 %v10109_v50 }
 0x626   :  { %9192 = vpow2.f32 %v7868_v62 }
 0x633   :  { %v9193_v43 = vpop.eup %9192 }
 0x634   :  { %v988_v58 = vadd.f32 1.0, %v9193_v43 }
 0x636   :  { %9194 = vrcp.f32 %v988_v58  ;;  %v12324_v58 = vmov 0.0  }
 0x637   :  { %8458 = vmatprep.subr.mxu0 %v12324_v58 }
 0x638   :  { %8459 = vmatpush3.msra.mxu0 %v10114_v32 }
 0x639   :  { %8460 = vmatprep.subr.mxu0 %v12324_v58 }
 0x643   :  { %v9195_v40 = vpop.eup %9194 }
 0x644   :  { %v1002_v47 = vsub.f32 1.0, %v9195_v40 }
 0x694   :  { %v993_v4 = vpop.permute.xlu0 %992 }
 0x695   :  { %v995_v35 = vmul.f32 %v9195_v40, %v993_v4  ;;  %v10121_v4 = vld [vmem:[%s12236_s21 + $0x8] sm:$0xff] }
 0x696   :  { %8461 = vmatpush3.msra.mxu0 %v10121_v4 }
 0x697   :  { %997 = vrot.lane.b32.xlu1 %v995_v35, %s12270_s7  ;;  %8462 = vmatprep.subr.mxu0 %v12324_v58 }
 0x709   :  { %v998_v46 = vpop.permute.xlu1 %997 }
 0x70a   :  { %v1000_v45 = vadd.f32 %v998_v46, %v909_v60  ;;  %v1008_v60 = vmul.f32 0.0, %v9195_v40 }
 0x70c   :  { %9196 = vtanh.f32 %v1000_v45  ;;  %v10128_v45 = vld [vmem:[%s12236_s21] sm:$0xff] }
 0x70d   :  { %8463 = vmatpush3.msra.mxu0 %v10128_v45 }
 0x70e   :  { %8467 = vmatprep.subr.mxu0 %v12324_v58 }
 0x719   :  { %v9197_v35 = vpop.eup %9196 }
 0x71a   :  { %1004 = vrot.lane.b32.xlu0 %v9197_v35, %s12268_s29 }
 0x71e   :  { %1090 = vrot.lane.b32.xlu0 %v9805_v17, %s12325_s1 }
 0x722   :  { %1103 = vrot.lane.b32.xlu0 %v9877_v37, %s12268_s29 }
 0x78c   :  { %v1005_v59 = vpop.permute.xlu0 %1004 }
 0x78d   :  { %v1007_v61 = vmul.f32 %v1005_v59, %v1002_v47 }
 0x78f   :  { %v10139_v62 = vadd.f32 %v1008_v60, %v1007_v61 }
 0x791   :  { %12326 = vst [vmem:[#allocation18_spill] sm:$0xff] %v10139_v62  ;;  %1015 = vrot.lane.b32.xlu1 %v10139_v62, %s12268_s29 }
 0x795   :  { %1092 = vrot.lane.b32.xlu1 %v9877_v37, %s12325_s1  ;;  %v1091_v37 = vpop.permute.xlu0 %1090 }
 0x803   :  { %v10145_v43 = vpop.permute.xlu1 %1015 }
 0x804   :  { %8465 = vmatmul.mubr.msk.f32.vlgmr.msra.gmra.mxu0 %vm89_vm1, %v10145_v43 }
 0x805   :  { %8468 = vmatpush3.msra.mxu0 %v9747_v8  ;;  %8475 = vmatprep.mubr.msk.f32.mxu0 %vm9574_vm0, %v12324_v58 }
 0x806   :  { %8469 = vmatprep.subr.mxu0 %v12324_v58 }
 0x807   :  { %8470 = vmatpush3.msra.mxu0 %v9771_v11  ;;  %v1093_v17 = vpop.permute.xlu1 %1092 }
 0x808   :  { %8471 = vmatprep.subr.mxu0 %v12324_v58  ;;  %v1094_v40 = vsel %vm89_vm1, %v1091_v37, %v1093_v17 }
 0x809   :  { %8472 = vmatpush3.msra.mxu0 %v9778_v12  ;;  %v1104_v12 = vpop.permute.xlu0 %1103 }
 0x80a   :  { %8473 = vmatprep.subr.mxu0 %v12324_v58 }
 0x80b   :  { %8474 = vmatpush3.msra.mxu0 %v9785_v13 }
 0x80c   :  { %8489 = vmatprep.subr.mxu0 %v12324_v58 }
 0x8c4   :  { %v1085_v46 = vpop.f32.mrf.mxu0 }
 0x8c5   :  { %v1096_v35 = vadd.f32 %v1094_v40, %v1085_v46 }
 0x8c6   :  { %v8466_v47 = vpop.f32.mrf.mxu0 }
 0x8c7   :  { %v7870_v59 = vmul.f32 -1.442695, %v1096_v35 }
 0x8c9   :  { %9198 = vpow2.f32 %v7870_v59 }
 0x8d6   :  { %v9199_v60 = vpop.eup %9198 }
 0x8d7   :  { %v1100_v61 = vadd.f32 1.0, %v9199_v60 }
 0x8d9   :  { %9200 = vrcp.f32 %v1100_v61 }
 0x8e6   :  { %v9201_v11 = vpop.eup %9200 }
 0x8e7   :  { %v1106_v8 = vmul.f32 %v9201_v11, %v1104_v12  ;;  %v1113_v17 = vsub.f32 1.0, %v9201_v11  ;;  %v1119_v40 = vmul.f32 0.0, %v9201_v11 }
 0x8e9   :  { %1108 = vrot.lane.b32.xlu1 %v1106_v8, %s12270_s7  ;;  %v7874_v8 = vld [vmem:[%s12310_s28 + $0x8] sm:$0xff] }
 0x95b   :  { %v1109_v13 = vpop.permute.xlu1 %1108 }
 0x95c   :  { %v1111_v62 = vadd.f32 %v1109_v13, %v1085_v46 }
 0x95e   :  { %9202 = vtanh.f32 %v1111_v62 }
 0x96b   :  { %v9203_v10 = vpop.eup %9202 }
 0x96c   :  { %1115 = vrot.lane.b32.xlu0 %v9203_v10, %s12268_s29 }
 0x9de   :  { %v1116_v37 = vpop.permute.xlu0 %1115 }
 0x9df   :  { %v1118_v47 = vmul.f32 %v1116_v37, %v1113_v17 }
 0x9e1   :  { %v10162_v35 = vadd.f32 %v1119_v40, %v1118_v47 }
 0x9e3   :  { %1173 = vrot.lane.b32.xlu1 %v10162_v35, %s12268_s29 }
 0xa55   :  { %v1174_v59 = vpop.permute.xlu1 %1173 }
 0xa56   :  { %7876 = vmatmul.mubr.msk.f32.vlgmr.msra.gmra.mxu1 %vm89_vm1, %v1174_v59 }
 0xa57   :  { %8479 = vmatpush3.msra.mxu1 %v9796_v14  ;;  %8486 = vmatprep.mubr.msk.f32.mxu1 %vm9574_vm0, %v12324_v58 }
 0xa58   :  { %8480 = vmatprep.subr.mxu1 %v12324_v58 }
 0xa59   :  { %8481 = vmatpush3.msra.mxu1 %v9845_v26 }
 0xa5a   :  { %8482 = vmatprep.subr.mxu1 %v12324_v58 }
 0xa5b   :  { %8483 = vmatpush3.msra.mxu1 %v9852_v27 }
 0xa5c   :  { %8484 = vmatprep.subr.mxu1 %v12324_v58 }
 0xa5d   :  { %8485 = vmatpush3.msra.mxu1 %v9859_v28 }
 0xa5e   :  { %8500 = vmatprep.subr.mxu1 %v12324_v58 }
 0xb16   :  { %v10180_v10 = vpop.f32.mrf.mxu1 }
 0xb17   :  { %v1248_v11 = vadd.f32 %v7874_v8, %v10180_v10  ;;  %v1415_v12 = vadd.f32 %v10180_v10, %v9800_v15 }
 0xb18   :  { %v10218_v59 = vpop.f32.mrf.mxu1 }
 0xb19   :  { %v1249_v13 = vmax.f32 %v1248_v11, 0.0  ;;  %v1416_v62 = vmax.f32 %v1415_v12, 0.0 }
 0xb1b   :  { %1418 = vrot.lane.b32.xlu1 %v1416_v62, %s12268_s29  ;;  %8476 = vmatmul.mubr.msk.f32.vlgmr.msra.gmra.mxu0 %vm89_vm1, %v1249_v13 }
 0xb1c   :  { %8490 = vmatpush3.msra.mxu0 %v9813_v22  ;;  %8497 = vmatprep.mubr.msk.f32.mxu0 %vm9574_vm0, %v12324_v58 }
 0xb1d   :  { %8491 = vmatprep.subr.mxu0 %v12324_v58 }
 0xb1e   :  { %8492 = vmatpush3.msra.mxu0 %v9820_v23 }
 0xb1f   :  { %8493 = vmatprep.subr.mxu0 %v12324_v58 }
 0xb20   :  { %8494 = vmatpush3.msra.mxu0 %v9829_v24 }
 0xb21   :  { %8495 = vmatprep.subr.mxu0 %v12324_v58 }
 0xb22   :  { %8496 = vmatpush3.msra.mxu0 %v9836_v25 }
 0xb23   :  { %8507 = vmatprep.subr.mxu0 %v12324_v58 }
 0xb8d   :  { %v1419_v46 = vpop.permute.xlu1 %1418 }
 0xb8e   :  { %8498 = vmatmul.mubr.msk.f32.vlgmr.msra.gmra.mxu0 %vm89_vm1, %v1419_v46 }
 0xb8f   :  { %8508 = vmatpush3.msra.mxu0 %v9919_v63  ;;  %8515 = vmatprep.mubr.msk.f32.mxu0 %vm9574_vm0, %v12324_v58 }
 0xb90   :  { %8509 = vmatprep.subr.mxu0 %v12324_v58 }
 0xb91   :  { %8510 = vmatpush3.msra.mxu0 %v9929_v6 }
 0xb92   :  { %8511 = vmatprep.subr.mxu0 %v12324_v58 }
 0xb93   :  { %8512 = vmatpush3.msra.mxu0 %v9936_v16 }
 0xb94   :  { %8513 = vmatprep.subr.mxu0 %v12324_v58 }
 0xb95   :  { %8514 = vmatpush3.msra.mxu0 %v9943_v18 }
 0xb96   :  { %8529 = vmatprep.subr.mxu0 %v12324_v58 }
 0xbdb   :  { %v1319_v60 = vpop.f32.mrf.mxu0 }
 0xbdc   :  { %v1320_v61 = vadd.f32 %v9869_v30, %v1319_v60 }
 0xbdd   :  { %v8477_v17 = vpop.f32.mrf.mxu0 }
 0xbde   :  { %v1323_v37 = vmax.f32 %v1320_v61, 0.0 }
 0xbe0   :  { %8487 = vmatmul.mubr.msk.f32.vlgmr.msra.gmra.mxu1 %vm89_vm1, %v1323_v37 }
 0xbe1   :  { %8501 = vmatpush3.msra.mxu1 %v9891_v48  ;;  %8504 = vmatprep.mubr.msk.f32.mxu1 %vm9574_vm0, %v12324_v58 }
 0xbe2   :  { %8502 = vmatprep.subr.mxu1 %v12324_v58 }
 0xbe3   :  { %8503 = vmatpush3.msra.mxu1 %v9898_v49 }
 0xbe4   :  { %8518 = vmatprep.subr.mxu1 %v12324_v58 }
 0xc4e   :  { %v10216_v40 = vpop.f32.mrf.mxu0 }
 0xc4f   :  { %12327 = vst [vmem:[#allocation19_spill] sm:$0xff] %v10216_v40 }
 0xc50   :  { %v8499_v47 = vpop.f32.mrf.mxu0 }
 0xca0   :  { %v1393_v8 = vpop.f32.mrf.mxu1 }
 0xca1   :  { %v10221_v11 = vadd.f32 %v9882_v38, %v1393_v8 }
 0xca2   :  { %v8488_v12 = vpop.f32.mrf.mxu1 }
 0xca3   :  { %12328 = vst [vmem:[#allocation20_spill] sm:$0xff] %v10221_v11  ;;  %v1400_v13 = vand.u32 2147483647, %v10221_v11  ;;  %v1397_v30 = vmax.f32 %v10221_v11, 0.0  ;;  %vm1398_vm6 = vcmp.ne.f32.partialorder %v10221_v11, %v10221_v11 }
 0xca5   :  { %v1401_v62 = vsub.f32 0.0, %v1400_v13 }
 0xca7   :  { %v1402_v46 = vmul.f32 1.442695, %v1401_v62 }
 0xca9   :  { %9204 = vpow2.f32 %v1402_v46 }
 0xcb6   :  { %v9205_v60 = vpop.eup %9204 }
 0xcb7   :  { %v1404_v61 = vadd.f32 1.0, %v9205_v60  ;;  %v1407_v17 = vmul.f32 -0.5, %v9205_v60  ;;  %v1410_v49 = vand.u32 2147483647, %v9205_v60 }
 0xcb9   :  { %9206 = vlog2.f32 %v1404_v61  ;;  %v1408_v37 = vadd.f32 1.0, %v1407_v17  ;;  %vm1411_vm5 = vcmp.lt.f32.partialorder %v1410_v49, 0.0004427343 }
 0xcbb   :  { %v1409_v48 = vmul.f32 %v9205_v60, %v1408_v37 }
 0xcc6   :  { %v9207_v40 = vpop.eup %9206 }
 0xcc7   :  { %v1406_v47 = vmul.f32 0.6931472, %v9207_v40  ;;  %v7873_v40 = vld [vmem:[%s12320_s8 + $0x8] sm:$0xff] }
 0xcc9   :  { %v1412_v8 = vsel %vm1411_vm5, %v1409_v48, %v1406_v47 }
 0xcca   :  { %v1413_v38 = vadd.f32 %v1412_v8, %v1397_v30 }
 0xccc   :  { %v10228_v12 = vsel %vm1398_vm6, %v10221_v11, %v1413_v38 }
 0xccd   :  { %12329 = vst [vmem:[#allocation21_spill] sm:$0xff] %v10228_v12  ;;  %1511 = vrot.lane.b32.xlu0 %v10228_v12, %s12330_s25 }
 0xcd1   :  { %1591 = vrot.lane.b32.xlu0 %v10180_v10, %s12270_s7 }
 0xd3f   :  { %v1512_v13 = vpop.permute.xlu0 %1511 }
 0xd40   :  { %v1514_v49 = vmul.f32 %v7873_v40, %v1512_v13 }
 0xd42   :  { %v1515_v30 = vadd.f32 %v1514_v49, %v10221_v11 }
 0xd43   :  { %v1592_v60 = vpop.permute.xlu0 %1591 }
 0xd44   :  { %8505 = vmatmul.mubr.msk.f32.vlgmr.msra.gmra.mxu1 %vm483_vm4, %v1515_v30 }
 0xd45   :  { %8519 = vmatpush3.msra.mxu1 %v9949_v19  ;;  %8526 = vmatprep.mubr.msk.f32.mxu1 %vm9574_vm0, %v12324_v58 }
 0xd46   :  { %8520 = vmatprep.subr.mxu1 %v12324_v58 }
 0xd47   :  { %8521 = vmatpush3.msra.mxu1 %v9966_v33 }
 0xd48   :  { %8522 = vmatprep.subr.mxu1 %v12324_v58 }
 0xd49   :  { %8523 = vmatpush3.msra.mxu1 %v9973_v34 }
 0xd4a   :  { %8524 = vmatprep.subr.mxu1 %v12324_v58 }
 0xd4b   :  { %8525 = vmatpush3.msra.mxu1 %v9980_v36 }
 0xd4c   :  { %8540 = vmatprep.subr.mxu1 %v12324_v58 }
 0xe04   :  { %v1585_v38 = vpop.f32.mrf.mxu1 }
 0xe05   :  { %v1586_v48 = vadd.f32 %v9957_v20, %v1585_v38 }
 0xe06   :  { %v8506_v62 = vpop.f32.mrf.mxu1 }
 0xe07   :  { %v1589_v46 = vmax.f32 %v1586_v48, 0.0  ;;  %v12331_v62 = vld [vmem:[#allocation6_spill] sm:$0xff] }
 0xe09   :  { %8516 = vmatmul.mubr.msk.f32.vlgmr.msra.gmra.mxu0 %vm89_vm1, %v1589_v46 }
 0xe0a   :  { %8530 = vmatpush3.msra.mxu0 %v9987_v39  ;;  %8537 = vmatprep.mubr.msk.f32.mxu0 %vm9574_vm0, %v12324_v58 }
 0xe0b   :  { %8531 = vmatprep.subr.mxu0 %v12324_v58 }
 0xe0c   :  { %8532 = vmatpush3.msra.mxu0 %v9992_v41 }
 0xe0d   :  { %8533 = vmatprep.subr.mxu0 %v12324_v58 }
 0xe0e   :  { %8534 = vmatpush3.msra.mxu0 %v10041_v55 }
 0xe0f   :  { %8535 = vmatprep.subr.mxu0 %v12324_v58 }
 0xe10   :  { %8536 = vmatpush3.msra.mxu0 %v10048_v56 }
 0xe11   :  { %8551 = vmatprep.subr.mxu0 %v12324_v58 }
 0xec9   :  { %v1663_v61 = vpop.f32.mrf.mxu0 }
 0xeca   :  { %v1664_v17 = vadd.f32 %v1663_v61, %v1592_v60 }
 0xecb   :  { %v8517_v37 = vpop.f32.mrf.mxu0 }
 0xecc   :  { %v1667_v47 = vadd.f32 %v10001_v44, %v1664_v17 }
 0xece   :  { %v1668_v8 = vmax.f32 %v1667_v47, 0.0 }
 0xed0   :  { %8527 = vmatmul.mubr.msk.f32.vlgmr.msra.gmra.mxu1 %vm89_vm1, %v1668_v8 }
 0xed1   :  { %8541 = vmatpush3.msra.mxu1 %v10007_v51  ;;  %8548 = vmatprep.mubr.msk.f32.mxu1 %vm9574_vm0, %v12324_v58 }
 0xed2   :  { %8542 = vmatprep.subr.mxu1 %v12324_v58 }
 0xed3   :  { %8543 = vmatpush3.msra.mxu1 %v10013_v52 }
 0xed4   :  { %8544 = vmatprep.subr.mxu1 %v12324_v58 }
 0xed5   :  { %8545 = vmatpush3.msra.mxu1 %v10022_v53 }
 0xed6   :  { %8546 = vmatprep.subr.mxu1 %v12324_v58 }
 0xed7   :  { %8547 = vmatpush3.msra.mxu1 %v10029_v54 }
 0xed8   :  { %8549 = vmatmul.mubr.msk.f32.vlgmr.msra.gmra.mxu1 %vm89_vm1, %v1589_v46  ;;  %8562 = vmatprep.subr.mxu1 %v12324_v58 }
 0xed9   :  { %8563 = vmatpush3.msra.mxu1 %v10109_v50  ;;  %8570 = vmatprep.mubr.msk.f32.mxu1 %vm9574_vm0, %v12324_v58 }
 0xeda   :  { %8564 = vmatprep.subr.mxu1 %v12324_v58 }
 0xedb   :  { %8565 = vmatpush3.msra.mxu1 %v10114_v32 }
 0xedc   :  { %8566 = vmatprep.subr.mxu1 %v12324_v58 }
 0xedd   :  { %8567 = vmatpush3.msra.mxu1 %v10121_v4 }
 0xede   :  { %8568 = vmatprep.subr.mxu1 %v12324_v58 }
 0xedf   :  { %8569 = vmatpush3.msra.mxu1 %v10128_v45 }
 0xee0   :  { %8573 = vmatprep.subr.mxu1 %v12324_v58 }
 0xf90   :  { %v1738_v40 = vpop.f32.mrf.mxu1 }
 0xf91   :  { %v1739_v13 = vadd.f32 %v10055_v57, %v1738_v40 }
 0xf92   :  { %v8528_v49 = vpop.f32.mrf.mxu1 }
 0xf93   :  { %v1742_v30 = vmax.f32 %v1739_v13, 0.0 }
 0xf95   :  { %8538 = vmatmul.mubr.msk.f32.vlgmr.msra.gmra.mxu0 %vm89_vm1, %v1742_v30  ;;  %v12333_v30 = vld [vmem:[#allocation18_spill] sm:$0xff] }
 0xf96   :  { %8552 = vmatpush3.msra.mxu0 %v10061_v21  ;;  %8559 = vmatprep.mubr.msk.f32.mxu0 %vm9574_vm0, %v12324_v58 }
 0xf97   :  { %8553 = vmatprep.subr.mxu0 %v12324_v58 }
 0xf98   :  { %v1900_v38 = vpop.f32.mrf.mxu1  ;;  %8554 = vmatpush3.msra.mxu0 %v10067_v29 }
 0xf99   :  { %8555 = vmatprep.subr.mxu0 %v12324_v58 }
 0xf9a   :  { %v8550_v48 = vpop.f32.mrf.mxu1  ;;  %8556 = vmatpush3.msra.mxu0 %v10076_v31 }
 0xf9b   :  { %8557 = vmatprep.subr.mxu0 %v12324_v58 }
 0xf9c   :  { %8558 = vmatpush3.msra.mxu0 %v10083_v42 }
 0xf9d   :  { %8560 = vmatmul.mubr.msk.f32.vlgmr.msra.gmra.mxu0 %vm89_vm1, %v10145_v43  ;;  %2188 = vmatprep.subr.mxu0 %v9708_v0 }
 0xf9e   :  { %2189 = vmatpush1.msra.mxu0 %v9713_v1  ;;  %2228 = vmatprep.mubr.f32.mxu0 %v12324_v58 }
 0xf9f   :  { %2190 = vmatprep.subr.mxu0 %v9718_v2  ;;  %v7875_v2 = vld [vmem:[%s12323_s4 + $0x8] sm:$0xff] }
 0xfa0   :  { %2191 = vmatpush1.msra.mxu0 %v9724_v3  ;;  %v1904_v3 = vadd.f32 %v7875_v2, %v1900_v38 }
 0xfa1   :  { %2192 = vmatprep.subr.mxu0 %v9731_v5 }
 0xfa2   :  { %2193 = vmatpush1.msra.mxu0 %v9741_v7 }
 0xfa3   :  { %2194 = vmatprep.subr.mxu0 %v9753_v9 }
 0xfa4   :  { %2195 = vmatpush1.msra.mxu0 %v12331_v62 }
 0xfa5   :  { %8584 = vmatprep.subr.mxu0 %v12324_v58 }
0x1055   :  { %v10307_v43 = vpop.f32.mrf.mxu0 }
0x1056   :  { %12332 = vst [vmem:[#allocation6_spill] sm:$0xff] %v10307_v43 }
0x1057   :  { %v8539_v0 = vpop.f32.mrf.mxu0 }
0x105d   :  { %v1971_v1 = vpop.f32.mrf.mxu0 }
0x105e   :  { %1983 = vrot.lane.b32.xlu1 %v1971_v1, %s12270_s7  ;;  %v1975_v5 = vadd.f32 %v1971_v1, %v1904_v3  ;;  %v12335_v1 = vld [vmem:[#allocation7_spill] sm:$0xff] }
0x105f   :  { %v8561_v46 = vpop.f32.mrf.mxu0 }
0x1060   :  { %v7886_v7 = vmul.f32 -1.442695, %v1975_v5  ;;  %v12336_v46 = vld [vmem:[#allocation8_spill] sm:$0xff] }
0x1062   :  { %9208 = vpow2.f32 %v7886_v7 }
0x106f   :  { %v9209_v9 = vpop.eup %9208 }
0x1070   :  { %v1979_v60 = vadd.f32 1.0, %v9209_v9 }
0x1072   :  { %9210 = vrcp.f32 %v1979_v60 }
0x107f   :  { %v9211_v61 = vpop.eup %9210 }
0x1080   :  { %v1993_v13 = vsub.f32 1.0, %v9211_v61  ;;  %v1999_v38 = vmul.f32 %v9211_v61, %v12333_v30 }
0x10d0   :  { %v1984_v17 = vpop.permute.xlu1 %1983 }
0x10d1   :  { %v1986_v37 = vmul.f32 %v9211_v61, %v1984_v17 }
0x10d3   :  { %1988 = vrot.lane.b32.xlu0 %v1986_v37, %s12270_s7 }
0x1145   :  { %v1989_v47 = vpop.permute.xlu0 %1988 }
0x1146   :  { %v1991_v8 = vadd.f32 %v1989_v47, %v1904_v3 }
0x1148   :  { %9212 = vtanh.f32 %v1991_v8 }
0x1155   :  { %v9213_v40 = vpop.eup %9212 }
0x1156   :  { %1995 = vrot.lane.b32.xlu1 %v9213_v40, %s12268_s29 }
0x115a   :  { %2077 = vrot.lane.b32.xlu1 %v10180_v10, %s12325_s1  ;;  %v12334_v10 = vld [vmem:[#allocation5_spill] sm:$0xff] }
0x115e   :  { %2090 = vrot.lane.b32.xlu1 %v10218_v59, %s12268_s29 }
0x11c8   :  { %v1996_v49 = vpop.permute.xlu1 %1995 }
0x11c9   :  { %v1998_v48 = vmul.f32 %v1996_v49, %v1993_v13 }
0x11cb   :  { %v10320_v62 = vadd.f32 %v1999_v38, %v1998_v48 }
0x11cc   :  { %v2078_v3 = vpop.permute.xlu1 %2077 }
0x11cd   :  { %2002 = vrot.lane.b32.xlu0 %v10320_v62, %s12268_s29 }
0x11d0   :  { %v2091_v8 = vpop.permute.xlu1 %2090 }
0x11d1   :  { %2079 = vrot.lane.b32.xlu0 %v10218_v59, %s12325_s1  ;;  %v12337_v59 = vld [vmem:[#allocation9_spill] sm:$0xff] }
0x123f   :  { %v10326_v0 = vpop.permute.xlu0 %2002 }
0x1240   :  { %8571 = vmatmul.mubr.msk.f32.vlgmr.msra.gmra.mxu1 %vm89_vm1, %v10326_v0 }
0x1241   :  { %8574 = vmatpush3.msra.mxu1 %v12334_v10  ;;  %8581 = vmatprep.mubr.msk.f32.mxu1 %vm9574_vm0, %v12324_v58 }
0x1242   :  { %8575 = vmatprep.subr.mxu1 %v12324_v58 }
0x1243   :  { %8576 = vmatpush3.msra.mxu1 %v12335_v1  ;;  %v2080_v2 = vpop.permute.xlu0 %2079 }
0x1244   :  { %8577 = vmatprep.subr.mxu1 %v12324_v58  ;;  %v2081_v5 = vsel %vm89_vm1, %v2078_v3, %v2080_v2 }
0x1245   :  { %8578 = vmatpush3.msra.mxu1 %v12336_v46 }
0x1246   :  { %8579 = vmatprep.subr.mxu1 %v12324_v58 }
0x1247   :  { %8580 = vmatpush3.msra.mxu1 %v12337_v59 }
0x1248   :  { %8595 = vmatprep.subr.mxu1 %v12324_v58 }
0x1300   :  { %v2072_v7 = vpop.f32.mrf.mxu1 }
0x1301   :  { %v2083_v9 = vadd.f32 %v2081_v5, %v2072_v7 }
0x1302   :  { %v8572_v60 = vpop.f32.mrf.mxu1 }
0x1303   :  { %v7888_v61 = vmul.f32 -1.442695, %v2083_v9  ;;  %v12342_v60 = vld [vmem:[#allocation12_spill] sm:$0xff] }
0x1305   :  { %9214 = vpow2.f32 %v7888_v61 }
0x1312   :  { %v9215_v17 = vpop.eup %9214 }
0x1313   :  { %v2087_v37 = vadd.f32 1.0, %v9215_v17 }
0x1315   :  { %9216 = vrcp.f32 %v2087_v37 }
0x1322   :  { %v9217_v47 = vpop.eup %9216 }
0x1323   :  { %v2093_v40 = vmul.f32 %v9217_v47, %v2091_v8  ;;  %v2100_v38 = vsub.f32 1.0, %v9217_v47  ;;  %v2106_v10 = vmul.f32 %v9217_v47, %v10162_v35 }
0x1325   :  { %2095 = vrot.lane.b32.xlu0 %v2093_v40, %s12270_s7 }
0x1397   :  { %v2096_v13 = vpop.permute.xlu0 %2095 }
0x1398   :  { %v2098_v49 = vadd.f32 %v2096_v13, %v2072_v7 }
0x139a   :  { %9218 = vtanh.f32 %v2098_v49 }
0x13a7   :  { %v9219_v30 = vpop.eup %9218 }
0x13a8   :  { %2102 = vrot.lane.b32.xlu1 %v9219_v30, %s12268_s29 }
0x141a   :  { %v2103_v48 = vpop.permute.xlu1 %2102 }
0x141b   :  { %v2105_v1 = vmul.f32 %v2103_v48, %v2100_v38 }
0x141d   :  { %v10344_v46 = vadd.f32 %v2106_v10, %v2105_v1 }
0x141f   :  { %2160 = vrot.lane.b32.xlu0 %v10344_v46, %s12268_s29 }
0x1491   :  { %v2161_v59 = vpop.permute.xlu0 %2160 }
0x1492   :  { %7894 = vmatmul.mubr.msk.f32.vlgmr.msra.gmra.mxu0 %vm89_vm1, %v2161_v59 }
0x1493   :  { %8585 = vmatpush3.msra.mxu0 %v9796_v14  ;;  %8592 = vmatprep.mubr.msk.f32.mxu0 %vm9574_vm0, %v12324_v58  ;;  %v7892_v14 = vld [vmem:[%s12310_s28 + $0x10] sm:$0xff] }
0x1494   :  { %8586 = vmatprep.subr.mxu0 %v12324_v58 }
0x1495   :  { %8587 = vmatpush3.msra.mxu0 %v9845_v26 }
0x1496   :  { %8588 = vmatprep.subr.mxu0 %v12324_v58 }
0x1497   :  { %8589 = vmatpush3.msra.mxu0 %v9852_v27 }
0x1498   :  { %8590 = vmatprep.subr.mxu0 %v12324_v58 }
0x1499   :  { %8591 = vmatpush3.msra.mxu0 %v9859_v28 }
0x149a   :  { %8606 = vmatprep.subr.mxu0 %v12324_v58 }
0x1552   :  { %v10362_v35 = vpop.f32.mrf.mxu0 }
0x1553   :  { %v2235_v2 = vadd.f32 %v7892_v14, %v10362_v35  ;;  %v2402_v26 = vadd.f32 %v10362_v35, %v9800_v15 }
0x1554   :  { %v10400_v7 = vpop.f32.mrf.mxu0 }
0x1555   :  { %v2236_v3 = vmax.f32 %v2235_v2, 0.0  ;;  %v2403_v5 = vmax.f32 %v2402_v26, 0.0 }
0x1557   :  { %2405 = vrot.lane.b32.xlu0 %v2403_v5, %s12268_s29  ;;  %8582 = vmatmul.mubr.msk.f32.vlgmr.msra.gmra.mxu1 %vm89_vm1, %v2236_v3  ;;  %v7891_v3 = vld [vmem:[%s12320_s8 + $0x10] sm:$0xff] }
0x1558   :  { %8596 = vmatpush3.msra.mxu1 %v9813_v22  ;;  %8603 = vmatprep.mubr.msk.f32.mxu1 %vm9574_vm0, %v12324_v58 }
0x1559   :  { %8597 = vmatprep.subr.mxu1 %v12324_v58 }
0x155a   :  { %8598 = vmatpush3.msra.mxu1 %v9820_v23  ;;  %v12338_v23 = vld [vmem:[#allocation10_spill] sm:$0xff] }
0x155b   :  { %8599 = vmatprep.subr.mxu1 %v12324_v58 }
0x155c   :  { %8600 = vmatpush3.msra.mxu1 %v9829_v24 }
0x155d   :  { %8601 = vmatprep.subr.mxu1 %v12324_v58 }
0x155e   :  { %8602 = vmatpush3.msra.mxu1 %v9836_v25 }
0x155f   :  { %8613 = vmatprep.subr.mxu1 %v12324_v58 }
0x15c9   :  { %v2406_v27 = vpop.permute.xlu0 %2405 }
0x15ca   :  { %8604 = vmatmul.mubr.msk.f32.vlgmr.msra.gmra.mxu1 %vm89_vm1, %v2406_v27 }
0x15cb   :  { %8614 = vmatpush3.msra.mxu1 %v9919_v63  ;;  %8621 = vmatprep.mubr.msk.f32.mxu1 %vm9574_vm0, %v12324_v58  ;;  %v12339_v63 = vld [vmem:[#allocation14_spill] sm:$0xff] }
0x15cc   :  { %8615 = vmatprep.subr.mxu1 %v12324_v58 }
0x15cd   :  { %8616 = vmatpush3.msra.mxu1 %v9929_v6  ;;  %v12340_v6 = vld [vmem:[#allocation15_spill] sm:$0xff] }
0x15ce   :  { %8617 = vmatprep.subr.mxu1 %v12324_v58 }
0x15cf   :  { %8618 = vmatpush3.msra.mxu1 %v9936_v16 }
0x15d0   :  { %8619 = vmatprep.subr.mxu1 %v12324_v58 }
0x15d1   :  { %8620 = vmatpush3.msra.mxu1 %v9943_v18 }
0x15d2   :  { %8635 = vmatprep.subr.mxu1 %v12324_v58 }
0x1617   :  { %v2306_v22 = vpop.f32.mrf.mxu1 }
0x1618   :  { %v2307_v24 = vadd.f32 %v12338_v23, %v2306_v22 }
0x1619   :  { %v8583_v25 = vpop.f32.mrf.mxu1 }
0x161a   :  { %v2310_v28 = vmax.f32 %v2307_v24, 0.0 }
0x161c   :  { %8593 = vmatmul.mubr.msk.f32.vlgmr.msra.gmra.mxu0 %vm89_vm1, %v2310_v28 }
0x161d   :  { %8607 = vmatpush3.msra.mxu0 %v12339_v63  ;;  %8610 = vmatprep.mubr.msk.f32.mxu0 %vm9574_vm0, %v12324_v58  ;;  %v7893_v63 = vld [vmem:[%s12323_s4 + $0x10] sm:$0xff] }
0x161e   :  { %8608 = vmatprep.subr.mxu0 %v12324_v58 }
0x161f   :  { %8609 = vmatpush3.msra.mxu0 %v12340_v6 }
0x1620   :  { %8624 = vmatprep.subr.mxu0 %v12324_v58 }
0x168a   :  { %v10398_v16 = vpop.f32.mrf.mxu1 }
0x168b   :  { %12341 = vst [vmem:[#allocation18_spill] sm:$0xff] %v10398_v16  ;;  %v7911_v16 = vld [vmem:[%s12323_s4 + $0x18] sm:$0xff] }
0x168c   :  { %v8605_v18 = vpop.f32.mrf.mxu1 }
0x16dc   :  { %v2380_v9 = vpop.f32.mrf.mxu0 }
0x16dd   :  { %v10403_v61 = vadd.f32 %v12342_v60, %v2380_v9 }
0x16de   :  { %v8594_v17 = vpop.f32.mrf.mxu0 }
0x16df   :  { %12343 = vst [vmem:[#allocation5_spill] sm:$0xff] %v10403_v61  ;;  %v2387_v37 = vand.u32 2147483647, %v10403_v61  ;;  %v2384_v59 = vmax.f32 %v10403_v61, 0.0  ;;  %vm2385_vm8 = vcmp.ne.f32.partialorder %v10403_v61, %v10403_v61 }
0x16e1   :  { %v2388_v47 = vsub.f32 0.0, %v2387_v37 }
0x16e3   :  { %v2389_v8 = vmul.f32 1.442695, %v2388_v47 }
0x16e5   :  { %9220 = vpow2.f32 %v2389_v8 }
0x16f2   :  { %v9221_v40 = vpop.eup %9220 }
0x16f3   :  { %v2391_v13 = vadd.f32 1.0, %v9221_v40  ;;  %v2394_v49 = vmul.f32 -0.5, %v9221_v40  ;;  %v2397_v38 = vand.u32 2147483647, %v9221_v40 }
0x16f5   :  { %9222 = vlog2.f32 %v2391_v13  ;;  %v2395_v30 = vadd.f32 1.0, %v2394_v49  ;;  %vm2398_vm7 = vcmp.lt.f32.partialorder %v2397_v38, 0.0004427343 }
0x16f7   :  { %v2396_v1 = vmul.f32 %v9221_v40, %v2395_v30 }
0x1702   :  { %v9223_v48 = vpop.eup %9222 }
0x1703   :  { %v2393_v10 = vmul.f32 0.6931472, %v9223_v48 }
0x1705   :  { %v2399_v14 = vsel %vm2398_vm7, %v2396_v1, %v2393_v10 }
0x1706   :  { %v2400_v2 = vadd.f32 %v2399_v14, %v2384_v59  ;;  %v10578_v14 = vld [vmem:[%s12303_s27] sm:$0xff] }
0x1708   :  { %v10410_v26 = vsel %vm2385_vm8, %v10403_v61, %v2400_v2 }
0x1709   :  { %12344 = vst [vmem:[#allocation7_spill] sm:$0xff] %v10410_v26  ;;  %2498 = vrot.lane.b32.xlu1 %v10410_v26, %s12330_s25 }
0x170d   :  { %2578 = vrot.lane.b32.xlu1 %v10362_v35, %s12270_s7  ;;  %s12354_s7 = smov 96  }
0x177b   :  { %v2499_v5 = vpop.permute.xlu1 %2498 }
0x177c   :  { %v2501_v27 = vmul.f32 %v7891_v3, %v2499_v5 }
0x177e   :  { %v2502_v22 = vadd.f32 %v2501_v27, %v10403_v61 }
0x1780   :  { %8611 = vmatmul.mubr.msk.f32.vlgmr.msra.gmra.mxu0 %vm483_vm4, %v2502_v22 }
0x1781   :  { %8625 = vmatpush3.msra.mxu0 %v9949_v19  ;;  %8632 = vmatprep.mubr.msk.f32.mxu0 %vm9574_vm0, %v12324_v58 }
0x1782   :  { %8626 = vmatprep.subr.mxu0 %v12324_v58 }
0x1783   :  { %8627 = vmatpush3.msra.mxu0 %v9966_v33 }
0x1784   :  { %8628 = vmatprep.subr.mxu0 %v12324_v58 }
0x1785   :  { %8629 = vmatpush3.msra.mxu0 %v9973_v34 }
0x1786   :  { %8630 = vmatprep.subr.mxu0 %v12324_v58 }
0x1787   :  { %8631 = vmatpush3.msra.mxu0 %v9980_v36 }
0x1788   :  { %8646 = vmatprep.subr.mxu0 %v12324_v58 }
0x1840   :  { %v2572_v23 = vpop.f32.mrf.mxu0 }
0x1841   :  { %v2573_v19 = vadd.f32 %v9957_v20, %v2572_v23  ;;  %v2579_v20 = vpop.permute.xlu1 %2578 }
0x1842   :  { %v8612_v24 = vpop.f32.mrf.mxu0 }
0x1843   :  { %v2576_v25 = vmax.f32 %v2573_v19, 0.0 }
0x1845   :  { %8622 = vmatmul.mubr.msk.f32.vlgmr.msra.gmra.mxu1 %vm89_vm1, %v2576_v25 }
0x1846   :  { %8636 = vmatpush3.msra.mxu1 %v9987_v39  ;;  %8643 = vmatprep.mubr.msk.f32.mxu1 %vm9574_vm0, %v12324_v58 }
0x1847   :  { %8637 = vmatprep.subr.mxu1 %v12324_v58 }
0x1848   :  { %8638 = vmatpush3.msra.mxu1 %v9992_v41 }
0x1849   :  { %8639 = vmatprep.subr.mxu1 %v12324_v58 }
0x184a   :  { %8640 = vmatpush3.msra.mxu1 %v10041_v55  ;;  %v10482_v55 = vld [vmem:[%s12234_s19 + $0x38] sm:$0xff] }
0x184b   :  { %8641 = vmatprep.subr.mxu1 %v12324_v58 }
0x184c   :  { %8642 = vmatpush3.msra.mxu1 %v10048_v56  ;;  %v10488_v56 = vld [vmem:[%s12234_s19 + $0x30] sm:$0xff] }
0x184d   :  { %8657 = vmatprep.subr.mxu1 %v12324_v58  ;;  %12345 = vst [vmem:[#allocation8_spill] sm:$0xff] %v10488_v56 }
0x1905   :  { %v2650_v33 = vpop.f32.mrf.mxu1 }
0x1906   :  { %v2651_v34 = vadd.f32 %v2650_v33, %v2579_v20 }
0x1907   :  { %v8623_v36 = vpop.f32.mrf.mxu1 }
0x1908   :  { %v2654_v39 = vadd.f32 %v10001_v44, %v2651_v34 }
0x190a   :  { %v2655_v28 = vmax.f32 %v2654_v39, 0.0 }
0x190c   :  { %8633 = vmatmul.mubr.msk.f32.vlgmr.msra.gmra.mxu0 %vm89_vm1, %v2655_v28 }
0x190d   :  { %8647 = vmatpush3.msra.mxu0 %v10007_v51  ;;  %8654 = vmatprep.mubr.msk.f32.mxu0 %vm9574_vm0, %v12324_v58 }
0x190e   :  { %8648 = vmatprep.subr.mxu0 %v12324_v58 }
0x190f   :  { %8649 = vmatpush3.msra.mxu0 %v10013_v52 }
0x1910   :  { %8650 = vmatprep.subr.mxu0 %v12324_v58 }
0x1911   :  { %8651 = vmatpush3.msra.mxu0 %v10022_v53 }
0x1912   :  { %8652 = vmatprep.subr.mxu0 %v12324_v58 }
0x1913   :  { %8653 = vmatpush3.msra.mxu0 %v10029_v54 }
0x1914   :  { %8655 = vmatmul.mubr.msk.f32.vlgmr.msra.gmra.mxu0 %vm89_vm1, %v2576_v25  ;;  %8668 = vmatprep.subr.mxu0 %v12324_v58 }
0x1915   :  { %8669 = vmatpush3.msra.mxu0 %v10109_v50  ;;  %8676 = vmatprep.mubr.msk.f32.mxu0 %vm9574_vm0, %v12324_v58  ;;  %v10525_v50 = vld [vmem:[%s12234_s19] sm:$0xff] }
0x1916   :  { %8670 = vmatprep.subr.mxu0 %v12324_v58  ;;  %12351 = vst [vmem:[#allocation22_spill] sm:$0xff] %v10525_v50 }
0x1917   :  { %8671 = vmatpush3.msra.mxu0 %v10114_v32 }
0x1918   :  { %8672 = vmatprep.subr.mxu0 %v12324_v58 }
0x1919   :  { %8673 = vmatpush3.msra.mxu0 %v10121_v4 }
0x191a   :  { %8674 = vmatprep.subr.mxu0 %v12324_v58 }
0x191b   :  { %8675 = vmatpush3.msra.mxu0 %v10128_v45 }
0x191c   :  { %8679 = vmatprep.subr.mxu0 %v12324_v58 }
0x19cc   :  { %v2725_v41 = vpop.f32.mrf.mxu0 }
0x19cd   :  { %v2726_v44 = vadd.f32 %v10055_v57, %v2725_v41  ;;  %v10495_v57 = vld [vmem:[%s12234_s19 + $0x28] sm:$0xff] }
0x19ce   :  { %v8634_v51 = vpop.f32.mrf.mxu0  ;;  %12346 = vst [vmem:[#allocation9_spill] sm:$0xff] %v10495_v57 }
0x19cf   :  { %v2729_v52 = vmax.f32 %v2726_v44, 0.0 }
0x19d1   :  { %8644 = vmatmul.mubr.msk.f32.vlgmr.msra.gmra.mxu1 %vm89_vm1, %v2729_v52 }
0x19d2   :  { %8658 = vmatpush3.msra.mxu1 %v10061_v21  ;;  %8665 = vmatprep.mubr.msk.f32.mxu1 %vm9574_vm0, %v12324_v58  ;;  %v10501_v21 = vld [vmem:[%s12234_s19 + $0x20] sm:$0xff] }
0x19d3   :  { %8659 = vmatprep.subr.mxu1 %v12324_v58  ;;  %12347 = vst [vmem:[#allocation10_spill] sm:$0xff] %v10501_v21 }
0x19d4   :  { %v2887_v53 = vpop.f32.mrf.mxu0  ;;  %8660 = vmatpush3.msra.mxu1 %v10067_v29  ;;  %v10507_v29 = vld [vmem:[%s12234_s19 + $0x18] sm:$0xff] }
0x19d5   :  { %8661 = vmatprep.subr.mxu1 %v12324_v58  ;;  %12348 = vst [vmem:[#allocation14_spill] sm:$0xff] %v10507_v29  ;;  %v2891_v6 = vadd.f32 %v7893_v63, %v2887_v53  ;;  %v7910_v63 = vld [vmem:[%s12310_s28 + $0x18] sm:$0xff] }
0x19d6   :  { %v8656_v54 = vpop.f32.mrf.mxu0  ;;  %8662 = vmatpush3.msra.mxu1 %v10076_v31  ;;  %v10513_v31 = vld [vmem:[%s12234_s19 + $0x10] sm:$0xff] }
0x19d7   :  { %8663 = vmatprep.subr.mxu1 %v12324_v58  ;;  %12349 = vst [vmem:[#allocation15_spill] sm:$0xff] %v10513_v31 }
0x19d8   :  { %8664 = vmatpush3.msra.mxu1 %v10083_v42  ;;  %v10519_v42 = vld [vmem:[%s12234_s19 + $0x8] sm:$0xff] }
0x19d9   :  { %8666 = vmatmul.mubr.msk.f32.vlgmr.msra.gmra.mxu1 %vm89_vm1, %v10326_v0  ;;  %3175 = vmatprep.subr.mxu1 %v10482_v55  ;;  %12350 = vst [vmem:[#allocation12_spill] sm:$0xff] %v10519_v42 }
0x19da   :  { %3176 = vmatpush1.msra.mxu1 %v10488_v56  ;;  %3215 = vmatprep.mubr.f32.mxu1 %v12324_v58 }
0x19db   :  { %3177 = vmatprep.subr.mxu1 %v10495_v57 }
0x19dc   :  { %3178 = vmatpush1.msra.mxu1 %v10501_v21 }
0x19dd   :  { %3179 = vmatprep.subr.mxu1 %v10507_v29 }
0x19de   :  { %3180 = vmatpush1.msra.mxu1 %v10513_v31 }
0x19df   :  { %3181 = vmatprep.subr.mxu1 %v10519_v42 }
0x19e0   :  { %3182 = vmatpush1.msra.mxu1 %v10525_v50 }
0x19e1   :  { %8690 = vmatprep.subr.mxu1 %v12324_v58 }
0x1a91   :  { %v10529_v32 = vpop.f32.mrf.mxu1 }
0x1a92   :  { %12352 = vst [vmem:[#allocation23_spill] sm:$0xff] %v10529_v32 }
0x1a93   :  { %v8645_v4 = vpop.f32.mrf.mxu1 }
0x1a94   :  { %v10594_v4 = vld [vmem:[%s12309_s5 + $0x18] sm:$0xff] }
0x1a99   :  { %v2958_v45 = vpop.f32.mrf.mxu1 }
0x1a9a   :  { %2970 = vrot.lane.b32.xlu0 %v2958_v45, %s12353_s23  ;;  %v2962_v18 = vadd.f32 %v2958_v45, %v2891_v6  ;;  %v10610_v45 = vld [vmem:[%s12309_s5 + $0x8] sm:$0xff] }
0x1a9b   :  { %v8667_v0 = vpop.f32.mrf.mxu1 }
0x1a9c   :  { %v7904_v9 = vmul.f32 -1.442695, %v2962_v18  ;;  %v10617_v0 = vld [vmem:[%s12309_s5] sm:$0xff] }
0x1a9e   :  { %9224 = vpow2.f32 %v7904_v9 }
0x1aab   :  { %v9225_v60 = vpop.eup %9224 }
0x1aac   :  { %v2966_v17 = vadd.f32 1.0, %v9225_v60 }
0x1aae   :  { %9226 = vrcp.f32 %v2966_v17 }
0x1abb   :  { %v9227_v37 = vpop.eup %9226 }
0x1abc   :  { %v2980_v30 = vsub.f32 1.0, %v9227_v37  ;;  %v2986_v48 = vmul.f32 %v9227_v37, %v10320_v62  ;;  %v10564_v62 = vld [vmem:[%s12303_s27 + $0x10] sm:$0xff] }
0x1b0c   :  { %v2971_v47 = vpop.permute.xlu0 %2970 }
0x1b0d   :  { %v2973_v8 = vmul.f32 %v9227_v37, %v2971_v47  ;;  %v10634_v37 = vld [vmem:[%s12226_s11 + $0x18] sm:$0xff]  ;;  %v10643_v47 = vld [vmem:[%s12226_s11 + $0x10] sm:$0xff] }
0x1b0f   :  { %2975 = vrot.lane.b32.xlu1 %v2973_v8, %s12353_s23  ;;  %v10650_v8 = vld [vmem:[%s12226_s11 + $0x8] sm:$0xff] }
0x1b81   :  { %v2976_v40 = vpop.permute.xlu1 %2975 }
0x1b82   :  { %v2978_v13 = vadd.f32 %v2976_v40, %v2891_v6  ;;  %v10657_v40 = vld [vmem:[%s12226_s11] sm:$0xff] }
0x1b84   :  { %9228 = vtanh.f32 %v2978_v13 }
0x1b91   :  { %v9229_v49 = vpop.eup %9228 }
0x1b92   :  { %2982 = vrot.lane.b32.xlu0 %v9229_v49, %s12354_s7  ;;  %v10665_v49 = vld [vmem:[%s12228_s13 + $0x18] sm:$0xff] }
0x1b96   :  { %3064 = vrot.lane.b32.xlu0 %v10362_v35, %s12325_s1  ;;  %v10555_v35 = vld [vmem:[%s12303_s27 + $0x18] sm:$0xff] }
0x1b9a   :  { %3077 = vrot.lane.b32.xlu0 %v10400_v7, %s12354_s7 }
0x1c04   :  { %v2983_v38 = vpop.permute.xlu0 %2982 }
0x1c05   :  { %v2985_v10 = vmul.f32 %v2983_v38, %v2980_v30  ;;  %v10674_v30 = vld [vmem:[%s12228_s13 + $0x10] sm:$0xff]  ;;  %v10681_v38 = vld [vmem:[%s12228_s13 + $0x8] sm:$0xff] }
0x1c07   :  { %v10542_v1 = vadd.f32 %v2986_v48, %v2985_v10  ;;  %v10688_v48 = vld [vmem:[%s12228_s13] sm:$0xff] }
0x1c08   :  { %v3065_v3 = vpop.permute.xlu0 %3064 }
0x1c09   :  { %2989 = vrot.lane.b32.xlu1 %v10542_v1, %s12354_s7 }
0x1c0c   :  { %v3078_v33 = vpop.permute.xlu0 %3077 }
0x1c0d   :  { %3066 = vrot.lane.b32.xlu1 %v10400_v7, %s12325_s1  ;;  %v10571_v7 = vld [vmem:[%s12303_s27 + $0x8] sm:$0xff] }
0x1c7b   :  { %v10548_v59 = vpop.permute.xlu1 %2989 }
0x1c7c   :  { %8677 = vmatmul.mubr.msk.f32.vlgmr.msra.gmra.mxu0 %vm89_vm1, %v10548_v59 }
0x1c7d   :  { %8680 = vmatpush3.msra.mxu0 %v10555_v35  ;;  %8687 = vmatprep.mubr.msk.f32.mxu0 %vm9574_vm0, %v12324_v58 }
0x1c7e   :  { %8681 = vmatprep.subr.mxu0 %v12324_v58 }
0x1c7f   :  { %8682 = vmatpush3.msra.mxu0 %v10564_v62  ;;  %v3067_v2 = vpop.permute.xlu1 %3066 }
0x1c80   :  { %8683 = vmatprep.subr.mxu0 %v12324_v58  ;;  %v3068_v5 = vsel %vm89_vm1, %v3065_v3, %v3067_v2  ;;  %v10695_v2 = vld [vmem:[%s12311_s3] ss:$0 sm:$0xff] }
0x1c81   :  { %8684 = vmatpush3.msra.mxu0 %v10571_v7 }
0x1c82   :  { %8685 = vmatprep.subr.mxu0 %v12324_v58 }
0x1c83   :  { %8686 = vmatpush3.msra.mxu0 %v10578_v14 }
0x1c84   :  { %8701 = vmatprep.subr.mxu0 %v12324_v58 }
0x1d3c   :  { %v3059_v27 = vpop.f32.mrf.mxu0 }
0x1d3d   :  { %v3070_v22 = vadd.f32 %v3068_v5, %v3059_v27 }
0x1d3e   :  { %v8678_v23 = vpop.f32.mrf.mxu0 }
0x1d3f   :  { %v7906_v19 = vmul.f32 -1.442695, %v3070_v22  ;;  %v10702_v22 = vld [vmem:[%s12316_s10 + $0x8] sm:$0xff]  ;;  %v10711_v23 = vld [vmem:[%s12316_s10] sm:$0xff] }
0x1d40   :  { %12355 = vst [vmem:[#allocation24_spill] sm:$0xff] %v10702_v22  ;;  %12356 = vst [vmem:[#allocation25_spill] sm:$0xff] %v10711_v23 }
0x1d41   :  { %9230 = vpow2.f32 %v7906_v19 }
0x1d4e   :  { %v9231_v24 = vpop.eup %9230 }
0x1d4f   :  { %v3074_v25 = vadd.f32 1.0, %v9231_v24 }
0x1d51   :  { %9232 = vrcp.f32 %v3074_v25 }
0x1d5e   :  { %v9233_v20 = vpop.eup %9232 }
0x1d5f   :  { %v3080_v34 = vmul.f32 %v9233_v20, %v3078_v33  ;;  %v3087_v41 = vsub.f32 1.0, %v9233_v20  ;;  %v3093_v51 = vmul.f32 %v9233_v20, %v10344_v46  ;;  %v10603_v46 = vld [vmem:[%s12309_s5 + $0x10] sm:$0xff]  ;;  %v10722_v33 = vld [vmem:[%s12224_s9] ss:$0 sm:$0xff] }
0x1d60   :  { %12358 = vst [vmem:[#allocation27_spill] sm:$0xff] %v10722_v33 }
0x1d61   :  { %3082 = vrot.lane.b32.xlu1 %v3080_v34, %s12353_s23 }
0x1dd3   :  { %v3083_v36 = vpop.permute.xlu1 %3082 }
0x1dd4   :  { %v3085_v39 = vadd.f32 %v3083_v36, %v3059_v27 }
0x1dd6   :  { %9234 = vtanh.f32 %v3085_v39 }
0x1de3   :  { %v9235_v28 = vpop.eup %9234 }
0x1de4   :  { %3089 = vrot.lane.b32.xlu0 %v9235_v28, %s12354_s7 }
0x1e56   :  { %v3090_v44 = vpop.permute.xlu0 %3089 }
0x1e57   :  { %v3092_v52 = vmul.f32 %v3090_v44, %v3087_v41 }
0x1e59   :  { %v10586_v53 = vadd.f32 %v3093_v51, %v3092_v52 }
0x1e5b   :  { %3147 = vrot.lane.b32.xlu1 %v10586_v53, %s12354_s7 }
0x1ecd   :  { %v3148_v54 = vpop.permute.xlu1 %3147 }
0x1ece   :  { %7912 = vmatmul.mubr.msk.f32.vlgmr.msra.gmra.mxu1 %vm89_vm1, %v3148_v54 }
0x1ecf   :  { %8691 = vmatpush3.msra.mxu1 %v10594_v4  ;;  %8698 = vmatprep.mubr.msk.f32.mxu1 %vm9574_vm0, %v12324_v58 }
0x1ed0   :  { %8692 = vmatprep.subr.mxu1 %v12324_v58 }
0x1ed1   :  { %8693 = vmatpush3.msra.mxu1 %v10603_v46 }
0x1ed2   :  { %8694 = vmatprep.subr.mxu1 %v12324_v58 }
0x1ed3   :  { %8695 = vmatpush3.msra.mxu1 %v10610_v45 }
0x1ed4   :  { %8696 = vmatprep.subr.mxu1 %v12324_v58 }
0x1ed5   :  { %8697 = vmatpush3.msra.mxu1 %v10617_v0 }
0x1ed6   :  { %8712 = vmatprep.subr.mxu1 %v12324_v58 }
0x1f8e   :  { %v10624_v6 = vpop.f32.mrf.mxu1 }
0x1f8f   :  { %v3222_v18 = vadd.f32 %v7910_v63, %v10624_v6  ;;  %v3389_v9 = vadd.f32 %v10624_v6, %v9800_v15 }
0x1f90   :  { %v10717_v25 = vpop.f32.mrf.mxu1 }
0x1f91   :  { %v3223_v60 = vmax.f32 %v3222_v18, 0.0  ;;  %v3390_v17 = vmax.f32 %v3389_v9, 0.0 }
0x1f93   :  { %3392 = vrot.lane.b32.xlu1 %v3390_v17, %s12354_s7  ;;  %8688 = vmatmul.mubr.msk.f32.vlgmr.msra.gmra.mxu0 %vm89_vm1, %v3223_v60 }
0x1f94   :  { %8702 = vmatpush3.msra.mxu0 %v10634_v37  ;;  %8709 = vmatprep.mubr.msk.f32.mxu0 %vm9574_vm0, %v12324_v58 }
0x1f95   :  { %8703 = vmatprep.subr.mxu0 %v12324_v58 }
0x1f96   :  { %8704 = vmatpush3.msra.mxu0 %v10643_v47 }
0x1f97   :  { %8705 = vmatprep.subr.mxu0 %v12324_v58 }
0x1f98   :  { %8706 = vmatpush3.msra.mxu0 %v10650_v8 }
0x1f99   :  { %8707 = vmatprep.subr.mxu0 %v12324_v58 }
0x1f9a   :  { %8708 = vmatpush3.msra.mxu0 %v10657_v40 }
0x1f9b   :  { %8719 = vmatprep.subr.mxu0 %v12324_v58 }
0x2005   :  { %v3393_v13 = vpop.permute.xlu1 %3392 }
0x2006   :  { %8710 = vmatmul.mubr.msk.f32.vlgmr.msra.gmra.mxu0 %vm89_vm1, %v3393_v13 }
0x2007   :  { %8720 = vmatpush3.msra.mxu0 %v10665_v49  ;;  %8727 = vmatprep.mubr.msk.f32.mxu0 %vm9574_vm0, %v12324_v58 }
0x2008   :  { %8721 = vmatprep.subr.mxu0 %v12324_v58 }
0x2009   :  { %8722 = vmatpush3.msra.mxu0 %v10674_v30 }
0x200a   :  { %8723 = vmatprep.subr.mxu0 %v12324_v58 }
0x200b   :  { %8724 = vmatpush3.msra.mxu0 %v10681_v38 }
0x200c   :  { %8725 = vmatprep.subr.mxu0 %v12324_v58 }
0x200d   :  { %8726 = vmatpush3.msra.mxu0 %v10688_v48 }
0x200e   :  { %8741 = vmatprep.subr.mxu0 %v12324_v58 }
0x2053   :  { %v3293_v10 = vpop.f32.mrf.mxu0 }
0x2054   :  { %v3294_v3 = vadd.f32 %v10695_v2, %v3293_v10 }
0x2055   :  { %v8689_v5 = vpop.f32.mrf.mxu0 }
0x2056   :  { %v3297_v27 = vmax.f32 %v3294_v3, 0.0  ;;  %v7909_v5 = vld [vmem:[%s12320_s8 + $0x18] sm:$0xff] }
0x2058   :  { %8699 = vmatmul.mubr.msk.f32.vlgmr.msra.gmra.mxu1 %vm89_vm1, %v3297_v27 }
0x2059   :  { %8713 = vmatpush3.msra.mxu1 %v10702_v22  ;;  %8716 = vmatprep.mubr.msk.f32.mxu1 %vm9574_vm0, %v12324_v58 }
0x205a   :  { %8714 = vmatprep.subr.mxu1 %v12324_v58 }
0x205b   :  { %8715 = vmatpush3.msra.mxu1 %v10711_v23 }
0x205c   :  { %8730 = vmatprep.subr.mxu1 %v12324_v58 }
0x20c6   :  { %v10715_v19 = vpop.f32.mrf.mxu0 }
0x20c7   :  { %12357 = vst [vmem:[#allocation26_spill] sm:$0xff] %v10715_v19  ;;  %v10888_v19 = vld [vmem:[%s12237_s22 + $0x18] sm:$0xff] }
0x20c8   :  { %v8711_v24 = vpop.f32.mrf.mxu0 }
0x2118   :  { %v3367_v20 = vpop.f32.mrf.mxu1 }
0x2119   :  { %v10725_v34 = vadd.f32 %v10722_v33, %v3367_v20 }
0x211a   :  { %v8700_v36 = vpop.f32.mrf.mxu1 }
0x211b   :  { %12359 = vst [vmem:[#allocation28_spill] sm:$0xff] %v10725_v34  ;;  %v3374_v39 = vand.u32 2147483647, %v10725_v34  ;;  %v3371_v17 = vmax.f32 %v10725_v34, 0.0  ;;  %vm3372_vm10 = vcmp.ne.f32.partialorder %v10725_v34, %v10725_v34  ;;  %v10746_v36 = vld [vmem:[%s12230_s15 + $0x18] sm:$0xff] }
0x211d   :  { %v3375_v28 = vsub.f32 0.0, %v3374_v39  ;;  %v10755_v39 = vld [vmem:[%s12230_s15 + $0x10] sm:$0xff] }
0x211f   :  { %v3376_v41 = vmul.f32 1.442695, %v3375_v28  ;;  %v10762_v28 = vld [vmem:[%s12230_s15 + $0x8] sm:$0xff] }
0x2121   :  { %9236 = vpow2.f32 %v3376_v41  ;;  %v10769_v41 = vld [vmem:[%s12230_s15] sm:$0xff] }
0x212e   :  { %v9237_v44 = vpop.eup %9236 }
0x212f   :  { %v3378_v51 = vadd.f32 1.0, %v9237_v44  ;;  %v3381_v52 = vmul.f32 -0.5, %v9237_v44  ;;  %v3384_v63 = vand.u32 2147483647, %v9237_v44 }
0x2131   :  { %9238 = vlog2.f32 %v3378_v51  ;;  %v3382_v54 = vadd.f32 1.0, %v3381_v52  ;;  %vm3385_vm9 = vcmp.lt.f32.partialorder %v3384_v63, 0.0004427343  ;;  %v10776_v51 = vld [vmem:[%s12321_s0] ss:$0 sm:$0xff] }
0x2133   :  { %v3383_v60 = vmul.f32 %v9237_v44, %v3382_v54 }
0x213e   :  { %v9239_v18 = vpop.eup %9238 }
0x213f   :  { %v3380_v9 = vmul.f32 0.6931472, %v9239_v18  ;;  %v10783_v18 = vld [vmem:[%s12232_s17 + $0x18] sm:$0xff] }
0x2141   :  { %v3386_v13 = vsel %vm3385_vm9, %v3383_v60, %v3380_v9  ;;  %v10792_v9 = vld [vmem:[%s12232_s17 + $0x10] sm:$0xff]  ;;  %v10799_v60 = vld [vmem:[%s12232_s17 + $0x8] sm:$0xff] }
0x2142   :  { %v3387_v10 = vadd.f32 %v3386_v13, %v3371_v17  ;;  %v10806_v17 = vld [vmem:[%s12232_s17] sm:$0xff] }
0x2144   :  { %v10732_v3 = vsel %vm3372_vm10, %v10725_v34, %v3387_v10 }
0x2145   :  { %12360 = vst [vmem:[#allocation29_spill] sm:$0xff] %v10732_v3  ;;  %3485 = vrot.lane.b32.xlu0 %v10732_v3, %s12330_s25  ;;  %v10881_v3 = vld [vmem:[%s12231_s16] ss:$0 sm:$0xff] }
0x2149   :  { %3565 = vrot.lane.b32.xlu0 %v10624_v6, %s12353_s23 }
0x21b7   :  { %v3486_v27 = vpop.permute.xlu0 %3485 }
0x21b8   :  { %v3488_v24 = vmul.f32 %v7909_v5, %v3486_v27 }
0x21ba   :  { %v3489_v20 = vadd.f32 %v3488_v24, %v10725_v34  ;;  %v10813_v24 = vld [vmem:[%s12229_s14] ss:$0 sm:$0xff] }
0x21bb   :  { %v3566_v13 = vpop.permute.xlu0 %3565 }
0x21bc   :  { %8717 = vmatmul.mubr.msk.f32.vlgmr.msra.gmra.mxu1 %vm483_vm4, %v3489_v20 }
0x21bd   :  { %8731 = vmatpush3.msra.mxu1 %v10746_v36  ;;  %8738 = vmatprep.mubr.msk.f32.mxu1 %vm9574_vm0, %v12324_v58 }
0x21be   :  { %8732 = vmatprep.subr.mxu1 %v12324_v58 }
0x21bf   :  { %8733 = vmatpush3.msra.mxu1 %v10755_v39 }
0x21c0   :  { %8734 = vmatprep.subr.mxu1 %v12324_v58 }
0x21c1   :  { %8735 = vmatpush3.msra.mxu1 %v10762_v28 }
0x21c2   :  { %8736 = vmatprep.subr.mxu1 %v12324_v58 }
0x21c3   :  { %8737 = vmatpush3.msra.mxu1 %v10769_v41 }
0x21c4   :  { %8752 = vmatprep.subr.mxu1 %v12324_v58 }
0x227c   :  { %v3559_v44 = vpop.f32.mrf.mxu1 }
0x227d   :  { %v3560_v52 = vadd.f32 %v10776_v51, %v3559_v44 }
0x227e   :  { %v8718_v54 = vpop.f32.mrf.mxu1 }
0x227f   :  { %v3563_v63 = vmax.f32 %v3560_v52, 0.0  ;;  %v10820_v52 = vld [vmem:[%s12235_s20 + $0x18] sm:$0xff]  ;;  %v10829_v54 = vld [vmem:[%s12235_s20 + $0x10] sm:$0xff] }
0x2281   :  { %8728 = vmatmul.mubr.msk.f32.vlgmr.msra.gmra.mxu0 %vm89_vm1, %v3563_v63 }
0x2282   :  { %8742 = vmatpush3.msra.mxu0 %v10783_v18  ;;  %8749 = vmatprep.mubr.msk.f32.mxu0 %vm9574_vm0, %v12324_v58 }
0x2283   :  { %8743 = vmatprep.subr.mxu0 %v12324_v58 }
0x2284   :  { %8744 = vmatpush3.msra.mxu0 %v10792_v9 }
0x2285   :  { %8745 = vmatprep.subr.mxu0 %v12324_v58 }
0x2286   :  { %8746 = vmatpush3.msra.mxu0 %v10799_v60 }
0x2287   :  { %8747 = vmatprep.subr.mxu0 %v12324_v58 }
0x2288   :  { %8748 = vmatpush3.msra.mxu0 %v10806_v17 }
0x2289   :  { %8763 = vmatprep.subr.mxu0 %v12324_v58 }
0x2341   :  { %v3637_v10 = vpop.f32.mrf.mxu0 }
0x2342   :  { %v3638_v5 = vadd.f32 %v3637_v10, %v3566_v13  ;;  %v10836_v13 = vld [vmem:[%s12235_s20 + $0x8] sm:$0xff]  ;;  %v10843_v10 = vld [vmem:[%s12235_s20] sm:$0xff] }
0x2343   :  { %v8729_v27 = vpop.f32.mrf.mxu0 }
0x2344   :  { %v3641_v20 = vadd.f32 %v10813_v24, %v3638_v5  ;;  %v10851_v5 = vld [vmem:[%s12236_s21 + $0x18] sm:$0xff]  ;;  %v10860_v27 = vld [vmem:[%s12236_s21 + $0x10] sm:$0xff] }
0x2346   :  { %v3642_v44 = vmax.f32 %v3641_v20, 0.0  ;;  %v10874_v20 = vld [vmem:[%s12236_s21] sm:$0xff] }
0x2348   :  { %8739 = vmatmul.mubr.msk.f32.vlgmr.msra.gmra.mxu1 %vm89_vm1, %v3642_v44 }
0x2349   :  { %8753 = vmatpush3.msra.mxu1 %v10820_v52  ;;  %8760 = vmatprep.mubr.msk.f32.mxu1 %vm9574_vm0, %v12324_v58 }
0x234a   :  { %8754 = vmatprep.subr.mxu1 %v12324_v58 }
0x234b   :  { %8755 = vmatpush3.msra.mxu1 %v10829_v54 }
0x234c   :  { %8756 = vmatprep.subr.mxu1 %v12324_v58 }
0x234d   :  { %8757 = vmatpush3.msra.mxu1 %v10836_v13 }
0x234e   :  { %8758 = vmatprep.subr.mxu1 %v12324_v58 }
0x234f   :  { %8759 = vmatpush3.msra.mxu1 %v10843_v10 }
0x2350   :  { %8761 = vmatmul.mubr.msk.f32.vlgmr.msra.gmra.mxu1 %vm89_vm1, %v3563_v63  ;;  %8774 = vmatprep.subr.mxu1 %v12324_v58  ;;  %v10867_v63 = vld [vmem:[%s12236_s21 + $0x8] sm:$0xff] }
0x2351   :  { %8775 = vmatpush3.msra.mxu1 %v10851_v5  ;;  %8782 = vmatprep.mubr.msk.f32.mxu1 %vm9574_vm0, %v12324_v58 }
0x2352   :  { %8776 = vmatprep.subr.mxu1 %v12324_v58 }
0x2353   :  { %8777 = vmatpush3.msra.mxu1 %v10860_v27 }
0x2354   :  { %8778 = vmatprep.subr.mxu1 %v12324_v58 }
0x2355   :  { %8779 = vmatpush3.msra.mxu1 %v10867_v63 }
0x2356   :  { %8780 = vmatprep.subr.mxu1 %v12324_v58 }
0x2357   :  { %8781 = vmatpush3.msra.mxu1 %v10874_v20 }
0x2358   :  { %8785 = vmatprep.subr.mxu1 %v12324_v58 }
0x2408   :  { %v3712_v44 = vpop.f32.mrf.mxu1 }
0x2409   :  { %v3713_v26 = vadd.f32 %v10881_v3, %v3712_v44  ;;  %v10911_v44 = vld [vmem:[%s12237_s22] sm:$0xff] }
0x240a   :  { %v8740_v12 = vpop.f32.mrf.mxu1 }
0x240b   :  { %v3716_v34 = vmax.f32 %v3713_v26, 0.0  ;;  %v10897_v12 = vld [vmem:[%s12237_s22 + $0x10] sm:$0xff] }
0x240d   :  { %8750 = vmatmul.mubr.msk.f32.vlgmr.msra.gmra.mxu0 %vm89_vm1, %v3716_v34  ;;  %v10904_v34 = vld [vmem:[%s12237_s22 + $0x8] sm:$0xff] }
0x240e   :  { %8764 = vmatpush3.msra.mxu0 %v10888_v19  ;;  %8771 = vmatprep.mubr.msk.f32.mxu0 %vm9574_vm0, %v12324_v58 }
0x240f   :  { %8765 = vmatprep.subr.mxu0 %v12324_v58 }
0x2410   :  { %v3874_v11 = vpop.f32.mrf.mxu1  ;;  %8766 = vmatpush3.msra.mxu0 %v10897_v12 }
0x2411   :  { %8767 = vmatprep.subr.mxu0 %v12324_v58  ;;  %v3878_v32 = vadd.f32 %v7911_v16, %v3874_v11 }
0x2412   :  { %v8762_v26 = vpop.f32.mrf.mxu1  ;;  %8768 = vmatpush3.msra.mxu0 %v10904_v34 }
0x2413   :  { %8769 = vmatprep.subr.mxu0 %v12324_v58 }
0x2414   :  { %8770 = vmatpush3.msra.mxu0 %v10911_v44 }
0x2415   :  { %8772 = vmatmul.mubr.msk.f32.vlgmr.msra.gmra.mxu0 %vm89_vm1, %v10548_v59  ;;  %4162 = vmatprep.subr.mxu0 %v10482_v55 }
0x2416   :  { %4163 = vmatpush1.msra.mxu0 %v10488_v56  ;;  %4202 = vmatprep.mubr.f32.mxu0 %v12324_v58 }
0x2417   :  { %4164 = vmatprep.subr.mxu0 %v10495_v57 }
0x2418   :  { %4165 = vmatpush1.msra.mxu0 %v10501_v21 }
0x2419   :  { %4166 = vmatprep.subr.mxu0 %v10507_v29 }
0x241a   :  { %4167 = vmatpush1.msra.mxu0 %v10513_v31 }
0x241b   :  { %4168 = vmatprep.subr.mxu0 %v10519_v42 }
0x241c   :  { %4169 = vmatpush1.msra.mxu0 %v10525_v50 }
0x241d   :  { %8796 = vmatprep.subr.mxu0 %v12324_v58 }
0x24cd   :  { %v10926_v59 = vpop.f32.mrf.mxu0 }
0x24ce   :  { %12361 = vst [vmem:[#allocation30_spill] sm:$0xff] %v10926_v59 }
0x24cf   :  { %v8751_v26 = vpop.f32.mrf.mxu0 }
0x24d5   :  { %v3945_v43 = vpop.f32.mrf.mxu0 }
0x24d6   :  { %3957 = vrot.lane.b32.xlu1 %v3945_v43, %s12353_s23  ;;  %v3949_v29 = vadd.f32 %v3945_v43, %v3878_v32 }
0x24d7   :  { %v8773_v61 = vpop.f32.mrf.mxu0 }
0x24d8   :  { %v7922_v31 = vmul.f32 -1.442695, %v3949_v29 }
0x24da   :  { %9240 = vpow2.f32 %v7922_v31 }
0x24e7   :  { %v9241_v42 = vpop.eup %9240 }
0x24e8   :  { %v3953_v21 = vadd.f32 1.0, %v9241_v42 }
0x24ea   :  { %9242 = vrcp.f32 %v3953_v21 }
0x24f7   :  { %v9243_v50 = vpop.eup %9242 }
0x24f8   :  { %v3967_v11 = vsub.f32 1.0, %v9243_v50  ;;  %v3973_v16 = vmul.f32 %v9243_v50, %v10542_v1 }
0x2548   :  { %v3958_v57 = vpop.permute.xlu1 %3957 }
0x2549   :  { %v3960_v56 = vmul.f32 %v9243_v50, %v3958_v57 }
0x254b   :  { %3962 = vrot.lane.b32.xlu0 %v3960_v56, %s12353_s23 }
0x25bd   :  { %v3963_v26 = vpop.permute.xlu0 %3962 }
0x25be   :  { %v3965_v59 = vadd.f32 %v3963_v26, %v3878_v32 }
0x25c0   :  { %9244 = vtanh.f32 %v3965_v59 }
0x25cd   :  { %v9245_v61 = vpop.eup %9244 }
0x25ce   :  { %3969 = vrot.lane.b32.xlu1 %v9245_v61, %s12354_s7 }
0x25d2   :  { %4051 = vrot.lane.b32.xlu1 %v10624_v6, %s12325_s1 }
0x25d6   :  { %4064 = vrot.lane.b32.xlu1 %v10717_v25, %s12354_s7 }
0x2640   :  { %v3970_v43 = vpop.permute.xlu1 %3969 }
0x2641   :  { %v3972_v21 = vmul.f32 %v3970_v43, %v3967_v11 }
0x2643   :  { %v10939_v57 = vadd.f32 %v3973_v16, %v3972_v21 }
0x2644   :  { %v4052_v31 = vpop.permute.xlu1 %4051 }
0x2645   :  { %3976 = vrot.lane.b32.xlu0 %v10939_v57, %s12354_s7 }
0x2648   :  { %v4065_v61 = vpop.permute.xlu1 %4064 }
0x2649   :  { %4053 = vrot.lane.b32.xlu0 %v10717_v25, %s12325_s1 }
0x26b7   :  { %v10945_v56 = vpop.permute.xlu0 %3976 }
0x26b8   :  { %8783 = vmatmul.mubr.msk.f32.vlgmr.msra.gmra.mxu1 %vm89_vm1, %v10945_v56 }
0x26b9   :  { %8786 = vmatpush3.msra.mxu1 %v10555_v35  ;;  %8793 = vmatprep.mubr.msk.f32.mxu1 %vm9574_vm0, %v12324_v58 }
0x26ba   :  { %8787 = vmatprep.subr.mxu1 %v12324_v58 }
0x26bb   :  { %8788 = vmatpush3.msra.mxu1 %v10564_v62  ;;  %v4054_v29 = vpop.permute.xlu0 %4053 }
0x26bc   :  { %8789 = vmatprep.subr.mxu1 %v12324_v58  ;;  %v4055_v42 = vsel %vm89_vm1, %v4052_v31, %v4054_v29 }
0x26bd   :  { %8790 = vmatpush3.msra.mxu1 %v10571_v7 }
0x26be   :  { %8791 = vmatprep.subr.mxu1 %v12324_v58 }
0x26bf   :  { %8792 = vmatpush3.msra.mxu1 %v10578_v14 }
0x26c0   :  { %8807 = vmatprep.subr.mxu1 %v12324_v58 }
0x2778   :  { %v4046_v50 = vpop.f32.mrf.mxu1 }
0x2779   :  { %v4057_v32 = vadd.f32 %v4055_v42, %v4046_v50 }
0x277a   :  { %v8784_v1 = vpop.f32.mrf.mxu1 }
0x277b   :  { %v7924_v6 = vmul.f32 -1.442695, %v4057_v32 }
0x277d   :  { %9246 = vpow2.f32 %v7924_v6 }
0x278a   :  { %v9247_v25 = vpop.eup %9246 }
0x278b   :  { %v4061_v59 = vadd.f32 1.0, %v9247_v25 }
0x278d   :  { %9248 = vrcp.f32 %v4061_v59 }
0x279a   :  { %v9249_v26 = vpop.eup %9248 }
0x279b   :  { %v4067_v11 = vmul.f32 %v9249_v26, %v4065_v61  ;;  %v4074_v29 = vsub.f32 1.0, %v9249_v26  ;;  %v4080_v42 = vmul.f32 %v9249_v26, %v10586_v53  ;;  %v7928_v53 = vld [vmem:[%s12310_s28 + $0x20] sm:$0xff] }
0x279d   :  { %4069 = vrot.lane.b32.xlu0 %v4067_v11, %s12353_s23 }
0x280f   :  { %v4070_v43 = vpop.permute.xlu0 %4069 }
0x2810   :  { %v4072_v16 = vadd.f32 %v4070_v43, %v4046_v50 }
0x2812   :  { %9250 = vtanh.f32 %v4072_v16 }
0x281f   :  { %v9251_v21 = vpop.eup %9250 }
0x2820   :  { %4076 = vrot.lane.b32.xlu1 %v9251_v21, %s12354_s7 }
0x2892   :  { %v4077_v31 = vpop.permute.xlu1 %4076 }
0x2893   :  { %v4079_v32 = vmul.f32 %v4077_v31, %v4074_v29 }
0x2895   :  { %v10963_v1 = vadd.f32 %v4080_v42, %v4079_v32 }
0x2897   :  { %4134 = vrot.lane.b32.xlu0 %v10963_v1, %s12354_s7 }
0x2909   :  { %v4135_v6 = vpop.permute.xlu0 %4134 }
0x290a   :  { %7930 = vmatmul.mubr.msk.f32.vlgmr.msra.gmra.mxu0 %vm89_vm1, %v4135_v6 }
0x290b   :  { %8797 = vmatpush3.msra.mxu0 %v10594_v4  ;;  %8804 = vmatprep.mubr.msk.f32.mxu0 %vm9574_vm0, %v12324_v58 }
0x290c   :  { %8798 = vmatprep.subr.mxu0 %v12324_v58 }
0x290d   :  { %8799 = vmatpush3.msra.mxu0 %v10603_v46 }
0x290e   :  { %8800 = vmatprep.subr.mxu0 %v12324_v58 }
0x290f   :  { %8801 = vmatpush3.msra.mxu0 %v10610_v45 }
0x2910   :  { %8802 = vmatprep.subr.mxu0 %v12324_v58 }
0x2911   :  { %8803 = vmatpush3.msra.mxu0 %v10617_v0 }
0x2912   :  { %8818 = vmatprep.subr.mxu0 %v12324_v58 }
0x29ca   :  { %v10981_v50 = vpop.f32.mrf.mxu0 }
0x29cb   :  { %v4209_v25 = vadd.f32 %v7928_v53, %v10981_v50  ;;  %v4376_v59 = vadd.f32 %v10981_v50, %v9800_v15 }
0x29cc   :  { %v11019_v32 = vpop.f32.mrf.mxu0 }
0x29cd   :  { %v4210_v26 = vmax.f32 %v4209_v25, 0.0  ;;  %v4377_v61 = vmax.f32 %v4376_v59, 0.0 }
0x29cf   :  { %4379 = vrot.lane.b32.xlu0 %v4377_v61, %s12354_s7  ;;  %8794 = vmatmul.mubr.msk.f32.vlgmr.msra.gmra.mxu1 %vm89_vm1, %v4210_v26 }
0x29d0   :  { %8808 = vmatpush3.msra.mxu1 %v10634_v37  ;;  %8815 = vmatprep.mubr.msk.f32.mxu1 %vm9574_vm0, %v12324_v58 }
0x29d1   :  { %8809 = vmatprep.subr.mxu1 %v12324_v58 }
0x29d2   :  { %8810 = vmatpush3.msra.mxu1 %v10643_v47 }
0x29d3   :  { %8811 = vmatprep.subr.mxu1 %v12324_v58 }
0x29d4   :  { %8812 = vmatpush3.msra.mxu1 %v10650_v8 }
0x29d5   :  { %8813 = vmatprep.subr.mxu1 %v12324_v58 }
0x29d6   :  { %8814 = vmatpush3.msra.mxu1 %v10657_v40 }
0x29d7   :  { %8825 = vmatprep.subr.mxu1 %v12324_v58 }
0x2a41   :  { %v4380_v11 = vpop.permute.xlu0 %4379 }
0x2a42   :  { %8816 = vmatmul.mubr.msk.f32.vlgmr.msra.gmra.mxu1 %vm89_vm1, %v4380_v11 }
0x2a43   :  { %8826 = vmatpush3.msra.mxu1 %v10665_v49  ;;  %8833 = vmatprep.mubr.msk.f32.mxu1 %vm9574_vm0, %v12324_v58 }
0x2a44   :  { %8827 = vmatprep.subr.mxu1 %v12324_v58 }
0x2a45   :  { %8828 = vmatpush3.msra.mxu1 %v10674_v30 }
0x2a46   :  { %8829 = vmatprep.subr.mxu1 %v12324_v58 }
0x2a47   :  { %8830 = vmatpush3.msra.mxu1 %v10681_v38 }
0x2a48   :  { %8831 = vmatprep.subr.mxu1 %v12324_v58 }
0x2a49   :  { %8832 = vmatpush3.msra.mxu1 %v10688_v48 }
0x2a4a   :  { %8847 = vmatprep.subr.mxu1 %v12324_v58 }
0x2a8f   :  { %v4280_v43 = vpop.f32.mrf.mxu1 }
0x2a90   :  { %v4281_v16 = vadd.f32 %v10695_v2, %v4280_v43 }
0x2a91   :  { %v8795_v21 = vpop.f32.mrf.mxu1 }
0x2a92   :  { %v4284_v29 = vmax.f32 %v4281_v16, 0.0 }
0x2a94   :  { %8805 = vmatmul.mubr.msk.f32.vlgmr.msra.gmra.mxu0 %vm89_vm1, %v4284_v29 }
0x2a95   :  { %8819 = vmatpush3.msra.mxu0 %v10702_v22  ;;  %8822 = vmatprep.mubr.msk.f32.mxu0 %vm9574_vm0, %v12324_v58 }
0x2a96   :  { %8820 = vmatprep.subr.mxu0 %v12324_v58 }
0x2a97   :  { %8821 = vmatpush3.msra.mxu0 %v10711_v23 }
0x2a98   :  { %8836 = vmatprep.subr.mxu0 %v12324_v58 }
0x2b02   :  { %v11017_v31 = vpop.f32.mrf.mxu1 }
0x2b03   :  { %12362 = vst [vmem:[#allocation31_spill] sm:$0xff] %v11017_v31 }
0x2b04   :  { %v8817_v42 = vpop.f32.mrf.mxu1 }
0x2b54   :  { %v4354_v6 = vpop.f32.mrf.mxu0 }
0x2b55   :  { %v11022_v53 = vadd.f32 %v10722_v33, %v4354_v6 }
0x2b56   :  { %v8806_v25 = vpop.f32.mrf.mxu0 }
0x2b57   :  { %v4361_v59 = vand.u32 2147483647, %v11022_v53  ;;  %v4358_v22 = vmax.f32 %v11022_v53, 0.0  ;;  %vm4359_vm12 = vcmp.ne.f32.partialorder %v11022_v53, %v11022_v53 }
0x2b59   :  { %v4362_v26 = vsub.f32 0.0, %v4361_v59 }
0x2b5b   :  { %v4363_v61 = vmul.f32 1.442695, %v4362_v26 }
0x2b5d   :  { %9252 = vpow2.f32 %v4363_v61 }
0x2b6a   :  { %v9253_v11 = vpop.eup %9252 }
0x2b6b   :  { %v4365_v43 = vadd.f32 1.0, %v9253_v11  ;;  %v4368_v16 = vmul.f32 -0.5, %v9253_v11  ;;  %v4371_v29 = vand.u32 2147483647, %v9253_v11 }
0x2b6d   :  { %9254 = vlog2.f32 %v4365_v43  ;;  %v4369_v21 = vadd.f32 1.0, %v4368_v16  ;;  %vm4372_vm11 = vcmp.lt.f32.partialorder %v4371_v29, 0.0004427343 }
0x2b6f   :  { %v4370_v23 = vmul.f32 %v9253_v11, %v4369_v21 }
0x2b7a   :  { %v9255_v31 = vpop.eup %9254 }
0x2b7b   :  { %v4367_v42 = vmul.f32 0.6931472, %v9255_v31  ;;  %v7927_v31 = vld [vmem:[%s12320_s8 + $0x20] sm:$0xff] }
0x2b7d   :  { %v4373_v6 = vsel %vm4372_vm11, %v4370_v23, %v4367_v42 }
0x2b7e   :  { %v4374_v33 = vadd.f32 %v4373_v6, %v4358_v22 }
0x2b80   :  { %v11029_v25 = vsel %vm4359_vm12, %v11022_v53, %v4374_v33 }
0x2b81   :  { %4472 = vrot.lane.b32.xlu1 %v11029_v25, %s12330_s25 }
0x2b85   :  { %4552 = vrot.lane.b32.xlu1 %v10981_v50, %s12353_s23 }
0x2bf3   :  { %v4473_v59 = vpop.permute.xlu1 %4472 }
0x2bf4   :  { %v4475_v26 = vmul.f32 %v7927_v31, %v4473_v59 }
0x2bf6   :  { %v4476_v22 = vadd.f32 %v4475_v26, %v11022_v53 }
0x2bf7   :  { %v4553_v43 = vpop.permute.xlu1 %4552 }
0x2bf8   :  { %8823 = vmatmul.mubr.msk.f32.vlgmr.msra.gmra.mxu0 %vm483_vm4, %v4476_v22 }
0x2bf9   :  { %8837 = vmatpush3.msra.mxu0 %v10746_v36  ;;  %8844 = vmatprep.mubr.msk.f32.mxu0 %vm9574_vm0, %v12324_v58 }
0x2bfa   :  { %8838 = vmatprep.subr.mxu0 %v12324_v58 }
0x2bfb   :  { %8839 = vmatpush3.msra.mxu0 %v10755_v39 }
0x2bfc   :  { %8840 = vmatprep.subr.mxu0 %v12324_v58 }
0x2bfd   :  { %8841 = vmatpush3.msra.mxu0 %v10762_v28 }
0x2bfe   :  { %8842 = vmatprep.subr.mxu0 %v12324_v58 }
0x2bff   :  { %8843 = vmatpush3.msra.mxu0 %v10769_v41 }
0x2c00   :  { %8858 = vmatprep.subr.mxu0 %v12324_v58 }
0x2cb8   :  { %v4546_v23 = vpop.f32.mrf.mxu0 }
0x2cb9   :  { %v4547_v33 = vadd.f32 %v10776_v51, %v4546_v23 }
0x2cba   :  { %v8824_v61 = vpop.f32.mrf.mxu0 }
0x2cbb   :  { %v4550_v11 = vmax.f32 %v4547_v33, 0.0  ;;  %v12363_v61 = vld [vmem:[#allocation8_spill] sm:$0xff] }
0x2cbd   :  { %8834 = vmatmul.mubr.msk.f32.vlgmr.msra.gmra.mxu1 %vm89_vm1, %v4550_v11 }
0x2cbe   :  { %8848 = vmatpush3.msra.mxu1 %v10783_v18  ;;  %8855 = vmatprep.mubr.msk.f32.mxu1 %vm9574_vm0, %v12324_v58 }
0x2cbf   :  { %8849 = vmatprep.subr.mxu1 %v12324_v58 }
0x2cc0   :  { %8850 = vmatpush3.msra.mxu1 %v10792_v9 }
0x2cc1   :  { %8851 = vmatprep.subr.mxu1 %v12324_v58 }
0x2cc2   :  { %8852 = vmatpush3.msra.mxu1 %v10799_v60 }
0x2cc3   :  { %8853 = vmatprep.subr.mxu1 %v12324_v58 }
0x2cc4   :  { %8854 = vmatpush3.msra.mxu1 %v10806_v17 }
0x2cc5   :  { %8869 = vmatprep.subr.mxu1 %v12324_v58 }
0x2d7d   :  { %v4624_v16 = vpop.f32.mrf.mxu1 }
0x2d7e   :  { %v4625_v21 = vadd.f32 %v4624_v16, %v4553_v43  ;;  %v12365_v43 = vld [vmem:[#allocation10_spill] sm:$0xff] }
0x2d7f   :  { %v8835_v29 = vpop.f32.mrf.mxu1  ;;  %v12366_v16 = vld [vmem:[#allocation14_spill] sm:$0xff] }
0x2d80   :  { %v4628_v42 = vadd.f32 %v10813_v24, %v4625_v21  ;;  %v12367_v21 = vld [vmem:[#allocation15_spill] sm:$0xff]  ;;  %v12368_v29 = vld [vmem:[#allocation12_spill] sm:$0xff] }
0x2d82   :  { %v4629_v6 = vmax.f32 %v4628_v42, 0.0  ;;  %v12369_v42 = vld [vmem:[#allocation22_spill] sm:$0xff] }
0x2d84   :  { %8845 = vmatmul.mubr.msk.f32.vlgmr.msra.gmra.mxu0 %vm89_vm1, %v4629_v6 }
0x2d85   :  { %8859 = vmatpush3.msra.mxu0 %v10820_v52  ;;  %8866 = vmatprep.mubr.msk.f32.mxu0 %vm9574_vm0, %v12324_v58 }
0x2d86   :  { %8860 = vmatprep.subr.mxu0 %v12324_v58 }
0x2d87   :  { %8861 = vmatpush3.msra.mxu0 %v10829_v54 }
0x2d88   :  { %8862 = vmatprep.subr.mxu0 %v12324_v58 }
0x2d89   :  { %8863 = vmatpush3.msra.mxu0 %v10836_v13 }
0x2d8a   :  { %8864 = vmatprep.subr.mxu0 %v12324_v58 }
0x2d8b   :  { %8865 = vmatpush3.msra.mxu0 %v10843_v10 }
0x2d8c   :  { %8867 = vmatmul.mubr.msk.f32.vlgmr.msra.gmra.mxu0 %vm89_vm1, %v4550_v11  ;;  %8880 = vmatprep.subr.mxu0 %v12324_v58  ;;  %v12364_v11 = vld [vmem:[#allocation9_spill] sm:$0xff] }
0x2d8d   :  { %8881 = vmatpush3.msra.mxu0 %v10851_v5  ;;  %8888 = vmatprep.mubr.msk.f32.mxu0 %vm9574_vm0, %v12324_v58 }
0x2d8e   :  { %8882 = vmatprep.subr.mxu0 %v12324_v58 }
0x2d8f   :  { %8883 = vmatpush3.msra.mxu0 %v10860_v27 }
0x2d90   :  { %8884 = vmatprep.subr.mxu0 %v12324_v58 }
0x2d91   :  { %8885 = vmatpush3.msra.mxu0 %v10867_v63 }
0x2d92   :  { %8886 = vmatprep.subr.mxu0 %v12324_v58 }
0x2d93   :  { %8887 = vmatpush3.msra.mxu0 %v10874_v20 }
0x2d94   :  { %8891 = vmatprep.subr.mxu0 %v12324_v58 }
0x2e44   :  { %v4699_v31 = vpop.f32.mrf.mxu0 }
0x2e45   :  { %v4700_v59 = vadd.f32 %v10881_v3, %v4699_v31 }
0x2e46   :  { %v8846_v26 = vpop.f32.mrf.mxu0 }
0x2e47   :  { %v4703_v22 = vmax.f32 %v4700_v59, 0.0  ;;  %v7929_v59 = vld [vmem:[%s12323_s4 + $0x20] sm:$0xff] }
0x2e49   :  { %8856 = vmatmul.mubr.msk.f32.vlgmr.msra.gmra.mxu1 %vm89_vm1, %v4703_v22 }
0x2e4a   :  { %8870 = vmatpush3.msra.mxu1 %v10888_v19  ;;  %8877 = vmatprep.mubr.msk.f32.mxu1 %vm9574_vm0, %v12324_v58 }
0x2e4b   :  { %8871 = vmatprep.subr.mxu1 %v12324_v58 }
0x2e4c   :  { %v4861_v23 = vpop.f32.mrf.mxu0  ;;  %8872 = vmatpush3.msra.mxu1 %v10897_v12 }
0x2e4d   :  { %8873 = vmatprep.subr.mxu1 %v12324_v58  ;;  %v4865_v26 = vadd.f32 %v7929_v59, %v4861_v23 }
0x2e4e   :  { %v8868_v33 = vpop.f32.mrf.mxu0  ;;  %8874 = vmatpush3.msra.mxu1 %v10904_v34 }
0x2e4f   :  { %8875 = vmatprep.subr.mxu1 %v12324_v58 }
0x2e50   :  { %8876 = vmatpush3.msra.mxu1 %v10911_v44 }
0x2e51   :  { %8878 = vmatmul.mubr.msk.f32.vlgmr.msra.gmra.mxu1 %vm89_vm1, %v10945_v56  ;;  %5149 = vmatprep.subr.mxu1 %v10482_v55 }
0x2e52   :  { %5150 = vmatpush1.msra.mxu1 %v12363_v61  ;;  %5189 = vmatprep.mubr.f32.mxu1 %v12324_v58 }
0x2e53   :  { %5151 = vmatprep.subr.mxu1 %v12364_v11 }
0x2e54   :  { %5152 = vmatpush1.msra.mxu1 %v12365_v43 }
0x2e55   :  { %5153 = vmatprep.subr.mxu1 %v12366_v16 }
0x2e56   :  { %5154 = vmatpush1.msra.mxu1 %v12367_v21 }
0x2e57   :  { %5155 = vmatprep.subr.mxu1 %v12368_v29 }
0x2e58   :  { %5156 = vmatpush1.msra.mxu1 %v12369_v42 }
0x2e59   :  { %8902 = vmatprep.subr.mxu1 %v12324_v58 }
0x2f09   :  { %v11108_v56 = vpop.f32.mrf.mxu1 }
0x2f0b   :  { %v8857_v55 = vpop.f32.mrf.mxu1 }
0x2f11   :  { %v4932_v6 = vpop.f32.mrf.mxu1 }
0x2f12   :  { %4944 = vrot.lane.b32.xlu0 %v4932_v6, %s12353_s23  ;;  %v4936_v22 = vadd.f32 %v4932_v6, %v4865_v26 }
0x2f13   :  { %v8879_v31 = vpop.f32.mrf.mxu1 }
0x2f14   :  { %v7940_v33 = vmul.f32 -1.442695, %v4936_v22 }
0x2f16   :  { %9256 = vpow2.f32 %v7940_v33 }
0x2f23   :  { %v9257_v61 = vpop.eup %9256 }
0x2f24   :  { %v4940_v11 = vadd.f32 1.0, %v9257_v61 }
0x2f26   :  { %9258 = vrcp.f32 %v4940_v11 }
0x2f33   :  { %v9259_v43 = vpop.eup %9258 }
0x2f34   :  { %v4954_v23 = vsub.f32 1.0, %v9259_v43  ;;  %v4960_v31 = vmul.f32 %v9259_v43, %v10939_v57 }
0x2f84   :  { %v4945_v16 = vpop.permute.xlu0 %4944 }
0x2f85   :  { %v4947_v21 = vmul.f32 %v9259_v43, %v4945_v16 }
0x2f87   :  { %4949 = vrot.lane.b32.xlu1 %v4947_v21, %s12353_s23 }
0x2ff9   :  { %v4950_v29 = vpop.permute.xlu1 %4949 }
0x2ffa   :  { %v4952_v42 = vadd.f32 %v4950_v29, %v4865_v26 }
0x2ffc   :  { %9260 = vtanh.f32 %v4952_v42 }
0x3009   :  { %v9261_v55 = vpop.eup %9260 }
0x300a   :  { %4956 = vrot.lane.b32.xlu0 %v9261_v55, %s12354_s7 }
0x300e   :  { %5038 = vrot.lane.b32.xlu0 %v10981_v50, %s12325_s1 }
0x3012   :  { %5051 = vrot.lane.b32.xlu0 %v11019_v32, %s12354_s7 }
0x307c   :  { %v4957_v6 = vpop.permute.xlu0 %4956 }
0x307d   :  { %v4959_v59 = vmul.f32 %v4957_v6, %v4954_v23 }
0x307f   :  { %v11121_v22 = vadd.f32 %v4960_v31, %v4959_v59 }
0x3080   :  { %v5039_v50 = vpop.permute.xlu0 %5038 }
0x3081   :  { %4963 = vrot.lane.b32.xlu1 %v11121_v22, %s12354_s7 }
0x3085   :  { %5040 = vrot.lane.b32.xlu1 %v11019_v32, %s12325_s1 }
0x30f3   :  { %v11127_v26 = vpop.permute.xlu1 %4963 }
0x30f4   :  { %8889 = vmatmul.mubr.msk.f32.vlgmr.msra.gmra.mxu0 %vm89_vm1, %v11127_v26 }
0x30f5   :  { %8892 = vmatpush3.msra.mxu0 %v10555_v35  ;;  %8899 = vmatprep.mubr.msk.f32.mxu0 %vm9574_vm0, %v12324_v58 }
0x30f6   :  { %8893 = vmatprep.subr.mxu0 %v12324_v58 }
0x30f7   :  { %8894 = vmatpush3.msra.mxu0 %v10564_v62  ;;  %v5041_v57 = vpop.permute.xlu1 %5040 }
0x30f8   :  { %8895 = vmatprep.subr.mxu0 %v12324_v58  ;;  %v5042_v35 = vsel %vm89_vm1, %v5039_v50, %v5041_v57 }
0x30f9   :  { %8896 = vmatpush3.msra.mxu0 %v10571_v7  ;;  %v5052_v7 = vpop.permute.xlu0 %5051 }
0x30fa   :  { %8897 = vmatprep.subr.mxu0 %v12324_v58 }
0x30fb   :  { %8898 = vmatpush3.msra.mxu0 %v10578_v14 }
0x30fc   :  { %8913 = vmatprep.subr.mxu0 %v12324_v58 }
0x31b4   :  { %v5033_v32 = vpop.f32.mrf.mxu0 }
0x31b5   :  { %v5044_v33 = vadd.f32 %v5042_v35, %v5033_v32 }
0x31b6   :  { %v8890_v61 = vpop.f32.mrf.mxu0 }
0x31b7   :  { %v7942_v11 = vmul.f32 -1.442695, %v5044_v33  ;;  %v12372_v33 = vld [vmem:[#allocation27_spill] sm:$0xff] }
0x31b9   :  { %9262 = vpow2.f32 %v7942_v11 }
0x31c6   :  { %v9263_v62 = vpop.eup %9262 }
0x31c7   :  { %v5048_v43 = vadd.f32 1.0, %v9263_v62 }
0x31c9   :  { %9264 = vrcp.f32 %v5048_v43 }
0x31d6   :  { %v9265_v16 = vpop.eup %9264 }
0x31d7   :  { %v5054_v21 = vmul.f32 %v9265_v16, %v5052_v7  ;;  %v5061_v55 = vsub.f32 1.0, %v9265_v16  ;;  %v5067_v6 = vmul.f32 %v9265_v16, %v10963_v1 }
0x31d9   :  { %5056 = vrot.lane.b32.xlu1 %v5054_v21, %s12353_s23 }
0x324b   :  { %v5057_v14 = vpop.permute.xlu1 %5056 }
0x324c   :  { %v5059_v29 = vadd.f32 %v5057_v14, %v5033_v32 }
0x324e   :  { %9266 = vtanh.f32 %v5059_v29 }
0x325b   :  { %v9267_v42 = vpop.eup %9266 }
0x325c   :  { %5063 = vrot.lane.b32.xlu0 %v9267_v42, %s12354_s7 }
0x32ce   :  { %v5064_v23 = vpop.permute.xlu0 %5063 }
0x32cf   :  { %v5066_v31 = vmul.f32 %v5064_v23, %v5061_v55 }
0x32d1   :  { %v11145_v59 = vadd.f32 %v5067_v6, %v5066_v31 }
0x32d3   :  { %5121 = vrot.lane.b32.xlu1 %v11145_v59, %s12354_s7 }
0x3345   :  { %v5122_v57 = vpop.permute.xlu1 %5121 }
0x3346   :  { %7948 = vmatmul.mubr.msk.f32.vlgmr.msra.gmra.mxu1 %vm89_vm1, %v5122_v57 }
0x3347   :  { %8903 = vmatpush3.msra.mxu1 %v10594_v4  ;;  %8910 = vmatprep.mubr.msk.f32.mxu1 %vm9574_vm0, %v12324_v58  ;;  %v7946_v4 = vld [vmem:[%s12310_s28 + $0x28] sm:$0xff] }
0x3348   :  { %8904 = vmatprep.subr.mxu1 %v12324_v58 }
0x3349   :  { %8905 = vmatpush3.msra.mxu1 %v10603_v46 }
0x334a   :  { %8906 = vmatprep.subr.mxu1 %v12324_v58 }
0x334b   :  { %8907 = vmatpush3.msra.mxu1 %v10610_v45 }
0x334c   :  { %8908 = vmatprep.subr.mxu1 %v12324_v58 }
0x334d   :  { %8909 = vmatpush3.msra.mxu1 %v10617_v0 }
0x334e   :  { %8924 = vmatprep.subr.mxu1 %v12324_v58 }
0x3406   :  { %v11163_v1 = vpop.f32.mrf.mxu1 }
0x3407   :  { %v5196_v50 = vadd.f32 %v7946_v4, %v11163_v1  ;;  %v5363_v46 = vadd.f32 %v11163_v1, %v9800_v15 }
0x3409   :  { %v5197_v35 = vmax.f32 %v5196_v50, 0.0  ;;  %v5364_v32 = vmax.f32 %v5363_v46, 0.0  ;;  %v7945_v46 = vld [vmem:[%s12320_s8 + $0x28] sm:$0xff] }
0x340b   :  { %5366 = vrot.lane.b32.xlu1 %v5364_v32, %s12354_s7  ;;  %8900 = vmatmul.mubr.msk.f32.vlgmr.msra.gmra.mxu0 %vm89_vm1, %v5197_v35 }
0x340c   :  { %8914 = vmatpush3.msra.mxu0 %v10634_v37  ;;  %8921 = vmatprep.mubr.msk.f32.mxu0 %vm9574_vm0, %v12324_v58 }
0x340d   :  { %8915 = vmatprep.subr.mxu0 %v12324_v58 }
0x340e   :  { %8916 = vmatpush3.msra.mxu0 %v10643_v47 }
0x340f   :  { %8917 = vmatprep.subr.mxu0 %v12324_v58 }
0x3410   :  { %8918 = vmatpush3.msra.mxu0 %v10650_v8 }
0x3411   :  { %8919 = vmatprep.subr.mxu0 %v12324_v58 }
0x3412   :  { %8920 = vmatpush3.msra.mxu0 %v10657_v40  ;;  %v12370_v40 = vld [vmem:[#allocation24_spill] sm:$0xff] }
0x3413   :  { %8931 = vmatprep.subr.mxu0 %v12324_v58 }
0x347d   :  { %v5367_v45 = vpop.permute.xlu1 %5366 }
0x347e   :  { %8922 = vmatmul.mubr.msk.f32.vlgmr.msra.gmra.mxu0 %vm89_vm1, %v5367_v45 }
0x347f   :  { %8932 = vmatpush3.msra.mxu0 %v10665_v49  ;;  %8939 = vmatprep.mubr.msk.f32.mxu0 %vm9574_vm0, %v12324_v58  ;;  %v12371_v49 = vld [vmem:[#allocation25_spill] sm:$0xff] }
0x3480   :  { %8933 = vmatprep.subr.mxu0 %v12324_v58 }
0x3481   :  { %8934 = vmatpush3.msra.mxu0 %v10674_v30 }
0x3482   :  { %8935 = vmatprep.subr.mxu0 %v12324_v58 }
0x3483   :  { %8936 = vmatpush3.msra.mxu0 %v10681_v38 }
0x3484   :  { %8937 = vmatprep.subr.mxu0 %v12324_v58 }
0x3485   :  { %8938 = vmatpush3.msra.mxu0 %v10688_v48  ;;  %v11201_v48 = vpop.f32.mrf.mxu1 }
0x3486   :  { %8953 = vmatprep.subr.mxu0 %v12324_v58 }
0x34cb   :  { %v5267_v0 = vpop.f32.mrf.mxu0 }
0x34cc   :  { %v5268_v37 = vadd.f32 %v10695_v2, %v5267_v0 }
0x34cd   :  { %v8901_v47 = vpop.f32.mrf.mxu0 }
0x34ce   :  { %v5271_v8 = vmax.f32 %v5268_v37, 0.0 }
0x34d0   :  { %8911 = vmatmul.mubr.msk.f32.vlgmr.msra.gmra.mxu1 %vm89_vm1, %v5271_v8 }
0x34d1   :  { %8925 = vmatpush3.msra.mxu1 %v12370_v40  ;;  %8928 = vmatprep.mubr.msk.f32.mxu1 %vm9574_vm0, %v12324_v58  ;;  %v7947_v40 = vld [vmem:[%s12323_s4 + $0x28] sm:$0xff] }
0x34d2   :  { %8926 = vmatprep.subr.mxu1 %v12324_v58 }
0x34d3   :  { %8927 = vmatpush3.msra.mxu1 %v12371_v49 }
0x34d4   :  { %8942 = vmatprep.subr.mxu1 %v12324_v58 }
0x353e   :  { %v11199_v30 = vpop.f32.mrf.mxu0 }
0x3540   :  { %v8923_v38 = vpop.f32.mrf.mxu0 }
0x3590   :  { %v5341_v2 = vpop.f32.mrf.mxu1 }
0x3591   :  { %v11204_v61 = vadd.f32 %v12372_v33, %v5341_v2 }
0x3592   :  { %v8912_v11 = vpop.f32.mrf.mxu1 }
0x3593   :  { %v5348_v62 = vand.u32 2147483647, %v11204_v61  ;;  %v5345_v31 = vmax.f32 %v11204_v61, 0.0  ;;  %vm5346_vm14 = vcmp.ne.f32.partialorder %v11204_v61, %v11204_v61 }
0x3595   :  { %v5349_v43 = vsub.f32 0.0, %v5348_v62 }
0x3597   :  { %v5350_v16 = vmul.f32 1.442695, %v5349_v43 }
0x3599   :  { %9268 = vpow2.f32 %v5350_v16 }
0x35a6   :  { %v9269_v7 = vpop.eup %9268 }
0x35a7   :  { %v5352_v21 = vadd.f32 1.0, %v9269_v7  ;;  %v5355_v14 = vmul.f32 -0.5, %v9269_v7  ;;  %v5358_v42 = vand.u32 2147483647, %v9269_v7 }
0x35a9   :  { %9270 = vlog2.f32 %v5352_v21  ;;  %v5356_v29 = vadd.f32 1.0, %v5355_v14  ;;  %vm5359_vm13 = vcmp.lt.f32.partialorder %v5358_v42, 0.0004427343 }
0x35ab   :  { %v5357_v6 = vmul.f32 %v9269_v7, %v5356_v29 }
0x35b6   :  { %v9271_v55 = vpop.eup %9270 }
0x35b7   :  { %v5354_v23 = vmul.f32 0.6931472, %v9271_v55 }
0x35b9   :  { %v5360_v57 = vsel %vm5359_vm13, %v5357_v6, %v5354_v23 }
0x35ba   :  { %v5361_v4 = vadd.f32 %v5360_v57, %v5345_v31  ;;  %v11379_v57 = vld [vmem:[%s12303_s27] sm:$0xff] }
0x35bc   :  { %v11211_v50 = vsel %vm5346_vm14, %v11204_v61, %v5361_v4 }
0x35bd   :  { %5459 = vrot.lane.b32.xlu0 %v11211_v50, %s12330_s25 }
0x35c1   :  { %5539 = vrot.lane.b32.xlu0 %v11163_v1, %s12353_s23 }
0x362f   :  { %v5460_v35 = vpop.permute.xlu0 %5459 }
0x3630   :  { %v5462_v32 = vmul.f32 %v7945_v46, %v5460_v35 }
0x3632   :  { %v5463_v45 = vadd.f32 %v5462_v32, %v11204_v61 }
0x3634   :  { %8929 = vmatmul.mubr.msk.f32.vlgmr.msra.gmra.mxu1 %vm483_vm4, %v5463_v45 }
0x3635   :  { %8943 = vmatpush3.msra.mxu1 %v10746_v36  ;;  %8950 = vmatprep.mubr.msk.f32.mxu1 %vm9574_vm0, %v12324_v58 }
0x3636   :  { %8944 = vmatprep.subr.mxu1 %v12324_v58 }
0x3637   :  { %8945 = vmatpush3.msra.mxu1 %v10755_v39  ;;  %v5540_v39 = vpop.permute.xlu0 %5539 }
0x3638   :  { %8946 = vmatprep.subr.mxu1 %v12324_v58 }
0x3639   :  { %8947 = vmatpush3.msra.mxu1 %v10762_v28 }
0x363a   :  { %8948 = vmatprep.subr.mxu1 %v12324_v58 }
0x363b   :  { %8949 = vmatpush3.msra.mxu1 %v10769_v41 }
0x363c   :  { %8964 = vmatprep.subr.mxu1 %v12324_v58 }
0x36f4   :  { %v5533_v0 = vpop.f32.mrf.mxu1 }
0x36f5   :  { %v5534_v36 = vadd.f32 %v10776_v51, %v5533_v0 }
0x36f6   :  { %v8930_v37 = vpop.f32.mrf.mxu1 }
0x36f7   :  { %v5537_v47 = vmax.f32 %v5534_v36, 0.0 }
0x36f9   :  { %8940 = vmatmul.mubr.msk.f32.vlgmr.msra.gmra.mxu0 %vm89_vm1, %v5537_v47 }
0x36fa   :  { %8954 = vmatpush3.msra.mxu0 %v10783_v18  ;;  %8961 = vmatprep.mubr.msk.f32.mxu0 %vm9574_vm0, %v12324_v58 }
0x36fb   :  { %8955 = vmatprep.subr.mxu0 %v12324_v58 }
0x36fc   :  { %8956 = vmatpush3.msra.mxu0 %v10792_v9 }
0x36fd   :  { %8957 = vmatprep.subr.mxu0 %v12324_v58 }
0x36fe   :  { %8958 = vmatpush3.msra.mxu0 %v10799_v60 }
0x36ff   :  { %8959 = vmatprep.subr.mxu0 %v12324_v58 }
0x3700   :  { %8960 = vmatpush3.msra.mxu0 %v10806_v17 }
0x3701   :  { %8975 = vmatprep.subr.mxu0 %v12324_v58 }
0x37b9   :  { %v5611_v28 = vpop.f32.mrf.mxu0 }
0x37ba   :  { %v5612_v41 = vadd.f32 %v5611_v28, %v5540_v39 }
0x37bb   :  { %v8941_v51 = vpop.f32.mrf.mxu0 }
0x37bc   :  { %v5615_v18 = vadd.f32 %v10813_v24, %v5612_v41 }
0x37be   :  { %v5616_v8 = vmax.f32 %v5615_v18, 0.0 }
0x37c0   :  { %8951 = vmatmul.mubr.msk.f32.vlgmr.msra.gmra.mxu1 %vm89_vm1, %v5616_v8 }
0x37c1   :  { %8965 = vmatpush3.msra.mxu1 %v10820_v52  ;;  %8972 = vmatprep.mubr.msk.f32.mxu1 %vm9574_vm0, %v12324_v58 }
0x37c2   :  { %8966 = vmatprep.subr.mxu1 %v12324_v58 }
0x37c3   :  { %8967 = vmatpush3.msra.mxu1 %v10829_v54 }
0x37c4   :  { %8968 = vmatprep.subr.mxu1 %v12324_v58 }
0x37c5   :  { %8969 = vmatpush3.msra.mxu1 %v10836_v13  ;;  %v11296_v13 = vld [vmem:[%s12234_s19 + $0x28] sm:$0xff] }
0x37c6   :  { %8970 = vmatprep.subr.mxu1 %v12324_v58 }
0x37c7   :  { %8971 = vmatpush3.msra.mxu1 %v10843_v10  ;;  %v11302_v10 = vld [vmem:[%s12234_s19 + $0x20] sm:$0xff] }
0x37c8   :  { %8973 = vmatmul.mubr.msk.f32.vlgmr.msra.gmra.mxu1 %vm89_vm1, %v5537_v47  ;;  %8986 = vmatprep.subr.mxu1 %v12324_v58 }
0x37c9   :  { %8987 = vmatpush3.msra.mxu1 %v10851_v5  ;;  %8994 = vmatprep.mubr.msk.f32.mxu1 %vm9574_vm0, %v12324_v58  ;;  %v11308_v5 = vld [vmem:[%s12234_s19 + $0x18] sm:$0xff] }
0x37ca   :  { %8988 = vmatprep.subr.mxu1 %v12324_v58 }
0x37cb   :  { %8989 = vmatpush3.msra.mxu1 %v10860_v27  ;;  %v11314_v27 = vld [vmem:[%s12234_s19 + $0x10] sm:$0xff] }
0x37cc   :  { %8990 = vmatprep.subr.mxu1 %v12324_v58 }
0x37cd   :  { %8991 = vmatpush3.msra.mxu1 %v10867_v63  ;;  %v11320_v63 = vld [vmem:[%s12234_s19 + $0x8] sm:$0xff] }
0x37ce   :  { %8992 = vmatprep.subr.mxu1 %v12324_v58 }
0x37cf   :  { %8993 = vmatpush3.msra.mxu1 %v10874_v20  ;;  %v11326_v20 = vld [vmem:[%s12234_s19] sm:$0xff] }
0x37d0   :  { %8997 = vmatprep.subr.mxu1 %v12324_v58 }
0x3880   :  { %v5686_v9 = vpop.f32.mrf.mxu1 }
0x3881   :  { %v5687_v60 = vadd.f32 %v10881_v3, %v5686_v9  ;;  %v11289_v3 = vld [vmem:[%s12234_s19 + $0x30] sm:$0xff] }
0x3882   :  { %v8952_v17 = vpop.f32.mrf.mxu1 }
0x3883   :  { %v5690_v24 = vmax.f32 %v5687_v60, 0.0 }
0x3885   :  { %8962 = vmatmul.mubr.msk.f32.vlgmr.msra.gmra.mxu0 %vm89_vm1, %v5690_v24 }
0x3886   :  { %8976 = vmatpush3.msra.mxu0 %v10888_v19  ;;  %8983 = vmatprep.mubr.msk.f32.mxu0 %vm9574_vm0, %v12324_v58  ;;  %v11283_v19 = vld [vmem:[%s12234_s19 + $0x38] sm:$0xff] }
0x3887   :  { %8977 = vmatprep.subr.mxu0 %v12324_v58 }
0x3888   :  { %v5848_v52 = vpop.f32.mrf.mxu1  ;;  %8978 = vmatpush3.msra.mxu0 %v10897_v12 }
0x3889   :  { %8979 = vmatprep.subr.mxu0 %v12324_v58  ;;  %v5852_v49 = vadd.f32 %v7947_v40, %v5848_v52  ;;  %v7964_v40 = vld [vmem:[%s12310_s28 + $0x30] sm:$0xff] }
0x388a   :  { %v8974_v54 = vpop.f32.mrf.mxu1  ;;  %8980 = vmatpush3.msra.mxu0 %v10904_v34 }
0x388b   :  { %8981 = vmatprep.subr.mxu0 %v12324_v58 }
0x388c   :  { %8982 = vmatpush3.msra.mxu0 %v10911_v44 }
0x388d   :  { %8984 = vmatmul.mubr.msk.f32.vlgmr.msra.gmra.mxu0 %vm89_vm1, %v11127_v26  ;;  %6136 = vmatprep.subr.mxu0 %v11283_v19 }
0x388e   :  { %6137 = vmatpush1.msra.mxu0 %v11289_v3  ;;  %6176 = vmatprep.mubr.f32.mxu0 %v12324_v58 }
0x388f   :  { %6138 = vmatprep.subr.mxu0 %v11296_v13 }
0x3890   :  { %6139 = vmatpush1.msra.mxu0 %v11302_v10 }
0x3891   :  { %6140 = vmatprep.subr.mxu0 %v11308_v5 }
0x3892   :  { %6141 = vmatpush1.msra.mxu0 %v11314_v27 }
0x3893   :  { %6142 = vmatprep.subr.mxu0 %v11320_v63 }
0x3894   :  { %6143 = vmatpush1.msra.mxu0 %v11326_v20 }
0x3895   :  { %9008 = vmatprep.subr.mxu0 %v12324_v58 }
0x3945   :  { %v11330_v12 = vpop.f32.mrf.mxu0 }
0x3947   :  { %v8963_v34 = vpop.f32.mrf.mxu0 }
0x3948   :  { %v11395_v34 = vld [vmem:[%s12309_s5 + $0x18] sm:$0xff] }
0x394d   :  { %v5919_v44 = vpop.f32.mrf.mxu0 }
0x394e   :  { %5931 = vrot.lane.b32.xlu1 %v5919_v44, %s12353_s23  ;;  %v5923_v38 = vadd.f32 %v5919_v44, %v5852_v49  ;;  %v11411_v44 = vld [vmem:[%s12309_s5 + $0x8] sm:$0xff] }
0x394f   :  { %v8985_v26 = vpop.f32.mrf.mxu0 }
0x3950   :  { %v7958_v2 = vmul.f32 -1.442695, %v5923_v38  ;;  %v11418_v26 = vld [vmem:[%s12309_s5] sm:$0xff] }
0x3952   :  { %9272 = vpow2.f32 %v7958_v2 }
0x395f   :  { %v9273_v33 = vpop.eup %9272 }
0x3960   :  { %v5927_v11 = vadd.f32 1.0, %v9273_v33 }
0x3962   :  { %9274 = vrcp.f32 %v5927_v11 }
0x396f   :  { %v9275_v62 = vpop.eup %9274 }
0x3970   :  { %v5941_v29 = vsub.f32 1.0, %v9275_v62  ;;  %v5947_v55 = vmul.f32 %v9275_v62, %v11121_v22  ;;  %v11365_v22 = vld [vmem:[%s12303_s27 + $0x10] sm:$0xff] }
0x39c0   :  { %v5932_v43 = vpop.permute.xlu1 %5931 }
0x39c1   :  { %v5934_v16 = vmul.f32 %v9275_v62, %v5932_v43  ;;  %v11435_v62 = vld [vmem:[%s12226_s11 + $0x18] sm:$0xff]  ;;  %v11444_v43 = vld [vmem:[%s12226_s11 + $0x10] sm:$0xff] }
0x39c3   :  { %5936 = vrot.lane.b32.xlu0 %v5934_v16, %s12353_s23  ;;  %v11451_v16 = vld [vmem:[%s12226_s11 + $0x8] sm:$0xff] }
0x3a35   :  { %v5937_v7 = vpop.permute.xlu0 %5936 }
0x3a36   :  { %v5939_v21 = vadd.f32 %v5937_v7, %v5852_v49  ;;  %v11458_v7 = vld [vmem:[%s12226_s11] sm:$0xff] }
0x3a38   :  { %9276 = vtanh.f32 %v5939_v21 }
0x3a45   :  { %v9277_v14 = vpop.eup %9276 }
0x3a46   :  { %5943 = vrot.lane.b32.xlu1 %v9277_v14, %s12354_s7  ;;  %v11466_v14 = vld [vmem:[%s12228_s13 + $0x18] sm:$0xff] }
0x3a4a   :  { %6025 = vrot.lane.b32.xlu1 %v11163_v1, %s12325_s1  ;;  %v11356_v1 = vld [vmem:[%s12303_s27 + $0x18] sm:$0xff] }
0x3a4e   :  { %6038 = vrot.lane.b32.xlu1 %v11201_v48, %s12354_s7 }
0x3ab8   :  { %v5944_v42 = vpop.permute.xlu1 %5943 }
0x3ab9   :  { %v5946_v23 = vmul.f32 %v5944_v42, %v5941_v29  ;;  %v11475_v29 = vld [vmem:[%s12228_s13 + $0x10] sm:$0xff]  ;;  %v11482_v42 = vld [vmem:[%s12228_s13 + $0x8] sm:$0xff] }
0x3abb   :  { %v11343_v6 = vadd.f32 %v5947_v55, %v5946_v23  ;;  %v11489_v55 = vld [vmem:[%s12228_s13] sm:$0xff] }
0x3abc   :  { %v6026_v46 = vpop.permute.xlu1 %6025 }
0x3abd   :  { %5950 = vrot.lane.b32.xlu0 %v11343_v6, %s12354_s7 }
0x3ac0   :  { %v6039_v28 = vpop.permute.xlu1 %6038 }
0x3ac1   :  { %6027 = vrot.lane.b32.xlu0 %v11201_v48, %s12325_s1  ;;  %v11372_v48 = vld [vmem:[%s12303_s27 + $0x8] sm:$0xff]  ;;  %s12381_s27 = sld [smem:[#allocation32_spill]] }
0x3b2f   :  { %v11349_v31 = vpop.permute.xlu0 %5950 }
0x3b30   :  { %8995 = vmatmul.mubr.msk.f32.vlgmr.msra.gmra.mxu1 %vm89_vm1, %v11349_v31 }
0x3b31   :  { %8998 = vmatpush3.msra.mxu1 %v11356_v1  ;;  %9005 = vmatprep.mubr.msk.f32.mxu1 %vm9574_vm0, %v12324_v58 }
0x3b32   :  { %8999 = vmatprep.subr.mxu1 %v12324_v58 }
0x3b33   :  { %9000 = vmatpush3.msra.mxu1 %v11365_v22  ;;  %v6028_v4 = vpop.permute.xlu0 %6027 }
0x3b34   :  { %9001 = vmatprep.subr.mxu1 %v12324_v58  ;;  %v6029_v35 = vsel %vm89_vm1, %v6026_v46, %v6028_v4  ;;  %v11496_v4 = vld [vmem:[%s12311_s3] ss:$0 sm:$0xff] }
0x3b35   :  { %9002 = vmatpush3.msra.mxu1 %v11372_v48 }
0x3b36   :  { %9003 = vmatprep.subr.mxu1 %v12324_v58 }
0x3b37   :  { %9004 = vmatpush3.msra.mxu1 %v11379_v57 }
0x3b38   :  { %9019 = vmatprep.subr.mxu1 %v12324_v58 }
0x3bf0   :  { %v6020_v32 = vpop.f32.mrf.mxu1 }
0x3bf1   :  { %v6031_v45 = vadd.f32 %v6029_v35, %v6020_v32 }
0x3bf2   :  { %v8996_v0 = vpop.f32.mrf.mxu1 }
0x3bf3   :  { %v7960_v36 = vmul.f32 -1.442695, %v6031_v45  ;;  %v11503_v45 = vld [vmem:[%s12316_s10 + $0x8] sm:$0xff]  ;;  %v11512_v0 = vld [vmem:[%s12316_s10] sm:$0xff] }
0x3bf5   :  { %9278 = vpow2.f32 %v7960_v36 }
0x3c02   :  { %v9279_v37 = vpop.eup %9278 }
0x3c03   :  { %v6035_v47 = vadd.f32 1.0, %v9279_v37 }
0x3c05   :  { %9280 = vrcp.f32 %v6035_v47 }
0x3c12   :  { %v9281_v39 = vpop.eup %9280 }
0x3c13   :  { %v6041_v41 = vmul.f32 %v9281_v39, %v6039_v28  ;;  %v6048_v9 = vsub.f32 1.0, %v9281_v39  ;;  %v6054_v17 = vmul.f32 %v9281_v39, %v11145_v59  ;;  %v11404_v59 = vld [vmem:[%s12309_s5 + $0x10] sm:$0xff]  ;;  %v11523_v28 = vld [vmem:[%s12224_s9] ss:$0 sm:$0xff] }
0x3c15   :  { %6043 = vrot.lane.b32.xlu0 %v6041_v41, %s12353_s23 }
0x3c87   :  { %v6044_v51 = vpop.permute.xlu0 %6043 }
0x3c88   :  { %v6046_v18 = vadd.f32 %v6044_v51, %v6020_v32 }
0x3c8a   :  { %9282 = vtanh.f32 %v6046_v18 }
0x3c97   :  { %v9283_v8 = vpop.eup %9282 }
0x3c98   :  { %6050 = vrot.lane.b32.xlu1 %v9283_v8, %s12354_s7 }
0x3d0a   :  { %v6051_v60 = vpop.permute.xlu1 %6050 }
0x3d0b   :  { %v6053_v24 = vmul.f32 %v6051_v60, %v6048_v9 }
0x3d0d   :  { %v11387_v52 = vadd.f32 %v6054_v17, %v6053_v24 }
0x3d0f   :  { %6108 = vrot.lane.b32.xlu0 %v11387_v52, %s12354_s7 }
0x3d81   :  { %v6109_v54 = vpop.permute.xlu0 %6108 }
0x3d82   :  { %7966 = vmatmul.mubr.msk.f32.vlgmr.msra.gmra.mxu0 %vm89_vm1, %v6109_v54 }
0x3d83   :  { %9009 = vmatpush3.msra.mxu0 %v11395_v34  ;;  %9016 = vmatprep.mubr.msk.f32.mxu0 %vm9574_vm0, %v12324_v58 }
0x3d84   :  { %9010 = vmatprep.subr.mxu0 %v12324_v58 }
0x3d85   :  { %9011 = vmatpush3.msra.mxu0 %v11404_v59 }
0x3d86   :  { %9012 = vmatprep.subr.mxu0 %v12324_v58 }
0x3d87   :  { %9013 = vmatpush3.msra.mxu0 %v11411_v44 }
0x3d88   :  { %9014 = vmatprep.subr.mxu0 %v12324_v58 }
0x3d89   :  { %9015 = vmatpush3.msra.mxu0 %v11418_v26 }
0x3d8a   :  { %9030 = vmatprep.subr.mxu0 %v12324_v58 }
0x3e42   :  { %v11425_v49 = vpop.f32.mrf.mxu0 }
0x3e43   :  { %v6183_v38 = vadd.f32 %v7964_v40, %v11425_v49  ;;  %v6350_v2 = vadd.f32 %v11425_v49, %v9800_v15 }
0x3e44   :  { %v11518_v47 = vpop.f32.mrf.mxu0 }
0x3e45   :  { %v6184_v33 = vmax.f32 %v6183_v38, 0.0  ;;  %v6351_v11 = vmax.f32 %v6350_v2, 0.0 }
0x3e47   :  { %6353 = vrot.lane.b32.xlu0 %v6351_v11, %s12354_s7  ;;  %9006 = vmatmul.mubr.msk.f32.vlgmr.msra.gmra.mxu1 %vm89_vm1, %v6184_v33 }
0x3e48   :  { %9020 = vmatpush3.msra.mxu1 %v11435_v62  ;;  %9027 = vmatprep.mubr.msk.f32.mxu1 %vm9574_vm0, %v12324_v58 }
0x3e49   :  { %9021 = vmatprep.subr.mxu1 %v12324_v58 }
0x3e4a   :  { %9022 = vmatpush3.msra.mxu1 %v11444_v43 }
0x3e4b   :  { %9023 = vmatprep.subr.mxu1 %v12324_v58 }
0x3e4c   :  { %9024 = vmatpush3.msra.mxu1 %v11451_v16 }
0x3e4d   :  { %9025 = vmatprep.subr.mxu1 %v12324_v58 }
0x3e4e   :  { %9026 = vmatpush3.msra.mxu1 %v11458_v7 }
0x3e4f   :  { %9037 = vmatprep.subr.mxu1 %v12324_v58 }
0x3eb9   :  { %v6354_v21 = vpop.permute.xlu0 %6353 }
0x3eba   :  { %9028 = vmatmul.mubr.msk.f32.vlgmr.msra.gmra.mxu1 %vm89_vm1, %v6354_v21 }
0x3ebb   :  { %9038 = vmatpush3.msra.mxu1 %v11466_v14  ;;  %9045 = vmatprep.mubr.msk.f32.mxu1 %vm9574_vm0, %v12324_v58 }
0x3ebc   :  { %9039 = vmatprep.subr.mxu1 %v12324_v58 }
0x3ebd   :  { %9040 = vmatpush3.msra.mxu1 %v11475_v29 }
0x3ebe   :  { %9041 = vmatprep.subr.mxu1 %v12324_v58 }
0x3ebf   :  { %9042 = vmatpush3.msra.mxu1 %v11482_v42 }
0x3ec0   :  { %9043 = vmatprep.subr.mxu1 %v12324_v58 }
0x3ec1   :  { %9044 = vmatpush3.msra.mxu1 %v11489_v55 }
0x3ec2   :  { %9059 = vmatprep.subr.mxu1 %v12324_v58 }
0x3f07   :  { %v6254_v23 = vpop.f32.mrf.mxu1 }
0x3f08   :  { %v6255_v46 = vadd.f32 %v11496_v4, %v6254_v23 }
0x3f09   :  { %v9007_v35 = vpop.f32.mrf.mxu1 }
0x3f0a   :  { %v6258_v32 = vmax.f32 %v6255_v46, 0.0  ;;  %v7963_v35 = vld [vmem:[%s12320_s8 + $0x30] sm:$0xff] }
0x3f0c   :  { %9017 = vmatmul.mubr.msk.f32.vlgmr.msra.gmra.mxu0 %vm89_vm1, %v6258_v32 }
0x3f0d   :  { %9031 = vmatpush3.msra.mxu0 %v11503_v45  ;;  %9034 = vmatprep.mubr.msk.f32.mxu0 %vm9574_vm0, %v12324_v58 }
0x3f0e   :  { %9032 = vmatprep.subr.mxu0 %v12324_v58 }
0x3f0f   :  { %9033 = vmatpush3.msra.mxu0 %v11512_v0 }
0x3f10   :  { %9048 = vmatprep.subr.mxu0 %v12324_v58 }
0x3f7a   :  { %v11516_v36 = vpop.f32.mrf.mxu1 }
0x3f7c   :  { %v9029_v37 = vpop.f32.mrf.mxu1 }
0x3fcc   :  { %v6328_v39 = vpop.f32.mrf.mxu0 }
0x3fcd   :  { %v11526_v41 = vadd.f32 %v11523_v28, %v6328_v39 }
0x3fce   :  { %v9018_v51 = vpop.f32.mrf.mxu0 }
0x3fcf   :  { %v6335_v18 = vand.u32 2147483647, %v11526_v41  ;;  %v6332_v11 = vmax.f32 %v11526_v41, 0.0  ;;  %vm6333_vm2 = vcmp.ne.f32.partialorder %v11526_v41, %v11526_v41  ;;  %v11547_v51 = vld [vmem:[%s12230_s15 + $0x18] sm:$0xff] }
0x3fd1   :  { %v6336_v8 = vsub.f32 0.0, %v6335_v18  ;;  %v11556_v18 = vld [vmem:[%s12230_s15 + $0x10] sm:$0xff] }
0x3fd3   :  { %v6337_v9 = vmul.f32 1.442695, %v6336_v8  ;;  %v11563_v8 = vld [vmem:[%s12230_s15 + $0x8] sm:$0xff] }
0x3fd5   :  { %9284 = vpow2.f32 %v6337_v9  ;;  %v11570_v9 = vld [vmem:[%s12230_s15] sm:$0xff] }
0x3fe2   :  { %v9285_v60 = vpop.eup %9284 }
0x3fe3   :  { %v6339_v17 = vadd.f32 1.0, %v9285_v60  ;;  %v6342_v24 = vmul.f32 -0.5, %v9285_v60  ;;  %v6345_v40 = vand.u32 2147483647, %v9285_v60 }
0x3fe5   :  { %9286 = vlog2.f32 %v6339_v17  ;;  %v6343_v54 = vadd.f32 1.0, %v6342_v24  ;;  %vm6346_vm15 = vcmp.lt.f32.partialorder %v6345_v40, 0.0004427343  ;;  %v11577_v17 = vld [vmem:[%s12321_s0] ss:$0 sm:$0xff] }
0x3fe7   :  { %v6344_v33 = vmul.f32 %v9285_v60, %v6343_v54 }
0x3ff2   :  { %v9287_v38 = vpop.eup %9286 }
0x3ff3   :  { %v6341_v2 = vmul.f32 0.6931472, %v9287_v38  ;;  %v11584_v38 = vld [vmem:[%s12232_s17 + $0x18] sm:$0xff] }
0x3ff5   :  { %v6347_v21 = vsel %vm6346_vm15, %v6344_v33, %v6341_v2  ;;  %v11593_v2 = vld [vmem:[%s12232_s17 + $0x10] sm:$0xff]  ;;  %v11600_v33 = vld [vmem:[%s12232_s17 + $0x8] sm:$0xff] }
0x3ff6   :  { %v6348_v23 = vadd.f32 %v6347_v21, %v6332_v11  ;;  %v11607_v11 = vld [vmem:[%s12232_s17] sm:$0xff] }
0x3ff8   :  { %v11533_v46 = vsel %vm6333_vm2, %v11526_v41, %v6348_v23 }
0x3ff9   :  { %6446 = vrot.lane.b32.xlu1 %v11533_v46, %s12330_s25 }
0x3ffd   :  { %6526 = vrot.lane.b32.xlu1 %v11425_v49, %s12353_s23 }
0x406b   :  { %v6447_v32 = vpop.permute.xlu1 %6446 }
0x406c   :  { %v6449_v37 = vmul.f32 %v7963_v35, %v6447_v32 }
0x406e   :  { %v6450_v39 = vadd.f32 %v6449_v37, %v11526_v41  ;;  %v11614_v37 = vld [vmem:[%s12229_s14] ss:$0 sm:$0xff] }
0x406f   :  { %v6527_v21 = vpop.permute.xlu1 %6526 }
0x4070   :  { %9035 = vmatmul.mubr.msk.f32.vlgmr.msra.gmra.mxu0 %vm483_vm4, %v6450_v39 }
0x4071   :  { %9049 = vmatpush3.msra.mxu0 %v11547_v51  ;;  %9056 = vmatprep.mubr.msk.f32.mxu0 %vm9574_vm0, %v12324_v58 }
0x4072   :  { %9050 = vmatprep.subr.mxu0 %v12324_v58 }
0x4073   :  { %9051 = vmatpush3.msra.mxu0 %v11556_v18 }
0x4074   :  { %9052 = vmatprep.subr.mxu0 %v12324_v58 }
0x4075   :  { %9053 = vmatpush3.msra.mxu0 %v11563_v8 }
0x4076   :  { %9054 = vmatprep.subr.mxu0 %v12324_v58 }
0x4077   :  { %9055 = vmatpush3.msra.mxu0 %v11570_v9 }
0x4078   :  { %9070 = vmatprep.subr.mxu0 %v12324_v58 }
0x4130   :  { %v6520_v60 = vpop.f32.mrf.mxu0 }
0x4131   :  { %v6521_v24 = vadd.f32 %v11577_v17, %v6520_v60 }
0x4132   :  { %v9036_v54 = vpop.f32.mrf.mxu0 }
0x4133   :  { %v6524_v40 = vmax.f32 %v6521_v24, 0.0  ;;  %v9537_v24 = vld [vmem:[%s12235_s20 + $0x18] sm:$0xff]  ;;  %v9538_v54 = vld [vmem:[%s12235_s20 + $0x10] sm:$0xff] }
0x4135   :  { %9046 = vmatmul.mubr.msk.f32.vlgmr.msra.gmra.mxu1 %vm89_vm1, %v6524_v40 }
0x4136   :  { %9060 = vmatpush3.msra.mxu1 %v11584_v38  ;;  %9067 = vmatprep.mubr.msk.f32.mxu1 %vm9574_vm0, %v12324_v58 }
0x4137   :  { %9061 = vmatprep.subr.mxu1 %v12324_v58 }
0x4138   :  { %9062 = vmatpush3.msra.mxu1 %v11593_v2 }
0x4139   :  { %9063 = vmatprep.subr.mxu1 %v12324_v58 }
0x413a   :  { %9064 = vmatpush3.msra.mxu1 %v11600_v33 }
0x413b   :  { %9065 = vmatprep.subr.mxu1 %v12324_v58 }
0x413c   :  { %9066 = vmatpush3.msra.mxu1 %v11607_v11 }
0x413d   :  { %9081 = vmatprep.subr.mxu1 %v12324_v58 }
0x41f5   :  { %v6598_v23 = vpop.f32.mrf.mxu1 }
0x41f6   :  { %v6599_v35 = vadd.f32 %v6598_v23, %v6527_v21  ;;  %v9539_v21 = vld [vmem:[%s12235_s20 + $0x8] sm:$0xff]  ;;  %v9540_v23 = vld [vmem:[%s12235_s20] sm:$0xff] }
0x41f7   :  { %v9047_v32 = vpop.f32.mrf.mxu1 }
0x41f8   :  { %v6602_v39 = vadd.f32 %v11614_v37, %v6599_v35  ;;  %v9541_v35 = vld [vmem:[%s12236_s21 + $0x18] sm:$0xff]  ;;  %v9542_v32 = vld [vmem:[%s12236_s21 + $0x10] sm:$0xff] }
0x41fa   :  { %v6603_v60 = vmax.f32 %v6602_v39, 0.0  ;;  %v9544_v39 = vld [vmem:[%s12236_s21] sm:$0xff] }
0x41fc   :  { %9057 = vmatmul.mubr.msk.f32.vlgmr.msra.gmra.mxu0 %vm89_vm1, %v6603_v60 }
0x41fd   :  { %9071 = vmatpush3.msra.mxu0 %v9537_v24  ;;  %9078 = vmatprep.mubr.msk.f32.mxu0 %vm9574_vm0, %v12324_v58  ;;  %v11658_v24 = vld [vmem:[%s12231_s16] ss:$0 sm:$0xff] }
0x41fe   :  { %9072 = vmatprep.subr.mxu0 %v12324_v58 }
0x41ff   :  { %9073 = vmatpush3.msra.mxu0 %v9538_v54 }
0x4200   :  { %9074 = vmatprep.subr.mxu0 %v12324_v58 }
0x4201   :  { %9075 = vmatpush3.msra.mxu0 %v9539_v21 }
0x4202   :  { %9076 = vmatprep.subr.mxu0 %v12324_v58 }
0x4203   :  { %9077 = vmatpush3.msra.mxu0 %v9540_v23 }
0x4204   :  { %9079 = vmatmul.mubr.msk.f32.vlgmr.msra.gmra.mxu0 %vm89_vm1, %v6524_v40  ;;  %9092 = vmatprep.subr.mxu0 %v12324_v58  ;;  %v9543_v40 = vld [vmem:[%s12236_s21 + $0x8] sm:$0xff] }
0x4205   :  { %9093 = vmatpush3.msra.mxu0 %v9541_v35  ;;  %9100 = vmatprep.mubr.msk.f32.mxu0 %vm9574_vm0, %v12324_v58  ;;  %v9546_v35 = vld [vmem:[%s12237_s22 + $0x18] sm:$0xff] }
0x4206   :  { %9094 = vmatprep.subr.mxu0 %v12324_v58 }
0x4207   :  { %9095 = vmatpush3.msra.mxu0 %v9542_v32 }
0x4208   :  { %9096 = vmatprep.subr.mxu0 %v12324_v58 }
0x4209   :  { %9097 = vmatpush3.msra.mxu0 %v9543_v40  ;;  %v9547_v40 = vld [vmem:[%s12237_s22 + $0x10] sm:$0xff] }
0x420a   :  { %9098 = vmatprep.subr.mxu0 %v12324_v58 }
0x420b   :  { %9099 = vmatpush3.msra.mxu0 %v9544_v39 }
0x420c   :  { %9103 = vmatprep.subr.mxu0 %v12324_v58 }
0x42bc   :  { %v6673_v60 = vpop.f32.mrf.mxu0 }
0x42bd   :  { %v6674_v54 = vadd.f32 %v11658_v24, %v6673_v60  ;;  %v9548_v60 = vld [vmem:[%s12237_s22 + $0x8] sm:$0xff] }
0x42be   :  { %v9058_v21 = vpop.f32.mrf.mxu0 }
0x42bf   :  { %v6677_v23 = vmax.f32 %v6674_v54, 0.0  ;;  %v9549_v54 = vld [vmem:[%s12237_s22] sm:$0xff]  ;;  %s7842_s22 = sshll.u32 %s9579_s6, 4  ;;  %s7843_s22 = int_to_ptr.vmem [resolvable:$true] %s7842_s22 }
0x42c0   :  { %p9555_p1 = scmp.lt.s32.totalorder %s7843_s22, %s7843_s22 }
0x42c1   :  { %9068 = vmatmul.mubr.msk.f32.vlgmr.msra.gmra.mxu1 %vm89_vm1, %v6677_v23 }
0x42c2   :  { %9082 = vmatpush3.msra.mxu1 %v9546_v35  ;;  %9089 = vmatprep.mubr.msk.f32.mxu1 %vm9574_vm0, %v12324_v58 }
0x42c3   :  { %9083 = vmatprep.subr.mxu1 %v12324_v58 }
0x42c4   :  { %v6835_v32 = vpop.f32.mrf.mxu0  ;;  %9084 = vmatpush3.msra.mxu1 %v9547_v40 }
0x42c5   :  { %9085 = vmatprep.subr.mxu1 %v12324_v58 }
0x42c6   :  { %v9080_v39 = vpop.f32.mrf.mxu0  ;;  %9086 = vmatpush3.msra.mxu1 %v9548_v60 }
0x42c7   :  { %9087 = vmatprep.subr.mxu1 %v12324_v58 }
0x42c8   :  { %9088 = vmatpush3.msra.mxu1 %v9549_v54 }
0x42c9   :  { %9090 = vmatmul.mubr.msk.f32.vlgmr.msra.gmra.mxu1 %vm89_vm1, %v11349_v31  ;;  %7121 = vmatprep.subr.mxu1 %v11283_v19 }
0x42ca   :  { %7122 = vmatpush1.msra.mxu1 %v11289_v3  ;;  %7161 = vmatprep.mubr.f32.mxu1 %v12324_v58 }
0x42cb   :  { %7123 = vmatprep.subr.mxu1 %v11296_v13  ;;  %v7965_v13 = vld [vmem:[%s12323_s4 + $0x30] sm:$0xff] }
0x42cc   :  { %7124 = vmatpush1.msra.mxu1 %v11302_v10  ;;  %v6839_v10 = vadd.f32 %v7965_v13, %v6835_v32 }
0x42cd   :  { %7125 = vmatprep.subr.mxu1 %v11308_v5 }
0x42ce   :  { %7126 = vmatpush1.msra.mxu1 %v11314_v27 }
0x42cf   :  { %7127 = vmatprep.subr.mxu1 %v11320_v63 }
0x42d0   :  { %7128 = vmatpush1.msra.mxu1 %v11326_v20 }
0x42d1   :  { %9114 = vmatprep.subr.mxu1 %v12324_v58 }
0x4381   :  { %v11691_v31 = vpop.f32.mrf.mxu1 }
0x4383   :  { %v9069_v19 = vpop.f32.mrf.mxu1 }
0x4389   :  { %v6906_v3 = vpop.f32.mrf.mxu1 }
0x438a   :  { %6918 = vrot.lane.b32.xlu0 %v6906_v3, %s12353_s23  ;;  %v6910_v5 = vadd.f32 %v6906_v3, %v6839_v10 }
0x438b   :  { %v9091_v21 = vpop.f32.mrf.mxu1 }
0x438c   :  { %v7976_v27 = vmul.f32 -1.442695, %v6910_v5 }
0x438e   :  { %9288 = vpow2.f32 %v7976_v27 }
0x439b   :  { %v9289_v63 = vpop.eup %9288 }
0x439c   :  { %v6914_v23 = vadd.f32 1.0, %v9289_v63 }
0x439e   :  { %9290 = vrcp.f32 %v6914_v23 }
0x43ab   :  { %v9291_v20 = vpop.eup %9290 }
0x43ac   :  { %v6928_v32 = vsub.f32 1.0, %v9291_v20  ;;  %v6934_v3 = vmul.f32 %v9291_v20, %v11343_v6 }
0x43fc   :  { %v6919_v35 = vpop.permute.xlu0 %6918 }
0x43fd   :  { %v6921_v40 = vmul.f32 %v9291_v20, %v6919_v35 }
0x43ff   :  { %6923 = vrot.lane.b32.xlu1 %v6921_v40, %s12353_s23 }
0x4471   :  { %v6924_v39 = vpop.permute.xlu1 %6923 }
0x4472   :  { %v6926_v60 = vadd.f32 %v6924_v39, %v6839_v10 }
0x4474   :  { %9292 = vtanh.f32 %v6926_v60 }
0x4481   :  { %v9293_v54 = vpop.eup %9292 }
0x4482   :  { %6930 = vrot.lane.b32.xlu0 %v9293_v54, %s12354_s7 }
0x4486   :  { %7012 = vrot.lane.b32.xlu0 %v11425_v49, %s12325_s1 }
0x448a   :  { %7025 = vrot.lane.b32.xlu0 %v11518_v47, %s12354_s7 }
0x44f4   :  { %v6931_v19 = vpop.permute.xlu0 %6930 }
0x44f5   :  { %v6933_v21 = vmul.f32 %v6931_v19, %v6928_v32 }
0x44f7   :  { %v6935_v13 = vadd.f32 %v6934_v3, %v6933_v21 }
0x44f8   :  { %v7013_v49 = vpop.permute.xlu0 %7012 }
0x44f9   :  { %6937 = vrot.lane.b32.xlu1 %v6935_v13, %s12354_s7 }
0x44fd   :  { %7014 = vrot.lane.b32.xlu1 %v11518_v47, %s12325_s1 }
0x456b   :  { %v6938_v10 = vpop.permute.xlu1 %6937 }
0x456c   :  { %9101 = vmatmul.mubr.msk.f32.vlgmr.msra.gmra.mxu0 %vm89_vm1, %v6938_v10  ;;  %v12374_v10 = vld [vmem:[#allocation23_spill] sm:$0xff] }
0x456d   :  { %9104 = vmatpush3.msra.mxu0 %v11356_v1  ;;  %9111 = vmatprep.mubr.msk.f32.mxu0 %vm9574_vm0, %v12324_v58 }
0x456e   :  { %9105 = vmatprep.subr.mxu0 %v12324_v58 }
0x456f   :  { %9106 = vmatpush3.msra.mxu0 %v11365_v22  ;;  %v7015_v6 = vpop.permute.xlu1 %7014 }
0x4570   :  { %9107 = vmatprep.subr.mxu0 %v12324_v58  ;;  %v7016_v1 = vsel %vm89_vm1, %v7013_v49, %v7015_v6 }
0x4571   :  { %9108 = vmatpush3.msra.mxu0 %v11372_v48  ;;  %v7026_v48 = vpop.permute.xlu0 %7025 }
0x4572   :  { %9109 = vmatprep.subr.mxu0 %v12324_v58 }
0x4573   :  { %9110 = vmatpush3.msra.mxu0 %v11379_v57 }
0x4574   :  { %9125 = vmatprep.subr.mxu0 %v12324_v58 }
0x462c   :  { %v7007_v47 = vpop.f32.mrf.mxu0 }
0x462d   :  { %v7018_v5 = vadd.f32 %v7016_v1, %v7007_v47 }
0x462e   :  { %v9102_v27 = vpop.f32.mrf.mxu0 }
0x462f   :  { %v7978_v63 = vmul.f32 -1.442695, %v7018_v5 }
0x4631   :  { %9294 = vpow2.f32 %v7978_v63 }
0x463e   :  { %v9295_v22 = vpop.eup %9294 }
0x463f   :  { %v7022_v23 = vadd.f32 1.0, %v9295_v22 }
0x4641   :  { %9296 = vrcp.f32 %v7022_v23 }
0x464e   :  { %v9297_v20 = vpop.eup %9296 }
0x464f   :  { %v7028_v35 = vmul.f32 %v9297_v20, %v7026_v48  ;;  %v7035_v60 = vsub.f32 1.0, %v9297_v20  ;;  %v7041_v32 = vmul.f32 %v9297_v20, %v11387_v52  ;;  %v11737_v52 = vld [vmem:[%s12233_s18] ss:$0 sm:$0xff] }
0x4650   :  { %v11751_v49 = vadd.f32 %v11737_v52, %v11108_v56  ;;  %v11756_v27 = vadd.f32 %v11737_v52, %v11691_v31 }
0x4651   :  { %7030 = vrot.lane.b32.xlu1 %v7028_v35, %s12353_s23 }
0x4652   :  { %v4780_v5 = vand.u32 2147483647, %v11751_v49  ;;  %v6754_v23 = vand.u32 2147483647, %v11756_v27  ;;  %vm4778_vm10 = vcmp.ne.f32.partialorder %v11751_v49, %v11751_v49  ;;  %vm6752_vm11 = vcmp.ne.f32.partialorder %v11756_v27, %v11756_v27 }
0x4654   :  { %v4781_v22 = vsub.f32 0.0, %v4780_v5  ;;  %v6755_v48 = vsub.f32 0.0, %v6754_v23 }
0x4656   :  { %v4782_v20 = vmul.f32 1.442695, %v4781_v22  ;;  %v6756_v35 = vmul.f32 1.442695, %v6755_v48 }
0x46c3   :  { %v7031_v57 = vpop.permute.xlu1 %7030 }
0x46c4   :  { %v7033_v40 = vadd.f32 %v7031_v57, %v7007_v47 }
0x46c6   :  { %9298 = vtanh.f32 %v7033_v40 }
0x46d3   :  { %v9299_v39 = vpop.eup %9298 }
0x46d4   :  { %7037 = vrot.lane.b32.xlu0 %v9299_v39, %s12354_s7 }
0x4746   :  { %v7038_v54 = vpop.permute.xlu0 %7037 }
0x4747   :  { %v7040_v19 = vmul.f32 %v7038_v54, %v7035_v60 }
0x4749   :  { %v7042_v3 = vadd.f32 %v7041_v32, %v7040_v19 }
0x474b   :  { %7093 = vrot.lane.b32.xlu1 %v7042_v3, %s12354_s7 }
0x47bd   :  { %v7094_v21 = vpop.permute.xlu1 %7093 }
0x47be   :  { %7983 = vmatmul.mubr.msk.f32.vlgmr.msra.gmra.mxu1 %vm89_vm1, %v7094_v21 }
0x47bf   :  { %9115 = vmatpush3.msra.mxu1 %v11395_v34  ;;  %9122 = vmatprep.mubr.msk.f32.mxu1 %vm9574_vm0, %v12324_v58  ;;  %v12373_v34 = vld [vmem:[#allocation17_spill] sm:$0xff] }
0x47c0   :  { %9116 = vmatprep.subr.mxu1 %v12324_v58  ;;  %v11741_v13 = vadd.f32 %v11737_v52, %v12373_v34 }
0x47c1   :  { %9117 = vmatpush3.msra.mxu1 %v11404_v59 }
0x47c2   :  { %9118 = vmatprep.subr.mxu1 %v12324_v58  ;;  %v820_v59 = vand.u32 2147483647, %v11741_v13  ;;  %v817_v22 = vmax.f32 %v11741_v13, 0.0  ;;  %vm818_vm6 = vcmp.ne.f32.partialorder %v11741_v13, %v11741_v13 }
0x47c3   :  { %9119 = vmatpush3.msra.mxu1 %v11411_v44  ;;  %v11746_v44 = vadd.f32 %v11737_v52, %v12374_v10 }
0x47c4   :  { %9120 = vmatprep.subr.mxu1 %v12324_v58  ;;  %v821_v6 = vsub.f32 0.0, %v820_v59 }
0x47c5   :  { %9121 = vmatpush3.msra.mxu1 %v11418_v26  ;;  %v2806_v26 = vand.u32 2147483647, %v11746_v44  ;;  %vm2804_vm8 = vcmp.ne.f32.partialorder %v11746_v44, %v11746_v44 }
0x47c6   :  { %9136 = vmatprep.subr.mxu1 %v12324_v58  ;;  %v822_v1 = vmul.f32 1.442695, %v821_v6 }
0x47c7   :  { %v2807_v47 = vsub.f32 0.0, %v2806_v26 }
0x47c8   :  { %9300 = vpow2.f32 %v822_v1 }
0x47c9   :  { %v2808_v63 = vmul.f32 1.442695, %v2807_v47 }
0x47cb   :  { %9302 = vpow2.f32 %v2808_v63 }
0x47cc   :  { %9304 = vpow2.f32 %v4782_v20 }
0x47cd   :  { %9306 = vpow2.f32 %v6756_v35 }
0x47d5   :  { %v9301_v56 = vpop.eup %9300 }
0x47d6   :  { %v824_v57 = vadd.f32 1.0, %v9301_v56  ;;  %v827_v19 = vmul.f32 -0.5, %v9301_v56  ;;  %v830_v34 = vand.u32 2147483647, %v9301_v56 }
0x47d8   :  { %v9303_v40 = vpop.eup %9302  ;;  %9308 = vlog2.f32 %v824_v57  ;;  %v828_v21 = vadd.f32 1.0, %v827_v19  ;;  %vm831_vm3 = vcmp.lt.f32.partialorder %v830_v34, 0.0004427343 }
0x47d9   :  { %v2810_v39 = vadd.f32 1.0, %v9303_v40  ;;  %v9305_v60 = vpop.eup %9304  ;;  %v2813_v59 = vmul.f32 -0.5, %v9303_v40  ;;  %v2816_v63 = vand.u32 2147483647, %v9303_v40 }
0x47da   :  { %v4784_v31 = vadd.f32 1.0, %v9305_v60  ;;  %v9307_v54 = vpop.eup %9306  ;;  %v829_v26 = vmul.f32 %v9301_v56, %v828_v21  ;;  %v4787_v47 = vmul.f32 -0.5, %v9305_v60  ;;  %v7982_v56 = vld [vmem:[%s12310_s28 + $0x38] sm:$0xff]  ;;  %v2803_v21 = vmax.f32 %v11746_v44, 0.0 }
0x47db   :  { %9310 = vlog2.f32 %v2810_v39  ;;  %v6758_v32 = vadd.f32 1.0, %v9307_v54  ;;  %v2814_v1 = vadd.f32 1.0, %v2813_v59  ;;  %v6761_v39 = vmul.f32 -0.5, %v9307_v54 }
0x47dc   :  { %9312 = vlog2.f32 %v4784_v31  ;;  %v4788_v57 = vadd.f32 1.0, %v4787_v47  ;;  %vm2817_vm5 = vcmp.lt.f32.partialorder %v2816_v63, 0.0004427343  ;;  %v4790_v31 = vand.u32 2147483647, %v9305_v60 }
0x47dd   :  { %9314 = vlog2.f32 %v6758_v32  ;;  %v2815_v35 = vmul.f32 %v9303_v40, %v2814_v1  ;;  %v6762_v59 = vadd.f32 1.0, %v6761_v39 }
0x47de   :  { %v4789_v40 = vmul.f32 %v9305_v60, %v4788_v57  ;;  %vm4791_vm7 = vcmp.lt.f32.partialorder %v4790_v31, 0.0004427343  ;;  %v6751_v31 = vmax.f32 %v11756_v27, 0.0 }
0x47e5   :  { %v9309_v3 = vpop.eup %9308 }
0x47e6   :  { %v826_v10 = vmul.f32 0.6931472, %v9309_v3 }
0x47e8   :  { %v9311_v6 = vpop.eup %9310  ;;  %v832_v5 = vsel %vm831_vm3, %v829_v26, %v826_v10  ;;  %v6764_v26 = vand.u32 2147483647, %v9307_v54 }
0x47e9   :  { %v2812_v23 = vmul.f32 0.6931472, %v9311_v6  ;;  %v9313_v20 = vpop.eup %9312  ;;  %v833_v48 = vadd.f32 %v832_v5, %v817_v22  ;;  %v4777_v22 = vmax.f32 %v11751_v49, 0.0 }
0x47ea   :  { %v4786_v19 = vmul.f32 0.6931472, %v9313_v20  ;;  %v9315_v3 = vpop.eup %9314  ;;  %vm6765_vm9 = vcmp.lt.f32.partialorder %v6764_v26, 0.0004427343  ;;  %v12377_v26 = vld [vmem:[#allocation13_spill] sm:$0xff] }
0x47eb   :  { %v2818_v32 = vsel %vm2817_vm5, %v2815_v35, %v2812_v23  ;;  %v11767_v34 = vsel %vm818_vm6, %v11741_v13, %v833_v48  ;;  %v6760_v63 = vmul.f32 0.6931472, %v9315_v3  ;;  %v6763_v35 = vmul.f32 %v9307_v54, %v6762_v59  ;;  %v12376_v59 = vld [vmem:[#allocation11_spill] sm:$0xff] }
0x47ec   :  { %v2819_v6 = vadd.f32 %v2818_v32, %v2803_v21  ;;  %v4792_v5 = vsel %vm4791_vm7, %v4789_v40, %v4786_v19  ;;  %v1150_v20 = vmul.f32 2.0, %v11767_v34 }
0x47ed   :  { %v4793_v39 = vadd.f32 %v4792_v5, %v4777_v22  ;;  %v12379_v22 = vld [vmem:[#allocation5_spill] sm:$0xff] }
0x47ee   :  { %v11779_v57 = vsel %vm2804_vm8, %v11746_v44, %v2819_v6  ;;  %v1151_v32 = vmul.f32 %v1150_v20, %v11767_v34  ;;  %v12380_v20 = vld [vmem:[#allocation31_spill] sm:$0xff] }
0x47ef   :  { %v3124_v54 = vmul.f32 2.0, %v11779_v57  ;;  %v11793_v19 = vsel %vm4778_vm10, %v11751_v49, %v4793_v39 }
0x487e   :  { %v11769_v10 = vpop.f32.mrf.mxu1 }
0x487f   :  { %v7167_v1 = vadd.f32 %v7982_v56, %v11769_v10  ;;  %v7334_v47 = vadd.f32 %v11769_v10, %v9800_v15  ;;  %v6766_v15 = vsel %vm6765_vm9, %v6763_v35, %v6760_v63  ;;  %v5098_v56 = vmul.f32 2.0, %v11793_v19 }
0x4880   :  { %v7165_v23 = vpop.f32.mrf.mxu1  ;;  %v6767_v3 = vadd.f32 %v6766_v15, %v6751_v31 }
0x4881   :  { %v7168_v48 = vmax.f32 %v7167_v1, 0.0  ;;  %v7335_v60 = vmax.f32 %v7334_v47, 0.0  ;;  %v12378_v47 = vld [vmem:[#allocation18_spill] sm:$0xff] }
0x4882   :  { %v11805_v21 = vsel %vm6752_vm11, %v11756_v27, %v6767_v3 }
0x4883   :  { %7337 = vrot.lane.b32.xlu1 %v7335_v60, %s12354_s7  ;;  %9112 = vmatmul.mubr.msk.f32.vlgmr.msra.gmra.mxu0 %vm89_vm1, %v7168_v48  ;;  %v7072_v40 = vmul.f32 2.0, %v11805_v21 }
0x4884   :  { %9126 = vmatpush3.msra.mxu0 %v11435_v62  ;;  %9133 = vmatprep.mubr.msk.f32.mxu0 %vm9574_vm0, %v12324_v58  ;;  %v3125_v62 = vmul.f32 %v3124_v54, %v11779_v57 }
0x4885   :  { %9127 = vmatprep.subr.mxu0 %v12324_v58 }
0x4886   :  { %9128 = vmatpush3.msra.mxu0 %v11444_v43  ;;  %v11813_v43 = vld [vmem:[%s12375_s12] ss:$0 sm:$0xff] }
0x4887   :  { %1153 = vrot.lane.b32.xlu1 %v1151_v32, %s12330_s25  ;;  %9129 = vmatprep.subr.mxu0 %v12324_v58  ;;  %v11819_v6 = vadd.f32 %v11813_v43, %v12376_v59  ;;  %v11827_v5 = vadd.f32 %v11813_v43, %v12378_v47  ;;  %v11834_v48 = vadd.f32 %v11813_v43, %v12380_v20  ;;  %v12383_v59 = vld [vmem:[#allocation30_spill] sm:$0xff] }
0x4888   :  { %9130 = vmatpush3.msra.mxu0 %v11451_v16  ;;  %v5099_v16 = vmul.f32 %v5098_v56, %v11793_v19 }
0x4889   :  { %9131 = vmatprep.subr.mxu0 %v12324_v58  ;;  %v1131_v1 = vsub.f32 %v12377_v26, %v11819_v6  ;;  %v3105_v23 = vsub.f32 %v12379_v22, %v11827_v5  ;;  %v5079_v35 = vsub.f32 %v11022_v53, %v11834_v48  ;;  %v77_v53 = vld [vmem:[%s12381_s27] sm:$0xff]  ;;  %vm451_vm8 = vcmp.ne.f32.partialorder %v11819_v6, %v11819_v6 }
0x488a   :  { %9132 = vmatpush3.msra.mxu0 %v11458_v7  ;;  %v7073_v7 = vmul.f32 %v7072_v40, %v11805_v21 }
0x488b   :  { %3127 = vrot.lane.b32.xlu1 %v3125_v62, %s12330_s25  ;;  %9143 = vmatprep.subr.mxu0 %v12324_v58  ;;  %v1132_v63 = vmul.f32 %v1131_v1, %v1131_v1  ;;  %v3106_v60 = vmul.f32 %v3105_v23, %v3105_v23  ;;  %v5080_v39 = vmul.f32 %v5079_v35, %v5079_v35 }
0x488f   :  { %5101 = vrot.lane.b32.xlu1 %v5099_v16, %s12330_s25  ;;  %v12382_v16 = vld [vmem:[#allocation6_spill] sm:$0xff] }
0x4893   :  { %7075 = vrot.lane.b32.xlu1 %v7073_v7, %s12330_s25  ;;  %v11879_v7 = vadd.f32 %v11737_v52, %v11330_v12 }
0x4895   :  { %v5767_v1 = vand.u32 2147483647, %v11879_v7  ;;  %vm5765_vm6 = vcmp.ne.f32.partialorder %v11879_v7, %v11879_v7 }
0x4897   :  { %1134 = vrot.lane.b32.xlu1 %v1132_v63, %s9578_s2  ;;  %v5768_v22 = vsub.f32 0.0, %v5767_v1 }
0x4899   :  { %v5769_v20 = vmul.f32 1.442695, %v5768_v22 }
0x489b   :  { %3108 = vrot.lane.b32.xlu1 %v3106_v60, %s9578_s2 }
0x489f   :  { %5082 = vrot.lane.b32.xlu1 %v5080_v39, %s9578_s2 }
0x48f5   :  { %v7338_v15 = vpop.permute.xlu1 %7337 }
0x48f6   :  { %9134 = vmatmul.mubr.msk.f32.vlgmr.msra.gmra.mxu0 %vm89_vm1, %v7338_v15 }
0x48f7   :  { %9144 = vmatpush3.msra.mxu0 %v11466_v14  ;;  %9151 = vmatprep.mubr.msk.f32.mxu0 %vm9574_vm0, %v12324_v58  ;;  %v1148_v14 = vsub.f32 %v77_v53, %v11741_v13 }
0x48f8   :  { %9145 = vmatprep.subr.mxu0 %v12324_v58 }
0x48f9   :  { %v1154_v31 = vpop.permute.xlu1 %1153  ;;  %9146 = vmatpush3.msra.mxu0 %v11475_v29  ;;  %v1149_v32 = vmul.f32 %v1148_v14, %v1148_v14 }
0x48fa   :  { %9316 = vrcp.f32 %v1154_v31  ;;  %9147 = vmatprep.subr.mxu0 %v12324_v58 }
0x48fb   :  { %9148 = vmatpush3.msra.mxu0 %v11482_v42 }
0x48fc   :  { %9149 = vmatprep.subr.mxu0 %v12324_v58 }
0x48fd   :  { %9150 = vmatpush3.msra.mxu0 %v11489_v55 }
0x48fe   :  { %9165 = vmatprep.subr.mxu0 %v12324_v58 }
0x4907   :  { %v9317_v54 = vpop.eup %9316 }
0x4908   :  { %v11856_v29 = vmul.f32 %v9317_v54, %v1149_v32 }
0x4943   :  { %v7238_v3 = vpop.f32.mrf.mxu0 }
0x4944   :  { %v7239_v62 = vadd.f32 %v11496_v4, %v7238_v3  ;;  %v11870_v4 = vadd.f32 %v11737_v52, %v12382_v16 }
0x4945   :  { %v9113_v42 = vpop.f32.mrf.mxu0 }
0x4946   :  { %v7242_v56 = vmax.f32 %v7239_v62, 0.0  ;;  %v1819_v40 = vand.u32 2147483647, %v11870_v4  ;;  %vm1817_vm2 = vcmp.ne.f32.partialorder %v11870_v4, %v11870_v4 }
0x4948   :  { %9123 = vmatmul.mubr.msk.f32.vlgmr.msra.gmra.mxu1 %vm89_vm1, %v7242_v56 }
0x4949   :  { %9137 = vmatpush3.msra.mxu1 %v11503_v45  ;;  %9140 = vmatprep.mubr.msk.f32.mxu1 %vm9574_vm0, %v12324_v58  ;;  %v11875_v45 = vadd.f32 %v11737_v52, %v12383_v59 }
0x494a   :  { %9138 = vmatprep.subr.mxu1 %v12324_v58 }
0x494b   :  { %9139 = vmatpush3.msra.mxu1 %v11512_v0  ;;  %v1820_v0 = vsub.f32 0.0, %v1819_v40  ;;  %v3793_v26 = vand.u32 2147483647, %v11875_v45  ;;  %vm3791_vm5 = vcmp.ne.f32.partialorder %v11875_v45, %v11875_v45 }
0x494c   :  { %9154 = vmatprep.subr.mxu1 %v12324_v58 }
0x494d   :  { %v1821_v47 = vmul.f32 1.442695, %v1820_v0  ;;  %v3794_v63 = vsub.f32 0.0, %v3793_v26 }
0x494f   :  { %9318 = vpow2.f32 %v1821_v47  ;;  %v3795_v23 = vmul.f32 1.442695, %v3794_v63 }
0x4951   :  { %9320 = vpow2.f32 %v3795_v23 }
0x4952   :  { %9322 = vpow2.f32 %v5769_v20 }
0x495c   :  { %v9319_v53 = vpop.eup %9318 }
0x495d   :  { %v1823_v14 = vadd.f32 1.0, %v9319_v53  ;;  %v1829_v0 = vand.u32 2147483647, %v9319_v53 }
0x495e   :  { %v9321_v32 = vpop.eup %9320 }
0x495f   :  { %v9323_v54 = vpop.eup %9322  ;;  %v3797_v3 = vadd.f32 1.0, %v9321_v32  ;;  %v3800_v59 = vmul.f32 -0.5, %v9321_v32  ;;  %v3803_v47 = vand.u32 2147483647, %v9321_v32  ;;  %vm1830_vm12 = vcmp.lt.f32.partialorder %v1829_v0, 0.0004427343 }
0x4960   :  { %v5771_v62 = vadd.f32 1.0, %v9323_v54  ;;  %v5774_v20 = vmul.f32 -0.5, %v9323_v54 }
0x4961   :  { %v3801_v23 = vadd.f32 1.0, %v3800_v59  ;;  %vm11888_vm13 = vcmp.lt.f32.partialorder %v3803_v47, 0.0004427343 }
0x49b6   :  { %v11866_v55 = vpop.f32.mrf.mxu0 }
0x49b8   :  { %v9135_v13 = vpop.f32.mrf.mxu0 }
0x4a08   :  { %v7312_v60 = vpop.f32.mrf.mxu1 }
0x4a09   :  { %v11884_v35 = vadd.f32 %v11523_v28, %v7312_v60  ;;  %v1826_v28 = vmul.f32 -0.5, %v9319_v53 }
0x4a0a   :  { %v9124_v39 = vpop.f32.mrf.mxu1 }
0x4a0b   :  { %v7319_v12 = vand.u32 2147483647, %v11884_v35  ;;  %v1827_v40 = vadd.f32 1.0, %v1826_v28  ;;  %v3802_v28 = vmul.f32 %v9321_v32, %v3801_v23  ;;  %vm7317_vm15 = vcmp.ne.f32.partialorder %v11884_v35, %v11884_v35 }
0x4a0d   :  { %v7320_v15 = vsub.f32 0.0, %v7319_v12  ;;  %v1828_v22 = vmul.f32 %v9319_v53, %v1827_v40  ;;  %v7316_v53 = vmax.f32 %v11884_v35, 0.0  ;;  %v5777_v40 = vand.u32 2147483647, %v9323_v54 }
0x4a0f   :  { %v7321_v31 = vmul.f32 1.442695, %v7320_v15  ;;  %vm5778_vm3 = vcmp.lt.f32.partialorder %v5777_v40, 0.0004427343 }
0x4a11   :  { %9324 = vpow2.f32 %v7321_v31 }
0x4a12   :  { %9326 = vlog2.f32 %v1823_v14  ;;  %v1816_v14 = vmax.f32 %v11870_v4, 0.0 }
0x4a13   :  { %9328 = vlog2.f32 %v3797_v3 }
0x4a14   :  { %9330 = vlog2.f32 %v5771_v62 }
0x4a1e   :  { %v9325_v42 = vpop.eup %9324 }
0x4a1f   :  { %v7323_v56 = vadd.f32 1.0, %v9325_v42  ;;  %v9327_v13 = vpop.eup %9326  ;;  %v7326_v16 = vmul.f32 -0.5, %v9325_v42  ;;  %v7329_v60 = vand.u32 2147483647, %v9325_v42 }
0x4a20   :  { %v1825_v26 = vmul.f32 0.6931472, %v9327_v13  ;;  %v9329_v1 = vpop.eup %9328  ;;  %v5775_v13 = vadd.f32 1.0, %v5774_v20  ;;  %v5764_v20 = vmax.f32 %v11879_v7, 0.0 }
0x4a21   :  { %9332 = vlog2.f32 %v7323_v56  ;;  %v7327_v63 = vadd.f32 1.0, %v7326_v16  ;;  %v9331_v39 = vpop.eup %9330  ;;  %v3799_v15 = vmul.f32 0.6931472, %v9329_v1  ;;  %vm7330_vm14 = vcmp.lt.f32.partialorder %v7329_v60, 0.0004427343 }
0x4a22   :  { %v1831_v12 = vsel %vm1830_vm12, %v1828_v22, %v1825_v26  ;;  %v5773_v26 = vmul.f32 0.6931472, %v9331_v39  ;;  %v3790_v1 = vmax.f32 %v11875_v45, 0.0  ;;  %v5776_v32 = vmul.f32 %v9323_v54, %v5775_v13 }
0x4a23   :  { %v7328_v56 = vmul.f32 %v9325_v42, %v7327_v63  ;;  %v1832_v16 = vadd.f32 %v1831_v12, %v1816_v14  ;;  %v3805_v0 = vsel %vm11888_vm13, %v3802_v28, %v3799_v15  ;;  %vm2480_vm12 = vcmp.ne.f32.partialorder %v11827_v5, %v11827_v5 }
0x4a24   :  { %v3806_v22 = vadd.f32 %v3805_v0, %v3790_v1  ;;  %v5779_v23 = vsel %vm5778_vm3, %v5776_v32, %v5773_v26  ;;  %v7872_v0 = vld [vmem:[%s12381_s27 + $0x8] sm:$0xff] }
0x4a25   :  { %v11904_v63 = vsel %vm1817_vm2, %v11870_v4, %v1832_v16  ;;  %v5780_v39 = vadd.f32 %v5779_v23, %v5764_v20  ;;  %v3128_v16 = vpop.permute.xlu1 %3127  ;;  %v2135_v26 = vsub.f32 %v7872_v0, %v11870_v4  ;;  %vm4454_vm2 = vcmp.ne.f32.partialorder %v11834_v48, %v11834_v48 }
0x4a26   :  { %v2137_v60 = vmul.f32 2.0, %v11904_v63  ;;  %v11913_v54 = vsel %vm3791_vm5, %v11875_v45, %v3806_v22 }
0x4a27   :  { %v4111_v15 = vmul.f32 2.0, %v11913_v54  ;;  %v2136_v1 = vmul.f32 %v2135_v26, %v2135_v26 }
0x4a28   :  { %v2138_v12 = vmul.f32 %v2137_v60, %v11904_v63  ;;  %v7926_v60 = vld [vmem:[%s12381_s27 + $0x20] sm:$0xff] }
0x4a29   :  { %v4112_v14 = vmul.f32 %v4111_v15, %v11913_v54  ;;  %v5096_v15 = vsub.f32 %v7926_v60, %v11751_v49 }
0x4a2e   :  { %v9333_v31 = vpop.eup %9332 }
0x4a2f   :  { %v7325_v62 = vmul.f32 0.6931472, %v9333_v31  ;;  %v11922_v31 = vsel %vm5765_vm6, %v11879_v7, %v5780_v39 }
0x4a30   :  { %v6085_v3 = vmul.f32 2.0, %v11922_v31 }
0x4a31   :  { %v7331_v59 = vsel %vm7330_vm14, %v7328_v56, %v7325_v62  ;;  %v7981_v62 = vld [vmem:[%s12320_s8 + $0x38] sm:$0xff] }
0x4a32   :  { %v7332_v47 = vadd.f32 %v7331_v59, %v7316_v53 }
0x4a34   :  { %v11901_v42 = vsel %vm7317_vm15, %v11884_v35, %v7332_v47 }
0x4a35   :  { %7430 = vrot.lane.b32.xlu0 %v11901_v42, %s12330_s25 }
0x4a39   :  { %7510 = vrot.lane.b32.xlu0 %v11769_v10, %s12353_s23  ;;  %v6086_v10 = vmul.f32 %v6085_v3, %v11922_v31 }
0x4a3d   :  { %2140 = vrot.lane.b32.xlu0 %v2138_v12, %s12330_s25 }
0x4a41   :  { %4114 = vrot.lane.b32.xlu0 %v4112_v14, %s12330_s25  ;;  %v7962_v14 = vld [vmem:[%s12381_s27 + $0x30] sm:$0xff] }
0x4a45   :  { %6088 = vrot.lane.b32.xlu0 %v6086_v10, %s12330_s25 }
0x4aa7   :  { %v7431_v56 = vpop.permute.xlu0 %7430 }
0x4aa8   :  { %v7433_v28 = vmul.f32 %v7981_v62, %v7431_v56  ;;  %v7070_v62 = vsub.f32 %v7962_v14, %v11756_v27 }
0x4aaa   :  { %v7434_v13 = vadd.f32 %v7433_v28, %v11884_v35 }
0x4aab   :  { %v11934_v53 = vpop.permute.xlu0 %7510 }
0x4aac   :  { %7833 = vst.msk [vmem:[#allocation2] sm:$0xff] %vm483_vm4, %v7434_v13  ;;  %9141 = vmatmul.mubr.msk.f32.vlgmr.msra.gmra.mxu1 %vm483_vm4, %v7434_v13  ;;  %v7071_v13 = vmul.f32 %v7070_v62, %v7070_v62 }
0x4aad   :  { %9155 = vmatpush3.msra.mxu1 %v11547_v51  ;;  %9162 = vmatprep.mubr.msk.f32.mxu1 %vm9574_vm0, %v12324_v58  ;;  %v5102_v51 = vpop.permute.xlu1 %5101 }
0x4aae   :  { %9156 = vmatprep.subr.mxu1 %v12324_v58 }
0x4aaf   :  { %v2141_v40 = vpop.permute.xlu0 %2140  ;;  %9157 = vmatpush3.msra.mxu1 %v11556_v18  ;;  %v7890_v18 = vld [vmem:[%s12381_s27 + $0x10] sm:$0xff] }
0x4ab0   :  { %9334 = vrcp.f32 %v2141_v40  ;;  %9158 = vmatprep.subr.mxu1 %v12324_v58  ;;  %v3122_v47 = vsub.f32 %v7890_v18, %v11746_v44 }
0x4ab1   :  { %9159 = vmatpush3.msra.mxu1 %v11563_v8  ;;  %9336 = vrcp.f32 %v3128_v16  ;;  %v7076_v8 = vpop.permute.xlu1 %7075 }
0x4ab2   :  { %9160 = vmatprep.subr.mxu1 %v12324_v58  ;;  %v3123_v4 = vmul.f32 %v3122_v47, %v3122_v47 }
0x4ab3   :  { %v4115_v59 = vpop.permute.xlu0 %4114  ;;  %9161 = vmatpush3.msra.mxu1 %v11570_v9  ;;  %v7908_v9 = vld [vmem:[%s12381_s27 + $0x18] sm:$0xff] }
0x4ab4   :  { %9338 = vrcp.f32 %v4115_v59  ;;  %v4109_v20 = vsub.f32 %v7908_v9, %v11875_v45  ;;  %v5097_v45 = vmul.f32 %v5096_v15, %v5096_v15  ;;  %v12386_v15 = vld [vmem:[#allocation19_spill] sm:$0xff] }
0x4ab5   :  { %9340 = vrcp.f32 %v5102_v51  ;;  %v12000_v14 = vadd.f32 %v11813_v43, %v12386_v15 }
0x4ab6   :  { %9342 = vrcp.f32 %v7076_v8  ;;  %v4110_v44 = vmul.f32 %v4109_v20, %v4109_v20 }
0x4ab7   :  { %vm1493_vm11 = vcmp.ne.f32.partialorder %v12000_v14, %v12000_v14 }
0x4abd   :  { %v9335_v32 = vpop.eup %9334 }
0x4abe   :  { %v2144_v22 = vmul.f32 %v9335_v32, %v2136_v1  ;;  %v9337_v23 = vpop.eup %9336 }
0x4abf   :  { %v3131_v39 = vmul.f32 %v9337_v23, %v3123_v4 }
0x4ac0   :  { %2146 = vrot.lane.b32.xlu1 %v2144_v22, %s9578_s2 }
0x4ac1   :  { %v9339_v12 = vpop.eup %9338 }
0x4ac2   :  { %v4118_v3 = vmul.f32 %v9339_v12, %v4110_v44  ;;  %v9341_v10 = vpop.eup %9340 }
0x4ac3   :  { %v5105_v56 = vmul.f32 %v9341_v10, %v5097_v45  ;;  %v9343_v28 = vpop.eup %9342  ;;  %v12387_v45 = vld [vmem:[#allocation20_spill] sm:$0xff] }
0x4ac4   :  { %3133 = vrot.lane.b32.xlu1 %v3131_v39, %s9578_s2  ;;  %v7079_v16 = vmul.f32 %v9343_v28, %v7071_v13  ;;  %v2118_v62 = vsub.f32 %v12387_v45, %v12000_v14 }
0x4ac6   :  { %v2119_v13 = vmul.f32 %v2118_v62, %v2118_v62 }
0x4ac8   :  { %4120 = vrot.lane.b32.xlu1 %v4118_v3, %s9578_s2 }
0x4acc   :  { %5107 = vrot.lane.b32.xlu1 %v5105_v56, %s9578_s2  ;;  %v12388_v56 = vld [vmem:[#allocation26_spill] sm:$0xff] }
0x4acd   :  { %v12008_v28 = vadd.f32 %v11813_v43, %v12388_v56 }
0x4acf   :  { %vm3467_vm15 = vcmp.ne.f32.partialorder %v12008_v28, %v12008_v28 }
0x4ad0   :  { %7081 = vrot.lane.b32.xlu1 %v7079_v16, %s9578_s2  ;;  %v12389_v16 = vld [vmem:[#allocation28_spill] sm:$0xff] }
0x4b6c   :  { %v7504_v49 = vpop.f32.mrf.mxu1 }
0x4b6d   :  { %v7505_v40 = vadd.f32 %v11577_v17, %v7504_v49  ;;  %v4092_v49 = vsub.f32 %v12389_v16, %v12008_v28 }
0x4b6e   :  { %v9142_v59 = vpop.f32.mrf.mxu1 }
0x4b6f   :  { %v7508_v51 = vmax.f32 %v7505_v40, 0.0  ;;  %v4093_v40 = vmul.f32 %v4092_v49, %v4092_v49  ;;  %v6089_v59 = vpop.permute.xlu0 %6088 }
0x4b71   :  { %9152 = vmatmul.mubr.msk.f32.vlgmr.msra.gmra.mxu0 %vm89_vm1, %v7508_v51  ;;  %v12016_v51 = vadd.f32 %v11813_v43, %v11199_v30 }
0x4b72   :  { %9166 = vmatpush3.msra.mxu0 %v11584_v38  ;;  %9173 = vmatprep.mubr.msk.f32.mxu0 %vm9574_vm0, %v12324_v58 }
0x4b73   :  { %9167 = vmatprep.subr.mxu0 %v12324_v58  ;;  %vm5441_vm6 = vcmp.ne.f32.partialorder %v12016_v51, %v12016_v51 }
0x4b74   :  { %9168 = vmatpush3.msra.mxu0 %v11593_v2 }
0x4b75   :  { %9169 = vmatprep.subr.mxu0 %v12324_v58 }
0x4b76   :  { %9170 = vmatpush3.msra.mxu0 %v11600_v33 }
0x4b77   :  { %9171 = vmatprep.subr.mxu0 %v12324_v58 }
0x4b78   :  { %9172 = vmatpush3.msra.mxu0 %v11607_v11 }
0x4c31   :  { %v7582_v17 = vpop.f32.mrf.mxu0 }
0x4c32   :  { %v7583_v27 = vadd.f32 %v7582_v17, %v11934_v53  ;;  %v453_v17 = vand.u32 2147483647, %v11819_v6 }
0x4c33   :  { %v9153_v0 = vpop.f32.mrf.mxu0 }
0x4c34   :  { %v7586_v38 = vadd.f32 %v11614_v37, %v7583_v27  ;;  %v6066_v27 = vsub.f32 %v11204_v61, %v12016_v51  ;;  %v12024_v0 = vadd.f32 %v11813_v43, %v11516_v36  ;;  %v7944_v61 = vld [vmem:[%s12381_s27 + $0x28] sm:$0xff] }
0x4c36   :  { %v7587_v26 = vmax.f32 %v7586_v38, 0.0  ;;  %v454_v38 = vsub.f32 0.0, %v453_v17  ;;  %v7053_v30 = vsub.f32 %v11526_v41, %v12024_v0  ;;  %v1495_v41 = vand.u32 2147483647, %v12000_v14 }
0x4c38   :  { %9163 = vmatmul.mubr.msk.f32.vlgmr.msra.gmra.mxu1 %vm89_vm1, %v7587_v26  ;;  %v6067_v26 = vmul.f32 %v6066_v27, %v6066_v27  ;;  %v455_v36 = vmul.f32 1.442695, %v454_v38 }
0x4cf8   :  { %v7657_v18 = vpop.f32.mrf.mxu1 }
0x4cf9   :  { %v7658_v2 = vadd.f32 %v11658_v24, %v7657_v18  ;;  %v12032_v18 = vadd.f32 %v11813_v43, %v11866_v55 }
0x4cfa   :  { %v9164_v8 = vpop.f32.mrf.mxu1 }
0x4cfb   :  { %v7661_v1 = vmax.f32 %v7658_v2, 0.0  ;;  %v7054_v2 = vmul.f32 %v7053_v30, %v7053_v30  ;;  %v6083_v8 = vsub.f32 %v7944_v61, %v11879_v7  ;;  %v7414_v56 = vand.u32 2147483647, %v12032_v18 }
0x4cfd   :  { %9174 = vmatmul.mubr.msk.f32.vlgmr.msra.gmra.mxu0 %vm89_vm1, %v7661_v1  ;;  %v6084_v1 = vmul.f32 %v6083_v8, %v6083_v8  ;;  %v7415_v27 = vsub.f32 0.0, %v7414_v56 }
0x4dbd   :  { %v7731_v33 = vpop.f32.mrf.mxu0 }
0x4dbe   :  { %v11989_v58 = vadd.f32 %v11737_v52, %v7731_v33  ;;  %v1496_v33 = vsub.f32 0.0, %v1495_v41 }
0x4dbf   :  { %v9175_v11 = vpop.f32.mrf.mxu0 }
0x4dc0   :  { %v7738_v53 = vand.u32 2147483647, %v11989_v58  ;;  %v7735_v39 = vmax.f32 %v11989_v58, 0.0  ;;  %vm7736_vm1 = vcmp.ne.f32.partialorder %v11989_v58, %v11989_v58 }
0x4dc2   :  { %v7739_v47 = vsub.f32 0.0, %v7738_v53  ;;  %v2482_v53 = vand.u32 2147483647, %v11827_v5 }
0x4dc4   :  { %v7740_v32 = vmul.f32 1.442695, %v7739_v47  ;;  %v1497_v47 = vmul.f32 1.442695, %v1496_v33 }
0x4dc6   :  { %9344 = vpow2.f32 %v7740_v32  ;;  %v3469_v32 = vand.u32 2147483647, %v12008_v28 }
0x4dd3   :  { %v9345_v37 = vpop.eup %9344 }
0x4dd4   :  { %v7742_v9 = vadd.f32 1.0, %v9345_v37  ;;  %v7745_v22 = vmul.f32 -0.5, %v9345_v37  ;;  %v7748_v24 = vand.u32 2147483647, %v9345_v37 }
0x4dd6   :  { %9346 = vlog2.f32 %v7742_v9  ;;  %v7746_v23 = vadd.f32 1.0, %v7745_v22  ;;  %vm7749_vm0 = vcmp.lt.f32.partialorder %v7748_v24, 0.0004427343  ;;  %v4456_v9 = vand.u32 2147483647, %v11834_v48 }
0x4dd7   :  { %9348 = vrcp.f32 %v6089_v59  ;;  %v3470_v22 = vsub.f32 0.0, %v3469_v32 }
0x4dd8   :  { %v7747_v60 = vmul.f32 %v9345_v37, %v7746_v23  ;;  %9350 = vpow2.f32 %v455_v36  ;;  %v4457_v24 = vsub.f32 0.0, %v4456_v9  ;;  %v7416_v36 = vmul.f32 1.442695, %v7415_v27 }
0x4dd9   :  { %9352 = vpow2.f32 %v1497_v47 }
0x4de3   :  { %v9347_v4 = vpop.eup %9346 }
0x4de4   :  { %v7744_v20 = vmul.f32 0.6931472, %v9347_v4  ;;  %v9349_v55 = vpop.eup %9348  ;;  %v3471_v4 = vmul.f32 1.442695, %v3470_v22 }
0x4de5   :  { %v6092_v11 = vmul.f32 %v9349_v55, %v6084_v1  ;;  %v9351_v7 = vpop.eup %9350 }
0x4de6   :  { %v7750_v52 = vsel %vm7749_vm0, %v7747_v60, %v7744_v20  ;;  %v457_v23 = vadd.f32 1.0, %v9351_v7  ;;  %v4458_v20 = vmul.f32 1.442695, %v4457_v24  ;;  %v5443_v60 = vand.u32 2147483647, %v12016_v51 }
0x4de7   :  { %v7751_v12 = vadd.f32 %v7750_v52, %v7735_v39  ;;  %v9353_v39 = vpop.eup %9352  ;;  %v460_v45 = vmul.f32 -0.5, %v9351_v7  ;;  %v463_v17 = vand.u32 2147483647, %v9351_v7 }
0x4de8   :  { %v5444_v52 = vsub.f32 0.0, %v5443_v60  ;;  %v1499_v15 = vadd.f32 1.0, %v9353_v39  ;;  %v1502_v41 = vmul.f32 -0.5, %v9353_v39 }
0x4de9   :  { %v11996_v44 = vsel %vm7736_vm1, %v11989_v58, %v7751_v12  ;;  %v6430_v12 = vand.u32 2147483647, %v12024_v0  ;;  %v461_v49 = vadd.f32 1.0, %v460_v45  ;;  %vm464_vm7 = vcmp.lt.f32.partialorder %v463_v17, 0.0004427343 }
0x4dea   :  { %v7782_v3 = vmul.f32 2.0, %v11996_v44  ;;  %v1503_v33 = vadd.f32 1.0, %v1502_v41  ;;  %vm6428_vm1 = vcmp.ne.f32.partialorder %v12024_v0, %v12024_v0 }
0x4deb   :  { %v6431_v62 = vsub.f32 0.0, %v6430_v12  ;;  %v462_v30 = vmul.f32 %v9351_v7, %v461_v49 }
0x4dec   :  { %v7783_v10 = vmul.f32 %v7782_v3, %v11996_v44  ;;  %v5445_v3 = vmul.f32 1.442695, %v5444_v52 }
0x4dee   :  { %7785 = vrot.lane.b32.xlu0 %v7783_v10, %s12330_s25 }
0x4df2   :  { %2121 = vrot.lane.b32.xlu0 %v2119_v13, %s9578_s2 }
0x4df6   :  { %4095 = vrot.lane.b32.xlu0 %v4093_v40, %s9578_s2  ;;  %v6432_v40 = vmul.f32 1.442695, %v6431_v62  ;;  %v12390_v62 = vld [vmem:[#allocation16_spill] sm:$0xff] }
0x4df7   :  { %v1125_v56 = vadd.f32 1.1920929e-07, %v12390_v62 }
0x4dfa   :  { %1159 = vrot.lane.b32.xlu0 %v11856_v29, %s9578_s2  ;;  %v7763_v29 = vsub.f32 %v11884_v35, %v12032_v18  ;;  %v2483_v35 = vsub.f32 0.0, %v2482_v53  ;;  %v1505_v53 = vand.u32 2147483647, %v9353_v39 }
0x4dfc   :  { %v7764_v43 = vmul.f32 %v7763_v29, %v7763_v29  ;;  %v2484_v37 = vmul.f32 1.442695, %v2483_v35  ;;  %v450_v29 = vmax.f32 %v11819_v6, 0.0  ;;  %vm1506_vm9 = vcmp.lt.f32.partialorder %v1505_v53, 0.0004427343 }
0x4dfe   :  { %6069 = vrot.lane.b32.xlu0 %v6067_v26, %s9578_s2  ;;  %9354 = vpow2.f32 %v2484_v37  ;;  %v1504_v37 = vmul.f32 %v9353_v39, %v1503_v33 }
0x4dff   :  { %9356 = vlog2.f32 %v457_v23 }
0x4e00   :  { %9358 = vpow2.f32 %v3471_v4 }
0x4e01   :  { %9360 = vpow2.f32 %v4458_v20  ;;  %v1492_v20 = vmax.f32 %v12000_v14, 0.0 }
0x4e02   :  { %7056 = vrot.lane.b32.xlu0 %v7054_v2, %s9578_s2  ;;  %9362 = vlog2.f32 %v1499_v15 }
0x4e03   :  { %9364 = vpow2.f32 %v5445_v3 }
0x4e06   :  { %7766 = vrot.lane.b32.xlu0 %v7764_v43, %s9578_s2 }
0x4e0a   :  { %6094 = vrot.lane.b32.xlu0 %v6092_v11, %s9578_s2 }
0x4e0b   :  { %v9355_v10 = vpop.eup %9354 }
0x4e0c   :  { %v9357_v13 = vpop.eup %9356  ;;  %v2486_v16 = vadd.f32 1.0, %v9355_v10  ;;  %v2489_v47 = vmul.f32 -0.5, %v9355_v10  ;;  %v2492_v4 = vand.u32 2147483647, %v9355_v10 }
0x4e0d   :  { %v12051_v59 = vpop.eup %9358  ;;  %v459_v38 = vmul.f32 0.6931472, %v9357_v13 }
0x4e0e   :  { %9366 = vlog2.f32 %v2486_v16  ;;  %v12053_v26 = vpop.eup %9360  ;;  %v3473_v61 = vadd.f32 1.0, %v12051_v59  ;;  %v2490_v23 = vadd.f32 1.0, %v2489_v47  ;;  %v3476_v52 = vmul.f32 -0.5, %v12051_v59 }
0x4e0f   :  { %9368 = vpow2.f32 %v6432_v40  ;;  %v465_v2 = vsel %vm464_vm7, %v462_v30, %v459_v38  ;;  %v4460_v8 = vadd.f32 1.0, %v12053_v26  ;;  %v9363_v55 = vpop.eup %9362  ;;  %v4463_v39 = vmul.f32 -0.5, %v12053_v26 }
0x4e10   :  { %9370 = vlog2.f32 %v3473_v61  ;;  %v466_v43 = vadd.f32 %v465_v2, %v450_v29  ;;  %v12058_v1 = vpop.eup %9364  ;;  %v1501_v35 = vmul.f32 0.6931472, %v9363_v55  ;;  %v2491_v3 = vmul.f32 %v9355_v10, %v2490_v23  ;;  %v12391_v61 = vld [vmem:[#allocation21_spill] sm:$0xff] }
0x4e11   :  { %9372 = vpow2.f32 %v7416_v36  ;;  %v5447_v32 = vadd.f32 1.0, %v12058_v1  ;;  %vm2493_vm10 = vcmp.lt.f32.partialorder %v2492_v4, 0.0004427343  ;;  %v3477_v16 = vadd.f32 1.0, %v3476_v52 }
0x4e12   :  { %9374 = vlog2.f32 %v4460_v8  ;;  %v467_v11 = vsel %vm451_vm8, %v11819_v6, %v466_v43  ;;  %v1507_v24 = vsel %vm1506_vm9, %v1504_v37, %v1501_v35  ;;  %v2479_v40 = vmax.f32 %v11827_v5, 0.0  ;;  %v12392_v35 = vld [vmem:[#allocation7_spill] sm:$0xff] }
0x4e13   :  { %v1121_v9 = vadd.f32 1.1920929e-07, %v467_v11  ;;  %9376 = vlog2.f32 %v5447_v32  ;;  %v1508_v15 = vadd.f32 %v1507_v24, %v1492_v20  ;;  %v3479_v17 = vand.u32 2147483647, %v12051_v59 }
0x4e14   :  { %v4464_v38 = vadd.f32 1.0, %v4463_v39  ;;  %v2112_v36 = vadd.f32 1.1920929e-07, %v12391_v61  ;;  %v4466_v29 = vand.u32 2147483647, %v12053_v26  ;;  %v3478_v8 = vmul.f32 %v12051_v59, %v3477_v16  ;;  %v12393_v39 = vld [vmem:[#allocation29_spill] sm:$0xff] }
0x4e15   :  { %9378 = vlog2.f32 %v1121_v9  ;;  %v12078_v10 = vsel %vm1493_vm11, %v12000_v14, %v1508_v15  ;;  %vm3480_vm13 = vcmp.lt.f32.partialorder %v3479_v17, 0.0004427343  ;;  %v1144_v43 = vadd.f32 1.1920929e-07, %v11767_v34 }
0x4e16   :  { %v2108_v14 = vadd.f32 1.1920929e-07, %v12078_v10  ;;  %v4465_v33 = vmul.f32 %v12053_v26, %v4464_v38  ;;  %v5450_v53 = vmul.f32 -0.5, %v12058_v1  ;;  %v3466_v59 = vmax.f32 %v12008_v28, 0.0 }
0x4e17   :  { %vm4467_vm14 = vcmp.lt.f32.partialorder %v4466_v29, 0.0004427343  ;;  %v3099_v32 = vadd.f32 1.1920929e-07, %v12392_v35  ;;  %v1138_v9 = vmul.f32 %v467_v11, %v467_v11  ;;  %v4453_v34 = vmax.f32 %v11834_v48, 0.0 }
0x4e18   :  { %v5451_v26 = vadd.f32 1.0, %v5450_v53  ;;  %v2131_v52 = vadd.f32 1.1920929e-07, %v11904_v63  ;;  %v3118_v15 = vadd.f32 1.1920929e-07, %v11779_v57  ;;  %vm7412_vm7 = vcmp.ne.f32.partialorder %v12032_v18, %v12032_v18 }
0x4e1a   :  { %v5452_v63 = vmul.f32 %v12058_v1, %v5451_v26 }
0x4e1b   :  { %v9367_v7 = vpop.eup %9366 }
0x4e1c   :  { %v12064_v22 = vpop.eup %9368  ;;  %v2488_v60 = vmul.f32 0.6931472, %v9367_v7 }
0x4e1d   :  { %v6434_v6 = vadd.f32 1.0, %v12064_v22  ;;  %v9371_v12 = vpop.eup %9370 }
0x4e1e   :  { %v12070_v45 = vpop.eup %9372  ;;  %v2494_v13 = vsel %vm2493_vm10, %v2491_v3, %v2488_v60  ;;  %v3475_v27 = vmul.f32 0.6931472, %v9371_v12  ;;  %v5453_v60 = vand.u32 2147483647, %v12058_v1  ;;  %v5073_v1 = vadd.f32 1.1920929e-07, %v11029_v25 }
0x4e1f   :  { %v9375_v49 = vpop.eup %9374  ;;  %9380 = vlog2.f32 %v6434_v6  ;;  %v7418_v30 = vadd.f32 1.0, %v12070_v45  ;;  %v2495_v2 = vadd.f32 %v2494_v13, %v2479_v40  ;;  %v6440_v40 = vand.u32 2147483647, %v12064_v22 }
0x4e20   :  { %9382 = vlog2.f32 %v1125_v56  ;;  %v4462_v41 = vmul.f32 0.6931472, %v9375_v49  ;;  %v3481_v55 = vsel %vm3480_vm13, %v3478_v8, %v3475_v27  ;;  %v9377_v37 = vpop.eup %9376  ;;  %v4086_v56 = vadd.f32 1.1920929e-07, %v12393_v39 }
0x4e21   :  { %9384 = vlog2.f32 %v7418_v30  ;;  %v2496_v47 = vsel %vm2480_vm12, %v11827_v5, %v2495_v2  ;;  %v3482_v23 = vadd.f32 %v3481_v55, %v3466_v59  ;;  %v6437_v5 = vmul.f32 -0.5, %v12064_v22  ;;  %v12119_v30 = vpop.permute.xlu1 %1134 }
0x4e22   :  { %9386 = vlog2.f32 %v2112_v36  ;;  %v4468_v7 = vsel %vm4467_vm14, %v4465_v33, %v4462_v41  ;;  %v9379_v24 = vpop.eup %9378  ;;  %v3095_v4 = vadd.f32 1.1920929e-07, %v2496_v47  ;;  %v5449_v11 = vmul.f32 0.6931472, %v9377_v37 }
0x4e23   :  { %9388 = vlog2.f32 %v1144_v43  ;;  %v4469_v20 = vadd.f32 %v4468_v7, %v4453_v34  ;;  %v12100_v6 = vsel %vm3467_vm15, %v12008_v28, %v3482_v23  ;;  %v1123_v12 = vmul.f32 0.6931472, %v9379_v24 }
0x4e24   :  { %9390 = vlog2.f32 %v2108_v14  ;;  %vm12108_vm3 = vcmp.lt.f32.partialorder %v5453_v60, 0.0004427343  ;;  %v6438_v28 = vadd.f32 1.0, %v6437_v5  ;;  %v7421_v17 = vmul.f32 -0.5, %v12070_v45 }
0x4e25   :  { %9392 = vlog2.f32 %v3099_v32  ;;  %v4470_v13 = vsel %vm4454_vm2, %v11834_v48, %v4469_v20  ;;  %v5455_v57 = vsel %vm12108_vm3, %v5452_v63, %v5449_v11  ;;  %v4082_v27 = vadd.f32 1.1920929e-07, %v12100_v6 }
0x4e26   :  { %9394 = vrcp.f32 %v1138_v9  ;;  %v5440_v48 = vmax.f32 %v12016_v51, 0.0  ;;  %v12121_v36 = vmul.f32 2.0, %v1123_v12  ;;  %v5069_v2 = vadd.f32 1.1920929e-07, %v4470_v13 }
0x4e27   :  { %9396 = vlog2.f32 %v3095_v4  ;;  %v2125_v41 = vmul.f32 %v12078_v10, %v12078_v10  ;;  %v6439_v43 = vmul.f32 %v12064_v22, %v6438_v28  ;;  %v3112_v33 = vmul.f32 %v2496_v47, %v2496_v47  ;;  %v3109_v4 = vpop.permute.xlu1 %3108 }
0x4e28   :  { %9398 = vlog2.f32 %v2131_v52  ;;  %v5456_v14 = vadd.f32 %v5455_v57, %v5440_v48  ;;  %vm12126_vm5 = vcmp.lt.f32.partialorder %v6440_v40, 0.0004427343  ;;  %v7422_v59 = vadd.f32 1.0, %v7421_v17 }
0x4e29   :  { %9400 = vlog2.f32 %v3118_v15  ;;  %v7424_v7 = vand.u32 2147483647, %v12070_v45  ;;  %v4105_v37 = vadd.f32 1.1920929e-07, %v11913_v54  ;;  %v6427_v22 = vmax.f32 %v12024_v0, 0.0 }
0x4e2a   :  { %9402 = vlog2.f32 %v4086_v56  ;;  %v5086_v34 = vmul.f32 %v4470_v13, %v4470_v13  ;;  %v5457_v24 = vsel %vm5441_vm6, %v12016_v51, %v5456_v14  ;;  %v7423_v54 = vmul.f32 %v12070_v45, %v7422_v59 }
0x4e2b   :  { %9404 = vlog2.f32 %v4082_v27  ;;  %v5092_v60 = vadd.f32 1.1920929e-07, %v11793_v19  ;;  %v6060_v52 = vadd.f32 1.1920929e-07, %v11211_v50  ;;  %vm12143_vm0 = vcmp.lt.f32.partialorder %v7424_v7, 0.0004427343  ;;  %v5083_v17 = vpop.permute.xlu1 %5082 }
0x4e2c   :  { %v9381_v3 = vpop.eup %9380  ;;  %9406 = vlog2.f32 %v5073_v1  ;;  %v6056_v56 = vadd.f32 1.1920929e-07, %v5457_v24  ;;  %v7411_v19 = vmax.f32 %v12032_v18, 0.0  ;;  %v4099_v28 = vmul.f32 %v12100_v6, %v12100_v6 }
0x4e2d   :  { %v9383_v49 = vpop.eup %9382  ;;  %v6436_v38 = vmul.f32 0.6931472, %v9381_v3  ;;  %9408 = vlog2.f32 %v5069_v2  ;;  %v7047_v57 = vadd.f32 1.1920929e-07, %v11533_v46  ;;  %v1130_v40 = vmul.f32 %v12390_v62, %v12390_v62 }
0x4e2e   :  { %v9385_v29 = vpop.eup %9384  ;;  %v1127_v8 = vmul.f32 0.6931472, %v9383_v49  ;;  %9410 = vrcp.f32 %v3112_v33 }
0x4e2f   :  { %v9387_v55 = vpop.eup %9386  ;;  %v6442_v32 = vsel %vm12126_vm5, %v6439_v43, %v6436_v38  ;;  %v7420_v47 = vmul.f32 0.6931472, %v9385_v29  ;;  %9412 = vlog2.f32 %v4105_v37  ;;  %v12176_v53 = vpop.permute.xlu1 %2146  ;;  %v1137_v7 = vadd.f32 %v12119_v30, %v1130_v40 }
0x4e30   :  { %v9389_v10 = vpop.eup %9388  ;;  %v2114_v23 = vmul.f32 0.6931472, %v9387_v55  ;;  %v12138_v26 = vmul.f32 2.0, %v1127_v8  ;;  %v6443_v20 = vadd.f32 %v6442_v32, %v6427_v22  ;;  %9414 = vrcp.f32 %v2125_v41 }
0x4e31   :  { %v9391_v9 = vpop.eup %9390  ;;  %v1146_v12 = vmul.f32 0.6931472, %v9389_v10  ;;  %v7426_v51 = vsel %vm12143_vm0, %v7423_v54, %v7420_v47  ;;  %9416 = vrcp.f32 %v5086_v34  ;;  %v3104_v55 = vmul.f32 %v12392_v35, %v12392_v35 }
0x4e32   :  { %v9393_v5 = vpop.eup %9392  ;;  %v2110_v3 = vmul.f32 0.6931472, %v9391_v9  ;;  %v12152_v45 = vmul.f32 2.0, %v2114_v23  ;;  %v6444_v49 = vsel %vm6428_vm1, %v12024_v0, %v6443_v20  ;;  %9418 = vlog2.f32 %v5092_v60 }
0x4e33   :  { %v9395_v15 = vpop.eup %9394  ;;  %v3101_v16 = vmul.f32 0.6931472, %v9393_v5  ;;  %9420 = vlog2.f32 %v6060_v52  ;;  %v7427_v27 = vadd.f32 %v7426_v51, %v7411_v19  ;;  %v1129_v48 = vsub.f32 %v12121_v36, %v12138_v26 }
0x4e34   :  { %v9397_v63 = vpop.eup %9396  ;;  %v12162_v2 = vmul.f32 2.0, %v2110_v3  ;;  %9422 = vlog2.f32 %v6056_v56  ;;  %v2117_v0 = vmul.f32 %v12391_v61, %v12391_v61  ;;  %v12166_v8 = vadd.f32 0.9189385, %v1146_v12 }
0x4e35   :  { %v9399_v13 = vpop.eup %9398  ;;  %v3097_v38 = vmul.f32 0.6931472, %v9397_v63  ;;  %v7043_v41 = vadd.f32 1.1920929e-07, %v6444_v49  ;;  %9424 = vrcp.f32 %v4099_v28  ;;  %v3102_v62 = vmul.f32 2.0, %v3101_v16  ;;  %v3134_v63 = vpop.permute.xlu1 %3133 }
0x4e36   :  { %v9401_v1 = vpop.eup %9400  ;;  %v2133_v29 = vmul.f32 0.6931472, %v9399_v13  ;;  %v2116_v14 = vsub.f32 %v12162_v2, %v12152_v45  ;;  %9426 = vlog2.f32 %v7047_v57  ;;  %v7428_v33 = vsel %vm7412_vm7, %v12032_v18, %v7427_v27  ;;  %v7980_v27 = vld [vmem:[%s12381_s27 + $0x38] sm:$0xff] }
0x4e37   :  { %v9403_v6 = vpop.eup %9402  ;;  %v7757_v61 = vadd.f32 1.1920929e-07, %v11901_v42  ;;  %v3098_v37 = vmul.f32 2.0, %v3097_v38  ;;  %v3120_v10 = vmul.f32 0.6931472, %v9401_v1  ;;  %v6073_v47 = vmul.f32 %v5457_v24, %v5457_v24 }
0x4e38   :  { %v9405_v43 = vpop.eup %9404  ;;  %v4088_v32 = vmul.f32 0.6931472, %v9403_v6  ;;  %v3111_v9 = vadd.f32 %v3109_v4, %v3104_v55  ;;  %v12179_v23 = vadd.f32 0.9189385, %v2133_v29  ;;  %9428 = vlog2.f32 %v7043_v41 }
0x4e39   :  { %v9407_v59 = vpop.eup %9406  ;;  %v3103_v35 = vsub.f32 %v3098_v37, %v3102_v62  ;;  %v4084_v18 = vmul.f32 0.6931472, %v9405_v43  ;;  %v7753_v20 = vadd.f32 1.1920929e-07, %v7428_v33  ;;  %v5078_v5 = vmul.f32 %v11029_v25, %v11029_v25  ;;  %v4121_v36 = vpop.permute.xlu1 %4120 }
0x4e3a   :  { %v9409_v22 = vpop.eup %9408  ;;  %v5075_v60 = vmul.f32 0.6931472, %v9407_v59  ;;  %v6079_v30 = vadd.f32 1.1920929e-07, %v11922_v31  ;;  %v1140_v11 = vmul.f32 %v9395_v15, %v1137_v7  ;;  %v3121_v4 = vadd.f32 0.9189385, %v3120_v10 }
0x4e3b   :  { %v9411_v54 = vpop.eup %9410  ;;  %v5071_v24 = vmul.f32 0.6931472, %v9409_v22  ;;  %v4089_v12 = vmul.f32 2.0, %v4088_v32  ;;  %v5085_v56 = vadd.f32 %v5083_v17, %v5078_v5  ;;  %v7066_v19 = vadd.f32 1.1920929e-07, %v11805_v21 }
0x4e3c   :  { %v9413_v52 = vpop.eup %9412  ;;  %v3114_v3 = vmul.f32 %v9411_v54, %v3111_v9  ;;  %v7060_v16 = vmul.f32 %v6444_v49, %v6444_v49  ;;  %v4085_v25 = vmul.f32 2.0, %v4084_v18  ;;  %v5076_v31 = vmul.f32 2.0, %v5075_v60 }
0x4e3d   :  { %v9415_v51 = vpop.eup %9414  ;;  %v4107_v40 = vmul.f32 0.6931472, %v9413_v52  ;;  %v4091_v15 = vmul.f32 %v12393_v39, %v12393_v39  ;;  %v1141_v21 = vadd.f32 %v1140_v11, %v1129_v48  ;;  %v5072_v49 = vmul.f32 2.0, %v5071_v24 }
0x4e3e   :  { %v9417_v13 = vpop.eup %9416  ;;  %v4090_v38 = vsub.f32 %v4085_v25, %v4089_v12  ;;  %v3115_v6 = vadd.f32 %v3114_v3, %v3103_v35  ;;  %v7780_v43 = vsub.f32 %v7980_v27, %v11989_v58  ;;  %v3136_v5 = vadd.f32 %v3134_v63, %v3121_v4 }
0x4e3f   :  { %v9419_v57 = vpop.eup %9418  ;;  %v5088_v29 = vmul.f32 %v9417_v13, %v5085_v56  ;;  %v5077_v59 = vsub.f32 %v5072_v49, %v5076_v31  ;;  %v4108_v32 = vadd.f32 0.9189385, %v4107_v40  ;;  %v7871_v7 = vadd.f32 -1.0, %v1141_v21  ;;  %v5108_v56 = vpop.permute.xlu1 %5107 }
0x4e40   :  { %v9421_v17 = vpop.eup %9420  ;;  %v5094_v26 = vmul.f32 0.6931472, %v9419_v57  ;;  %v6065_v52 = vmul.f32 %v11211_v50, %v11211_v50  ;;  %v7052_v40 = vmul.f32 %v11533_v46, %v11533_v46  ;;  %v7762_v46 = vmul.f32 %v11901_v42, %v11901_v42 }
0x4e41   :  { %v9423_v2 = vpop.eup %9422 }
0x4e42   :  { %v9425_v55 = vpop.eup %9424  ;;  %v6058_v22 = vmul.f32 0.6931472, %v9423_v2 }
0x4e43   :  { %v9427_v48 = vpop.eup %9426 }
0x4e44   :  { %v7049_v60 = vmul.f32 0.6931472, %v9427_v48 }
0x4e46   :  { %v7050_v31 = vmul.f32 2.0, %v7049_v60 }
0x4e60   :  { %v7786_v34 = vpop.permute.xlu0 %7785 }
0x4e61   :  { %9430 = vrcp.f32 %v7786_v34  ;;  %v9429_v34 = vpop.eup %9428 }
0x4e62   :  { %9432 = vlog2.f32 %v7757_v61  ;;  %v6062_v61 = vmul.f32 0.6931472, %v9421_v17  ;;  %v7045_v13 = vmul.f32 0.6931472, %v9429_v34 }
0x4e63   :  { %9434 = vrcp.f32 %v6073_v47  ;;  %v7907_v47 = vadd.f32 -1.0, %v3115_v6 }
0x4e64   :  { %v2122_v45 = vpop.permute.xlu0 %2121  ;;  %9436 = vlog2.f32 %v7753_v20  ;;  %v7781_v20 = vmul.f32 %v7780_v43, %v7780_v43 }
0x4e65   :  { %v2124_v28 = vadd.f32 %v2122_v45, %v2117_v0  ;;  %9438 = vlog2.f32 %v6079_v30  ;;  %v7770_v0 = vmul.f32 %v7428_v33, %v7428_v33  ;;  %v5089_v33 = vadd.f32 %v5088_v29, %v5077_v59 }
0x4e66   :  { %9440 = vlog2.f32 %v7066_v19  ;;  %v6063_v30 = vmul.f32 2.0, %v6062_v61  ;;  %v6059_v19 = vmul.f32 2.0, %v6058_v22 }
0x4e67   :  { %v2127_v1 = vmul.f32 %v9415_v51, %v2124_v28  ;;  %9442 = vrcp.f32 %v7060_v16  ;;  %v4123_v16 = vadd.f32 %v4121_v36, %v4108_v32 }
0x4e68   :  { %v4096_v41 = vpop.permute.xlu0 %4095  ;;  %9444 = vrcp.f32 %v7770_v0  ;;  %v6064_v57 = vsub.f32 %v6059_v19, %v6063_v30 }
0x4e69   :  { %v2128_v39 = vadd.f32 %v2127_v1, %v2116_v14  ;;  %v4098_v62 = vadd.f32 %v4096_v41, %v4091_v15  ;;  %v2149_v14 = vadd.f32 %v12176_v53, %v12179_v23  ;;  %v7943_v53 = vadd.f32 -1.0, %v5089_v33 }
0x4e6a   :  { %v5095_v23 = vadd.f32 0.9189385, %v5094_v26  ;;  %v7046_v1 = vmul.f32 2.0, %v7045_v13 }
0x4e6b   :  { %v7889_v37 = vadd.f32 -1.0, %v2128_v39  ;;  %v4101_v10 = vmul.f32 %v9425_v55, %v4098_v62 }
0x4e6c   :  { %v1160_v9 = vpop.permute.xlu0 %1159  ;;  %v5110_v27 = vadd.f32 %v5108_v56, %v5095_v23  ;;  %v7051_v62 = vsub.f32 %v7046_v1, %v7050_v31 }
0x4e6d   :  { %v2130_v58 = vadd.f32 %v7889_v37, %v7871_v7  ;;  %v4102_v35 = vadd.f32 %v4101_v10, %v4090_v38  ;;  %v1162_v18 = vadd.f32 %v1160_v9, %v12166_v8  ;;  %v7082_v9 = vpop.permute.xlu1 %7081 }
0x4e6e   :  { %v9431_v54 = vpop.eup %9430 }
0x4e6f   :  { %v9433_v11 = vpop.eup %9432  ;;  %v3117_v24 = vadd.f32 %v7907_v47, %v2130_v58  ;;  %v7925_v12 = vadd.f32 -1.0, %v4102_v35  ;;  %v2150_v51 = vadd.f32 %v2149_v14, %v1162_v18  ;;  %v7789_v3 = vmul.f32 %v9431_v54, %v7781_v20 }
0x4e70   :  { %v6070_v45 = vpop.permute.xlu0 %6069  ;;  %v9435_v8 = vpop.eup %9434  ;;  %v7759_v50 = vmul.f32 0.6931472, %v9433_v11 }
0x4e71   :  { %v4104_v28 = vadd.f32 %v7925_v12, %v3117_v24  ;;  %v3137_v25 = vadd.f32 %v3136_v5, %v2150_v51  ;;  %v6072_v4 = vadd.f32 %v6070_v45, %v6065_v52  ;;  %7791 = vrot.lane.b32.xlu0 %v7789_v3, %s9578_s2  ;;  %v9437_v63 = vpop.eup %9436  ;;  %v7776_v52 = vadd.f32 1.1920929e-07, %v11996_v44 }
0x4e72   :  { %v9439_v15 = vpop.eup %9438  ;;  %v7755_v0 = vmul.f32 0.6931472, %v9437_v63  ;;  %v7760_v59 = vmul.f32 2.0, %v7759_v50 }
0x4e73   :  { %v5091_v17 = vadd.f32 %v7943_v53, %v4104_v28  ;;  %v6075_v21 = vmul.f32 %v9435_v8, %v6072_v4  ;;  %v4124_v49 = vadd.f32 %v4123_v16, %v3137_v25  ;;  %v9441_v2 = vpop.eup %9440  ;;  %v6081_v43 = vmul.f32 0.6931472, %v9439_v15 }
0x4e74   :  { %v7057_v38 = vpop.permute.xlu0 %7056  ;;  %v9443_v39 = vpop.eup %9442  ;;  %v7068_v32 = vmul.f32 0.6931472, %v9441_v2  ;;  %v7756_v37 = vmul.f32 2.0, %v7755_v0  ;;  %9446 = vlog2.f32 %v7776_v52 }
0x4e75   :  { %v6076_v6 = vadd.f32 %v6075_v21, %v6064_v57  ;;  %v7059_v29 = vadd.f32 %v7057_v38, %v7052_v40  ;;  %v5111_v41 = vadd.f32 %v5110_v27, %v4124_v49  ;;  %v9445_v26 = vpop.eup %9444  ;;  %v6082_v14 = vadd.f32 0.9189385, %v6081_v43 }
0x4e76   :  { %v7761_v47 = vsub.f32 %v7756_v37, %v7760_v59  ;;  %v7069_v58 = vadd.f32 0.9189385, %v7068_v32 }
0x4e77   :  { %v7961_v55 = vadd.f32 -1.0, %v6076_v6  ;;  %v7062_v61 = vmul.f32 %v9443_v39, %v7059_v29 }
0x4e78   :  { %v7767_v36 = vpop.permute.xlu0 %7766  ;;  %v7084_v54 = vadd.f32 %v7082_v9, %v7069_v58 }
0x4e79   :  { %v6078_v48 = vadd.f32 %v7961_v55, %v5091_v17  ;;  %v7063_v7 = vadd.f32 %v7062_v61, %v7051_v62  ;;  %v7769_v10 = vadd.f32 %v7767_v36, %v7762_v46 }
0x4e7b   :  { %v7979_v22 = vadd.f32 -1.0, %v7063_v7  ;;  %v7772_v33 = vmul.f32 %v9445_v26, %v7769_v10 }
0x4e7c   :  { %v6095_v34 = vpop.permute.xlu0 %6094 }
0x4e7d   :  { %v7065_v35 = vadd.f32 %v7979_v22, %v6078_v48  ;;  %v7773_v18 = vadd.f32 %v7772_v33, %v7761_v47  ;;  %v6097_v20 = vadd.f32 %v6095_v34, %v6082_v14 }
0x4e7f   :  { %v7991_v60 = vadd.f32 -1.0, %v7773_v18  ;;  %v6098_v42 = vadd.f32 %v6097_v20, %v5111_v41 }
0x4e81   :  { %v7775_v5 = vadd.f32 %v7991_v60, %v7065_v35  ;;  %v7085_v30 = vadd.f32 %v7084_v54, %v6098_v42  ;;  %v9447_v11 = vpop.eup %9446 }
0x4e82   :  { %v7778_v24 = vmul.f32 0.6931472, %v9447_v11 }
0x4e83   :  { %7797 = vrot.lane.b32.xlu1 %v7775_v5, %s12330_s25 }
0x4e84   :  { %v7779_v12 = vadd.f32 0.9189385, %v7778_v24 }
0x4ee3   :  { %v7792_v51 = vpop.permute.xlu0 %7791 }
0x4ee4   :  { %v7794_v3 = vadd.f32 %v7792_v51, %v7779_v12 }
0x4ee6   :  { %v7795_v53 = vadd.f32 %v7794_v3, %v7085_v30 }
0x4ee8   :  { %7813 = vrot.lane.b32.xlu0 %v7795_v53, %s12330_s25  ;;  %s9550_s25 = scalar_lea.vmem %s7843_s22, 128 }
0x4ee9   :  { %p9551_p0 = scmp.ne.s32.totalorder %s7843_s22, %s9550_s25  ;;  %p9556_p2 = scmp.lt.s32.totalorder %s9550_s25, %s9550_s25 }
0x4eeb   :  { %p9557_p3 = por %p9556_p2, %p9555_p1 }
0x4eed   :  { %p9558_p4 = pnand %p9557_p3, %p9551_p0 }
0x4ef5   :  { %v7798_v23 = vpop.permute.xlu1 %7797 }
0x4ef6   :  { %v7800_v56 = vsel %vm483_vm4, %v7798_v23, 0.0 }
0x4ef7   :  { %7801 = vadd.xlane.f32.xlu1 %v7800_v56 }
0x4f5a   :  { %v7814_v19 = vpop.permute.xlu0 %7813 }
0x4f5b   :  { %v7816_v45 = vsel %vm483_vm4, %v7814_v19, 0.0 }
0x4f5c   :  { %7817 = vadd.xlane.f32.xlu0 %v7816_v45 }
0x4f80   :  { %v7802_v13 = vpop.xlane.xlu1 %7801 }
0x4f81   :  { %v7803_v8 = vrot.slane %v7802_v13, 4 }
0x4f83   :  { %v7804_v44 = vadd.f32 %v7803_v8, %v7802_v13 }
0x4f85   :  { %v7805_v16 = vrot.slane %v7804_v44, 2 }
0x4f87   :  { %v7806_v28 = vadd.f32 %v7805_v16, %v7804_v44 }
0x4f89   :  { %v7807_v25 = vrot.slane %v7806_v28, 1 }
0x4f8b   :  { %v7808_v4 = vadd.f32 %v7807_v25, %v7806_v28 }
0x4f8d   :  { %9176 = vpush %v7808_v4 }
0x4f8e   :  { %9561 = shalt.err (!%p9558_p4)
}
0x4f8f   :  { %s12400_s1 = sld [smem:[#allocation43_spill]]  ;;  %v7826_v17 = vlaneseq  ;;  %vm7831_vm8 = vcmask 8192  }
0x4f90   :  { %s12401_s12 = sld [smem:[#allocation42_spill]] }
0x4f91   :  { %v7827_v21 = vand.u32 127, %v7826_v17 }
0x4f93   :  { %vm7828_vm4 = vcmp.eq.s32.totalorder %v7827_v21, 0 }
0x4f95   :  { %7845 = dma.vmem_to_hbm [thread:$0]  %s7843_s22, 128, %s12400_s1, [#allocation3]  }
0x4fbe   :  { %s9177_s18 = spop %9176 }
0x4fbf   :  { %v7810_v49 = vstv %s9177_s18 }
0x4fc0   :  { %v7811_v1 = vmul.f32 0.5, %v7810_v49 }
0x4fe5   :  { %v7818_v63 = vpop.xlane.xlu0 %7817 }
0x4fe6   :  { %v7819_v50 = vrot.slane %v7818_v63, 4 }
0x4fe8   :  { %v7820_v57 = vadd.f32 %v7819_v50, %v7818_v63 }
0x4fea   :  { %v7821_v31 = vrot.slane %v7820_v57, 2 }
0x4fec   :  { %v7822_v40 = vadd.f32 %v7821_v31, %v7820_v57 }
0x4fee   :  { %v7823_v15 = vrot.slane %v7822_v40, 1 }
0x4ff0   :  { %v7824_v27 = vadd.f32 %v7823_v15, %v7822_v40 }
0x4ff2   :  { %9178 = vpush %v7824_v27 }
0x5023   :  { %s9179_s24 = spop %9178 }
0x5024   :  { %v7829_v38 = vstv %s9179_s24 }
0x5025   :  { %v7830_v2 = vsel %vm7828_vm4, %v7811_v1, %v7829_v38 }
0x5026   :  { %7832 = vst.msk [vmem:[%s12401_s12] sm:$0x1] %vm7831_vm8, %v7830_v2 }
0x5027   :  { %9570 = dma.done.wait [#allocation3], 128  }
0x5028   :  { %9571 = vsyncadd [#allocation3], 4294967168 }
0x5029   :  { %7851 = vsyncpa [#allocation3], 1 }

</bundles_post_ra>
